<compile_context>
chip_gen: v7x
topology: tpu7x:2x2x1
jax: 0.10.0
libtpu: 0.0.40
codegen_flags: <defaults>
</compile_context>

<pallas_src>
import functools
import math

import jax
import jax.numpy as jnp
from jax import lax
from jax.experimental import pallas as pl
from jax.experimental.pallas import tpu as pltpu


def _round_up(v, m):
    return (v + m - 1) // m * m


# ---------------------------------------------------------------------------
# Kernel 1: hw = sin(x @ W1^T + b1) @ W2^T   (per-node scalar), row-tiled.
#   - matmul in bf16 on the MXU, f32 accumulation
#   - the W2 contraction is a VPU mul + lane reduce (out_features == 1)
# ---------------------------------------------------------------------------
def _lin1_fold_kernel(x_ref, w1t_ref, b1_ref, w2_ref, hw_ref):
    h = jnp.dot(x_ref[...], w1t_ref[...], preferred_element_type=jnp.float32)
    h = jnp.sin(h + b1_ref[...])                                  # (tm1, dp) f32
    hw_ref[...] = jnp.sum(h * w2_ref[...], axis=1, keepdims=True  # (tm1, 1)  f32
                          ).astype(hw_ref.dtype)


# ---------------------------------------------------------------------------
# Kernel 2: per (row tile i, K tile k) of the dense adjacency A:
#   z_acc += A[i, k] . hw[k]        (bf16 A stream, f32 accumulate, VPU+XLU)
# at the last K step:
#   y = sin(z + b2); padded rows masked; write y^2 for this row tile.
# The final sum over nodes + sqrt (torch.norm(y, dim=0)) is a trivial wrapper op.
# ---------------------------------------------------------------------------
def _agg_kernel(a_ref, hw_ref, b2_ref, ysq_ref, z_acc, *, row_tile, n_valid):
    i = pl.program_id(0)
    k = pl.program_id(1)

    @pl.when(k == 0)
    def _init():
        z_acc[...] = jnp.zeros_like(z_acc)

    a = a_ref[...].astype(jnp.float32)            # (tm2, tk)
    hw = hw_ref[...]                              # (1, tk) f32, broadcast over rows
    z_acc[...] += jnp.sum(a * hw, axis=1, keepdims=True)

    @pl.when(k == pl.num_programs(1) - 1)
    def _finalize():
        y = jnp.sin(z_acc[...] + b2_ref[...])     # (tm2, 1)
        # mask node rows that exist only because of padding (their A rows are
        # zero, but sin(b2) != 0 would otherwise leak into the norm)
        row = i * row_tile + lax.broadcasted_iota(jnp.int32, y.shape, 0)
        ysq_ref[...] = jnp.where(row < n_valid, y * y, 0.0).astype(ysq_ref.dtype)


@functools.partial(jax.jit,
                   static_argnames=("row_tile_1", "row_tile_2", "k_tile"))
def linear_h_forward(x, w1, b1, w2, b2, edge_index, edge_weight, *,
                     row_tile_1=512, row_tile_2=256, k_tile=512):
    """Forward pass of linear_H.

    x:  [N, 2*size_in]          node features
    w1: [size_in, 2*size_in]    layer1 weight (PyTorch [out, in]),  b1: [size_in]
    w2: [1, size_in]            layer2 weight,                      b2: [1]
    edge_index: [2, E] int,  edge_weight: [E]
    returns: [1]   (torch.norm over nodes of sin(layer2(A @ sin(layer1(x)))))
    """
    n, k_in = x.shape
    d = w1.shape[0]
    assert w1.shape == (d, k_in)
    assert b1.shape == (d,)
    assert w2.shape == (1, d)
    assert b2.shape == (1,)
    assert row_tile_1 % 8 == 0 and row_tile_2 % 8 == 0 and k_tile % 128 == 0

    f32 = jnp.float32
    bf16 = jnp.bfloat16

    # ---- pad to TPU-friendly shapes (padding is exact zeros) ----------------
    kp = _round_up(k_in, 128)                      # layer1 contraction dim
    dp = _round_up(d, 128)                         # layer1 out dim
    base = math.lcm(row_tile_1, row_tile_2, k_tile)
    np_ = _round_up(n, base)                       # padded node count

    x_p = jnp.zeros((np_, kp), bf16).at[:n, :k_in].set(x.astype(bf16))
    w1t_p = jnp.zeros((kp, dp), bf16).at[:k_in, :d].set(w1.T.astype(bf16))
    b1_p = jnp.zeros((1, dp), f32).at[0, :d].set(b1.astype(f32))
    w2_p = jnp.zeros((1, dp), f32).at[0, :d].set(w2[0].astype(f32))
    b2_p = b2.astype(f32).reshape(1, 1)

    # dense adjacency scattered directly into the padded bf16 buffer
    # (duplicate edges sum, matching torch_sparse.spmm)
    a_p = jnp.zeros((np_, np_), bf16).at[
        edge_index[0], edge_index[1]].add(edge_weight.astype(bf16))

    # ---- kernel 1: hw = sin(layer1(x)) @ W2^T  (per-node scalar) ------------
    hw = pl.pallas_call(
        _lin1_fold_kernel,
        out_shape=jax.ShapeDtypeStruct((np_, 1), f32),
        grid_spec=pltpu.PrefetchScalarGridSpec(
            num_scalar_prefetch=0,
            grid=(np_ // row_tile_1,),
            in_specs=[
                pl.BlockSpec((row_tile_1, kp), lambda i: (i, 0)),  # x row tile
                pl.BlockSpec((kp, dp), lambda i: (0, 0)),          # W1^T (resident)
                pl.BlockSpec((1, dp), lambda i: (0, 0)),           # b1   (resident)
                pl.BlockSpec((1, dp), lambda i: (0, 0)),           # w2   (resident)
            ],
            out_specs=pl.BlockSpec((row_tile_1, 1), lambda i: (i, 0)),
        ),
        compiler_params=pltpu.CompilerParams(
            dimension_semantics=("parallel",),
            vmem_limit_bytes=32 * 1024 * 1024),
    )(x_p, w1t_p, b1_p, w2_p)

    # present hw as a lane-dense row vector for kernel 2 (tiny np_*4 B reshape)
    hw_row = hw.reshape(1, np_)

    # ---- kernel 2: A @ hw -> sin -> masked y^2 per node ---------------------
    ysq = pl.pallas_call(
        functools.partial(_agg_kernel, row_tile=row_tile_2, n_valid=n),
        out_shape=jax.ShapeDtypeStruct((np_, 1), f32),
        grid_spec=pltpu.PrefetchScalarGridSpec(
            num_scalar_prefetch=0,
            grid=(np_ // row_tile_2, np_ // k_tile),
            in_specs=[
                pl.BlockSpec((row_tile_2, k_tile), lambda i, k: (i, k)),  # A tile
                pl.BlockSpec((1, k_tile), lambda i, k: (0, k)),           # hw slice
                pl.BlockSpec((1, 1), lambda i, k: (0, 0)),                # b2
            ],
            out_specs=pl.BlockSpec((row_tile_2, 1), lambda i, k: (i, 0)),
            scratch_shapes=[pltpu.VMEM((row_tile_2, 1), f32)],  # matvec accumulator
        ),
        compiler_params=pltpu.CompilerParams(
            dimension_semantics=("parallel", "arbitrary"),
            vmem_limit_bytes=32 * 1024 * 1024),
    )(a_p, hw_row, b2_p)

    # torch.norm(y, dim=0): tiny cross-tile reduce + sqrt in the wrapper
    return jnp.sqrt(jnp.sum(ysq)).reshape(1)


def _reference(x, w1, b1, w2, b2, edge_index, edge_weight):
    """Pure-JAX f32 reference mirroring the PyTorch forward."""
    n = x.shape[0]
    h = jnp.sin(x @ w1.T + b1)
    a = jnp.zeros((n, n), jnp.float32).at[
        edge_index[0], edge_index[1]].add(edge_weight)
    z = a @ h
    y = jnp.sin(z @ w2.T + b2)
    return jnp.sqrt(jnp.sum(y * y, axis=0))          # torch.norm(y, dim=0)


if __name__ == "__main__":
    key = jax.random.PRNGKey(0)
    (k_x, k_w1, k_b1, k_w2, k_b2, k_src, k_dst, k_ew) = jax.random.split(key, 8)

    size_in = 32        # module feature dim
    n_nodes = 200       # nodes (deliberately not a multiple of any tile)
    n_edges = 800       # sparse edges

    x = jax.random.normal(k_x, (n_nodes, 2 * size_in), jnp.float32)

    def init_linear(kw, kb, fan_in, fan_out):
        bound = 1.0 / (fan_in ** 0.5)
        w = jax.random.uniform(kw, (fan_out, fan_in), jnp.float32, -bound, bound)
        b = jax.random.uniform(kb, (fan_out,), jnp.float32, -bound, bound)
        return w, b

    w1, b1 = init_linear(k_w1, k_b1, 2 * size_in, size_in)   # layer1
    w2, b2 = init_linear(k_w2, k_b2, size_in, 1)             # layer2

    src = jax.random.randint(k_src, (n_edges,), 0, n_nodes, dtype=jnp.int32)
    dst = jax.random.randint(k_dst, (n_edges,), 0, n_nodes, dtype=jnp.int32)
    edge_index = jnp.stack([src, dst])                       # [2, E]
    edge_weight = jax.random.uniform(k_ew, (n_edges,), jnp.float32)

    # small tiles so both grid axes (row tiles and K tiles) get multiple steps
    out = linear_h_forward(x, w1, b1, w2, b2, edge_index, edge_weight,
                           row_tile_1=256, row_tile_2=128, k_tile=128)
    out = jax.block_until_ready(out)

    ref = _reference(x, w1, b1, w2, b2, edge_index, edge_weight)
    assert out.shape == (1,), out.shape
    # tolerance covers the bf16 quantization of x / W1 / A (f32 accumulation)
    assert jnp.allclose(out, ref, atol=2e-2, rtol=2e-2), (out, ref)
    print("KERNEL_OK")
</pallas_src>

<mosaic_0001>
module attributes {stable_mosaic.version = 11 : i64} {
  func.func @_lin1_fold_kernel(%arg0: i32, %arg1: memref<256x128xbf16, #tpu.memory_space<vmem>>, %arg2: memref<128x128xbf16, #tpu.memory_space<vmem>>, %arg3: memref<1x128xf32, #tpu.memory_space<vmem>>, %arg4: memref<1x128xf32, #tpu.memory_space<vmem>>, %arg5: memref<256x1xf32, #tpu.memory_space<vmem>>) attributes {dimension_semantics = [#tpu.dimension_semantics<parallel>], iteration_bounds = array<i64: 1>, scalar_prefetch = 0 : i64, scratch_operands = 0 : i64, tpu.core_type = #tpu.core_type<tc>, window_params = [{transform_indices = @transform_0, window_bounds = array<i64: 256, 128>}, {pipeline_mode = #tpu.pipeline_mode<synchronous>, transform_indices = @transform_1, window_bounds = array<i64: 128, 128>}, {pipeline_mode = #tpu.pipeline_mode<synchronous>, transform_indices = @transform_2, window_bounds = array<i64: 1, 128>}, {pipeline_mode = #tpu.pipeline_mode<synchronous>, transform_indices = @transform_3, window_bounds = array<i64: 1, 128>}, {transform_indices = @transform_4, window_bounds = array<i64: 256, 1>}]} {
    %c0 = arith.constant 0 : index
    %c0_0 = arith.constant 0 : index
    %0 = vector.load %arg1[%c0, %c0_0] : memref<256x128xbf16, #tpu.memory_space<vmem>>, vector<256x128xbf16>
    %c0_1 = arith.constant 0 : index
    %c0_2 = arith.constant 0 : index
    %1 = vector.load %arg2[%c0_1, %c0_2] : memref<128x128xbf16, #tpu.memory_space<vmem>>, vector<128x128xbf16>
    %cst = arith.constant dense<0.000000e+00> : vector<256x128xf32>
    %2 = tpu.matmul %0, %1, %cst {dimension_numbers = #tpu.dot_dimension_numbers<[1], [0], [0], [1], [0, 0, 1, 1], [], []>} : vector<256x128xbf16>, vector<128x128xbf16>, vector<256x128xf32> -> vector<256x128xf32>
    %c0_3 = arith.constant 0 : index
    %c0_4 = arith.constant 0 : index
    %3 = vector.load %arg3[%c0_3, %c0_4] : memref<1x128xf32, #tpu.memory_space<vmem>>, vector<1x128xf32>
    %4 = vector.broadcast %3 : vector<1x128xf32> to vector<256x128xf32>
    %5 = arith.addf %2, %4 : vector<256x128xf32>
    %6 = math.sin %5 : vector<256x128xf32>
    %c0_5 = arith.constant 0 : index
    %c0_6 = arith.constant 0 : index
    %7 = vector.load %arg4[%c0_5, %c0_6] : memref<1x128xf32, #tpu.memory_space<vmem>>, vector<1x128xf32>
    %8 = vector.broadcast %7 : vector<1x128xf32> to vector<256x128xf32>
    %9 = arith.mulf %6, %8 : vector<256x128xf32>
    %cst_7 = arith.constant dense<0.000000e+00> : vector<256xf32>
    %10 = vector.multi_reduction <add>, %9, %cst_7 [1] : vector<256x128xf32> to vector<256xf32>
    %11 = vector.shape_cast %10 : vector<256xf32> to vector<256x1xf32>
    %c0_8 = arith.constant 0 : index
    %c0_9 = arith.constant 0 : index
    %12 = vector.load %arg5[%c0_8, %c0_9] : memref<256x1xf32, #tpu.memory_space<vmem>>, vector<256x1xf32>
    tpu.vector_store %arg5[%c0_8, %c0_9], %11 {strides = array<i32>} : memref<256x1xf32, #tpu.memory_space<vmem>>, vector<256x1xf32>,
    return
  }
  func.func @transform_0(%arg0: i32) -> (i32, i32) {
    %c0_i32 = arith.constant 0 : i32
    %c0_i32_0 = arith.constant 0 : i32
    return %arg0, %c0_i32 : i32, i32
  }
  func.func @transform_1(%arg0: i32) -> (i32, i32) {
    %c0_i32 = arith.constant 0 : i32
    %c0_i32_0 = arith.constant 0 : i32
    %c0_i32_1 = arith.constant 0 : i32
    return %c0_i32, %c0_i32_0 : i32, i32
  }
  func.func @transform_2(%arg0: i32) -> (i32, i32) {
    %c0_i32 = arith.constant 0 : i32
    %c0_i32_0 = arith.constant 0 : i32
    %c0_i32_1 = arith.constant 0 : i32
    return %c0_i32, %c0_i32_0 : i32, i32
  }
  func.func @transform_3(%arg0: i32) -> (i32, i32) {
    %c0_i32 = arith.constant 0 : i32
    %c0_i32_0 = arith.constant 0 : i32
    %c0_i32_1 = arith.constant 0 : i32
    return %c0_i32, %c0_i32_0 : i32, i32
  }
  func.func @transform_4(%arg0: i32) -> (i32, i32) {
    %c0_i32 = arith.constant 0 : i32
    %c0_i32_0 = arith.constant 0 : i32
    return %arg0, %c0_i32 : i32, i32
  }
}

module attributes {stable_mosaic.version = 11 : i64} {
  func.func @_agg_kernel(%arg0: i32, %arg1: i32, %arg2: memref<128x128xbf16, #tpu.memory_space<vmem>>, %arg3: memref<1x128xf32, #tpu.memory_space<vmem>>, %arg4: memref<1x1xf32, #tpu.memory_space<vmem>>, %arg5: memref<128x1xf32, #tpu.memory_space<vmem>>, %arg6: memref<128x1xf32, #tpu.memory_space<vmem>>) attributes {dimension_semantics = [#tpu.dimension_semantics<parallel>, #tpu.dimension_semantics<arbitrary>], iteration_bounds = array<i64: 2, 2>, scalar_prefetch = 0 : i64, scratch_operands = 1 : i64, tpu.core_type = #tpu.core_type<tc>, window_params = [{transform_indices = @transform_0, window_bounds = array<i64: 128, 128>}, {transform_indices = @transform_1, window_bounds = array<i64: 1, 128>}, {pipeline_mode = #tpu.pipeline_mode<synchronous>, transform_indices = @transform_2, window_bounds = array<i64: 1, 1>}, {transform_indices = @transform_3, window_bounds = array<i64: 128, 1>}]} {
    %c0_i32 = arith.constant 0 : i32
    %0 = arith.cmpi eq, %arg1, %c0_i32 : i32
    %1 = arith.extui %0 : i1 to i32
    %c0_i32_0 = arith.constant 0 : i32
    %2 = arith.cmpi ne, %1, %c0_i32_0 : i32
    scf.if %2 {
      %cst_9 = arith.constant 0.000000e+00 : f32
      %16 = vector.broadcast %cst_9 : f32 to vector<128x1xf32>
      %c0_10 = arith.constant 0 : index
      %c0_11 = arith.constant 0 : index
      %17 = vector.load %arg6[%c0_10, %c0_11] : memref<128x1xf32, #tpu.memory_space<vmem>>, vector<128x1xf32>
      tpu.vector_store %arg6[%c0_10, %c0_11], %16 {strides = array<i32>} : memref<128x1xf32, #tpu.memory_space<vmem>>, vector<128x1xf32>,
    } else {
    }
    %c0 = arith.constant 0 : index
    %c0_1 = arith.constant 0 : index
    %3 = vector.load %arg2[%c0, %c0_1] : memref<128x128xbf16, #tpu.memory_space<vmem>>, vector<128x128xbf16>
    %4 = arith.extf %3 : vector<128x128xbf16> to vector<128x128xf32>
    %c0_2 = arith.constant 0 : index
    %c0_3 = arith.constant 0 : index
    %5 = vector.load %arg3[%c0_2, %c0_3] : memref<1x128xf32, #tpu.memory_space<vmem>>, vector<1x128xf32>
    %c0_4 = arith.constant 0 : index
    %c0_5 = arith.constant 0 : index
    %6 = vector.load %arg6[%c0_4, %c0_5] : memref<128x1xf32, #tpu.memory_space<vmem>>, vector<128x1xf32>
    %7 = vector.broadcast %5 : vector<1x128xf32> to vector<128x128xf32>
    %8 = arith.mulf %4, %7 : vector<128x128xf32>
    %cst = arith.constant dense<0.000000e+00> : vector<128xf32>
    %9 = vector.multi_reduction <add>, %8, %cst [1] : vector<128x128xf32> to vector<128xf32>
    %10 = vector.shape_cast %9 : vector<128xf32> to vector<128x1xf32>
    %11 = arith.addf %6, %10 : vector<128x1xf32>
    %c0_6 = arith.constant 0 : index
    %c0_7 = arith.constant 0 : index
    %12 = vector.load %arg6[%c0_6, %c0_7] : memref<128x1xf32, #tpu.memory_space<vmem>>, vector<128x1xf32>
    tpu.vector_store %arg6[%c0_6, %c0_7], %11 {strides = array<i32>} : memref<128x1xf32, #tpu.memory_space<vmem>>, vector<128x1xf32>,
    %c1_i32 = arith.constant 1 : i32
    %13 = arith.cmpi eq, %arg1, %c1_i32 : i32
    %14 = arith.extui %13 : i1 to i32
    %c0_i32_8 = arith.constant 0 : i32
    %15 = arith.cmpi ne, %14, %c0_i32_8 : i32
    scf.if %15 {
      %c0_9 = arith.constant 0 : index
      %c0_10 = arith.constant 0 : index
      %16 = vector.load %arg6[%c0_9, %c0_10] : memref<128x1xf32, #tpu.memory_space<vmem>>, vector<128x1xf32>
      %c0_11 = arith.constant 0 : index
      %c0_12 = arith.constant 0 : index
      %17 = vector.load %arg4[%c0_11, %c0_12] : memref<1x1xf32, #tpu.memory_space<vmem>>, vector<1x1xf32>
      %18 = vector.broadcast %17 : vector<1x1xf32> to vector<128x1xf32>
      %19 = arith.addf %16, %18 : vector<128x1xf32>
      %20 = math.sin %19 : vector<128x1xf32>
      %c128_i32 = arith.constant 128 : i32
      %21 = arith.muli %arg0, %c128_i32 : i32
      %22 = tpu.iota {dimensions = array<i32: 0>} : vector<128x1xi32>
      %23 = vector.broadcast %21 : i32 to vector<128x1xi32>
      %24 = arith.addi %23, %22 : vector<128x1xi32>
      %c200_i32 = arith.constant 200 : i32
      %25 = vector.broadcast %c200_i32 : i32 to vector<128x1xi32>
      %26 = arith.cmpi slt, %24, %25 : vector<128x1xi32>
      %27 = arith.mulf %20, %20 : vector<128x1xf32>
      %cst_13 = arith.constant 0.000000e+00 : f32
      %28 = vector.broadcast %cst_13 : f32 to vector<128x1xf32>
      %29 = arith.select %26, %27, %28 : vector<128x1xi1>, vector<128x1xf32>
      %c0_14 = arith.constant 0 : index
      %c0_15 = arith.constant 0 : index
      %30 = vector.load %arg5[%c0_14, %c0_15] : memref<128x1xf32, #tpu.memory_space<vmem>>, vector<128x1xf32>
      tpu.vector_store %arg5[%c0_14, %c0_15], %29 {strides = array<i32>} : memref<128x1xf32, #tpu.memory_space<vmem>>, vector<128x1xf32>,
    } else {
    }
    return
  }
  func.func @transform_0(%arg0: i32, %arg1: i32) -> (i32, i32) {
    %c0_i32 = arith.constant 0 : i32
    return %arg0, %arg1 : i32, i32
  }
  func.func @transform_1(%arg0: i32, %arg1: i32) -> (i32, i32) {
    %c0_i32 = arith.constant 0 : i32
    %c0_i32_0 = arith.constant 0 : i32
    return %c0_i32, %arg1 : i32, i32
  }
  func.func @transform_2(%arg0: i32, %arg1: i32) -> (i32, i32) {
    %c0_i32 = arith.constant 0 : i32
    %c0_i32_0 = arith.constant 0 : i32
    %c0_i32_1 = arith.constant 0 : i32
    return %c0_i32, %c0_i32_0 : i32, i32
  }
  func.func @transform_3(%arg0: i32, %arg1: i32) -> (i32, i32) {
    %c0_i32 = arith.constant 0 : i32
    %c0_i32_0 = arith.constant 0 : i32
    return %arg0, %c0_i32 : i32, i32
  }
}

</mosaic_0001>

<bundles_post_ra>
// kernel: linear_h_forward.3
= control target key start
LH: loop header
LB: loop body
LE: loop exit
PB: predicated region body
PF: predicated region fallthrough
CT: control target
= control target key end

     0   :  { %s4683_s0 = inlined_call_operand.vmem [shape: bf16[256,256], index: 0, kind: input, shape index: {}]   ;;  %s4684_s1 = inlined_call_operand.vmem [shape: f32[1,256], index: 1, kind: input, shape index: {}]   ;;  %s4685_s2 = inlined_call_operand.<no memory space> [shape: f32[1,1], index: 2, kind: input, shape index: {}]   ;;  %s4686_s3 = inlined_call_operand.vmem [shape: f32[256,1], index: 3, kind: output, shape index: {}]  }
   0x1   :  { %v8_v0 = vstv %s4685_s2 }
   0x2   :  { %9 = vst [vmem:[#allocation3] sm:$0x1] %v8_v0 }
   0x3   :  { %s2755_s14 = smov 0   ;;  %s2757_s15 = smov 0  }
   0x4   :  { %s2759_s16 = smov 0   ;;  %s2761_s17 = smov 0  }
   0x5   :  { %s2763_s18 = smov 0   ;;  %s2765_s19 = smov 0  }
   0x6   :  { %s2767_s20 = smov 0  }
   0x7 LB: > { %s24_s2 = sadd.s32 1, %s2715_s18  ;;  %s27_s21 = sadd.s32 1, %s2719_s19  ;;  %s2723_s20 = sphi %s2767_s20, %s15_s20   ;;  %s2719_s19 = sphi %s2765_s19, %s4765_s19   ;;  %s2715_s18 = sphi %s2763_s18, %s4764_s18   ;;  %s2711_s17 = sphi %s2761_s17, %s4763_s17   ;;  %s2707_s16 = sphi %s2759_s16, %s4762_s16   ;;  %s2703_s15 = sphi %s2757_s15, %s4761_s15   ;;  %s2699_s14 = sphi %s2755_s14, %s4760_s14  }
   0x8   : > { %p25_p0 = scmp.ge.s32.totalorder %s24_s2, 2  ;;  %p43_p1 = scmp.ne.s32.totalorder %s2703_s15, %s2699_s14 }
   0x9   : > { %p44_p2 = scmp.eq.s32.totalorder %s2723_s20, 0  ;;  %s36_s25 = sadd.s32 1, %s2703_s15 }
   0xa   : > { %s4767_s2 = smov (%p25_p0, %s24_s2), 0  ;;  %s4769_s21 = smov (!%p25_p0, %s27_s21), %s2719_s19 }
   0xb   : > { %p45_p3 = por %p44_p2, %p43_p1  ;;  %p29_p4 = scmp.ge.s32.totalorder %s4769_s21, 2 }
   0xc   : > { %s32_s22 = ssub.s32 %s2715_s18, %s4767_s2  ;;  %p2358_p6 = scmp.ge.s32.totalorder %s2723_s20, 4 }
   0xd   : > { %s4771_s21 = smov (%p29_p4, %s4769_s21), 0 }
   0xe   : > { %s31_s23 = ssub.s32 %s2719_s19, %s4771_s21  ;;  %145 = sbr.rel (%p2358_p6) target bundleno = 37 (0x25), region = 20 }
   0xf   : > { %s33_s24 = sor.u32 %s32_s22, %s31_s23 }
  0x10   : > { %p34_p5 = scmp.eq.s32.totalorder %s33_s24, 0 }
  0x12   : > { %s2806_s26 = scalar_select %p34_p5, %s2703_s15, %s36_s25  }
  0x15   : > { %148 = sbr.rel (!%p45_p3) target bundleno = 37 (0x25), region = 24  ;;  %s150_s27 = sand.u32 (%p45_p3), 1, %s2703_s15  }
  0x16   : > { %s2438_s28 = sshll.u32 (%p45_p3), %s2719_s19, 5  ;;  %s2359_s29 = sshll.u32 (%p45_p3), %s150_s27, 6 }
  0x17   : > { %s155_s30 = sadd.s32 (%p45_p3), %s2715_s18, %s2438_s28  ;;  %s152_s8 = scalar_lea.vmem (%p45_p3), [#allocation4], %s2359_s29 }
  0x18   : > { %s2362_s4 = sshll.u32 (%p45_p3), %s155_s30, 2 }
  0x19   : > { %s2815_s7 = scalar_lea.vmem (%p45_p3), %s4683_s0, %s2362_s4 }
  0x1a   : > { %v173_v1 = vld [vmem:[%s2815_s7] sm:$0xf] (%p45_p3)  ;;  %v175_v2 = vld [vmem:[%s2815_s7 + $0x8] sm:$0xf] (%p45_p3)  ;;  %v177_v3 = vld [vmem:[%s2815_s7 + $0x10] sm:$0xf] (%p45_p3) }
  0x1b   : > { %174 = vst [vmem:[%s152_s8] sm:$0xf] (%p45_p3), %v173_v1  ;;  %176 = vst [vmem:[%s152_s8 + $0x4] sm:$0xf] (%p45_p3), %v175_v2  ;;  %v179_v4 = vld [vmem:[%s2815_s7 + $0x18] sm:$0xf] (%p45_p3) }
  0x1c   : > { %178 = vst [vmem:[%s152_s8 + $0x8] sm:$0xf] %v177_v3  ;;  %v181_v5 = vld [vmem:[%s2815_s7 + $0x20] sm:$0xf]  ;;  %v183_v6 = vld [vmem:[%s2815_s7 + $0x28] sm:$0xf] }
  0x1d   : > { %180 = vst [vmem:[%s152_s8 + $0xc] sm:$0xf] %v179_v4  ;;  %182 = vst [vmem:[%s152_s8 + $0x10] sm:$0xf] %v181_v5  ;;  %v185_v7 = vld [vmem:[%s2815_s7 + $0x30] sm:$0xf] }
  0x1e   : > { %184 = vst [vmem:[%s152_s8 + $0x14] sm:$0xf] %v183_v6  ;;  %v187_v8 = vld [vmem:[%s2815_s7 + $0x38] sm:$0xf]  ;;  %v189_v9 = vld [vmem:[%s2815_s7 + $0x40] sm:$0xf] }
  0x1f   : > { %186 = vst [vmem:[%s152_s8 + $0x18] sm:$0xf] %v185_v7  ;;  %188 = vst [vmem:[%s152_s8 + $0x1c] sm:$0xf] %v187_v8  ;;  %v191_v10 = vld [vmem:[%s2815_s7 + $0x48] sm:$0xf] }
  0x20   : > { %190 = vst [vmem:[%s152_s8 + $0x20] sm:$0xf] %v189_v9  ;;  %v193_v11 = vld [vmem:[%s2815_s7 + $0x50] sm:$0xf]  ;;  %v195_v12 = vld [vmem:[%s2815_s7 + $0x58] sm:$0xf] }
  0x21   : > { %192 = vst [vmem:[%s152_s8 + $0x24] sm:$0xf] %v191_v10  ;;  %194 = vst [vmem:[%s152_s8 + $0x28] sm:$0xf] %v193_v11  ;;  %v197_v13 = vld [vmem:[%s2815_s7 + $0x60] sm:$0xf] }
  0x22   : > { %196 = vst [vmem:[%s152_s8 + $0x2c] sm:$0xf] %v195_v12  ;;  %v199_v14 = vld [vmem:[%s2815_s7 + $0x68] sm:$0xf]  ;;  %v201_v15 = vld [vmem:[%s2815_s7 + $0x70] sm:$0xf] }
  0x23   : > { %198 = vst [vmem:[%s152_s8 + $0x30] sm:$0xf] %v197_v13  ;;  %200 = vst [vmem:[%s152_s8 + $0x34] sm:$0xf] %v199_v14  ;;  %v203_v16 = vld [vmem:[%s2815_s7 + $0x78] sm:$0xf] }
  0x24   : > { %202 = vst [vmem:[%s152_s8 + $0x38] sm:$0xf] %v201_v15  ;;  %204 = vst [vmem:[%s152_s8 + $0x3c] sm:$0xf] %v203_v16 }
  0x25 PF: > { %p2363_p7 = scmp.ge.s32.totalorder %s2723_s20, 1  ;;  %p264_p8 = scmp.lt.s32.totalorder %s2723_s20, 5 }
  0x27   : > { %p265_p9 = pnand %p2363_p7, %p264_p8 }
  0x28   : > { %s271_s9 = sand.u32 (!%p265_p9), 1, %s2699_s14   ;;  %p298_p10 = scmp.lt.s32.totalorder (!%p265_p9), %s2707_s16, 1 }
  0x29   : > { %268 = sbr.rel (%p265_p9) target bundleno = 685 (0x2ad), region = 69  ;;  %s2364_s10 = sshll.u32 (!%p265_p9), %s271_s9, 6 }
  0x2a   : > { %s2365_s11 = sshll.u32 (!%p265_p9), %s2711_s17, 4  ;;  %s2847_s29 = scalar_lea.vmem (!%p265_p9), [#allocation4], %s2364_s10 }
  0x2b   : > { %p302_p11 = scmp.lt.s32.totalorder (!%p265_p9), %s2365_s11, 31  ;;  %p2367_p12 = scmp.ne.s32.totalorder (!%p265_p9), %s2707_s16, 0 }
  0x30   : > { %s299_s12 = scalar_select %p298_p10, %s2707_s16, 1 }
  0x31   : > { %s4773_s11 = smov (!%p302_p11, %s2365_s11), 31  ;;  %310 = sbr.rel (%p2367_p12) target bundleno = 59 (0x3b), region = 77 }
  0x32   : > { %s300_s23 = scalar_lea.vmem %s4684_s1, %s299_s12  ;;  %s2366_s24 = sshll.u32 %s4773_s11, 3  ;;  %vm311_vm0 = vcmask (!%p2367_p12), 7168   ;;  %v2725_v17 = vmov (!%p2367_p12), 0.0  }
  0x33   : > { %s2845_s28 = scalar_lea.vmem %s4686_s3, %s2366_s24  ;;  %312 = vst.msk [vmem:[#allocation2] sm:$0xff] (!%p2367_p12), %vm311_vm0, %v2725_v17  ;;  %313 = vst.msk [vmem:[#allocation2 + $0x8] sm:$0xff] (!%p2367_p12), %vm311_vm0, %v2725_v17 }
  0x34   : > { %314 = vst.msk [vmem:[#allocation2 + $0x10] sm:$0xff] (!%p2367_p12), %vm311_vm0, %v2725_v17  ;;  %315 = vst.msk [vmem:[#allocation2 + $0x18] sm:$0xff] (!%p2367_p12), %vm311_vm0, %v2725_v17 }
  0x35   : > { %316 = vst.msk [vmem:[#allocation2 + $0x20] sm:$0xff] (!%p2367_p12), %vm311_vm0, %v2725_v17  ;;  %317 = vst.msk [vmem:[#allocation2 + $0x28] sm:$0xff] (!%p2367_p12), %vm311_vm0, %v2725_v17 }
  0x36   : > { %318 = vst.msk [vmem:[#allocation2 + $0x30] sm:$0xff] (!%p2367_p12), %vm311_vm0, %v2725_v17  ;;  %319 = vst.msk [vmem:[#allocation2 + $0x38] sm:$0xff] (!%p2367_p12), %vm311_vm0, %v2725_v17 }
  0x37   : > { %320 = vst.msk [vmem:[#allocation2 + $0x40] sm:$0xff] (!%p2367_p12), %vm311_vm0, %v2725_v17  ;;  %321 = vst.msk [vmem:[#allocation2 + $0x48] sm:$0xff] (!%p2367_p12), %vm311_vm0, %v2725_v17 }
  0x38   : > { %322 = vst.msk [vmem:[#allocation2 + $0x50] sm:$0xff] %vm311_vm0, %v2725_v17  ;;  %323 = vst.msk [vmem:[#allocation2 + $0x58] sm:$0xff] %vm311_vm0, %v2725_v17 }
  0x39   : > { %324 = vst.msk [vmem:[#allocation2 + $0x60] sm:$0xff] %vm311_vm0, %v2725_v17  ;;  %325 = vst.msk [vmem:[#allocation2 + $0x68] sm:$0xff] %vm311_vm0, %v2725_v17 }
  0x3a   : > { %326 = vst.msk [vmem:[#allocation2 + $0x70] sm:$0xff] %vm311_vm0, %v2725_v17  ;;  %327 = vst.msk [vmem:[#allocation2 + $0x78] sm:$0xff] %vm311_vm0, %v2725_v17 }
  0x3b PF: > { %v2471_v18 = vld [vmem:[%s2847_s29 + $0x8] sm:$0xff]   ;;  %v2368_v19 = vld [vmem:[%s300_s23] ss:$0 sm:$0xff]  ;;  %v2440_v20 = vld [vmem:[%s2847_s29] sm:$0xff]   ;;  %vm447_vm1 = vcmask 7168   ;;  %p2369_p13 = scmp.ne.s32.totalorder %s2707_s16, 1 }
  0x3c   : > { %v2445_v21 = vunpack.c.l.bf16 %v2471_v18  ;;  %v2441_v22 = vunpack.c.l.bf16 %v2440_v20  ;;  %v2446_v23 = vunpack.c.h.bf16 %v2471_v18  ;;  %v2442_v24 = vunpack.c.h.bf16 %v2440_v20  ;;  %v2472_v25 = vld [vmem:[%s2847_s29 + $0x10] sm:$0xff]   ;;  %v2473_v32 = vld [vmem:[%s2847_s29 + $0x18] sm:$0xff]   ;;  %v2474_v37 = vld [vmem:[%s2847_s29 + $0x20] sm:$0xff]  }
  0x3d   : > { %v2450_v30 = vunpack.c.h.bf16 %v2472_v25  ;;  %v2449_v31 = vunpack.c.l.bf16 %v2472_v25  ;;  %v2454_v35 = vunpack.c.h.bf16 %v2473_v32  ;;  %v2453_v36 = vunpack.c.l.bf16 %v2473_v32  ;;  %v2475_v42 = vld [vmem:[%s2847_s29 + $0x28] sm:$0xff]   ;;  %v2476_v47 = vld [vmem:[%s2847_s29 + $0x30] sm:$0xff]   ;;  %v2477_v52 = vld [vmem:[%s2847_s29 + $0x38] sm:$0xff]  }
  0x3e   : > { %v385_v26 = vmul.f32 %v2445_v21, %v2368_v19  ;;  %v383_v27 = vmul.f32 %v2441_v22, %v2368_v19  ;;  %v386_v28 = vmul.f32 %v2446_v23, %v2368_v19  ;;  %v384_v29 = vmul.f32 %v2442_v24, %v2368_v19  ;;  %v363_v59 = vld [vmem:[#allocation2 + $0x10] sm:$0xff]  ;;  %v361_v60 = vld [vmem:[#allocation2] sm:$0xff]  ;;  %v364_v1 = vld [vmem:[#allocation2 + $0x18] sm:$0xff] }
  0x3f   : > { %v388_v33 = vmul.f32 %v2450_v30, %v2368_v19  ;;  %v387_v34 = vmul.f32 %v2449_v31, %v2368_v19  ;;  %v390_v38 = vmul.f32 %v2454_v35, %v2368_v19  ;;  %v389_v39 = vmul.f32 %v2453_v36, %v2368_v19  ;;  %v362_v2 = vld [vmem:[#allocation2 + $0x8] sm:$0xff]  ;;  %v365_v8 = vld [vmem:[#allocation2 + $0x20] sm:$0xff] }
  0x40   : > { %403 = vadd.xlane.f32.xlu1 %v385_v26  ;;  %399 = vadd.xlane.f32.xlu0 %v383_v27  ;;  %v2458_v40 = vunpack.c.h.bf16 %v2474_v37  ;;  %v2457_v41 = vunpack.c.l.bf16 %v2474_v37  ;;  %v2462_v45 = vunpack.c.h.bf16 %v2475_v42  ;;  %v2461_v46 = vunpack.c.l.bf16 %v2475_v42  ;;  %v366_v7 = vld [vmem:[#allocation2 + $0x28] sm:$0xff]  ;;  %v368_v13 = vld [vmem:[#allocation2 + $0x38] sm:$0xff]  ;;  %v367_v14 = vld [vmem:[#allocation2 + $0x30] sm:$0xff] }
  0x41   : > { %v2466_v50 = vunpack.c.h.bf16 %v2476_v47  ;;  %v2465_v51 = vunpack.c.l.bf16 %v2476_v47  ;;  %v2470_v55 = vunpack.c.h.bf16 %v2477_v52  ;;  %v2469_v56 = vunpack.c.l.bf16 %v2477_v52  ;;  %v369_v20 = vld [vmem:[#allocation2 + $0x40] sm:$0xff]  ;;  %v371_v26 = vld [vmem:[#allocation2 + $0x50] sm:$0xff]  ;;  %v374_v31 = vld [vmem:[#allocation2 + $0x68] sm:$0xff] }
  0x42   : > { %v392_v43 = vmul.f32 %v2458_v40, %v2368_v19  ;;  %v391_v44 = vmul.f32 %v2457_v41, %v2368_v19  ;;  %v394_v48 = vmul.f32 %v2462_v45, %v2368_v19  ;;  %v393_v49 = vmul.f32 %v2461_v46, %v2368_v19  ;;  %v372_v25 = vld [vmem:[#allocation2 + $0x58] sm:$0xff]  ;;  %v373_v32 = vld [vmem:[#allocation2 + $0x60] sm:$0xff] }
  0x43   : > { %v396_v53 = vmul.f32 %v2466_v50, %v2368_v19  ;;  %v395_v54 = vmul.f32 %v2465_v51, %v2368_v19  ;;  %v398_v57 = vmul.f32 %v2470_v55, %v2368_v19  ;;  %v397_v58 = vmul.f32 %v2469_v56, %v2368_v19  ;;  %v370_v19 = vld [vmem:[#allocation2 + $0x48] sm:$0xff]  ;;  %v376_v37 = vld [vmem:[#allocation2 + $0x78] sm:$0xff] }
  0x44   : > { %405 = vadd.xlane.f32.xlu1 %v386_v28  ;;  %401 = vadd.xlane.f32.xlu0 %v384_v29 }
  0x48   : > { %409 = vadd.xlane.f32.xlu1 %v388_v33  ;;  %407 = vadd.xlane.f32.xlu0 %v387_v34 }
  0x4c   : > { %413 = vadd.xlane.f32.xlu1 %v390_v38  ;;  %411 = vadd.xlane.f32.xlu0 %v389_v39  ;;  %v375_v38 = vld [vmem:[#allocation2 + $0x70] sm:$0xff] }
  0x50   : > { %417 = vadd.xlane.f32.xlu1 %v392_v43  ;;  %415 = vadd.xlane.f32.xlu0 %v391_v44 }
  0x54   : > { %421 = vadd.xlane.f32.xlu1 %v394_v48  ;;  %419 = vadd.xlane.f32.xlu0 %v393_v49 }
  0x58   : > { %425 = vadd.xlane.f32.xlu1 %v396_v53  ;;  %423 = vadd.xlane.f32.xlu0 %v395_v54 }
  0x5c   : > { %429 = vadd.xlane.f32.xlu1 %v398_v57  ;;  %427 = vadd.xlane.f32.xlu0 %v397_v58 }
  0xcd   : > { %v404_v61 = vpop.xlane.xlu1 %403  ;;  %v400_v62 = vpop.xlane.xlu0 %399 }
  0xce   : > { %v433_v63 = vadd.f32 %v404_v61, %v363_v59  ;;  %v431_v0 = vadd.f32 %v400_v62, %v361_v60 }
  0xd0   : > { %450 = vst.msk [vmem:[#allocation2 + $0x10] sm:$0xff] %vm447_vm1, %v433_v63  ;;  %448 = vst.msk [vmem:[#allocation2] sm:$0xff] %vm447_vm1, %v431_v0 }
  0xd1   : > { %v406_v3 = vpop.xlane.xlu1 %405  ;;  %v402_v4 = vpop.xlane.xlu0 %401 }
  0xd2   : > { %v434_v5 = vadd.f32 %v406_v3, %v364_v1  ;;  %v432_v6 = vadd.f32 %v402_v4, %v362_v2 }
  0xd4   : > { %451 = vst.msk [vmem:[#allocation2 + $0x18] sm:$0xff] %vm447_vm1, %v434_v5  ;;  %449 = vst.msk [vmem:[#allocation2 + $0x8] sm:$0xff] %vm447_vm1, %v432_v6 }
  0xd5   : > { %v410_v9 = vpop.xlane.xlu1 %409  ;;  %v408_v10 = vpop.xlane.xlu0 %407 }
  0xd6   : > { %v436_v11 = vadd.f32 %v410_v9, %v366_v7  ;;  %v435_v12 = vadd.f32 %v408_v10, %v365_v8 }
  0xd8   : > { %453 = vst.msk [vmem:[#allocation2 + $0x28] sm:$0xff] %vm447_vm1, %v436_v11  ;;  %452 = vst.msk [vmem:[#allocation2 + $0x20] sm:$0xff] %vm447_vm1, %v435_v12 }
  0xd9   : > { %v414_v15 = vpop.xlane.xlu1 %413  ;;  %v412_v16 = vpop.xlane.xlu0 %411 }
  0xda   : > { %v438_v17 = vadd.f32 %v414_v15, %v368_v13  ;;  %v437_v18 = vadd.f32 %v412_v16, %v367_v14 }
  0xdc   : > { %455 = vst.msk [vmem:[#allocation2 + $0x38] sm:$0xff] %vm447_vm1, %v438_v17  ;;  %454 = vst.msk [vmem:[#allocation2 + $0x30] sm:$0xff] %vm447_vm1, %v437_v18 }
  0xdd   : > { %v418_v21 = vpop.xlane.xlu1 %417  ;;  %v416_v22 = vpop.xlane.xlu0 %415 }
  0xde   : > { %v440_v23 = vadd.f32 %v418_v21, %v370_v19  ;;  %v439_v24 = vadd.f32 %v416_v22, %v369_v20 }
  0xe0   : > { %457 = vst.msk [vmem:[#allocation2 + $0x48] sm:$0xff] %vm447_vm1, %v440_v23  ;;  %456 = vst.msk [vmem:[#allocation2 + $0x40] sm:$0xff] %vm447_vm1, %v439_v24 }
  0xe1   : > { %v422_v27 = vpop.xlane.xlu1 %421  ;;  %v420_v28 = vpop.xlane.xlu0 %419 }
  0xe2   : > { %v442_v29 = vadd.f32 %v422_v27, %v372_v25  ;;  %v441_v30 = vadd.f32 %v420_v28, %v371_v26 }
  0xe4   : > { %459 = vst.msk [vmem:[#allocation2 + $0x58] sm:$0xff] %vm447_vm1, %v442_v29  ;;  %458 = vst.msk [vmem:[#allocation2 + $0x50] sm:$0xff] %vm447_vm1, %v441_v30 }
  0xe5   : > { %v426_v33 = vpop.xlane.xlu1 %425  ;;  %v424_v34 = vpop.xlane.xlu0 %423 }
  0xe6   : > { %v444_v35 = vadd.f32 %v426_v33, %v374_v31  ;;  %v443_v36 = vadd.f32 %v424_v34, %v373_v32  ;;  %467 = sbr.rel (%p2369_p13) target bundleno = 685 (0x2ad), region = 81 }
  0xe8   : > { %461 = vst.msk [vmem:[#allocation2 + $0x68] sm:$0xff] %vm447_vm1, %v444_v35  ;;  %460 = vst.msk [vmem:[#allocation2 + $0x60] sm:$0xff] %vm447_vm1, %v443_v36 }
  0xe9   : > { %v430_v39 = vpop.xlane.xlu1 %429  ;;  %v428_v40 = vpop.xlane.xlu0 %427 }
  0xea   : > { %v446_v41 = vadd.f32 %v430_v39, %v376_v37  ;;  %v445_v42 = vadd.f32 %v428_v40, %v375_v38 }
  0xec   : > { %463 = vst.msk [vmem:[#allocation2 + $0x78] sm:$0xff] %vm447_vm1, %v446_v41  ;;  %462 = vst.msk [vmem:[#allocation2 + $0x70] sm:$0xff] %vm447_vm1, %v445_v42 }
  0xed   : > { %v468_v43 = vld [vmem:[#allocation2] sm:$0xff]  ;;  %v469_v44 = vld [vmem:[#allocation2 + $0x8] sm:$0xff]  ;;  %v470_v46 = vld [vmem:[#allocation2 + $0x10] sm:$0xff]  ;;  %v4700_v12 = vmov 683565275   ;;  %s2435_s14 = sshll.u32 %s2711_s17, 7 }
  0xee   : > { %v2891_v45 = vld [vmem:[#allocation3] ss:$0 sm:$0xff]  ;;  %v4694_v14 = vmov 2475754826   ;;  %v4692_v16 = vmov 2131351028  }
  0xef   : > { %v2894_v47 = vadd.f32 %v2891_v45, %v468_v43  ;;  %v2897_v48 = vadd.f32 %v2891_v45, %v469_v44  ;;  %v2900_v49 = vadd.f32 %v2891_v45, %v470_v46  ;;  %v4690_v18 = vmov 2102212464  }
  0xf0   : > { %v4698_v20 = vmov 920167782   ;;  %v4696_v28 = vmov 1326507024  }
  0xf1   : > { %v507_v50 = vand.u32 2147483647, %v2894_v47  ;;  %v510_v51 = vand.u32 2139095040, %v2894_v47  ;;  %v611_v52 = vand.u32 2147483647, %v2897_v48  ;;  %v614_v53 = vand.u32 2139095040, %v2897_v48 }
  0xf2   : > { %v718_v58 = vand.u32 2139095040, %v2900_v49 }
  0xf3   : > { %v511_v54 = vshrl.u32 %v510_v51, 23  ;;  %v514_v55 = vand.u32 8388607, %v507_v50  ;;  %v615_v56 = vshrl.u32 %v614_v53, 23  ;;  %v618_v57 = vand.u32 8388607, %v611_v52 }
  0xf4   : > { %v719_v61 = vshrl.u32 %v718_v58, 23 }
  0xf5   : > { %v2371_v59 = vadd.s32 4294967169, %v511_v54  ;;  %v2375_v60 = vadd.s32 4294967169, %v615_v56  ;;  %v515_v63 = vor.u32 8388608, %v514_v55  ;;  %v619_v0 = vor.u32 8388608, %v618_v57 }
  0xf6   : > { %v2379_v2 = vadd.s32 4294967169, %v719_v61 }
  0xf7   : > { %v517_v62 = vadd.s32 1, %v2371_v59  ;;  %v621_v1 = vadd.s32 1, %v2375_v60  ;;  %v2911_v7 = vshll.u32 %v515_v63, 8  ;;  %v2913_v9 = vshll.u32 %v619_v0, 8 }
  0xf8   : > { %v2915_v10 = vadd.s32 1, %v2379_v2 }
  0xf9   : > { %vm518_vm2 = vcmp.gt.s32.totalorder %v517_v62, 0  ;;  %vm622_vm3 = vcmp.gt.s32.totalorder %v621_v1, 0 }
  0xfa   : > { %v519_v3 = vsel %vm518_vm2, %v517_v62, 0  ;;  %v623_v6 = vsel %vm622_vm3, %v621_v1, 0  ;;  %vm726_vm8 = vcmp.gt.s32.totalorder %v2915_v10, 0 }
  0xfb   : > { %v520_v4 = vshrl.u32 %v519_v3, 5  ;;  %v521_v5 = vand.u32 31, %v519_v3  ;;  %v625_v8 = vand.u32 31, %v623_v6  ;;  %v2922_v22 = vshrl.u32 %v623_v6, 5 }
  0xfd   : > { %v522_v11 = vsub.s32 32, %v521_v5  ;;  %v524_v13 = vshll.u32 %v4700_v12, %v521_v5  ;;  %v527_v15 = vshll.u32 %v4694_v14, %v521_v5  ;;  %v530_v17 = vshll.u32 %v4692_v16, %v521_v5 }
  0xfe   : > { %v533_v19 = vshll.u32 %v4690_v18, %v521_v5  ;;  %v536_v21 = vshll.u32 %v4698_v20, %v521_v5  ;;  %vm539_vm4 = vcmp.lt.s32.totalorder %v520_v4, 1  ;;  %vm540_vm5 = vcmp.lt.s32.totalorder %v520_v4, 2 }
  0xff   : > { %v523_v23 = vshrl.u32 %v4700_v12, %v522_v11  ;;  %v525_v24 = vshrl.u32 %v4694_v14, %v522_v11  ;;  %v528_v25 = vshrl.u32 %v4692_v16, %v522_v11  ;;  %v531_v26 = vshrl.u32 %v4690_v18, %v522_v11 }
 0x100   : > { %v534_v27 = vshrl.u32 %v4698_v20, %v522_v11  ;;  %v537_v29 = vshrl.u32 %v4696_v28, %v522_v11  ;;  %vm542_vm6 = vcmp.lt.s32.totalorder %v520_v4, 4  ;;  %v626_v33 = vsub.s32 32, %v625_v8 }
 0x101   : > { %v526_v30 = vor.u32 %v525_v24, %v524_v13  ;;  %v529_v31 = vor.u32 %v528_v25, %v527_v15  ;;  %v532_v32 = vor.u32 %v531_v26, %v530_v17  ;;  %vm541_vm7 = vcmp.lt.s32.totalorder %v520_v4, 3 }
 0x102   : > { %v535_v34 = vor.u32 %v534_v27, %v533_v19  ;;  %v538_v35 = vor.u32 %v537_v29, %v536_v21  ;;  %v628_v36 = vshll.u32 %v4700_v12, %v625_v8  ;;  %v631_v44 = vshll.u32 %v4694_v14, %v625_v8 }
 0x103   : > { %v543_v37 = vsel %vm539_vm4, %v523_v23, %v526_v30  ;;  %v544_v38 = vsel %vm542_vm6, %v532_v32, 2102212464  ;;  %v547_v39 = vsel %vm539_vm4, %v526_v30, %v529_v31  ;;  %v551_v40 = vsel %vm539_vm4, %v529_v31, %v532_v32 }
 0x104   : > { %v545_v41 = vsel %vm541_vm7, %v529_v31, %v544_v38  ;;  %v548_v42 = vsel %vm542_vm6, %v535_v34, 920167782  ;;  %v552_v43 = vsel %vm542_vm6, %v538_v35, 1326507024  ;;  %v627_v53 = vshrl.u32 %v4700_v12, %v626_v33  ;;  %v471_v35 = vld [vmem:[#allocation2 + $0x18] sm:$0xff] }
 0x105   : > { %v549_v46 = vsel %vm541_vm7, %v532_v32, %v548_v42  ;;  %v553_v51 = vsel %vm541_vm7, %v535_v34, %v552_v43  ;;  %v629_v54 = vshrl.u32 %v4694_v14, %v626_v33  ;;  %v546_v55 = vsel %vm540_vm5, %v543_v37, %v545_v41 }
 0x106   : > { %v550_v56 = vsel %vm540_vm5, %v547_v39, %v549_v46  ;;  %v554_v57 = vsel %vm540_vm5, %v551_v40, %v553_v51  ;;  %v632_v58 = vshrl.u32 %v4692_v16, %v626_v33  ;;  %v634_v1 = vshll.u32 %v4692_v16, %v625_v8 }
 0x107   : > { %v2943_v59 = vmul.u32.u64.low %v2911_v7, %v554_v57  ;;  %v2944_v60 = vmul.u32.u64.high %v2911_v7, %v554_v57, %v2943_v59  ;;  %v2947_v61 = vmul.u32.u64.low %v2911_v7, %v550_v56  ;;  %v2948_v62 = vmul.u32.u64.high %v2911_v7, %v550_v56, %v2947_v61 }
 0x108   : > { %v630_v63 = vor.u32 %v629_v54, %v628_v36  ;;  %v633_v0 = vor.u32 %v632_v58, %v631_v44  ;;  %v635_v2 = vshrl.u32 %v4690_v18, %v626_v33  ;;  %v637_v3 = vshll.u32 %v4690_v18, %v625_v8 }
 0x109   : > { %v638_v4 = vshrl.u32 %v4698_v20, %v626_v33  ;;  %v640_v5 = vshll.u32 %v4698_v20, %v625_v8  ;;  %v641_v6 = vshrl.u32 %v4696_v28, %v626_v33  ;;  %v562_v11 = vmul.u32 %v2911_v7, %v546_v55 }
 0x10a   : > { %v636_v13 = vor.u32 %v635_v2, %v634_v1  ;;  %vm643_vm9 = vcmp.lt.s32.totalorder %v2922_v22, 1  ;;  %vm644_vm10 = vcmp.lt.s32.totalorder %v2922_v22, 2  ;;  %vm564_vm11 = vc.u32 %v2944_v60, %v2947_v61 }
 0x10b   : > { %v565_v15 = vadd.s32 1, %v2948_v62  ;;  %v639_v17 = vor.u32 %v638_v4, %v637_v3  ;;  %vm645_vm12 = vcmp.lt.s32.totalorder %v2922_v22, 3  ;;  %v642_v19 = vor.u32 %v641_v6, %v640_v5 }
 0x10c   : > { %vm646_vm13 = vcmp.lt.s32.totalorder %v2922_v22, 4  ;;  %v647_v8 = vsel %vm643_vm9, %v627_v53, %v630_v63  ;;  %v651_v21 = vsel %vm643_vm9, %v630_v63, %v633_v0  ;;  %v655_v25 = vsel %vm643_vm9, %v633_v0, %v636_v13 }
 0x10d   : > { %v566_v7 = vsel %vm564_vm11, %v565_v15, %v2948_v62  ;;  %v648_v23 = vsel %vm646_vm13, %v636_v13, 2102212464  ;;  %v652_v24 = vsel %vm646_vm13, %v639_v17, 920167782  ;;  %v656_v30 = vsel %vm646_vm13, %v642_v19, 1326507024 }
 0x10e   : > { %v567_v26 = vadd.s32 %v566_v7, %v562_v11  ;;  %v649_v27 = vsel %vm645_vm12, %v633_v0, %v648_v23  ;;  %v653_v29 = vsel %vm645_vm12, %v636_v13, %v652_v24  ;;  %v657_v33 = vsel %vm645_vm12, %v639_v17, %v656_v30 }
 0x10f   : > { %v650_v31 = vsel %vm644_vm10, %v647_v8, %v649_v27  ;;  %v654_v32 = vsel %vm644_vm10, %v651_v21, %v653_v29  ;;  %v727_v34 = vsel %vm726_vm8, %v2915_v10, 0  ;;  %v658_v37 = vsel %vm644_vm10, %v655_v25, %v657_v33 }
 0x110   : > { %v568_v36 = vadd.s32 536870912, %v567_v26  ;;  %v2976_v38 = vmul.u32.u64.low %v2913_v9, %v654_v32  ;;  %v2977_v39 = vmul.u32.u64.high %v2913_v9, %v654_v32, %v2976_v38  ;;  %v729_v43 = vand.u32 31, %v727_v34 }
 0x111   : > { %v2981_v40 = vmul.u32.u64.low %v2913_v9, %v658_v37  ;;  %v2982_v41 = vmul.u32.u64.high %v2913_v9, %v658_v37, %v2981_v40  ;;  %v2987_v44 = vadd.f32 %v2891_v45, %v471_v35  ;;  %v666_v10 = vmul.u32 %v2913_v9, %v650_v31 }
 0x112   : > { %v2984_v42 = vshrl.u32 %v568_v36, 30  ;;  %v715_v22 = vand.u32 2147483647, %v2900_v49  ;;  %v669_v51 = vadd.s32 1, %v2977_v39  ;;  %v730_v53 = vsub.s32 32, %v729_v43 }
 0x113   : > { %vm668_vm14 = vc.u32 %v2982_v41, %v2976_v38  ;;  %v728_v58 = vshrl.u32 %v727_v34, 5  ;;  %v822_v9 = vand.u32 2139095040, %v2987_v44  ;;  %v732_v59 = vshll.u32 %v4700_v12, %v729_v43 }
 0x114   : > { %v570_v46 = vshll.u32 %v2984_v42, 30  ;;  %v670_v55 = vsel %vm668_vm14, %v669_v51, %v2977_v39  ;;  %v722_v57 = vand.u32 8388607, %v715_v22  ;;  %v733_v62 = vshrl.u32 %v4694_v14, %v730_v53 }
 0x115   : > { %v671_v56 = vadd.s32 %v670_v55, %v666_v10  ;;  %v735_v63 = vshll.u32 %v4694_v14, %v729_v43  ;;  %v736_v0 = vshrl.u32 %v4692_v16, %v730_v53  ;;  %v738_v2 = vshll.u32 %v4692_v16, %v729_v43 }
 0x116   : > { %v2995_v54 = vsub.s32 %v567_v26, %v570_v46  ;;  %v739_v3 = vshrl.u32 %v4690_v18, %v730_v53  ;;  %v741_v4 = vshll.u32 %v4690_v18, %v729_v43  ;;  %v742_v6 = vshrl.u32 %v4698_v20, %v730_v53 }
 0x117   : > { %v672_v1 = vadd.s32 536870912, %v671_v56  ;;  %v744_v13 = vshll.u32 %v4698_v20, %v729_v43  ;;  %v745_v15 = vshrl.u32 %v4696_v28, %v730_v53  ;;  %v723_v17 = vor.u32 8388608, %v722_v57 }
 0x118   : > { %v573_v5 = vsub.s32 0, %v2995_v54  ;;  %v734_v19 = vor.u32 %v733_v62, %v732_v59  ;;  %vm750_vm15 = vcmp.lt.s32.totalorder %v728_v58, 4  ;;  %v823_v8 = vshrl.u32 %v822_v9, 23 }
 0x119   : > { %v3010_v11 = vshrl.u32 %v672_v1, 30  ;;  %v737_v7 = vor.u32 %v736_v0, %v735_v63  ;;  %v740_v23 = vor.u32 %v739_v3, %v738_v2  ;;  %v743_v24 = vor.u32 %v742_v6, %v741_v4 }
 0x11a   : > { %v2372_v25 = vmin.u32 %v573_v5, %v2995_v54  ;;  %v746_v26 = vor.u32 %v745_v15, %v744_v13  ;;  %vm747_vm0 = vcmp.lt.s32.totalorder %v728_v58, 1  ;;  %vm749_vm2 = vcmp.lt.s32.totalorder %v728_v58, 3 }
 0x11b   : > { %v674_v21 = vshll.u32 %v3010_v11, 30  ;;  %v731_v29 = vshrl.u32 %v4700_v12, %v730_v53  ;;  %v756_v30 = vsel %vm750_vm15, %v743_v24, 920167782  ;;  %vm748_vm3 = vcmp.lt.s32.totalorder %v728_v58, 2 }
 0x11c   : > { %v2383_v31 = vadd.s32 4294967169, %v823_v8  ;;  %v752_v32 = vsel %vm750_vm15, %v740_v23, 2102212464  ;;  %v755_v33 = vsel %vm747_vm0, %v734_v19, %v737_v7  ;;  %v757_v34 = vsel %vm749_vm2, %v740_v23, %v756_v30 }
 0x11d   : > { %v3016_v27 = vsub.s32 %v671_v56, %v674_v21  ;;  %v759_v35 = vsel %vm747_vm0, %v737_v7, %v740_v23  ;;  %v575_v36 = vclz %v2372_v25  ;;  %v760_v39 = vsel %vm750_vm15, %v746_v26, 1326507024 }
 0x11e   : > { %v763_v40 = vshll.u32 %v723_v17, 8  ;;  %v751_v43 = vsel %vm747_vm0, %v731_v29, %v734_v19  ;;  %v761_v10 = vsel %vm749_vm2, %v743_v24, %v760_v39  ;;  %v753_v46 = vsel %vm749_vm2, %v737_v7, %v752_v32 }
 0x11f   : > { %v677_v37 = vsub.s32 0, %v3016_v27  ;;  %v758_v51 = vsel %vm748_vm3, %v755_v33, %v757_v34  ;;  %v762_v53 = vsel %vm748_vm3, %v759_v35, %v761_v10  ;;  %v829_v55 = vadd.s32 1, %v2383_v31 }
 0x120   : > { %v2373_v56 = vadd.s32 4294967294, %v575_v36  ;;  %v3029_v9 = vmul.u32.u64.low %v763_v40, %v762_v53  ;;  %v3030_v59 = vmul.u32.u64.high %v763_v40, %v762_v53, %v3029_v9  ;;  %v754_v62 = vsel %vm748_vm3, %v751_v43, %v753_v46 }
 0x121   : > { %v2376_v57 = vmin.u32 %v677_v37, %v3016_v27  ;;  %v3033_v63 = vmul.u32.u64.low %v763_v40, %v758_v51  ;;  %v3034_v0 = vmul.u32.u64.high %v763_v40, %v758_v51, %v3033_v63  ;;  %vm830_vm4 = vcmp.gt.s32.totalorder %v829_v55, 0 }
 0x122   : > { %v831_v1 = vsel %vm830_vm4, %v829_v55, 0  ;;  %v819_v2 = vand.u32 2147483647, %v2987_v44  ;;  %v770_v5 = vmul.u32 %v763_v40, %v754_v62  ;;  %vm2374_vm6 = vcmp.lt.s32.totalorder %v2373_v56, 0 }
 0x123   : > { %v833_v3 = vand.u32 31, %v831_v1  ;;  %v679_v4 = vclz %v2376_v57  ;;  %vm772_vm5 = vc.u32 %v3030_v59, %v3033_v63  ;;  %v773_v6 = vadd.s32 1, %v3034_v0 }
 0x124   : > { %v826_v15 = vand.u32 8388607, %v819_v2  ;;  %v578_v17 = vsel %vm2374_vm6, 0, %v2373_v56  ;;  %v832_v25 = vshrl.u32 %v831_v1, 5  ;;  %v563_v40 = vadd.s32 %v2947_v61, %v2944_v60  ;;  %v472_v1 = vld [vmem:[#allocation2 + $0x20] sm:$0xff] }
 0x125   : > { %v834_v13 = vsub.s32 32, %v833_v3  ;;  %v774_v58 = vsel %vm772_vm5, %v773_v6, %v3034_v0  ;;  %v2377_v19 = vadd.s32 4294967294, %v679_v4  ;;  %v836_v21 = vshll.u32 %v4700_v12, %v833_v3 }
 0x126   : > { %v775_v8 = vadd.s32 %v774_v58, %v770_v5  ;;  %v839_v23 = vshll.u32 %v4694_v14, %v833_v3  ;;  %v845_v26 = vshll.u32 %v4690_v18, %v833_v3  ;;  %v583_v29 = vsub.s32 4294967266, %v578_v17 }
 0x127   : > { %v837_v7 = vshrl.u32 %v4694_v14, %v834_v13  ;;  %v840_v24 = vshrl.u32 %v4692_v16, %v834_v13  ;;  %v827_v30 = vor.u32 8388608, %v826_v15  ;;  %v842_v31 = vshll.u32 %v4692_v16, %v833_v3 }
 0x128   : > { %v843_v32 = vshrl.u32 %v4690_v18, %v834_v13  ;;  %vm2378_vm7 = vcmp.lt.s32.totalorder %v2377_v19, 0  ;;  %v776_v33 = vadd.s32 536870912, %v775_v8  ;;  %v846_v34 = vshrl.u32 %v4698_v20, %v834_v13 }
 0x129   : > { %v838_v35 = vor.u32 %v837_v7, %v836_v21  ;;  %v841_v36 = vor.u32 %v840_v24, %v839_v23  ;;  %v848_v37 = vshll.u32 %v4698_v20, %v833_v3  ;;  %v849_v39 = vshrl.u32 %v4696_v28, %v834_v13 }
 0x12a   : > { %v579_v43 = vsub.s32 32, %v578_v17  ;;  %v847_v10 = vor.u32 %v846_v34, %v845_v26  ;;  %vm851_vm8 = vcmp.lt.s32.totalorder %v832_v25, 1  ;;  %v584_v46 = vadd.s32 127, %v583_v29 }
 0x12b   : > { %v682_v51 = vsel %vm2378_vm7, 0, %v2377_v19  ;;  %v844_v53 = vor.u32 %v843_v32, %v842_v31  ;;  %v867_v55 = vshll.u32 %v827_v30, 8  ;;  %v3056_v56 = vshrl.u32 %v776_v33, 30 }
 0x12c   : > { %v835_v57 = vshrl.u32 %v4700_v12, %v834_v13  ;;  %vm853_vm9 = vcmp.lt.s32.totalorder %v832_v25, 3  ;;  %vm854_vm10 = vcmp.lt.s32.totalorder %v832_v25, 4  ;;  %v850_v9 = vor.u32 %v849_v39, %v848_v37 }
 0x12d   : > { %vm852_vm11 = vcmp.lt.s32.totalorder %v832_v25, 2  ;;  %v856_v62 = vsel %vm854_vm10, %v844_v53, 2102212464  ;;  %v859_v0 = vsel %vm851_vm8, %v838_v35, %v841_v36  ;;  %v580_v60 = vshll.u32 %v2995_v54, %v578_v17 }
 0x12e   : > { %v860_v61 = vsel %vm854_vm10, %v847_v10, 920167782  ;;  %v581_v3 = vshrl.u32 %v563_v40, %v579_v43  ;;  %v585_v4 = vshll.u32 %v584_v46, 23  ;;  %v687_v5 = vsub.s32 4294967266, %v682_v51 }
 0x12f   : > { %v861_v6 = vsel %vm853_vm9, %v844_v53, %v860_v61  ;;  %v778_v13 = vshll.u32 %v3056_v56, 30  ;;  %v855_v58 = vsel %vm851_vm8, %v835_v57, %v838_v35  ;;  %v857_v15 = vsel %vm853_vm9, %v841_v36, %v856_v62 }
 0x130   : > { %v862_v19 = vsel %vm852_vm11, %v859_v0, %v861_v6  ;;  %v863_v21 = vsel %vm851_vm8, %v841_v36, %v844_v53  ;;  %v864_v54 = vsel %vm854_vm10, %v850_v9, 1326507024  ;;  %v3075_v23 = vadd.f32 %v2891_v45, %v472_v1  ;;  %v473_v0 = vld [vmem:[#allocation2 + $0x28] sm:$0xff] }
 0x131   : > { %v3070_v17 = vmul.u32.u64.low %v867_v55, %v862_v19  ;;  %v3071_v7 = vmul.u32.u64.high %v867_v55, %v862_v19, %v3070_v17  ;;  %v667_v24 = vadd.s32 %v2976_v38, %v2982_v41  ;;  %v582_v26 = vor.u32 %v581_v3, %v580_v60  ;;  %v476_v19 = vld [vmem:[#allocation2 + $0x40] sm:$0xff] }
 0x132   : > { %v586_v29 = vor.u32 4788187, %v585_v4  ;;  %v683_v30 = vsub.s32 32, %v682_v51  ;;  %v865_v31 = vsel %vm853_vm9, %v847_v10, %v864_v54  ;;  %v688_v32 = vadd.s32 127, %v687_v5 }
 0x133   : > { %v3080_v33 = vsub.s32 %v775_v8, %v778_v13  ;;  %v858_v34 = vsel %vm852_vm11, %v855_v58, %v857_v15  ;;  %v866_v35 = vsel %vm852_vm11, %v863_v21, %v865_v31  ;;  %v593_v36 = vsub.s32 4, %v2984_v42  ;;  %v474_v13 = vld [vmem:[#allocation2 + $0x30] sm:$0xff]  ;;  %v475_v15 = vld [vmem:[#allocation2 + $0x38] sm:$0xff]  ;;  %v477_v21 = vld [vmem:[#allocation2 + $0x48] sm:$0xff] }
 0x134   : > { %v3085_v37 = vmul.u32.u64.low %v867_v55, %v866_v35  ;;  %v3086_v39 = vmul.u32.u64.high %v867_v55, %v866_v35, %v3085_v37  ;;  %vm509_vm12 = vcmp.lt.s32.totalorder %v2894_v47, 0  ;;  %v877_v38 = vadd.s32 1, %v3071_v7 }
 0x135   : > { %v587_v41 = vand.u32 2147483647, %v586_v29  ;;  %v589_v40 = vcvt.s32.f32 %v582_v26  ;;  %v874_v43 = vmul.u32 %v867_v55, %v858_v34  ;;  %v926_v10 = vand.u32 2139095040, %v3075_v23 }
 0x136   : > { %v684_v8 = vshll.u32 %v3016_v27, %v682_v51  ;;  %v685_v46 = vshrl.u32 %v667_v24, %v683_v30  ;;  %v689_v53 = vshll.u32 %v688_v32, 23  ;;  %v781_v25 = vsub.s32 0, %v3080_v33 }
 0x137   : > { %v594_v57 = vsel %vm509_vm12, %v593_v36, %v2984_v42  ;;  %vm876_vm13 = vc.u32 %v3086_v39, %v3070_v17  ;;  %v927_v9 = vshrl.u32 %v926_v10, 23  ;;  %vm3101_vm14 = vcmp.le.f32.partialorder %v507_v50, 0.7853982 }
 0x138   : > { %v878_v62 = vsel %vm876_vm13, %v877_v38, %v3071_v7  ;;  %v590_v27 = vmul.f32 %v589_v40, %v587_v41  ;;  %v596_v61 = vsel %vm3101_vm14, 0, %v594_v57  ;;  %v686_v42 = vor.u32 %v685_v46, %v684_v8 }
 0x139   : > { %v879_v51 = vadd.s32 %v878_v62, %v874_v43  ;;  %v2387_v60 = vadd.s32 4294967169, %v927_v9  ;;  %v690_v1 = vor.u32 4788187, %v689_v53  ;;  %v2380_v3 = vmin.u32 %v781_v25, %v3080_v33 }
 0x13a   : > { %v3109_v6 = vadd.f32 %v2891_v45, %v473_v0  ;;  %v591_v50 = vxor.u32 2147483648, %v590_v27  ;;  %v600_v58 = vadd.s32 3, %v596_v61  ;;  %v693_v7 = vcvt.s32.f32 %v686_v42 }
 0x13b   : > { %v880_v4 = vadd.s32 536870912, %v879_v51  ;;  %v933_v5 = vadd.s32 1, %v2387_v60  ;;  %v691_v54 = vand.u32 2147483647, %v690_v1  ;;  %v783_v24 = vclz %v2380_v3 }
 0x13c   : > { %v4689_v30 = vand.u32 2147483647, %v3075_v23  ;;  %v3115_v31 = vadd.f32 %v2891_v45, %v474_v13  ;;  %v1030_v34 = vand.u32 2139095040, %v3109_v6  ;;  %v3119_v35 = vadd.f32 %v2891_v45, %v475_v15 }
 0x13d   : > { %vm934_vm15 = vcmp.gt.s32.totalorder %v933_v5, 0  ;;  %v3111_v29 = vshrl.u32 %v880_v4, 30  ;;  %v3122_v36 = vadd.f32 %v2891_v45, %v476_v19  ;;  %v3125_v37 = vadd.f32 %v2891_v45, %v477_v21 }
 0x13e   : > { %v935_v26 = vsel %vm934_vm15, %v933_v5, 0  ;;  %v3127_v38 = vand.u32 3, %v600_v58  ;;  %v592_v41 = vsel %vm509_vm12, %v591_v50, %v590_v27  ;;  %v3131_v40 = vmul.f32 %v693_v7, %v691_v54 }
 0x13f   : > { %v937_v32 = vand.u32 31, %v935_v26  ;;  %v2381_v43 = vadd.s32 4294967294, %v783_v24  ;;  %v882_v8 = vshll.u32 %v3111_v29, 30  ;;  %v930_v46 = vand.u32 8388607, %v4689_v30 }
 0x140   : > { %v936_v57 = vshrl.u32 %v935_v26, 5  ;;  %v1031_v0 = vshrl.u32 %v1030_v34, 23  ;;  %v697_v27 = vsub.s32 4, %v3010_v11  ;;  %v771_v60 = vadd.s32 %v3033_v63, %v3030_v59 }
 0x141   : > { %v938_v10 = vsub.s32 32, %v937_v32  ;;  %v940_v53 = vshll.u32 %v4700_v12, %v937_v32  ;;  %v943_v25 = vshll.u32 %v4694_v14, %v937_v32  ;;  %v946_v61 = vshll.u32 %v4692_v16, %v937_v32 }
 0x142   : > { %v595_v1 = vsel %vm3101_vm14, %v2894_v47, %v592_v41  ;;  %v695_v3 = vxor.u32 2147483648, %v3131_v40  ;;  %vm2382_vm0 = vcmp.lt.s32.totalorder %v2381_v43, 0  ;;  %v949_v4 = vshll.u32 %v4690_v18, %v937_v32 }
 0x143   : > { %v941_v9 = vshrl.u32 %v4694_v14, %v938_v10  ;;  %v944_v62 = vshrl.u32 %v4692_v16, %v938_v10  ;;  %v947_v42 = vshrl.u32 %v4690_v18, %v938_v10  ;;  %vm613_vm2 = vcmp.lt.s32.totalorder %v2897_v48, 0 }
 0x144   : > { %v3151_v5 = vsub.s32 %v879_v51, %v882_v8  ;;  %v931_v13 = vor.u32 8388608, %v930_v46  ;;  %v950_v63 = vshrl.u32 %v4698_v20, %v938_v10  ;;  %v952_v58 = vshll.u32 %v4698_v20, %v937_v32 }
 0x145   : > { %v942_v50 = vor.u32 %v941_v9, %v940_v53  ;;  %v945_v59 = vor.u32 %v944_v62, %v943_v25  ;;  %vm955_vm3 = vcmp.lt.s32.totalorder %v936_v57, 1  ;;  %v2391_v15 = vadd.s32 4294967169, %v1031_v0 }
 0x146   : > { %v939_v55 = vshrl.u32 %v4700_v12, %v938_v10  ;;  %v948_v19 = vor.u32 %v947_v42, %v946_v61  ;;  %v953_v21 = vshrl.u32 %v4696_v28, %v938_v10  ;;  %vm958_vm4 = vcmp.lt.s32.totalorder %v936_v57, 4 }
 0x147   : > { %vm3159_vm5 = vcmp.le.f32.partialorder %v611_v52, 0.7853982  ;;  %v786_v54 = vsel %vm2382_vm0, 0, %v2381_v43  ;;  %v951_v7 = vor.u32 %v950_v63, %v949_v4  ;;  %vm956_vm6 = vcmp.lt.s32.totalorder %v936_v57, 2 }
 0x148   : > { %vm957_vm7 = vcmp.lt.s32.totalorder %v936_v57, 3  ;;  %v885_v24 = vsub.s32 0, %v3151_v5  ;;  %v954_v26 = vor.u32 %v953_v21, %v952_v58  ;;  %v960_v32 = vsel %vm958_vm4, %v948_v19, 2102212464 }
 0x149   : > { %v963_v34 = vsel %vm955_vm3, %v942_v50, %v945_v59  ;;  %v787_v41 = vsub.s32 32, %v786_v54  ;;  %v964_v10 = vsel %vm958_vm4, %v951_v7, 920167782  ;;  %v971_v8 = vshll.u32 %v931_v13, 8 }
 0x14a   : > { %v1037_v52 = vadd.s32 1, %v2391_v15  ;;  %v791_v46 = vsub.s32 4294967266, %v786_v54  ;;  %v959_v53 = vsel %vm955_vm3, %v939_v55, %v942_v50  ;;  %v965_v43 = vsel %vm957_vm7, %v948_v19, %v964_v10 }
 0x14b   : > { %v967_v25 = vsel %vm955_vm3, %v945_v59, %v948_v19  ;;  %v961_v9 = vsel %vm957_vm7, %v945_v59, %v960_v32  ;;  %v966_v62 = vsel %vm956_vm6, %v963_v34, %v965_v43  ;;  %v968_v0 = vsel %vm958_vm4, %v954_v26, 1326507024 }
 0x14c   : > { %vm1038_vm8 = vcmp.gt.s32.totalorder %v1037_v52, 0  ;;  %v2384_v61 = vmin.u32 %v885_v24, %v3151_v5  ;;  %v969_v42 = vsel %vm957_vm7, %v951_v7, %v968_v0  ;;  %v4687_v4 = vand.u32 2147483647, %v3109_v6 }
 0x14d   : > { %v1039_v13 = vsel %vm1038_vm8, %v1037_v52, 0  ;;  %2605 = vcosq.f32 %v595_v1  ;;  %v970_v50 = vsel %vm956_vm6, %v967_v25, %v969_v42  ;;  %v788_v59 = vshll.u32 %v3080_v33, %v786_v54 }
 0x14e   : > { %v3178_v63 = vmul.u32.u64.low %v971_v8, %v966_v62  ;;  %v3179_v58 = vmul.u32.u64.high %v971_v8, %v966_v62, %v3178_v63  ;;  %v789_v15 = vshrl.u32 %v771_v60, %v787_v41  ;;  %v962_v55 = vsel %vm956_vm6, %v959_v53, %v961_v9 }
 0x14f   : > { %v1041_v19 = vand.u32 31, %v1039_v13  ;;  %v696_v21 = vsel %vm613_vm2, %v695_v3, %v3131_v40  ;;  %v792_v7 = vadd.s32 127, %v791_v46  ;;  %2607 = vsinq.f32 %v595_v1 }
 0x150   : > { %v3187_v24 = vmul.u32.u64.low %v971_v8, %v970_v50  ;;  %v3188_v26 = vmul.u32.u64.high %v971_v8, %v970_v50, %v3187_v24  ;;  %v887_v32 = vclz %v2384_v61  ;;  %v1034_v34 = vand.u32 8388607, %v4687_v4 }
 0x151   : > { %v1042_v10 = vsub.s32 32, %v1041_v19  ;;  %v801_v33 = vsub.s32 4, %v3056_v56  ;;  %v978_v60 = vmul.u32 %v971_v8, %v962_v55  ;;  %v981_v57 = vadd.s32 1, %v3179_v58 }
 0x152   : > { %v1044_v54 = vshll.u32 %v4700_v12, %v1041_v19  ;;  %v3198_v40 = vsel %vm3159_vm5, %v2897_v48, %v696_v21  ;;  %v3200_v3 = vor.u32 %v789_v15, %v788_v59  ;;  %v1047_v41 = vshll.u32 %v4694_v14, %v1041_v19 }
 0x153   : > { %v1045_v1 = vshrl.u32 %v4694_v14, %v1042_v10  ;;  %v793_v52 = vshll.u32 %v792_v7, 23  ;;  %vm980_vm9 = vc.u32 %v3188_v26, %v3178_v63  ;;  %v1040_v8 = vshrl.u32 %v1039_v13, 5 }
 0x154   : > { %v1048_v46 = vshrl.u32 %v4692_v16, %v1042_v10  ;;  %v2385_v53 = vadd.s32 4294967294, %v887_v32  ;;  %v982_v43 = vsel %vm980_vm9, %v981_v57, %v3179_v58  ;;  %v1035_v25 = vor.u32 8388608, %v1034_v34 }
 0x155   : > { %v1050_v9 = vshll.u32 %v4692_v16, %v1041_v19  ;;  %v983_v62 = vadd.s32 %v982_v43, %v978_v60  ;;  %v1046_v0 = vor.u32 %v1045_v1, %v1044_v54  ;;  %v1051_v61 = vshrl.u32 %v4690_v18, %v1042_v10 }
 0x156   : > { %v1053_v42 = vshll.u32 %v4690_v18, %v1041_v19  ;;  %v1049_v50 = vor.u32 %v1048_v46, %v1047_v41  ;;  %v1054_v59 = vshrl.u32 %v4698_v20, %v1042_v10  ;;  %v1056_v15 = vshll.u32 %v4698_v20, %v1041_v19 }
 0x157   : > { %v1057_v13 = vshrl.u32 %v4696_v28, %v1042_v10  ;;  %v3214_v55 = vpop.eup %2605  ;;  %v984_v21 = vadd.s32 536870912, %v983_v62  ;;  %v1043_v58 = vshrl.u32 %v4700_v12, %v1042_v10  ;;  %v1052_v7 = vor.u32 %v1051_v61, %v1050_v9 }
 0x158   : > { %vm1059_vm10 = vcmp.lt.s32.totalorder %v1040_v8, 1  ;;  %vm2386_vm11 = vcmp.lt.s32.totalorder %v2385_v53, 0  ;;  %v1055_v24 = vor.u32 %v1054_v59, %v1053_v42  ;;  %vm1062_vm12 = vcmp.lt.s32.totalorder %v1040_v8, 4  ;;  %v478_v59 = vld [vmem:[#allocation2 + $0x50] sm:$0xff] }
 0x159   : > { %v1058_v32 = vor.u32 %v1057_v13, %v1056_v15  ;;  %v794_v34 = vor.u32 4788187, %v793_v52  ;;  %v3217_v60 = vshrl.u32 %v984_v21, 30  ;;  %vm1061_vm13 = vcmp.lt.s32.totalorder %v1040_v8, 3  ;;  %v3220_v19 = vpop.eup %2607 }
 0x15a   : > { %v1064_v57 = vsel %vm1062_vm12, %v1052_v7, 2102212464  ;;  %v797_v54 = vcvt.s32.f32 %v3200_v3  ;;  %vm1060_vm14 = vcmp.lt.s32.totalorder %v1040_v8, 2  ;;  %v1067_v1 = vsel %vm1059_vm10, %v1046_v0, %v1049_v50 }
 0x15b   : > { %v1068_v10 = vsel %vm1062_vm12, %v1055_v24, 920167782  ;;  %v3225_v41 = vsel %vm2386_vm11, 0, %v2385_v53  ;;  %v986_v46 = vshll.u32 %v3217_v60, 30  ;;  %v1063_v52 = vsel %vm1059_vm10, %v1043_v58, %v1046_v0 }
 0x15c   : > { %v1065_v43 = vsel %vm1061_vm13, %v1049_v50, %v1064_v57  ;;  %v1069_v9 = vsel %vm1061_vm13, %v1052_v7, %v1068_v10  ;;  %v1071_v61 = vsel %vm1059_vm10, %v1049_v50, %v1052_v7  ;;  %v1072_v42 = vsel %vm1062_vm12, %v1058_v32, 1326507024 }
 0x15d   : > { %v1075_v3 = vshll.u32 %v1035_v25, 8  ;;  %v795_v15 = vand.u32 2147483647, %v794_v34  ;;  %v3233_v13 = vsub.s32 %v983_v62, %v986_v46  ;;  %v1070_v53 = vsel %vm1060_vm14, %v1067_v1, %v1069_v9 }
 0x15e   : > { %v1073_v21 = vsel %vm1061_vm13, %v1055_v24, %v1072_v42  ;;  %v895_v4 = vsub.s32 4294967266, %v3225_v41  ;;  %v1066_v25 = vsel %vm1060_vm14, %v1063_v52, %v1065_v43  ;;  %v3249_v62 = vadd.f32 %v2891_v45, %v478_v59  ;;  %v479_v43 = vld [vmem:[#allocation2 + $0x58] sm:$0xff] }
 0x15f   : > { %v1074_v0 = vsel %vm1060_vm14, %v1071_v61, %v1073_v21  ;;  %v3239_v58 = vmul.u32.u64.low %v1075_v3, %v1070_v53  ;;  %v3240_v57 = vmul.u32.u64.high %v1075_v3, %v1070_v53, %v3239_v58  ;;  %v989_v50 = vsub.s32 0, %v3233_v13 }
 0x160   : > { %v3245_v7 = vmul.u32.u64.low %v1075_v3, %v1074_v0  ;;  %v3246_v32 = vmul.u32.u64.high %v1075_v3, %v1074_v0, %v3245_v7  ;;  %2609 = vcosq.f32 %v3198_v40  ;;  %vm3254_vm15 = vcmp.le.f32.partialorder %v715_v22, 0.7853982  ;;  %v481_v0 = vld [vmem:[#allocation2 + $0x68] sm:$0xff] }
 0x161   : > { %vm717_vm0 = vcmp.lt.s32.totalorder %v2900_v49, 0  ;;  %v698_v8 = vsel %vm613_vm2, %v697_v27, %v3010_v11  ;;  %2611 = vsinq.f32 %v3198_v40  ;;  %v1134_v22 = vand.u32 2139095040, %v3115_v31  ;;  %v482_v7 = vld [vmem:[#allocation2 + $0x70] sm:$0xff] }
 0x162   : > { %v802_v34 = vsel %vm717_vm0, %v801_v33, %v3056_v56  ;;  %v798_v1 = vmul.f32 %v797_v54, %v795_v15  ;;  %v2388_v10 = vmin.u32 %v989_v50, %v3233_v13  ;;  %v1082_v46 = vmul.u32 %v1075_v3, %v1066_v25  ;;  %v480_v54 = vld [vmem:[#allocation2 + $0x60] sm:$0xff] }
 0x163   : > { %v1085_v52 = vadd.s32 1, %v3240_v57  ;;  %vm603_vm3 = vcmp.eq.s32.totalorder %v3127_v38, 0  ;;  %v875_v11 = vadd.s32 %v3070_v17, %v3086_v39  ;;  %v891_v27 = vsub.s32 32, %v3225_v41 }
 0x164   : > { %v896_v40 = vadd.s32 127, %v895_v4  ;;  %vm606_vm2 = vcmp.eq.s32.totalorder %v3127_v38, 2  ;;  %v700_v56 = vsel %vm3159_vm5, 0, %v698_v8  ;;  %vm1084_vm4 = vc.u32 %v3246_v32, %v3239_v58  ;;  %v483_v8 = vld [vmem:[#allocation2 + $0x78] sm:$0xff] }
 0x165   : > { %v1135_v33 = vshrl.u32 %v1134_v22, 23  ;;  %v604_v9 = vxor.u32 2147483648, %v3220_v19  ;;  %v607_v61 = vxor.u32 2147483648, %v3214_v55  ;;  %v804_v17 = vsel %vm3254_vm15, 0, %v802_v34 }
 0x166   : > { %v1086_v39 = vsel %vm1084_vm4, %v1085_v52, %v3240_v57  ;;  %v799_v4 = vxor.u32 2147483648, %v798_v1  ;;  %v991_v42 = vclz %v2388_v10  ;;  %v3288_v51 = vadd.f32 %v2891_v45, %v479_v43 }
 0x167   : > { %v1087_v3 = vadd.s32 %v1086_v39, %v1082_v46  ;;  %v2395_v59 = vadd.s32 4294967169, %v1135_v33  ;;  %v892_v15 = vshll.u32 %v3151_v5, %v3225_v41  ;;  %v893_v53 = vshrl.u32 %v875_v11, %v891_v27 }
 0x168   : > { %v897_v21 = vshll.u32 %v896_v40, 23  ;;  %v3293_v50 = vadd.f32 %v2891_v45, %v480_v54  ;;  %vm602_vm5 = vcmp.lt.s32.totalorder %v3127_v38, 2  ;;  %v605_v34 = vsel %vm603_vm3, %v3214_v55, %v604_v9 }
 0x169   : > { %v1088_v25 = vadd.s32 536870912, %v1087_v3  ;;  %v1141_v57 = vadd.s32 1, %v2395_v59  ;;  %v608_v5 = vsel %vm606_vm2, %v607_v61, %v3220_v19  ;;  %v704_v41 = vadd.s32 3, %v700_v56 }
 0x16a   : > { %v808_v22 = vadd.s32 3, %v804_v17  ;;  %v3302_v10 = vpop.eup %2609  ;;  %v800_v46 = vsel %vm717_vm0, %v799_v4, %v798_v1  ;;  %v2389_v52 = vadd.s32 4294967294, %v991_v42  ;;  %v3311_v40 = vadd.f32 %v2891_v45, %v481_v0 }
 0x16b   : > { %v3306_v11 = vshrl.u32 %v1088_v25, 30  ;;  %vm1142_vm6 = vcmp.gt.s32.totalorder %v1141_v57, 0  ;;  %v3308_v27 = vpop.eup %2611  ;;  %v894_v55 = vor.u32 %v893_v53, %v892_v15  ;;  %v898_v43 = vor.u32 4788187, %v897_v21 }
 0x16c   : > { %v1143_v33 = vsel %vm1142_vm6, %v1141_v57, 0  ;;  %v3314_v19 = vadd.f32 %v2891_v45, %v482_v7  ;;  %v3317_v56 = vadd.f32 %v2891_v45, %v483_v8  ;;  %v4688_v1 = vand.u32 2147483647, %v3115_v31 }
 0x16d   : > { %v1145_v54 = vand.u32 31, %v1143_v33  ;;  %v3322_v9 = vsel %vm602_vm5, %v605_v34, %v608_v5  ;;  %v3324_v61 = vand.u32 3, %v704_v41  ;;  %v803_v17 = vsel %vm3254_vm15, %v2900_v49, %v800_v46 }
 0x16e   : > { %4714 = vst [vmem:[#allocation5_spill] sm:$0xff] %v3314_v19  ;;  %4715 = vst [vmem:[#allocation6_spill] sm:$0xff] %v3317_v56  ;;  %v3329_v39 = vand.u32 3, %v808_v22  ;;  %v711_v4 = vxor.u32 2147483648, %v3302_v10  ;;  %vm2390_vm7 = vcmp.lt.s32.totalorder %v2389_v52, 0  ;;  %v1090_v45 = vshll.u32 %v3306_v11, 30 }
 0x16f   : > { %v1146_v42 = vsub.s32 32, %v1145_v54  ;;  %v708_v59 = vxor.u32 2147483648, %v3308_v27  ;;  %v899_v15 = vand.u32 2147483647, %v898_v43  ;;  %v901_v38 = vcvt.s32.f32 %v894_v55 }
 0x170   : > { %v905_v53 = vsub.s32 4, %v3111_v29  ;;  %2613 = vcosq.f32 %v803_v17  ;;  %v1138_v21 = vand.u32 8388607, %v4688_v1  ;;  %v1148_v24 = vshll.u32 %v4700_v12, %v1145_v54 }
 0x171   : > { %v1149_v0 = vshrl.u32 %v4694_v14, %v1146_v42  ;;  %v3339_v25 = vsel %vm2390_vm7, 0, %v2389_v52  ;;  %v1144_v57 = vshrl.u32 %v1143_v33, 5  ;;  %v1151_v7 = vshll.u32 %v4694_v14, %v1145_v54 }
 0x172   : > { %v1152_v8 = vshrl.u32 %v4692_v16, %v1146_v42  ;;  %v3343_v34 = vsub.s32 %v1087_v3, %v1090_v45  ;;  %v1154_v5 = vshll.u32 %v4692_v16, %v1145_v54  ;;  %v1155_v41 = vshrl.u32 %v4690_v18, %v1146_v42 }
 0x173   : > { %v1157_v22 = vshll.u32 %v4690_v18, %v1145_v54  ;;  %2615 = vsinq.f32 %v803_v17  ;;  %v902_v46 = vmul.f32 %v901_v38, %v899_v15  ;;  %v1158_v55 = vshrl.u32 %v4698_v20, %v1146_v42 }
 0x174   : > { %v1238_v52 = vand.u32 2139095040, %v3119_v35  ;;  %vm599_vm8 = vweird.f32 %v2894_v47  ;;  %vm707_vm9 = vcmp.eq.s32.totalorder %v3324_v61, 0  ;;  %vm710_vm10 = vcmp.eq.s32.totalorder %v3324_v61, 2 }
 0x175   : > { %v979_v3 = vadd.s32 %v3178_v63, %v3188_v26  ;;  %v999_v43 = vsub.s32 4294967266, %v3339_v25  ;;  %v1139_v33 = vor.u32 8388608, %v1138_v21  ;;  %v1150_v45 = vor.u32 %v1149_v0, %v1148_v24 }
 0x176   : > { %vm821_vm11 = vcmp.lt.s32.totalorder %v2987_v44, 0  ;;  %v1153_v17 = vor.u32 %v1152_v8, %v1151_v7  ;;  %v1159_v15 = vor.u32 %v1158_v55, %v1157_v22  ;;  %v1160_v38 = vshll.u32 %v4698_v20, %v1145_v54 }
 0x177   : > { %v1161_v1 = vshrl.u32 %v4696_v28, %v1146_v42  ;;  %v1093_v30 = vsub.s32 0, %v3343_v34  ;;  %v1147_v18 = vshrl.u32 %v4700_v12, %v1146_v42  ;;  %v1156_v16 = vor.u32 %v1155_v41, %v1154_v5 }
 0x178   : > { %vm1163_vm12 = vcmp.lt.s32.totalorder %v1144_v57, 1  ;;  %v903_v14 = vxor.u32 2147483648, %v902_v46  ;;  %vm1166_vm13 = vcmp.lt.s32.totalorder %v1144_v57, 4  ;;  %v1239_v26 = vshrl.u32 %v1238_v52, 23 }
 0x179   : > { %v1162_v63 = vor.u32 %v1161_v1, %v1160_v38  ;;  %vm706_vm14 = vcmp.lt.s32.totalorder %v3324_v61, 2  ;;  %v995_v21 = vsub.s32 32, %v3339_v25  ;;  %v1000_v24 = vadd.s32 127, %v999_v43 }
 0x17a   : > { %vm1165_vm15 = vcmp.lt.s32.totalorder %v1144_v57, 3  ;;  %v1168_v54 = vsel %vm1166_vm13, %v1156_v16, 2102212464  ;;  %vm3366_vm0 = vcmp.le.f32.partialorder %v819_v2, 0.7853982  ;;  %vm1164_vm3 = vcmp.lt.s32.totalorder %v1144_v57, 2  ;;  %v3372_v8 = vpop.eup %2613 }
 0x17b   : > { %v1171_v42 = vsel %vm1163_vm12, %v1150_v45, %v1153_v17  ;;  %v1172_v1 = vsel %vm1166_vm13, %v1159_v15, 920167782  ;;  %v1179_v7 = vshll.u32 %v1139_v33, 8  ;;  %v996_v5 = vshll.u32 %v3233_v13, %v3339_v25 }
 0x17c   : > { %v2392_v41 = vmin.u32 %v1093_v30, %v3343_v34  ;;  %v1167_v22 = vsel %vm1163_vm12, %v1147_v18, %v1150_v45  ;;  %v1169_v2 = vsel %vm1165_vm15, %v1153_v17, %v1168_v54  ;;  %v1173_v55 = vsel %vm1165_vm15, %v1156_v16, %v1172_v1 }
 0x17d   : > { %v1175_v52 = vsel %vm1163_vm12, %v1153_v17, %v1156_v16  ;;  %v1176_v43 = vsel %vm1166_vm13, %v1162_v63, 1326507024  ;;  %v2399_v38 = vadd.s32 4294967169, %v1239_v26  ;;  %v997_v28 = vshrl.u32 %v979_v3, %v995_v21  ;;  %v3384_v13 = vpop.eup %2615 }
 0x17e   : > { %v1001_v33 = vshll.u32 %v1000_v24, 23  ;;  %v1174_v20 = vsel %vm1164_vm3, %v1171_v42, %v1173_v55  ;;  %v1177_v12 = vsel %vm1165_vm15, %v1159_v15, %v1176_v43  ;;  %v1170_v30 = vsel %vm1164_vm3, %v1167_v22, %v1169_v2 }
 0x17f   : > { %v1178_v18 = vsel %vm1164_vm3, %v1175_v52, %v1177_v12  ;;  %v3388_v25 = vmul.u32.u64.low %v1179_v7, %v1174_v20  ;;  %v3389_v45 = vmul.u32.u64.high %v1179_v7, %v1174_v20, %v3388_v25  ;;  %vm814_vm2 = vcmp.eq.s32.totalorder %v3329_v39, 2 }
 0x180   : > { %v1095_v16 = vclz %v2392_v41  ;;  %v3393_v17 = vmul.u32.u64.low %v1179_v7, %v1178_v18  ;;  %v3394_v3 = vmul.u32.u64.high %v1179_v7, %v1178_v18, %v3393_v17  ;;  %v3399_v15 = vsel %vm599_vm8, nan, %v3322_v9 }
 0x181   : > { %4718 = vst [vmem:[#allocation7_spill] sm:$0xff] %v3399_v15  ;;  %v709_v12 = vsel %vm707_vm9, %v3302_v10, %v708_v59  ;;  %v712_v20 = vsel %vm710_vm10, %v711_v4, %v3308_v27  ;;  %v1245_v57 = vadd.s32 1, %v2399_v38  ;;  %v904_v63 = vsel %vm821_vm11, %v903_v14, %v902_v46 }
 0x182   : > { %v3418_v47 = vsel %vm821_vm11, %v905_v53, %v3111_v29  ;;  %vm925_vm4 = vcmp.lt.s32.totalorder %v3075_v23, 0  ;;  %v1186_v9 = vmul.u32 %v1179_v7, %v1170_v30  ;;  %v4702_v59 = vand.u32 2147483647, %v3119_v35 }
 0x183   : > { %v998_v10 = vor.u32 %v997_v28, %v996_v5  ;;  %v1002_v26 = vor.u32 4788187, %v1001_v33  ;;  %v1189_v27 = vadd.s32 1, %v3389_v45  ;;  %vm1246_vm5 = vcmp.gt.s32.totalorder %v1245_v57, 0 }
 0x184   : > { %v815_v4 = vxor.u32 2147483648, %v3372_v8  ;;  %v2393_v14 = vadd.s32 4294967294, %v1095_v16  ;;  %vm1188_vm6 = vc.u32 %v3394_v3, %v3388_v25  ;;  %v1247_v46 = vsel %vm1246_vm5, %v1245_v57, 0 }
 0x185   : > { %v3428_v29 = vsel %vm706_vm14, %v709_v12, %v712_v20  ;;  %v1190_v28 = vsel %vm1188_vm6, %v1189_v27, %v3389_v45  ;;  %v1249_v21 = vand.u32 31, %v1247_v46  ;;  %v3438_v54 = vsel %vm3366_vm0, %v2987_v44, %v904_v63 }
 0x186   : > { %v1009_v42 = vsub.s32 4, %v3217_v60  ;;  %v1191_v1 = vadd.s32 %v1190_v28, %v1186_v9  ;;  %v1003_v61 = vand.u32 2147483647, %v1002_v26  ;;  %v1005_v7 = vcvt.s32.f32 %v998_v10 }
 0x187   : > { %v1242_v5 = vand.u32 8388607, %v4702_v59  ;;  %v1250_v41 = vsub.s32 32, %v1249_v21  ;;  %v3446_v22 = vsel %vm814_vm2, %v815_v4, %v3384_v13  ;;  %vm2394_vm7 = vcmp.lt.s32.totalorder %v2393_v14, 0 }
 0x188   : > { %v1192_v2 = vadd.s32 536870912, %v1191_v1  ;;  %v4719_v55 = vmov 683565275   ;;  %vm811_vm8 = vcmp.eq.s32.totalorder %v3329_v39, 0  ;;  %2617 = vcosq.f32 %v3438_v54 }
 0x189   : > { %v1252_v52 = vshll.u32 %v4719_v55, %v1249_v21  ;;  %v4720_v43 = vmov 2475754826   ;;  %v4721_v30 = vmov 2131351028   ;;  %v1248_v16 = vshrl.u32 %v1247_v46, 5 }
 0x18a   : > { %v1253_v38 = vshrl.u32 %v4720_v43, %v1250_v41  ;;  %v1255_v33 = vshll.u32 %v4720_v43, %v1249_v21  ;;  %v1256_v18 = vshrl.u32 %v4721_v30, %v1250_v41  ;;  %v3454_v45 = vshrl.u32 %v1192_v2, 30 }
 0x18b   : > { %v1258_v17 = vshll.u32 %v4721_v30, %v1249_v21  ;;  %v4722_v12 = vmov 2102212464   ;;  %v1006_v57 = vmul.f32 %v1005_v7, %v1003_v61  ;;  %v3461_v63 = vsel %vm925_vm4, %v1009_v42, %v3217_v60 }
 0x18c   : > { %v1259_v20 = vshrl.u32 %v4722_v12, %v1250_v41  ;;  %v3463_v9 = vsel %vm2394_vm7, 0, %v2393_v14  ;;  %v1243_v10 = vor.u32 8388608, %v1242_v5  ;;  %v4723_v26 = vand.u32 2147483647, %v3075_v23 }
 0x18d   : > { %v1194_v4 = vshll.u32 %v3454_v45, 30  ;;  %v1251_v46 = vshrl.u32 %v4719_v55, %v1250_v41  ;;  %v1254_v28 = vor.u32 %v1253_v38, %v1252_v52  ;;  %v1342_v61 = vand.u32 2139095040, %v3122_v36 }
 0x18e   : > { %vm3467_vm9 = vcmp.le.f32.partialorder %v4723_v26, 0.7853982  ;;  %v1257_v7 = vor.u32 %v1256_v18, %v1255_v33  ;;  %v1261_v60 = vshll.u32 %v4722_v12, %v1249_v21  ;;  %v4726_v42 = vmov 920167782  }
 0x18f   : > { %v1262_v14 = vshrl.u32 %v4726_v42, %v1250_v41  ;;  %v1264_v5 = vshll.u32 %v4726_v42, %v1249_v21  ;;  %v3477_v2 = vsub.s32 %v1191_v1, %v1194_v4  ;;  %v1260_v26 = vor.u32 %v1259_v20, %v1258_v17 }
 0x190   : > { %v4727_v59 = vmov 1326507024   ;;  %vm1267_vm10 = vcmp.lt.s32.totalorder %v1248_v16, 1  ;;  %vm703_vm11 = vweird.f32 %v2897_v48  ;;  %vm810_vm12 = vcmp.lt.s32.totalorder %v3329_v39, 2 }
 0x191   : > { %v1265_v53 = vshrl.u32 %v4727_v59, %v1250_v41  ;;  %v1007_v52 = vxor.u32 2147483648, %v1006_v57  ;;  %v1103_v38 = vsub.s32 4294967266, %v3463_v9  ;;  %v1263_v33 = vor.u32 %v1262_v14, %v1261_v60 }
 0x192   : > { %vm1269_vm13 = vcmp.lt.s32.totalorder %v1248_v16, 3  ;;  %v1197_v18 = vsub.s32 0, %v3477_v2  ;;  %vm1268_vm14 = vcmp.lt.s32.totalorder %v1248_v16, 2  ;;  %vm1270_vm15 = vcmp.lt.s32.totalorder %v1248_v16, 4  ;;  %v3490_v15 = vpop.eup %2617 }
 0x193   : > { %v1266_v24 = vor.u32 %v1265_v53, %v1264_v5  ;;  %v1272_v21 = vsel %vm1270_vm15, %v1260_v26, 2102212464  ;;  %v1275_v1 = vsel %vm1267_vm10, %v1254_v28, %v1257_v7  ;;  %v1276_v17 = vsel %vm1270_vm15, %v1263_v33, 920167782 }
 0x194   : > { %v1283_v41 = vshll.u32 %v1243_v10, 8  ;;  %vm807_vm3 = vweird.f32 %v2900_v49  ;;  %vm1029_vm2 = vcmp.lt.s32.totalorder %v3109_v6, 0  ;;  %v2396_v20 = vmin.u32 %v1197_v18, %v3477_v2 }
 0x195   : > { %v1271_v4 = vsel %vm1267_vm10, %v1251_v46, %v1254_v28  ;;  %v1277_v60 = vsel %vm1269_vm13, %v1260_v26, %v1276_v17  ;;  %v1343_v14 = vshrl.u32 %v1342_v61, 23  ;;  %v1273_v53 = vsel %vm1269_vm13, %v1257_v7, %v1272_v21 }
 0x196   : > { %v1278_v5 = vsel %vm1268_vm14, %v1275_v1, %v1277_v60  ;;  %v1279_v56 = vsel %vm1267_vm10, %v1257_v7, %v1260_v26  ;;  %v1280_v10 = vsel %vm1270_vm15, %v1266_v24, 1326507024  ;;  %v4728_v19 = vxor.u32 2147483648, %v3384_v13 }
 0x197   : > { %v1083_v46 = vadd.s32 %v3239_v58, %v3246_v32  ;;  %v1099_v28 = vsub.s32 32, %v3463_v9  ;;  %v1104_v61 = vadd.s32 127, %v1103_v38  ;;  %v1012_v21 = vsel %vm3467_vm9, 0, %v3461_v63 }
 0x198   : > { %v813_v18 = vsel %vm811_vm8, %v3372_v8, %v4728_v19  ;;  %v1281_v1 = vsel %vm1269_vm13, %v1263_v33, %v1280_v10  ;;  %v3507_v7 = vmul.u32.u64.low %v1283_v41, %v1278_v5  ;;  %v3508_v24 = vmul.u32.u64.high %v1283_v41, %v1278_v5, %v3507_v7 }
 0x199   : > { %v1199_v13 = vclz %v2396_v20  ;;  %v1274_v26 = vsel %vm1268_vm14, %v1271_v4, %v1273_v53  ;;  %v1282_v19 = vsel %vm1268_vm14, %v1279_v56, %v1281_v1  ;;  %v2403_v8 = vadd.s32 4294967169, %v1343_v14 }
 0x19a   : > { %v1008_v58 = vsel %vm925_vm4, %v1007_v52, %v1006_v57  ;;  %v1113_v32 = vsub.s32 4, %v3306_v11  ;;  %v3516_v38 = vmul.u32.u64.low %v1283_v41, %v1282_v19  ;;  %v3517_v17 = vmul.u32.u64.high %v1283_v41, %v1282_v19, %v3516_v38 }
 0x19b   : > { %v1100_v63 = vshll.u32 %v3343_v34, %v3463_v9  ;;  %v1101_v33 = vshrl.u32 %v1083_v46, %v1099_v28  ;;  %v1105_v60 = vshll.u32 %v1104_v61, 23  ;;  %v1349_v5 = vadd.s32 1, %v2403_v8 }
 0x19c   : > { %v4729_v16 = vsel %vm3366_vm0, 0, %v3418_v47  ;;  %v4730_v20 = vand.u32 2147483647, %v3109_v6  ;;  %v1290_v52 = vmul.u32 %v1283_v41, %v1274_v26  ;;  %v1293_v4 = vadd.s32 1, %v3508_v24 }
 0x19d   : > { %v912_v56 = vadd.s32 3, %v4729_v16  ;;  %v3535_v34 = vsel %vm703_vm11, nan, %v3428_v29  ;;  %v817_v0 = vsel %vm810_vm12, %v813_v18, %v3446_v22  ;;  %v1016_v47 = vadd.s32 3, %v1012_v21 }
 0x19e   : > { %vm3527_vm5 = vcmp.le.f32.partialorder %v4730_v20, 0.7853982  ;;  %v2397_v9 = vadd.s32 4294967294, %v1199_v13  ;;  %v1011_v14 = vsel %vm3467_vm9, %v3075_v23, %v1008_v58  ;;  %v3546_v41 = vsel %vm1029_vm2, %v1113_v32, %v3306_v11 }
 0x19f   : > { %vm1292_vm0 = vc.u32 %v3517_v17, %v3507_v7  ;;  %vm1350_vm4 = vcmp.gt.s32.totalorder %v1349_v5, 0  ;;  %v1102_v48 = vor.u32 %v1101_v33, %v1100_v63  ;;  %v1106_v29 = vor.u32 4788187, %v1105_v60 }
 0x1a0   : > { %v1294_v39 = vsel %vm1292_vm0, %v1293_v4, %v3508_v24  ;;  %v1339_v22 = vand.u32 2147483647, %v3122_v36  ;;  %v3554_v53 = vsel %vm807_vm3, nan, %v817_v0  ;;  %v3556_v27 = vand.u32 3, %v912_v56 }
 0x1a1   : > { %v1295_v10 = vadd.s32 %v1294_v39, %v1290_v52  ;;  %v1351_v18 = vsel %vm1350_vm4, %v1349_v5, 0  ;;  %2619 = vsinq.f32 %v3438_v54  ;;  %v3559_v11 = vand.u32 3, %v1016_v47 }
 0x1a2   : > { %vm2398_vm6 = vcmp.lt.s32.totalorder %v2397_v9, 0  ;;  %v1353_v46 = vand.u32 31, %v1351_v18  ;;  %v919_v28 = vxor.u32 2147483648, %v3490_v15  ;;  %2621 = vcosq.f32 %v1011_v14 }
 0x1a3   : > { %v1116_v61 = vsel %vm3527_vm5, 0, %v3546_v41  ;;  %v1296_v49 = vadd.s32 536870912, %v1295_v10  ;;  %v1107_v21 = vand.u32 2147483647, %v1106_v29  ;;  %v1109_v1 = vcvt.s32.f32 %v1102_v48 }
 0x1a4   : > { %v1346_v24 = vand.u32 8388607, %v1339_v22  ;;  %v1354_v13 = vsub.s32 32, %v1353_v46  ;;  %v3567_v26 = vsel %vm2398_vm6, 0, %v2397_v9  ;;  %v3571_v19 = vshrl.u32 %v1351_v18, 5 }
 0x1a5   : > { %v3569_v54 = vshrl.u32 %v1296_v49, 30  ;;  %v1356_v8 = vshll.u32 %v4719_v55, %v1353_v46  ;;  %v1359_v32 = vshll.u32 %v4720_v43, %v1353_v46  ;;  %v1365_v63 = vshll.u32 %v4722_v12, %v1353_v46 }
 0x1a6   : > { %v1357_v58 = vshrl.u32 %v4720_v43, %v1354_v13  ;;  %v1360_v38 = vshrl.u32 %v4721_v30, %v1354_v13  ;;  %v1362_v60 = vshll.u32 %v4721_v30, %v1353_v46  ;;  %v1363_v5 = vshrl.u32 %v4722_v12, %v1354_v13 }
 0x1a7   : > { %v1298_v33 = vshll.u32 %v3569_v54, 30  ;;  %v1366_v16 = vshrl.u32 %v4726_v42, %v1354_v13  ;;  %vm918_vm7 = vcmp.eq.s32.totalorder %v3556_v27, 2  ;;  %2623 = vsinq.f32 %v1011_v14 }
 0x1a8   : > { %v1187_v56 = vadd.s32 %v3388_v25, %v3394_v3  ;;  %v1207_v20 = vsub.s32 4294967266, %v3567_v26  ;;  %v1347_v52 = vor.u32 8388608, %v1346_v24  ;;  %v1110_v4 = vmul.f32 %v1109_v1, %v1107_v21 }
 0x1a9   : > { %v3586_v0 = vsub.s32 %v1295_v10, %v1298_v33  ;;  %v1368_v47 = vshll.u32 %v4726_v42, %v1353_v46  ;;  %v1446_v9 = vand.u32 2139095040, %v3125_v37  ;;  %v1358_v48 = vor.u32 %v1357_v58, %v1356_v8 }
 0x1aa   : > { %v1361_v29 = vor.u32 %v1360_v38, %v1359_v32  ;;  %v1367_v39 = vor.u32 %v1366_v16, %v1365_v63  ;;  %v1369_v18 = vshrl.u32 %v4727_v59, %v1354_v13  ;;  %v1203_v14 = vsub.s32 32, %v3567_v26 }
 0x1ab   : > { %v1301_v49 = vsub.s32 0, %v3586_v0  ;;  %v1364_v25 = vor.u32 %v1363_v5, %v1362_v60  ;;  %vm1371_vm8 = vcmp.lt.s32.totalorder %v3571_v19, 1  ;;  %v2620_v3 = vpop.eup %2619  ;;  %vm915_vm9 = vcmp.eq.s32.totalorder %v3556_v27, 0 }
 0x1ac   : > { %v1208_v10 = vadd.s32 127, %v1207_v20  ;;  %v1355_v46 = vshrl.u32 %v4719_v55, %v1354_v13  ;;  %vm1374_vm10 = vcmp.lt.s32.totalorder %v3571_v19, 4  ;;  %v1387_v21 = vshll.u32 %v1347_v52, 8  ;;  %v3597_v1 = vpop.eup %2621 }
 0x1ad   : > { %v2400_v24 = vmin.u32 %v1301_v49, %v3586_v0  ;;  %v1370_v8 = vor.u32 %v1369_v18, %v1368_v47  ;;  %vm1373_vm11 = vcmp.lt.s32.totalorder %v3571_v19, 3  ;;  %v1376_v58 = vsel %vm1374_vm10, %v1364_v25, 2102212464 }
 0x1ae   : > { %vm1372_vm12 = vcmp.lt.s32.totalorder %v3571_v19, 2  ;;  %v1379_v32 = vsel %vm1371_vm8, %v1358_v48, %v1361_v29  ;;  %v1380_v13 = vsel %vm1374_vm10, %v1367_v39, 920167782  ;;  %v1447_v38 = vshrl.u32 %v1446_v9, 23 }
 0x1af   : > { %vm914_vm13 = vcmp.lt.s32.totalorder %v3556_v27, 2  ;;  %v1111_v63 = vxor.u32 2147483648, %v1110_v4  ;;  %v1204_v33 = vshll.u32 %v3477_v2, %v3567_v26  ;;  %v1205_v60 = vshrl.u32 %v1187_v56, %v1203_v14 }
 0x1b0   : > { %v1303_v5 = vclz %v2400_v24  ;;  %vm1019_vm14 = vcmp.eq.s32.totalorder %v3559_v11, 0  ;;  %vm1022_vm15 = vcmp.eq.s32.totalorder %v3559_v11, 2  ;;  %v1375_v16 = vsel %vm1371_vm8, %v1355_v46, %v1358_v48 }
 0x1b1   : > { %v1377_v20 = vsel %vm1373_vm11, %v1361_v29, %v1376_v58  ;;  %v1381_v52 = vsel %vm1373_vm11, %v1364_v25, %v1380_v13  ;;  %v1383_v47 = vsel %vm1371_vm8, %v1361_v29, %v1364_v25  ;;  %v1209_v9 = vshll.u32 %v1208_v10, 23  ;;  %v2624_v18 = vpop.eup %2623 }
 0x1b2   : > { %v2401_v2 = vadd.s32 4294967294, %v1303_v5  ;;  %v1382_v26 = vsel %vm1372_vm12, %v1379_v32, %v1381_v52  ;;  %v1384_v56 = vsel %vm1374_vm10, %v1370_v8, 1326507024  ;;  %v2407_v46 = vadd.s32 4294967169, %v1447_v38 }
 0x1b3   : > { %v1385_v48 = vsel %vm1373_vm11, %v1367_v39, %v1384_v56  ;;  %v3627_v14 = vmul.u32.u64.low %v1387_v21, %v1382_v26  ;;  %v3628_v49 = vmul.u32.u64.high %v1387_v21, %v1382_v26, %v3627_v14  ;;  %v916_v24 = vxor.u32 2147483648, %v2620_v3 }
 0x1b4   : > { %v920_v29 = vsel %vm918_vm7, %v919_v28, %v2620_v3  ;;  %v1378_v25 = vsel %vm1372_vm12, %v1375_v16, %v1377_v20  ;;  %v1386_v10 = vsel %vm1372_vm12, %v1383_v47, %v1385_v48  ;;  %v4706_v39 = vand.u32 2147483647, %v3125_v37 }
 0x1b5   : > { %v3639_v8 = vmul.u32.u64.low %v1387_v21, %v1386_v10  ;;  %v3640_v58 = vmul.u32.u64.high %v1387_v21, %v1386_v10, %v3639_v8  ;;  %v1453_v32 = vadd.s32 1, %v2407_v46  ;;  %v1112_v13 = vsel %vm1029_vm2, %v1111_v63, %v1110_v4 }
 0x1b6   : > { %v1120_v28 = vadd.s32 3, %v1116_v61  ;;  %v1206_v3 = vor.u32 %v1205_v60, %v1204_v33  ;;  %v1210_v38 = vor.u32 4788187, %v1209_v9  ;;  %vm2402_vm3 = vcmp.lt.s32.totalorder %v2401_v2, 0 }
 0x1b7   : > { %v1394_v5 = vmul.u32 %v1387_v21, %v1378_v25  ;;  %v1397_v19 = vadd.s32 1, %v3628_v49  ;;  %vm1454_vm0 = vcmp.gt.s32.totalorder %v1453_v32, 0  ;;  %v917_v16 = vsel %vm915_vm9, %v3490_v15, %v916_v24 }
 0x1b8   : > { %v1020_v20 = vxor.u32 2147483648, %v2624_v18  ;;  %v1023_v52 = vxor.u32 2147483648, %v3597_v1  ;;  %v1455_v4 = vsel %vm1454_vm0, %v1453_v32, 0  ;;  %v1115_v41 = vsel %vm3527_vm5, %v3109_v6, %v1112_v13 }
 0x1b9   : > { %vm1396_vm2 = vc.u32 %v3640_v58, %v3627_v14  ;;  %v1450_v61 = vand.u32 8388607, %v4706_v39  ;;  %v1457_v21 = vand.u32 31, %v1455_v4  ;;  %v1211_v63 = vand.u32 2147483647, %v1210_v38 }
 0x1ba   : > { %v1213_v33 = vcvt.s32.f32 %v1206_v3  ;;  %v3661_v60 = vsel %vm2402_vm3, 0, %v2401_v2  ;;  %v1398_v15 = vsel %vm1396_vm2, %v1397_v19, %v3628_v49  ;;  %v3666_v47 = vsel %vm914_vm13, %v917_v16, %v920_v29 }
 0x1bb   : > { %v3668_v9 = vand.u32 3, %v1120_v28  ;;  %v1399_v57 = vadd.s32 %v1398_v15, %v1394_v5  ;;  %v1458_v26 = vsub.s32 32, %v1457_v21  ;;  %v3673_v56 = vsel %vm1019_vm14, %v3597_v1, %v1020_v20 }
 0x1bc   : > { %v3677_v48 = vsel %vm1022_vm15, %v1023_v52, %v2624_v18  ;;  %2625 = vcosq.f32 %v1115_v41  ;;  %v1217_v2 = vsub.s32 4, %v3454_v45  ;;  %v1291_v27 = vadd.s32 %v3507_v7, %v3517_v17 }
 0x1bd   : > { %2627 = vsinq.f32 %v1115_v41  ;;  %v1311_v49 = vsub.s32 4294967266, %v3661_v60  ;;  %v1400_v46 = vadd.s32 536870912, %v1399_v57  ;;  %v3683_v24 = vmul.f32 %v1213_v33, %v1211_v63 }
 0x1be   : > { %v1451_v29 = vor.u32 8388608, %v1450_v61  ;;  %v1456_v25 = vshrl.u32 %v1455_v4, 5  ;;  %v1460_v1 = vshll.u32 %v4719_v55, %v1457_v21  ;;  %vm1133_vm5 = vcmp.lt.s32.totalorder %v3115_v31, 0 }
 0x1bf   : > { %v3687_v18 = vshrl.u32 %v1400_v46, 30  ;;  %v1461_v10 = vshrl.u32 %v4720_v43, %v1458_v26  ;;  %v1463_v8 = vshll.u32 %v4720_v43, %v1457_v21  ;;  %v1464_v32 = vshrl.u32 %v4721_v30, %v1458_v26 }
 0x1c0   : > { %v1466_v7 = vshll.u32 %v4721_v30, %v1457_v21  ;;  %v1467_v17 = vshrl.u32 %v4722_v12, %v1458_v26  ;;  %v1469_v13 = vshll.u32 %v4722_v12, %v1457_v21  ;;  %v1470_v28 = vshrl.u32 %v4726_v42, %v1458_v26 }
 0x1c1   : > { %v1307_v3 = vsub.s32 32, %v3661_v60  ;;  %v1312_v38 = vadd.s32 127, %v1311_v49  ;;  %v1402_v5 = vshll.u32 %v3687_v18, 30  ;;  %v1472_v19 = vshll.u32 %v4726_v42, %v1457_v21 }
 0x1c2   : > { %v1308_v16 = vshll.u32 %v3586_v0, %v3661_v60  ;;  %v1471_v20 = vor.u32 %v1470_v28, %v1469_v13  ;;  %v1473_v52 = vshrl.u32 %v4727_v59, %v1458_v26  ;;  %v3702_v4 = vshll.u32 %v1451_v29, 8 }
 0x1c3   : > { %v4733_v41 = vand.u32 2147483647, %v3115_v31  ;;  %v3710_v63 = vsub.s32 %v1399_v57, %v1402_v5  ;;  %v1459_v33 = vshrl.u32 %v4719_v55, %v1458_v26  ;;  %v1462_v15 = vor.u32 %v1461_v10, %v1460_v1 }
 0x1c4   : > { %v1465_v21 = vor.u32 %v1464_v32, %v1463_v8  ;;  %v1468_v49 = vor.u32 %v1467_v17, %v1466_v7  ;;  %v1474_v46 = vor.u32 %v1473_v52, %v1472_v19  ;;  %vm1475_vm6 = vcmp.lt.s32.totalorder %v1456_v25, 1 }
 0x1c5   : > { %vm3706_vm4 = vcmp.le.f32.partialorder %v4733_v41, 0.7853982  ;;  %vm1478_vm7 = vcmp.lt.s32.totalorder %v1456_v25, 4  ;;  %v1309_v0 = vshrl.u32 %v1291_v27, %v1307_v3  ;;  %v1313_v60 = vshll.u32 %v1312_v38, 23 }
 0x1c6   : > { %v1405_v29 = vsub.s32 0, %v3710_v63  ;;  %vm1477_vm8 = vcmp.lt.s32.totalorder %v1456_v25, 3  ;;  %v3714_v13 = vpop.eup %2625  ;;  %vm1476_vm9 = vcmp.lt.s32.totalorder %v1456_v25, 2  ;;  %v1480_v28 = vsel %vm1478_vm7, %v1468_v49, 2102212464 }
 0x1c7   : > { %v1484_v57 = vsel %vm1478_vm7, %v1471_v20, 920167782  ;;  %v1550_v26 = vand.u32 2139095040, %v3249_v62  ;;  %v3719_v1 = vpop.eup %2627  ;;  %v1479_v8 = vsel %vm1475_vm6, %v1459_v33, %v1462_v15  ;;  %v1481_v27 = vsel %vm1477_vm8, %v1465_v21, %v1480_v28 }
 0x1c8   : > { %v2404_v10 = vmin.u32 %v1405_v29, %v3710_v63  ;;  %v1483_v32 = vsel %vm1475_vm6, %v1462_v15, %v1465_v21  ;;  %vm911_vm10 = vweird.f32 %v2987_v44  ;;  %v1218_v7 = vsel %vm1133_vm5, %v1217_v2, %v3454_v45 }
 0x1c9   : > { %vm1237_vm11 = vcmp.lt.s32.totalorder %v3119_v35, 0  ;;  %v1485_v17 = vsel %vm1477_vm8, %v1468_v49, %v1484_v57  ;;  %v1487_v3 = vsel %vm1475_vm6, %v1465_v21, %v1468_v49  ;;  %v1488_v38 = vsel %vm1478_vm7, %v1474_v46, 1326507024 }
 0x1ca   : > { %vm1018_vm12 = vcmp.lt.s32.totalorder %v3559_v11, 2  ;;  %v1215_v5 = vxor.u32 2147483648, %v3683_v24  ;;  %v1310_v19 = vor.u32 %v1309_v0, %v1308_v16  ;;  %v1314_v52 = vor.u32 4788187, %v1313_v60 }
 0x1cb   : > { %v1407_v41 = vclz %v2404_v10  ;;  %vm1123_vm13 = vcmp.eq.s32.totalorder %v3668_v9, 0  ;;  %vm1126_vm14 = vcmp.eq.s32.totalorder %v3668_v9, 2  ;;  %v1482_v45 = vsel %vm1476_vm9, %v1479_v8, %v1481_v27 }
 0x1cc   : > { %v1486_v2 = vsel %vm1476_vm9, %v1483_v32, %v1485_v17  ;;  %v1489_v33 = vsel %vm1477_vm8, %v1471_v20, %v1488_v38  ;;  %v1551_v15 = vshrl.u32 %v1550_v26, 23  ;;  %v1220_v16 = vsel %vm3706_vm4, 0, %v1218_v7 }
 0x1cd   : > { %v2405_v21 = vadd.s32 4294967294, %v1407_v41  ;;  %v1490_v49 = vsel %vm1476_vm9, %v1487_v3, %v1489_v33  ;;  %v3742_v46 = vmul.u32.u64.low %v3702_v4, %v1486_v2  ;;  %v3743_v29 = vmul.u32.u64.high %v3702_v4, %v1486_v2, %v3742_v46 }
 0x1ce   : > { %v4736_v0 = vand.u32 2147483647, %v3119_v35  ;;  %v3755_v20 = vmul.u32.u64.low %v3702_v4, %v1490_v49  ;;  %v3756_v28 = vmul.u32.u64.high %v3702_v4, %v1490_v49, %v3755_v20  ;;  %v2411_v25 = vadd.s32 4294967169, %v1551_v15 }
 0x1cf   : > { %v1216_v57 = vsel %vm1133_vm5, %v1215_v5, %v3683_v24  ;;  %v1317_v26 = vcvt.s32.f32 %v1310_v19  ;;  %v1321_v10 = vsub.s32 4, %v3569_v54  ;;  %vm2406_vm3 = vcmp.lt.s32.totalorder %v2405_v21, 0 }
 0x1d0   : > { %vm3750_vm15 = vcmp.le.f32.partialorder %v4736_v0, 0.7853982  ;;  %v1315_v8 = vand.u32 2147483647, %v1314_v52  ;;  %v1410_v27 = vsel %vm2406_vm3, 0, %v2405_v21  ;;  %v1498_v32 = vmul.u32 %v3702_v4, %v1482_v45 }
 0x1d1   : > { %v1557_v7 = vadd.s32 1, %v2411_v25  ;;  %v1395_v17 = vadd.s32 %v3627_v14, %v3640_v58  ;;  %v1411_v3 = vsub.s32 32, %v1410_v27  ;;  %v1415_v38 = vsub.s32 4294967266, %v1410_v27 }
 0x1d2   : > { %v1501_v41 = vadd.s32 1, %v3743_v29  ;;  %v1127_v2 = vxor.u32 2147483648, %v3714_v13  ;;  %v1224_v33 = vadd.s32 3, %v1220_v16  ;;  %vm1500_vm0 = vc.u32 %v3756_v28, %v3742_v46 }
 0x1d3   : > { %vm1558_vm2 = vcmp.gt.s32.totalorder %v1557_v7, 0  ;;  %v1124_v24 = vxor.u32 2147483648, %v3719_v1  ;;  %v1219_v4 = vsel %vm3706_vm4, %v3115_v31, %v1216_v57  ;;  %v3776_v14 = vsel %vm1237_vm11, %v1321_v10, %v3569_v54 }
 0x1d4   : > { %v1502_v58 = vsel %vm1500_vm0, %v1501_v41, %v3743_v29  ;;  %v1318_v5 = vmul.f32 %v1317_v26, %v1315_v8  ;;  %v1416_v19 = vadd.s32 127, %v1415_v38  ;;  %v1559_v45 = vsel %vm1558_vm2, %v1557_v7, 0 }
 0x1d5   : > { %v1503_v52 = vadd.s32 %v1502_v58, %v1498_v32  ;;  %v3782_v15 = vsel %vm911_vm10, nan, %v3666_v47  ;;  %v1412_v21 = vshll.u32 %v3710_v63, %v1410_v27  ;;  %v1413_v61 = vshrl.u32 %v1395_v17, %v1411_v3 }
 0x1d6   : > { %v4705_v49 = vand.u32 2147483647, %v3249_v62  ;;  %v3790_v54 = vsel %vm1018_vm12, %v3673_v56, %v3677_v48  ;;  %v3792_v29 = vand.u32 3, %v1224_v33  ;;  %v1561_v0 = vand.u32 31, %v1559_v45 }
 0x1d7   : > { %v1504_v16 = vadd.s32 536870912, %v1503_v52  ;;  %v3797_v44 = vsel %vm1123_vm13, %v3714_v13, %v1124_v24  ;;  %v3802_v47 = vsel %vm1126_vm14, %v1127_v2, %v3719_v1  ;;  %2629 = vcosq.f32 %v1219_v4 }
 0x1d8   : > { %v1324_v11 = vsel %vm3750_vm15, 0, %v3776_v14  ;;  %v1319_v56 = vxor.u32 2147483648, %v1318_v5  ;;  %v1417_v48 = vshll.u32 %v1416_v19, 23  ;;  %v1562_v20 = vsub.s32 32, %v1561_v0 }
 0x1d9   : > { %v3807_v63 = vshrl.u32 %v1504_v16, 30  ;;  %v1414_v25 = vor.u32 %v1413_v61, %v1412_v21  ;;  %v1554_v13 = vand.u32 8388607, %v4705_v49  ;;  %v1560_v57 = vshrl.u32 %v1559_v45, 5 }
 0x1da   : > { %v1564_v26 = vshll.u32 %v4719_v55, %v1561_v0  ;;  %v1565_v10 = vshrl.u32 %v4720_v43, %v1562_v20  ;;  %v1567_v8 = vshll.u32 %v4720_v43, %v1561_v0  ;;  %v1570_v27 = vshll.u32 %v4721_v30, %v1561_v0 }
 0x1db   : > { %v1506_v1 = vshll.u32 %v3807_v63, 30  ;;  %v1568_v32 = vshrl.u32 %v4721_v30, %v1562_v20  ;;  %v1571_v7 = vshrl.u32 %v4722_v12, %v1562_v20  ;;  %v1573_v17 = vshll.u32 %v4722_v12, %v1561_v0 }
 0x1dc   : > { %v1574_v3 = vshrl.u32 %v4726_v42, %v1562_v20  ;;  %2631 = vsinq.f32 %v1219_v4  ;;  %v1418_v38 = vor.u32 4788187, %v1417_v48  ;;  %v1576_v2 = vshll.u32 %v4726_v42, %v1561_v0 }
 0x1dd   : > { %v3820_v41 = vsub.s32 %v1503_v52, %v1506_v1  ;;  %v1320_v33 = vsel %vm1237_vm11, %v1319_v56, %v1318_v5  ;;  %v1555_v24 = vor.u32 8388608, %v1554_v13  ;;  %v1563_v58 = vshrl.u32 %v4719_v55, %v1562_v20 }
 0x1de   : > { %v1654_v19 = vand.u32 2139095040, %v3288_v51  ;;  %vm1122_vm5 = vcmp.lt.s32.totalorder %v3668_v9, 2  ;;  %v1566_v21 = vor.u32 %v1565_v10, %v1564_v26  ;;  %v1569_v61 = vor.u32 %v1568_v32, %v1567_v8 }
 0x1df   : > { %v1509_v45 = vsub.s32 0, %v3820_v41  ;;  %v1577_v4 = vshrl.u32 %v4727_v59, %v1562_v20  ;;  %v1421_v52 = vcvt.s32.f32 %v1414_v25  ;;  %v1572_v16 = vor.u32 %v1571_v7, %v1570_v27 }
 0x1e0   : > { %v1575_v48 = vor.u32 %v1574_v3, %v1573_v17  ;;  %vm1579_vm4 = vcmp.lt.s32.totalorder %v1560_v57, 1  ;;  %v1419_v0 = vand.u32 2147483647, %v1418_v38  ;;  %vm1582_vm6 = vcmp.lt.s32.totalorder %v1560_v57, 4 }
 0x1e1   : > { %v2408_v5 = vmin.u32 %v1509_v45, %v3820_v41  ;;  %v1578_v56 = vor.u32 %v1577_v4, %v1576_v2  ;;  %v3831_v13 = vpop.eup %2629  ;;  %vm1581_vm7 = vcmp.lt.s32.totalorder %v1560_v57, 3  ;;  %v1584_v1 = vsel %vm1582_vm6, %v1572_v16, 2102212464 }
 0x1e2   : > { %v1595_v49 = vshll.u32 %v1555_v24, 8  ;;  %v1655_v39 = vshrl.u32 %v1654_v19, 23  ;;  %vm1015_vm8 = vweird.f32 %v3075_v23  ;;  %vm1580_vm9 = vcmp.lt.s32.totalorder %v1560_v57, 2 }
 0x1e3   : > { %v1511_v26 = vclz %v2408_v5  ;;  %v1583_v20 = vsel %vm1579_vm4, %v1563_v58, %v1566_v21  ;;  %v1587_v25 = vsel %vm1579_vm4, %v1566_v21, %v1569_v61  ;;  %vm1119_vm10 = vweird.f32 %v3109_v6 }
 0x1e4   : > { %vm1230_vm11 = vcmp.eq.s32.totalorder %v3792_v29, 2  ;;  %v1323_v10 = vsel %vm3750_vm15, %v3119_v35, %v1320_v33  ;;  %vm1341_vm12 = vcmp.lt.s32.totalorder %v3122_v36, 0  ;;  %v1585_v8 = vsel %vm1581_vm7, %v1569_v61, %v1584_v1 }
 0x1e5   : > { %v1588_v27 = vsel %vm1582_vm6, %v1575_v48, 920167782  ;;  %v1591_v32 = vsel %vm1579_vm4, %v1569_v61, %v1572_v16  ;;  %vm1227_vm13 = vcmp.eq.s32.totalorder %v3792_v29, 0  ;;  %v1422_v7 = vmul.f32 %v1421_v52, %v1419_v0 }
 0x1e6   : > { %v2409_v17 = vadd.s32 4294967294, %v1511_v26  ;;  %v1589_v3 = vsel %vm1581_vm7, %v1572_v16, %v1588_v27  ;;  %v1592_v38 = vsel %vm1582_vm6, %v1578_v56, 1326507024  ;;  %v1586_v2 = vsel %vm1580_vm9, %v1583_v20, %v1585_v8  ;;  %v2632_v19 = vpop.eup %2631 }
 0x1e7   : > { %v1590_v33 = vsel %vm1580_vm9, %v1587_v25, %v1589_v3  ;;  %v1593_v24 = vsel %vm1581_vm7, %v1575_v48, %v1592_v38  ;;  %v2415_v58 = vadd.s32 4294967169, %v1655_v39  ;;  %2633 = vcosq.f32 %v1323_v10 }
 0x1e8   : > { %vm2410_vm14 = vcmp.lt.s32.totalorder %v2409_v17, 0  ;;  %v1594_v45 = vsel %vm1580_vm9, %v1591_v32, %v1593_v24  ;;  %v3853_v21 = vmul.u32.u64.low %v1595_v49, %v1590_v33  ;;  %v3854_v61 = vmul.u32.u64.high %v1595_v49, %v1590_v33, %v3853_v21 }
 0x1e9   : > { %v1514_v4 = vsel %vm2410_vm14, 0, %v2409_v17  ;;  %v3857_v52 = vmul.u32.u64.low %v1595_v49, %v1594_v45  ;;  %v3858_v16 = vmul.u32.u64.high %v1595_v49, %v1594_v45, %v3857_v52  ;;  %v1499_v0 = vadd.s32 %v3742_v46, %v3756_v28 }
 0x1ea   : > { %v1515_v5 = vsub.s32 32, %v1514_v4  ;;  %v1519_v56 = vsub.s32 4294967266, %v1514_v4  ;;  %v1661_v48 = vadd.s32 1, %v2415_v58  ;;  %v1129_v39 = vsel %vm1122_vm5, %v3797_v44, %v3802_v47 }
 0x1eb   : > { %v1231_v57 = vxor.u32 2147483648, %v3831_v13  ;;  %v1328_v1 = vadd.s32 3, %v1324_v11  ;;  %v1602_v26 = vmul.u32 %v1595_v49, %v1586_v2  ;;  %v1423_v20 = vxor.u32 2147483648, %v1422_v7 }
 0x1ec   : > { %v1520_v25 = vadd.s32 127, %v1519_v56  ;;  %v1605_v46 = vadd.s32 1, %v3854_v61  ;;  %vm1662_vm3 = vcmp.gt.s32.totalorder %v1661_v48, 0  ;;  %v1228_v28 = vxor.u32 2147483648, %v2632_v19 }
 0x1ed   : > { %vm1604_vm0 = vc.u32 %v3858_v16, %v3853_v21  ;;  %v1651_v9 = vand.u32 2147483647, %v3288_v51  ;;  %v1663_v44 = vsel %vm1662_vm3, %v1661_v48, 0  ;;  %v1516_v47 = vshll.u32 %v3820_v41, %v1514_v4 }
 0x1ee   : > { %v1517_v8 = vshrl.u32 %v1499_v0, %v1515_v5  ;;  %v1521_v60 = vshll.u32 %v1520_v25, 23  ;;  %v1606_v14 = vsel %vm1604_vm0, %v1605_v46, %v3854_v61  ;;  %v3880_v49 = vsel %vm1015_vm8, nan, %v3790_v54 }
 0x1ef   : > { %vm3884_vm15 = vcmp.le.f32.partialorder %v1339_v22, 0.7853982  ;;  %v1607_v27 = vadd.s32 %v1606_v14, %v1602_v26  ;;  %v1665_v32 = vand.u32 31, %v1663_v44  ;;  %v3890_v41 = vsel %vm1119_vm10, nan, %v1129_v39 }
 0x1f0   : > { %v3894_v17 = vsel %vm1230_vm11, %v1231_v57, %v2632_v19  ;;  %v3896_v3 = vand.u32 3, %v1328_v1  ;;  %v1424_v23 = vsel %vm1341_vm12, %v1423_v20, %v1422_v7  ;;  %v3903_v22 = vsel %vm1227_vm13, %v3831_v13, %v1228_v28 }
 0x1f1   : > { %v1425_v54 = vsub.s32 4, %v3687_v18  ;;  %v1608_v38 = vadd.s32 536870912, %v1607_v27  ;;  %v1666_v6 = vsub.s32 32, %v1665_v32  ;;  %2635 = vsinq.f32 %v1323_v10  ;;  %v3908_v58 = vpop.eup %2633 }
 0x1f2   : > { %v1518_v2 = vor.u32 %v1517_v8, %v1516_v47  ;;  %v1522_v33 = vor.u32 4788187, %v1521_v60  ;;  %v1658_v24 = vand.u32 8388607, %v1651_v9  ;;  %v1427_v7 = vsel %vm3884_vm15, %v3122_v36, %v1424_v23 }
 0x1f3   : > { %v3913_v19 = vshrl.u32 %v1608_v38, 30  ;;  %v1664_v13 = vshrl.u32 %v1663_v44, 5  ;;  %v1668_v45 = vshll.u32 %v4719_v55, %v1665_v32  ;;  %v1669_v61 = vshrl.u32 %v4720_v43, %v1666_v6 }
 0x1f4   : > { %v1671_v10 = vshll.u32 %v4720_v43, %v1665_v32  ;;  %v1672_v4 = vshrl.u32 %v4721_v30, %v1666_v6  ;;  %v1677_v52 = vshll.u32 %v4722_v12, %v1665_v32  ;;  %v1674_v5 = vshll.u32 %v4721_v30, %v1665_v32 }
 0x1f5   : > { %v1610_v0 = vshll.u32 %v3913_v19, 30  ;;  %v1675_v56 = vshrl.u32 %v4722_v12, %v1666_v6  ;;  %v1678_v48 = vshrl.u32 %v4726_v42, %v1666_v6  ;;  %v1523_v39 = vand.u32 2147483647, %v1522_v33 }
 0x1f6   : > { %v1525_v57 = vcvt.s32.f32 %v1518_v2  ;;  %v1659_v1 = vor.u32 8388608, %v1658_v24  ;;  %v1680_v26 = vshll.u32 %v4726_v42, %v1665_v32  ;;  %v1335_v20 = vxor.u32 2147483648, %v3908_v58 }
 0x1f7   : > { %v3929_v25 = vsel %vm1341_vm12, %v1425_v54, %v3687_v18  ;;  %v3931_v46 = vsub.s32 %v1607_v27, %v1610_v0  ;;  %v1681_v28 = vshrl.u32 %v4727_v59, %v1666_v6  ;;  %vm1445_vm2 = vcmp.lt.s32.totalorder %v3125_v37, 0 }
 0x1f8   : > { %v1667_v44 = vshrl.u32 %v4719_v55, %v1666_v6  ;;  %v1670_v47 = vor.u32 %v1669_v61, %v1668_v45  ;;  %v1673_v8 = vor.u32 %v1672_v4, %v1671_v10  ;;  %v1679_v60 = vor.u32 %v1678_v48, %v1677_v52 }
 0x1f9   : > { %2637 = vcosq.f32 %v1427_v7  ;;  %v1613_v14 = vsub.s32 0, %v3931_v46  ;;  %v1676_v32 = vor.u32 %v1675_v56, %v1674_v5  ;;  %vm1683_vm5 = vcmp.lt.s32.totalorder %v1664_v13, 1 }
 0x1fa   : > { %vm1226_vm4 = vcmp.lt.s32.totalorder %v3792_v29, 2  ;;  %vm1331_vm6 = vcmp.eq.s32.totalorder %v3896_v3, 0  ;;  %vm1334_vm7 = vcmp.eq.s32.totalorder %v3896_v3, 2  ;;  %v1526_v18 = vmul.f32 %v1525_v57, %v1523_v39 }
 0x1fb   : > { %v1682_v27 = vor.u32 %v1681_v28, %v1680_v26  ;;  %vm1686_vm8 = vcmp.lt.s32.totalorder %v1664_v13, 4  ;;  %v3940_v23 = vshll.u32 %v1659_v1, 8  ;;  %v2412_v54 = vmin.u32 %v1613_v14, %v3931_v46  ;;  %v2636_v6 = vpop.eup %2635 }
 0x1fc   : > { %vm1684_vm9 = vcmp.lt.s32.totalorder %v1664_v13, 2  ;;  %vm1685_vm10 = vcmp.lt.s32.totalorder %v1664_v13, 3  ;;  %v1688_v38 = vsel %vm1686_vm8, %v1676_v32, 2102212464  ;;  %v4741_v2 = vand.u32 2147483647, %v3125_v37 }
 0x1fd   : > { %v1687_v24 = vsel %vm1683_vm5, %v1667_v44, %v1670_v47  ;;  %v1689_v45 = vsel %vm1685_vm10, %v1673_v8, %v1688_v38  ;;  %v1691_v61 = vsel %vm1683_vm5, %v1670_v47, %v1673_v8  ;;  %v1692_v10 = vsel %vm1686_vm8, %v1679_v60, 920167782 }
 0x1fe   : > { %vm3946_vm11 = vcmp.le.f32.partialorder %v4741_v2, 0.7853982  ;;  %2639 = vsinq.f32 %v1427_v7  ;;  %v1529_v4 = vsub.s32 4, %v3807_v63  ;;  %v1615_v52 = vclz %v2412_v54 }
 0x1ff   : > { %v1695_v0 = vsel %vm1683_vm5, %v1673_v8, %v1676_v32  ;;  %vm1223_vm12 = vweird.f32 %v3115_v31  ;;  %vm1330_vm13 = vcmp.lt.s32.totalorder %v3896_v3, 2  ;;  %v1527_v5 = vxor.u32 2147483648, %v1526_v18 }
 0x200   : > { %vm1549_vm14 = vcmp.lt.s32.totalorder %v3249_v62, 0  ;;  %v1693_v56 = vsel %vm1685_vm10, %v1676_v32, %v1692_v10  ;;  %v1696_v48 = vsel %vm1686_vm8, %v1682_v27, 1326507024  ;;  %v1758_v39 = vand.u32 2139095040, %v3293_v50 }
 0x201   : > { %v2413_v57 = vadd.s32 4294967294, %v1615_v52  ;;  %v1690_v7 = vsel %vm1684_vm9, %v1687_v24, %v1689_v45  ;;  %v1694_v1 = vsel %vm1684_vm9, %v1691_v61, %v1693_v56  ;;  %v1697_v26 = vsel %vm1685_vm10, %v1679_v60, %v1696_v48 }
 0x202   : > { %v1698_v28 = vsel %vm1684_vm9, %v1695_v0, %v1697_v26  ;;  %v3967_v44 = vmul.u32.u64.low %v3940_v23, %v1694_v1  ;;  %v3968_v47 = vmul.u32.u64.high %v3940_v23, %v1694_v1, %v3967_v44  ;;  %v1759_v8 = vshrl.u32 %v1758_v39, 23 }
 0x203   : > { %v1332_v14 = vxor.u32 2147483648, %v2636_v6  ;;  %vm2414_vm3 = vcmp.lt.s32.totalorder %v2413_v57, 0  ;;  %v3972_v32 = vmul.u32.u64.low %v3940_v23, %v1698_v28  ;;  %v3973_v27 = vmul.u32.u64.high %v3940_v23, %v1698_v28, %v3972_v32  ;;  %v3981_v2 = vpop.eup %2637 }
 0x204   : > { %v1428_v54 = vsel %vm3884_vm15, 0, %v3929_v25  ;;  %v1530_v13 = vsel %vm1445_vm2, %v1529_v4, %v3807_v63  ;;  %v1618_v60 = vsel %vm2414_vm3, 0, %v2413_v57  ;;  %v2419_v38 = vadd.s32 4294967169, %v1759_v8 }
 0x205   : > { %v1528_v24 = vsel %vm1445_vm2, %v1527_v5, %v1526_v18  ;;  %v1603_v45 = vadd.s32 %v3853_v21, %v3858_v16  ;;  %v1633_v61 = vsub.s32 4, %v3913_v19  ;;  %v1706_v10 = vmul.u32 %v3940_v23, %v1690_v7 }
 0x206   : > { %v1619_v11 = vsub.s32 32, %v1618_v60  ;;  %v1623_v25 = vsub.s32 4294967266, %v1618_v60  ;;  %v1709_v52 = vadd.s32 1, %v3968_v47  ;;  %v1765_v0 = vadd.s32 1, %v2419_v38 }
 0x207   : > { %v1233_v63 = vsel %vm1226_vm4, %v3903_v22, %v3894_v17  ;;  %v1333_v18 = vsel %vm1331_vm6, %v3908_v58, %v1332_v14  ;;  %v1336_v21 = vsel %vm1334_vm7, %v1335_v20, %v2636_v6  ;;  %v1432_v16 = vadd.s32 3, %v1428_v54 }
 0x208   : > { %v1532_v23 = vsel %vm3946_vm11, 0, %v1530_v13  ;;  %vm1708_vm0 = vc.u32 %v3973_v27, %v3967_v44  ;;  %v4707_v4 = vand.u32 2147483647, %v3293_v50  ;;  %vm1766_vm15 = vcmp.gt.s32.totalorder %v1765_v0, 0  ;;  %v4006_v29 = vpop.eup %2639 }
 0x209   : > { %v1531_v17 = vsel %vm3946_vm11, %v3125_v37, %v1528_v24  ;;  %v1620_v22 = vshll.u32 %v3931_v46, %v1618_v60  ;;  %v4015_v58 = vsel %vm1549_vm14, %v1633_v61, %v3913_v19  ;;  %v1710_v20 = vsel %vm1708_vm0, %v1709_v52, %v3968_v47 }
 0x20a   : > { %v1621_v6 = vshrl.u32 %v1603_v45, %v1619_v11  ;;  %v1624_v5 = vadd.s32 127, %v1623_v25  ;;  %v1711_v56 = vadd.s32 %v1710_v20, %v1706_v10  ;;  %v1767_v48 = vsel %vm1766_vm15, %v1765_v0, 0 }
 0x20b   : > { %v4020_v39 = vsel %vm1223_vm12, nan, %v1233_v63  ;;  %v4024_v33 = vsel %vm1330_vm13, %v1333_v18, %v1336_v21  ;;  %v4026_v46 = vand.u32 3, %v1432_v16  ;;  %v4744_v57 = vand.u32 2147483647, %v3249_v62 }
 0x20c   : > { %v1439_v7 = vxor.u32 2147483648, %v3981_v2  ;;  %v4035_v1 = vadd.s32 3, %v1532_v23  ;;  %v1712_v26 = vadd.s32 536870912, %v1711_v56  ;;  %v1769_v31 = vand.u32 31, %v1767_v48 }
 0x20d   : > { %vm4030_vm2 = vcmp.le.f32.partialorder %v4744_v57, 0.7853982  ;;  %v1436_v28 = vxor.u32 2147483648, %v4006_v29  ;;  %2641 = vcosq.f32 %v1531_v17  ;;  %v1762_v47 = vand.u32 8388607, %v4707_v4 }
 0x20e   : > { %v1636_v3 = vsel %vm4030_vm2, 0, %v4015_v58  ;;  %v1622_v8 = vor.u32 %v1621_v6, %v1620_v22  ;;  %v1625_v14 = vshll.u32 %v1624_v5, 23  ;;  %v4043_v32 = vshrl.u32 %v1712_v26, 30 }
 0x20f   : > { %v1770_v54 = vsub.s32 32, %v1769_v31  ;;  %v1768_v13 = vshrl.u32 %v1767_v48, 5  ;;  %v1772_v60 = vshll.u32 %v4719_v55, %v1769_v31  ;;  %v1775_v38 = vshll.u32 %v4720_v43, %v1769_v31 }
 0x210   : > { %v1862_v24 = vand.u32 2139095040, %v3311_v40  ;;  %v1714_v45 = vshll.u32 %v4043_v32, 30  ;;  %v1778_v10 = vshll.u32 %v4721_v30, %v1769_v31  ;;  %v1781_v11 = vshll.u32 %v4722_v12, %v1769_v31 }
 0x211   : > { %v1773_v61 = vshrl.u32 %v4720_v43, %v1770_v54  ;;  %v1776_v25 = vshrl.u32 %v4721_v30, %v1770_v54  ;;  %v1779_v52 = vshrl.u32 %v4722_v12, %v1770_v54  ;;  %v1782_v0 = vshrl.u32 %v4726_v42, %v1770_v54 }
 0x212   : > { %v1784_v63 = vshll.u32 %v4726_v42, %v1769_v31  ;;  %vm1435_vm5 = vcmp.eq.s32.totalorder %v4026_v46, 0  ;;  %vm1438_vm4 = vcmp.eq.s32.totalorder %v4026_v46, 2  ;;  %2643 = vsinq.f32 %v1531_v17 }
 0x213   : > { %v1626_v18 = vor.u32 4788187, %v1625_v14  ;;  %v4058_v21 = vsub.s32 %v1711_v56, %v1714_v45  ;;  %v1785_v16 = vshrl.u32 %v4727_v59, %v1770_v54  ;;  %v1763_v23 = vor.u32 8388608, %v1762_v47 }
 0x214   : > { %v1774_v22 = vor.u32 %v1773_v61, %v1772_v60  ;;  %v1777_v20 = vor.u32 %v1776_v25, %v1775_v38  ;;  %vm1787_vm6 = vcmp.lt.s32.totalorder %v1768_v13, 1  ;;  %v1771_v5 = vshrl.u32 %v4719_v55, %v1770_v54 }
 0x215   : > { %v1717_v6 = vsub.s32 0, %v4058_v21  ;;  %v1780_v48 = vor.u32 %v1779_v52, %v1778_v10  ;;  %v1783_v57 = vor.u32 %v1782_v0, %v1781_v11  ;;  %v1629_v26 = vcvt.s32.f32 %v1622_v8 }
 0x216   : > { %v1786_v31 = vor.u32 %v1785_v16, %v1784_v63  ;;  %vm1790_vm7 = vcmp.lt.s32.totalorder %v1768_v13, 4  ;;  %v1863_v4 = vshrl.u32 %v1862_v24, 23  ;;  %vm1327_vm8 = vweird.f32 %v3119_v35 }
 0x217   : > { %vm1434_vm9 = vcmp.lt.s32.totalorder %v4026_v46, 2  ;;  %v1627_v17 = vand.u32 2147483647, %v1626_v18  ;;  %v2416_v56 = vmin.u32 %v1717_v6, %v4058_v21  ;;  %vm1789_vm10 = vcmp.lt.s32.totalorder %v1768_v13, 3  ;;  %v4067_v14 = vpop.eup %2641 }
 0x218   : > { %v1792_v47 = vsel %vm1790_vm7, %v1780_v48, 2102212464  ;;  %vm1788_vm11 = vcmp.lt.s32.totalorder %v1768_v13, 2  ;;  %v1795_v54 = vsel %vm1787_vm6, %v1774_v22, %v1777_v20  ;;  %v1796_v8 = vsel %vm1790_vm7, %v1783_v57, 920167782 }
 0x219   : > { %v1803_v60 = vshll.u32 %v1763_v23, 8  ;;  %v1719_v38 = vclz %v2416_v56  ;;  %v1791_v24 = vsel %vm1787_vm6, %v1771_v5, %v1774_v22  ;;  %v1793_v45 = vsel %vm1789_vm10, %v1777_v20, %v1792_v47 }
 0x21a   : > { %v1799_v61 = vsel %vm1787_vm6, %v1777_v20, %v1780_v48  ;;  %v1707_v10 = vadd.s32 %v3967_v44, %v3973_v27  ;;  %v1797_v11 = vsel %vm1789_vm10, %v1780_v48, %v1796_v8  ;;  %v1800_v25 = vsel %vm1790_vm7, %v1786_v31, 1326507024 }
 0x21b   : > { %v2423_v52 = vadd.s32 4294967169, %v1863_v4  ;;  %v1630_v0 = vmul.f32 %v1629_v26, %v1627_v17  ;;  %v2417_v63 = vadd.s32 4294967294, %v1719_v38  ;;  %v1798_v18 = vsel %vm1788_vm11, %v1795_v54, %v1797_v11 }
 0x21c   : > { %v1801_v16 = vsel %vm1789_vm10, %v1783_v57, %v1800_v25  ;;  %v1794_v23 = vsel %vm1788_vm11, %v1791_v24, %v1793_v45  ;;  %v4082_v6 = vmul.u32.u64.low %v1803_v60, %v1798_v18  ;;  %v4083_v20 = vmul.u32.u64.high %v1803_v60, %v1798_v18, %v4082_v6  ;;  %v4086_v44 = vpop.eup %2643 }
 0x21d   : > { %v1802_v22 = vsel %vm1788_vm11, %v1799_v61, %v1801_v16  ;;  %vm2418_vm12 = vcmp.lt.s32.totalorder %v2417_v63, 0  ;;  %v1869_v4 = vadd.s32 1, %v2423_v52  ;;  %v1437_v48 = vsel %vm1435_vm5, %v3981_v2, %v1436_v28 }
 0x21e   : > { %v4088_v27 = vmul.u32.u64.low %v1803_v60, %v1802_v22  ;;  %v4089_v5 = vmul.u32.u64.high %v1803_v60, %v1802_v22, %v4088_v27  ;;  %v1440_v13 = vsel %vm1438_vm4, %v1439_v7, %v4006_v29  ;;  %v1640_v57 = vadd.s32 3, %v1636_v3 }
 0x21f   : > { %v1722_v26 = vsel %vm2418_vm12, 0, %v2417_v63  ;;  %vm1870_vm13 = vcmp.gt.s32.totalorder %v1869_v4, 0  ;;  %v4107_v47 = vand.u32 3, %v4035_v1  ;;  %v1810_v28 = vmul.u32 %v1803_v60, %v1794_v23 }
 0x220   : > { %v1723_v31 = vsub.s32 32, %v1722_v26  ;;  %v1724_v17 = vshll.u32 %v4058_v21, %v1722_v26  ;;  %v1727_v56 = vsub.s32 4294967266, %v1722_v26  ;;  %v1813_v2 = vadd.s32 1, %v4083_v20 }
 0x221   : > { %v1871_v54 = vsel %vm1870_vm13, %v1869_v4, 0  ;;  %v1631_v8 = vxor.u32 2147483648, %v1630_v0  ;;  %v1859_v38 = vand.u32 2147483647, %v3311_v40  ;;  %v4114_v58 = vsel %vm1327_vm8, nan, %v4024_v33 }
 0x222   : > { %v1725_v29 = vshrl.u32 %v1707_v10, %v1723_v31  ;;  %v1728_v7 = vadd.s32 127, %v1727_v56  ;;  %v4118_v3 = vsel %vm1434_vm9, %v1437_v48, %v1440_v13  ;;  %vm1653_vm3 = vcmp.lt.s32.totalorder %v3288_v51, 0 }
 0x223   : > { %vm1812_vm0 = vc.u32 %v4089_v5, %v4082_v6  ;;  %v1873_v1 = vand.u32 31, %v1871_v54  ;;  %v4123_v21 = vand.u32 3, %v1640_v57  ;;  %v1540_v35 = vxor.u32 2147483648, %v4086_v44 }
 0x224   : > { %v1726_v60 = vor.u32 %v1725_v29, %v1724_v17  ;;  %v1729_v24 = vshll.u32 %v1728_v7, 23  ;;  %v1814_v45 = vsel %vm1812_vm0, %v1813_v2, %v4083_v20  ;;  %vm1542_vm15 = vcmp.eq.s32.totalorder %v4107_v47, 2 }
 0x225   : > { %v1543_v33 = vxor.u32 2147483648, %v4067_v14  ;;  %v1815_v46 = vadd.s32 %v1814_v45, %v1810_v28  ;;  %v1874_v61 = vsub.s32 32, %v1873_v1  ;;  %v1632_v10 = vsel %vm1549_vm14, %v1631_v8, %v1630_v0 }
 0x226   : > { %vm4133_vm5 = vcmp.le.f32.partialorder %v1651_v9, 0.7853982  ;;  %v1730_v25 = vor.u32 4788187, %v1729_v24  ;;  %v1733_v52 = vcvt.s32.f32 %v1726_v60  ;;  %v1866_v63 = vand.u32 8388607, %v1859_v38 }
 0x227   : > { %v1816_v18 = vadd.s32 536870912, %v1815_v46  ;;  %v4139_v16 = vshrl.u32 %v1871_v54, 5  ;;  %v1876_v23 = vshll.u32 %v4719_v55, %v1873_v1  ;;  %v1879_v22 = vshll.u32 %v4720_v43, %v1873_v1 }
 0x228   : > { %vm1539_vm14 = vcmp.eq.s32.totalorder %v4107_v47, 0  ;;  %v1731_v0 = vand.u32 2147483647, %v1730_v25  ;;  %v1877_v9 = vshrl.u32 %v4720_v43, %v1874_v61  ;;  %v1880_v20 = vshrl.u32 %v4721_v30, %v1874_v61 }
 0x229   : > { %v1882_v27 = vshll.u32 %v4721_v30, %v1873_v1  ;;  %v4147_v4 = vshrl.u32 %v1816_v18, 30  ;;  %v1883_v48 = vshrl.u32 %v4722_v12, %v1874_v61  ;;  %v1885_v13 = vshll.u32 %v4722_v12, %v1873_v1 }
 0x22a   : > { %v1886_v57 = vshrl.u32 %v4726_v42, %v1874_v61  ;;  %v1635_v26 = vsel %vm4030_vm2, %v3249_v62, %v1632_v10  ;;  %v1734_v31 = vmul.f32 %v1733_v52, %v1731_v0  ;;  %v1737_v17 = vsub.s32 4, %v4043_v32 }
 0x22b   : > { %v1888_v56 = vshll.u32 %v4726_v42, %v1873_v1  ;;  %v1818_v28 = vshll.u32 %v4147_v4, 30  ;;  %v1867_v2 = vor.u32 8388608, %v1866_v63  ;;  %v1875_v54 = vshrl.u32 %v4719_v55, %v1874_v61 }
 0x22c   : > { %v1889_v8 = vshrl.u32 %v4727_v59, %v1874_v61  ;;  %v1735_v29 = vxor.u32 2147483648, %v1734_v31  ;;  %v1878_v7 = vor.u32 %v1877_v9, %v1876_v23  ;;  %v1881_v60 = vor.u32 %v1880_v20, %v1879_v22 }
 0x22d   : > { %v1887_v24 = vor.u32 %v1886_v57, %v1885_v13  ;;  %v4160_v45 = vsub.s32 %v1815_v46, %v1818_v28  ;;  %v1884_v19 = vor.u32 %v1883_v48, %v1882_v27  ;;  %vm1891_vm2 = vcmp.lt.s32.totalorder %v4139_v16, 1 }
 0x22e   : > { %vm1894_vm4 = vcmp.lt.s32.totalorder %v4139_v16, 4  ;;  %2645 = vcosq.f32 %v1635_v26  ;;  %v1736_v1 = vsel %vm1653_vm3, %v1735_v29, %v1734_v31  ;;  %v1890_v10 = vor.u32 %v1889_v8, %v1888_v56 }
 0x22f   : > { %vm1893_vm6 = vcmp.lt.s32.totalorder %v4139_v16, 3  ;;  %2647 = vsinq.f32 %v1635_v26  ;;  %v1821_v61 = vsub.s32 0, %v4160_v45  ;;  %vm1892_vm7 = vcmp.lt.s32.totalorder %v4139_v16, 2  ;;  %v4749_v26 = vld [vmem:[#allocation5_spill] sm:$0xff] }
 0x230   : > { %v1896_v46 = vsel %vm1894_vm4, %v1884_v19, 2102212464  ;;  %v1544_v25 = vsel %vm1542_vm15, %v1543_v33, %v4086_v44  ;;  %v1899_v52 = vsel %vm1891_vm2, %v1878_v7, %v1881_v60  ;;  %v1900_v63 = vsel %vm1894_vm4, %v1887_v24, 920167782 }
 0x231   : > { %v1907_v18 = vshll.u32 %v1867_v2, 8  ;;  %vm1538_vm8 = vcmp.lt.s32.totalorder %v4107_v47, 2  ;;  %v1739_v23 = vsel %vm4133_vm5, %v3288_v51, %v1736_v1  ;;  %vm1757_vm9 = vcmp.lt.s32.totalorder %v3293_v50, 0 }
 0x232   : > { %v2420_v22 = vmin.u32 %v1821_v61, %v4160_v45  ;;  %v1895_v44 = vsel %vm1891_vm2, %v1875_v54, %v1878_v7  ;;  %v1901_v33 = vsel %vm1893_vm6, %v1884_v19, %v1900_v63  ;;  %v1897_v0 = vsel %vm1893_vm6, %v1881_v60, %v1896_v46 }
 0x233   : > { %v1902_v9 = vsel %vm1892_vm7, %v1899_v52, %v1901_v33  ;;  %v1903_v20 = vsel %vm1891_vm2, %v1881_v60, %v1884_v19  ;;  %v1904_v27 = vsel %vm1894_vm4, %v1890_v10, 1326507024  ;;  %v1541_v48 = vsel %vm1539_vm14, %v4067_v14, %v1540_v35 }
 0x234   : > { %v1738_v13 = vsel %vm1653_vm3, %v1737_v17, %v4043_v32  ;;  %v1823_v57 = vclz %v2420_v22  ;;  %v1963_v31 = vand.u32 2147483647, %v4749_v26  ;;  %vm1646_vm10 = vcmp.eq.s32.totalorder %v4123_v21, 2 }
 0x235   : > { %2649 = vcosq.f32 %v1739_v23  ;;  %v4750_v56 = vand.u32 2147483647, %v3293_v50  ;;  %v1905_v2 = vsel %vm1893_vm6, %v1887_v24, %v1904_v27  ;;  %vm1643_vm12 = vcmp.eq.s32.totalorder %v4123_v21, 0 }
 0x236   : > { %v4212_v14 = vmul.u32.u64.low %v1907_v18, %v1902_v9  ;;  %v4213_v35 = vmul.u32.u64.high %v1907_v18, %v1902_v9, %v4212_v14  ;;  %v2421_v32 = vadd.s32 4294967294, %v1823_v57  ;;  %v1898_v17 = vsel %vm1892_vm7, %v1895_v44, %v1897_v0 }
 0x237   : > { %vm4206_vm11 = vcmp.le.f32.partialorder %v4750_v56, 0.7853982  ;;  %v1906_v54 = vsel %vm1892_vm7, %v1903_v20, %v1905_v2  ;;  %v1966_v8 = vand.u32 2139095040, %v4749_v26  ;;  %v1740_v29 = vsel %vm4133_vm5, 0, %v1738_v13 }
 0x238   : > { %v1841_v7 = vsub.s32 4, %v4147_v4  ;;  %v4224_v60 = vmul.u32.u64.low %v1907_v18, %v1906_v54  ;;  %v4225_v24 = vmul.u32.u64.high %v1907_v18, %v1906_v54, %v4224_v60  ;;  %2651 = vsinq.f32 %v1739_v23  ;;  %v2646_v10 = vpop.eup %2645 }
 0x239   : > { %v1811_v19 = vadd.s32 %v4082_v6, %v4089_v5  ;;  %vm2422_vm13 = vcmp.lt.s32.totalorder %v2421_v32, 0  ;;  %v1967_v1 = vshrl.u32 %v1966_v8, 23  ;;  %v1914_v16 = vmul.u32 %v1907_v18, %v1898_v17  ;;  %v2648_v52 = vpop.eup %2647  ;;  %v4753_v5 = vld [vmem:[#allocation6_spill] sm:$0xff] }
 0x23a   : > { %v1826_v61 = vsel %vm2422_vm13, 0, %v2421_v32  ;;  %v1917_v46 = vadd.s32 1, %v4213_v35  ;;  %v1970_v11 = vand.u32 8388607, %v1963_v31  ;;  %v1744_v23 = vadd.s32 3, %v1740_v29 }
 0x23b   : > { %v1827_v63 = vsub.s32 32, %v1826_v61  ;;  %v1828_v22 = vshll.u32 %v4160_v45, %v1826_v61  ;;  %v1831_v44 = vsub.s32 4294967266, %v1826_v61  ;;  %v2427_v33 = vadd.s32 4294967169, %v1967_v1 }
 0x23c   : > { %v1842_v6 = vsel %vm1757_vm9, %v1841_v7, %v4147_v4  ;;  %vm1916_vm3 = vc.u32 %v4225_v24, %v4212_v14  ;;  %v2070_v18 = vand.u32 2139095040, %v4753_v5  ;;  %v1647_v0 = vxor.u32 2147483648, %v2646_v10 }
 0x23d   : > { %v1829_v9 = vshrl.u32 %v1811_v19, %v1827_v63  ;;  %v1832_v20 = vadd.s32 127, %v1831_v44  ;;  %v1918_v27 = vsel %vm1916_vm3, %v1917_v46, %v4213_v35  ;;  %v4241_v13 = vsel %vm1538_vm8, %v1541_v48, %v1544_v25 }
 0x23e   : > { %v1644_v45 = vxor.u32 2147483648, %v2648_v52  ;;  %v1919_v57 = vadd.s32 %v1918_v27, %v1914_v16  ;;  %v1973_v56 = vadd.s32 1, %v2427_v33  ;;  %v1844_v4 = vsel %vm4206_vm11, 0, %v1842_v6 }
 0x23f   : > { %v1830_v2 = vor.u32 %v1829_v9, %v1828_v22  ;;  %v1833_v32 = vshll.u32 %v1832_v20, 23  ;;  %v1971_v17 = vor.u32 8388608, %v1970_v11  ;;  %v4245_v54 = vpop.eup %2649  ;;  %v4247_v8 = vand.u32 3, %v1744_v23 }
 0x240   : > { %vm1861_vm0 = vcmp.lt.s32.totalorder %v3311_v40, 0  ;;  %v1920_v35 = vadd.s32 536870912, %v1919_v57  ;;  %vm1974_vm15 = vcmp.gt.s32.totalorder %v1973_v56, 0  ;;  %v2071_v47 = vshrl.u32 %v2070_v18, 23 }
 0x241   : > { %v4252_v25 = vsel %vm1646_vm10, %v1647_v0, %v2648_v52  ;;  %v1834_v48 = vor.u32 4788187, %v1833_v32  ;;  %v1837_v29 = vcvt.s32.f32 %v1830_v2  ;;  %v1975_v7 = vsel %vm1974_vm15, %v1973_v56, 0 }
 0x242   : > { %v4256_v60 = vsel %vm1643_vm12, %v2646_v10, %v1644_v45  ;;  %v4258_v19 = vadd.s32 3, %v1844_v4  ;;  %v1921_v1 = vshrl.u32 %v1920_v35, 30  ;;  %v1977_v61 = vand.u32 31, %v1975_v7  ;;  %v4260_v16 = vpop.eup %2651 }
 0x243   : > { %v1835_v46 = vand.u32 2147483647, %v1834_v48  ;;  %vm4264_vm5 = vcmp.le.f32.partialorder %v1859_v38, 0.7853982  ;;  %v4269_v52 = vadd.s32 %v4212_v14, %v4225_v24  ;;  %v4271_v63 = vshll.u32 %v1971_v17, 8 }
 0x244   : > { %v2067_v10 = vand.u32 2147483647, %v4753_v5  ;;  %v1751_v22 = vxor.u32 2147483648, %v4245_v54  ;;  %v1922_v44 = vshll.u32 %v1921_v1, 30  ;;  %v1978_v33 = vsub.s32 32, %v1977_v61 }
 0x245   : > { %v2431_v23 = vadd.s32 4294967169, %v2071_v47  ;;  %v1838_v6 = vmul.f32 %v1837_v29, %v1835_v46  ;;  %v1945_v18 = vsub.s32 4, %v1921_v1  ;;  %v1976_v0 = vshrl.u32 %v1975_v7, 5 }
 0x246   : > { %v1980_v38 = vshll.u32 %v4719_v55, %v1977_v61  ;;  %v4276_v9 = vsub.s32 %v1919_v57, %v1922_v44  ;;  %v1981_v20 = vshrl.u32 %v4720_v43, %v1978_v33  ;;  %v1983_v14 = vshll.u32 %v4720_v43, %v1977_v61 }
 0x247   : > { %v1986_v24 = vshll.u32 %v4721_v30, %v1977_v61  ;;  %v1839_v27 = vxor.u32 2147483648, %v1838_v6  ;;  %v1984_v45 = vshrl.u32 %v4721_v30, %v1978_v33  ;;  %v1987_v56 = vshrl.u32 %v4722_v12, %v1978_v33 }
 0x248   : > { %v1989_v2 = vshll.u32 %v4722_v12, %v1977_v61  ;;  %v1748_v32 = vxor.u32 2147483648, %v4260_v16  ;;  %v1925_v4 = vsub.s32 0, %v4276_v9  ;;  %v1990_v57 = vshrl.u32 %v4726_v42, %v1978_v33 }
 0x249   : > { %v2077_v17 = vadd.s32 1, %v2431_v23  ;;  %v1840_v35 = vsel %vm1757_vm9, %v1839_v27, %v1838_v6  ;;  %v1946_v47 = vsel %vm1861_vm0, %v1945_v18, %v1921_v1  ;;  %v1979_v48 = vshrl.u32 %v4719_v55, %v1978_v33 }
 0x24a   : > { %v1992_v29 = vshll.u32 %v4726_v42, %v1977_v61  ;;  %vm1747_vm14 = vcmp.eq.s32.totalorder %v4247_v8, 0  ;;  %vm1750_vm2 = vcmp.eq.s32.totalorder %v4247_v8, 2  ;;  %v1843_v7 = vsel %vm4206_vm11, %v3293_v50, %v1840_v35 }
 0x24b   : > { %v2424_v46 = vmin.u32 %v1925_v4, %v4276_v9  ;;  %v1982_v44 = vor.u32 %v1981_v20, %v1980_v38  ;;  %v1985_v23 = vor.u32 %v1984_v45, %v1983_v14  ;;  %v1988_v6 = vor.u32 %v1987_v56, %v1986_v24 }
 0x24c   : > { %v1991_v27 = vor.u32 %v1990_v57, %v1989_v2  ;;  %v1993_v1 = vshrl.u32 %v4727_v59, %v1978_v33  ;;  %vm1995_vm4 = vcmp.lt.s32.totalorder %v1976_v0, 1  ;;  %vm1431_vm6 = vweird.f32 %v3122_v36 }
 0x24d   : > { %vm1535_vm7 = vweird.f32 %v3125_v37  ;;  %2653 = vcosq.f32 %v1843_v7  ;;  %v1927_v61 = vclz %v2424_v46  ;;  %v1948_v18 = vsel %vm4264_vm5, 0, %v1946_v47 }
 0x24e   : > { %vm2078_vm8 = vcmp.gt.s32.totalorder %v2077_v17, 0  ;;  %vm1642_vm9 = vcmp.lt.s32.totalorder %v4123_v21, 2  ;;  %vm1746_vm10 = vcmp.lt.s32.totalorder %v4247_v8, 2  ;;  %v1994_v28 = vor.u32 %v1993_v1, %v1992_v29 }
 0x24f   : > { %vm1996_vm11 = vcmp.lt.s32.totalorder %v1976_v0, 2  ;;  %vm1997_vm12 = vcmp.lt.s32.totalorder %v1976_v0, 3  ;;  %vm1998_vm13 = vcmp.lt.s32.totalorder %v1976_v0, 4  ;;  %v2425_v33 = vadd.s32 4294967294, %v1927_v61 }
 0x250   : > { %v1999_v38 = vsel %vm1995_vm4, %v1979_v48, %v1982_v44  ;;  %v2000_v20 = vsel %vm1998_vm13, %v1988_v6, 2102212464  ;;  %v2003_v14 = vsel %vm1995_vm4, %v1982_v44, %v1985_v23  ;;  %v2004_v45 = vsel %vm1998_vm13, %v1991_v27, 920167782 }
 0x251   : > { %v2001_v24 = vsel %vm1997_vm12, %v1985_v23, %v2000_v20  ;;  %v2007_v56 = vsel %vm1995_vm4, %v1985_v23, %v1988_v6  ;;  %v2008_v2 = vsel %vm1998_vm13, %v1994_v28, 1326507024  ;;  %2655 = vsinq.f32 %v1843_v7 }
 0x252   : > { %vm2426_vm3 = vcmp.lt.s32.totalorder %v2425_v33, 0  ;;  %v2005_v4 = vsel %vm1997_vm12, %v1988_v6, %v2004_v45  ;;  %v2009_v57 = vsel %vm1997_vm12, %v1991_v27, %v2008_v2  ;;  %v2002_v47 = vsel %vm1996_vm11, %v1999_v38, %v2001_v24 }
 0x253   : > { %v1930_v35 = vsel %vm2426_vm3, 0, %v2425_v33  ;;  %v2006_v29 = vsel %vm1996_vm11, %v2003_v14, %v2005_v4  ;;  %v2010_v46 = vsel %vm1996_vm11, %v2007_v56, %v2009_v57  ;;  %v2079_v61 = vsel %vm2078_vm8, %v2077_v17, 0 }
 0x254   : > { %v1931_v48 = vsub.s32 32, %v1930_v35  ;;  %v1932_v1 = vshll.u32 %v4276_v9, %v1930_v35  ;;  %v1935_v44 = vsub.s32 4294967266, %v1930_v35  ;;  %v4324_v27 = vand.u32 3, %v4258_v19 }
 0x255   : > { %v4315_v23 = vmul.u32.u64.low %v4271_v63, %v2010_v46  ;;  %v4316_v28 = vmul.u32.u64.high %v4271_v63, %v2010_v46, %v4315_v23  ;;  %v4319_v7 = vmul.u32.u64.low %v4271_v63, %v2006_v29  ;;  %v4320_v6 = vmul.u32.u64.high %v4271_v63, %v2006_v29, %v4319_v7 }
 0x256   : > { %v1933_v0 = vshrl.u32 %v4269_v52, %v1931_v48  ;;  %v1936_v33 = vadd.s32 127, %v1935_v44  ;;  %v2081_v38 = vand.u32 31, %v2079_v61  ;;  %v1749_v9 = vsel %vm1747_vm14, %v4245_v54, %v1748_v32 }
 0x257   : > { %v1752_v17 = vsel %vm1750_vm2, %v1751_v22, %v4260_v16  ;;  %v1952_v20 = vadd.s32 3, %v1948_v18  ;;  %v4337_v14 = vand.u32 8388607, %v2067_v10  ;;  %v4339_v19 = vpop.eup %2653  ;;  %v2018_v45 = vmul.u32 %v4271_v63, %v2002_v47 }
 0x258   : > { %v1934_v52 = vor.u32 %v1933_v0, %v1932_v1  ;;  %v1937_v24 = vshll.u32 %v1936_v33, 23  ;;  %v2082_v56 = vsub.s32 32, %v2081_v38  ;;  %v4345_v32 = vsel %vm1431_vm6, nan, %v4118_v3 }
 0x259   : > { %v4350_v54 = vsel %vm1535_vm7, nan, %v4241_v13  ;;  %vm2020_vm15 = vc.u32 %v4316_v28, %v4319_v7  ;;  %v2021_v16 = vadd.s32 1, %v4320_v6  ;;  %v4359_v63 = vsel %vm1642_vm9, %v4256_v60, %v4252_v25 }
 0x25a   : > { %v4363_v36 = vsel %vm1746_vm10, %v1749_v9, %v1752_v17  ;;  %v1938_v3 = vor.u32 4788187, %v1937_v24  ;;  %v1941_v22 = vcvt.s32.f32 %v1934_v52  ;;  %vm1854_vm14 = vcmp.eq.s32.totalorder %v4324_v27, 2 }
 0x25b   : > { %v4366_v37 = vand.u32 3, %v1952_v20  ;;  %vm1965_vm2 = vcmp.lt.s32.totalorder %v4749_v26, 0  ;;  %v2022_v13 = vsel %vm2020_vm15, %v2021_v16, %v4320_v6  ;;  %v2075_v18 = vor.u32 8388608, %v4337_v14  ;;  %v2656_v25 = vpop.eup %2655 }
 0x25c   : > { %v2084_v21 = vshll.u32 %v4719_v55, %v2081_v38  ;;  %vm1851_vm4 = vcmp.eq.s32.totalorder %v4324_v27, 0  ;;  %v1939_v8 = vand.u32 2147483647, %v1938_v3  ;;  %v2023_v60 = vadd.s32 %v2022_v13, %v2018_v45 }
 0x25d   : > { %v2085_v2 = vshrl.u32 %v4720_v43, %v2082_v56  ;;  %v2087_v4 = vshll.u32 %v4720_v43, %v2081_v38  ;;  %v1855_v57 = vxor.u32 2147483648, %v4339_v19  ;;  %v4376_v35 = vshrl.u32 %v2079_v61, 5 }
 0x25e   : > { %v2088_v47 = vshrl.u32 %v4721_v30, %v2082_v56  ;;  %v2090_v29 = vshll.u32 %v4721_v30, %v2081_v38  ;;  %v1942_v46 = vmul.f32 %v1941_v22, %v1939_v8  ;;  %vm4382_vm6 = vcmp.le.f32.partialorder %v1963_v31, 0.7853982 }
 0x25f   : > { %v2024_v1 = vadd.s32 536870912, %v2023_v60  ;;  %v2091_v44 = vshrl.u32 %v4722_v12, %v2082_v56  ;;  %v2093_v43 = vshll.u32 %v4722_v12, %v2081_v38  ;;  %vm1639_vm7 = vweird.f32 %v3249_v62 }
 0x260   : > { %vm1743_vm8 = vweird.f32 %v3288_v51  ;;  %v1852_v61 = vxor.u32 2147483648, %v2656_v25  ;;  %v2094_v23 = vshrl.u32 %v4726_v42, %v2082_v56  ;;  %v2096_v30 = vshll.u32 %v4726_v42, %v2081_v38 }
 0x261   : > { %v2097_v6 = vshrl.u32 %v4727_v59, %v2082_v56  ;;  %vm1850_vm9 = vcmp.lt.s32.totalorder %v4324_v27, 2  ;;  %v1943_v31 = vxor.u32 2147483648, %v1942_v46  ;;  %v2025_v0 = vshrl.u32 %v2024_v1, 30 }
 0x262   : > { %v2086_v33 = vor.u32 %v2085_v2, %v2084_v21  ;;  %v2089_v9 = vor.u32 %v2088_v47, %v2087_v4  ;;  %v2083_v17 = vshrl.u32 %v4719_v55, %v2082_v56  ;;  %v2092_v12 = vor.u32 %v2091_v44, %v2090_v29 }
 0x263   : > { %v2095_v20 = vor.u32 %v2094_v23, %v2093_v43  ;;  %vm2099_vm10 = vcmp.lt.s32.totalorder %v4376_v35, 1  ;;  %v1944_v14 = vsel %vm1861_vm0, %v1943_v31, %v1942_v46  ;;  %v2026_v52 = vshll.u32 %v2025_v0, 30 }
 0x264   : > { %v2049_v24 = vsub.s32 4, %v2025_v0  ;;  %vm2102_vm11 = vcmp.lt.s32.totalorder %v4376_v35, 4  ;;  %vm1847_vm12 = vweird.f32 %v3293_v50  ;;  %v1947_v59 = vsel %vm4264_vm5, %v3311_v40, %v1944_v14 }
 0x265   : > { %v2098_v42 = vor.u32 %v2097_v6, %v2096_v30  ;;  %vm2100_vm13 = vcmp.lt.s32.totalorder %v4376_v35, 2  ;;  %vm2101_vm3 = vcmp.lt.s32.totalorder %v4376_v35, 3  ;;  %2657 = vcosq.f32 %v1947_v59 }
 0x266   : > { %v4405_v55 = vsub.s32 %v2023_v60, %v2026_v52  ;;  %v2050_v38 = vsel %vm1965_vm2, %v2049_v24, %v2025_v0  ;;  %v2107_v45 = vsel %vm2099_vm10, %v2086_v33, %v2089_v9  ;;  %2659 = vsinq.f32 %v1947_v59 }
 0x267   : > { %v2104_v56 = vsel %vm2102_vm11, %v2092_v12, 2102212464  ;;  %v2108_v11 = vsel %vm2102_vm11, %v2095_v20, 920167782  ;;  %v2115_v16 = vshll.u32 %v2075_v18, 8  ;;  %v1856_v3 = vsel %vm1854_vm14, %v1855_v57, %v2656_v25 }
 0x268   : > { %v2029_v22 = vsub.s32 0, %v4405_v55  ;;  %v2109_v13 = vsel %vm2101_vm3, %v2092_v12, %v2108_v11  ;;  %v2111_v21 = vsel %vm2099_vm10, %v2089_v9, %v2092_v12  ;;  %v1853_v8 = vsel %vm1851_vm4, %v4339_v19, %v1852_v61 }
 0x269   : > { %v2052_v60 = vsel %vm4382_vm6, 0, %v2050_v38  ;;  %v2110_v18 = vsel %vm2100_vm13, %v2107_v45, %v2109_v13  ;;  %v2112_v25 = vsel %vm2102_vm11, %v2098_v42, 1326507024  ;;  %v2103_v4 = vsel %vm2099_vm10, %v2083_v17, %v2086_v33  ;;  %v4758_v33 = vld [vmem:[#allocation7_spill] sm:$0xff] }
 0x26a   : > { %v2428_v2 = vmin.u32 %v2029_v22, %v4405_v55  ;;  %v2105_v57 = vsel %vm2101_vm3, %v2089_v9, %v2104_v56  ;;  %v2113_v19 = vsel %vm2101_vm3, %v2095_v20, %v2112_v25  ;;  %v2172_v1 = vlaneseq }
 0x26b   : > { %v2114_v47 = vsel %vm2100_vm13, %v2111_v21, %v2113_v19  ;;  %v4440_v29 = vmul.u32.u64.low %v2115_v16, %v2110_v18  ;;  %v4441_v46 = vmul.u32.u64.high %v2115_v16, %v2110_v18, %v4440_v29  ;;  %v4447_v44 = vsel %vm1639_vm7, nan, %v4359_v63 }
 0x26c   : > { %v4452_v43 = vsel %vm1743_vm8, nan, %v4363_v36  ;;  %v2031_v61 = vclz %v2428_v2  ;;  %v2056_v23 = vadd.s32 3, %v2052_v60  ;;  %v1857_v30 = vsel %vm1850_vm9, %v1853_v8, %v1856_v3 }
 0x26d   : > { %vm1954_vm0 = vcmp.lt.s32.totalorder %v4366_v37, 2  ;;  %v2106_v6 = vsel %vm2100_vm13, %v2103_v4, %v2105_v57  ;;  %v4459_v31 = vmul.u32.u64.low %v2115_v16, %v2114_v47  ;;  %v4460_v0 = vmul.u32.u64.high %v2115_v16, %v2114_v47, %v4459_v31 }
 0x26e   : > { %vm1955_vm5 = vcmp.eq.s32.totalorder %v4366_v37, 0  ;;  %vm1958_vm15 = vcmp.eq.s32.totalorder %v4366_v37, 2  ;;  %v2429_v62 = vadd.s32 4294967294, %v2031_v61  ;;  %v4464_v51 = vstv %s2435_s14 }
 0x26f   : > { %v2019_v63 = vadd.s32 %v4319_v7, %v4316_v28  ;;  %v2125_v27 = vadd.s32 1, %v4441_v46  ;;  %v4469_v36 = vshrl.u32 %v2172_v1, 7  ;;  %v4473_v35 = vmul.f32 %v4758_v33, %v4758_v33  ;;  %v2658_v9 = vpop.eup %2657 }
 0x270   : > { %v4477_v17 = vsel %vm1847_vm12, nan, %v1857_v30  ;;  %vm1951_vm14 = vweird.f32 %v3311_v40  ;;  %vm2430_vm4 = vcmp.lt.s32.totalorder %v2429_v62, 0  ;;  %v4480_v12 = vand.u32 3, %v2056_v23  ;;  %v2660_v28 = vpop.eup %2659 }
 0x271   : > { %v2122_v20 = vmul.u32 %v2115_v16, %v2106_v6  ;;  %v1959_v7 = vxor.u32 2147483648, %v2658_v9  ;;  %v2034_v14 = vsel %vm2430_vm4, 0, %v2429_v62  ;;  %vm2124_vm7 = vc.u32 %v4460_v0, %v4440_v29 }
 0x272   : > { %v4485_v52 = vmul.f32 %v3535_v34, %v3535_v34  ;;  %v1956_v24 = vxor.u32 2147483648, %v2660_v28  ;;  %v2035_v59 = vsub.s32 32, %v2034_v14  ;;  %v2036_v50 = vshll.u32 %v4405_v55, %v2034_v14 }
 0x273   : > { %v2039_v42 = vsub.s32 4294967266, %v2034_v14  ;;  %v2126_v38 = vsel %vm2124_vm7, %v2125_v27, %v4441_v46  ;;  %v2174_v45 = vadd.s32 8, %v4469_v36  ;;  %v2175_v56 = vadd.s32 16, %v4469_v36 }
 0x274   : > { %v2176_v11 = vadd.s32 24, %v4469_v36  ;;  %v2037_v16 = vshrl.u32 %v2019_v63, %v2035_v59  ;;  %v2127_v22 = vadd.s32 %v2126_v38, %v2122_v20  ;;  %v2177_v13 = vadd.s32 32, %v4469_v36 }
 0x275   : > { %v2040_v3 = vadd.s32 127, %v2039_v42  ;;  %v1957_v34 = vsel %vm1955_vm5, %v2658_v9, %v1956_v24  ;;  %v1960_v55 = vsel %vm1958_vm15, %v1959_v7, %v2660_v28  ;;  %v2178_v21 = vadd.s32 40, %v4469_v36 }
 0x276   : > { %v2179_v8 = vadd.s32 48, %v4469_v36  ;;  %v2038_v60 = vor.u32 %v2037_v16, %v2036_v50  ;;  %v2128_v25 = vadd.s32 536870912, %v2127_v22  ;;  %v2180_v2 = vadd.s32 56, %v4469_v36 }
 0x277   : > { %v2041_v18 = vshll.u32 %v2040_v3, 23  ;;  %v2181_v4 = vadd.s32 64, %v4469_v36  ;;  %v2182_v57 = vadd.s32 72, %v4469_v36  ;;  %v2183_v19 = vadd.s32 80, %v4469_v36 }
 0x278   : > { %v2184_v47 = vadd.s32 88, %v4469_v36  ;;  %v1961_v46 = vsel %vm1954_vm0, %v1957_v34, %v1960_v55  ;;  %v2045_v61 = vcvt.s32.f32 %v2038_v60  ;;  %v4506_v23 = vshrl.u32 %v2128_v25, 30 }
 0x279   : > { %v2042_v1 = vor.u32 4788187, %v2041_v18  ;;  %v4509_v30 = vadd.s32 %v4440_v29, %v4460_v0  ;;  %v2185_v6 = vadd.s32 96, %v4469_v36  ;;  %v2186_v31 = vadd.s32 104, %v4469_v36 }
 0x27a   : > { %v4514_v62 = vadd.s32 112, %v4469_v36  ;;  %v2130_v27 = vshll.u32 %v4506_v23, 30  ;;  %v2190_v37 = vadd.s32 %v4464_v51, %v4469_v36  ;;  %v2191_v33 = vadd.s32 %v4464_v51, %v2174_v45 }
 0x27b   : > { %v2043_v63 = vand.u32 2147483647, %v2042_v1  ;;  %v1962_v9 = vsel %vm1951_vm14, nan, %v1961_v46  ;;  %v2192_v29 = vadd.s32 %v4464_v51, %v2175_v56  ;;  %v2193_v0 = vadd.s32 %v4464_v51, %v2176_v11 }
 0x27c   : > { %v2194_v20 = vadd.s32 %v4464_v51, %v2177_v13  ;;  %v4525_v7 = vsub.s32 %v2127_v22, %v2130_v27  ;;  %v2195_v14 = vadd.s32 %v4464_v51, %v2178_v21  ;;  %v2196_v24 = vadd.s32 %v4464_v51, %v2179_v8 }
 0x27d   : > { %v2046_v28 = vmul.f32 %v2045_v61, %v2043_v63  ;;  %v4530_v59 = vadd.s32 %v4464_v51, %v2180_v2  ;;  %v4533_v50 = vadd.s32 %v4464_v51, %v2181_v4  ;;  %v4536_v40 = vadd.s32 %v4464_v51, %v2182_v57 }
 0x27e   : > { %v4539_v42 = vadd.s32 %v4464_v51, %v2183_v19  ;;  %v2133_v45 = vsub.s32 0, %v4525_v7  ;;  %v4543_v56 = vadd.s32 %v4464_v51, %v2184_v47  ;;  %v4546_v11 = vadd.s32 %v4464_v51, %v2185_v6 }
 0x27f   : > { %v2047_v38 = vxor.u32 2147483648, %v2046_v28  ;;  %v4549_v16 = vadd.s32 %v4464_v51, %v2186_v31  ;;  %vm2206_vm8 = vcmp.lt.s32.totalorder %v2190_v37, 200  ;;  %vm2207_vm9 = vcmp.lt.s32.totalorder %v2191_v33, 200 }
 0x280   : > { %vm2208_vm10 = vcmp.lt.s32.totalorder %v2192_v29, 200  ;;  %v2432_v22 = vmin.u32 %v2133_v45, %v4525_v7  ;;  %vm2209_vm11 = vcmp.lt.s32.totalorder %v2193_v0, 200  ;;  %vm2210_vm12 = vcmp.lt.s32.totalorder %v2194_v20, 200 }
 0x281   : > { %v2048_v3 = vsel %vm1965_vm2, %v2047_v38, %v2046_v28  ;;  %vm2211_vm13 = vcmp.lt.s32.totalorder %v2195_v14, 200  ;;  %vm2212_vm3 = vcmp.lt.s32.totalorder %v2196_v24, 200  ;;  %vm2213_vm0 = vcmp.lt.s32.totalorder %v4530_v59, 200 }
 0x282   : > { %v2051_v13 = vsel %vm4382_vm6, %v4749_v26, %v2048_v3  ;;  %v2135_v34 = vclz %v2432_v22  ;;  %vm2214_vm5 = vcmp.lt.s32.totalorder %v4533_v50, 200  ;;  %vm2215_vm15 = vcmp.lt.s32.totalorder %v4536_v40, 200 }
 0x283   : > { %2661 = vcosq.f32 %v2051_v13  ;;  %vm2216_vm2 = vcmp.lt.s32.totalorder %v4539_v42, 200  ;;  %vm2217_vm14 = vcmp.lt.s32.totalorder %v4543_v56, 200  ;;  %vm2218_vm4 = vcmp.lt.s32.totalorder %v4546_v11, 200 }
 0x284   : > { %2663 = vsinq.f32 %v2051_v13  ;;  %v2433_v48 = vadd.s32 4294967294, %v2135_v34  ;;  %vm2219_vm6 = vcmp.lt.s32.totalorder %v4549_v16, 200  ;;  %v2224_v55 = vmul.f32 %v3554_v53, %v3554_v53 }
 0x285   : > { %v2225_v21 = vmul.f32 %v3782_v15, %v3782_v15  ;;  %v2226_v8 = vmul.f32 %v3880_v49, %v3880_v49  ;;  %v2227_v60 = vmul.f32 %v3890_v41, %v3890_v41  ;;  %v2228_v18 = vmul.f32 %v4020_v39, %v4020_v39 }
 0x286   : > { %v2229_v25 = vmul.f32 %v4114_v58, %v4114_v58  ;;  %vm2434_vm7 = vcmp.lt.s32.totalorder %v2433_v48, 0  ;;  %v2230_v53 = vmul.f32 %v4345_v32, %v4345_v32  ;;  %v2231_v15 = vmul.f32 %v4350_v54, %v4350_v54 }
 0x287   : > { %v2232_v49 = vmul.f32 %v4447_v44, %v4447_v44  ;;  %v2138_v2 = vsel %vm2434_vm7, 0, %v2433_v48  ;;  %v2233_v41 = vmul.f32 %v4452_v43, %v4452_v43  ;;  %v2234_v39 = vmul.f32 %v4477_v17, %v4477_v17 }
 0x288   : > { %v2235_v58 = vmul.f32 %v1962_v9, %v1962_v9  ;;  %v2139_v4 = vsub.s32 32, %v2138_v2  ;;  %v2140_v32 = vshll.u32 %v4525_v7, %v2138_v2  ;;  %v2143_v57 = vsub.s32 4294967266, %v2138_v2 }
 0x289   : > { %v2238_v54 = vsel %vm2206_vm8, %v4473_v35, 0.0  ;;  %v2239_v44 = vsel %vm2207_vm9, %v4485_v52, 0.0  ;;  %v2240_v43 = vsel %vm2208_vm10, %v2224_v55, 0.0  ;;  %v2241_v19 = vsel %vm2209_vm11, %v2225_v21, 0.0 }
 0x28a   : > { %v2242_v17 = vsel %vm2210_vm12, %v2226_v8, 0.0  ;;  %2254 = vst.msk [vmem:[%s2845_s28] sm:$0xff] %vm447_vm1, %v2238_v54  ;;  %v2141_v47 = vshrl.u32 %v4509_v30, %v2139_v4  ;;  %v2144_v46 = vadd.s32 127, %v2143_v57  ;;  %v2243_v1 = vsel %vm2211_vm13, %v2227_v60, 0.0  ;;  %2255 = vst.msk [vmem:[%s2845_s28 + $0x8] sm:$0xff] %vm447_vm1, %v2239_v44 }
 0x28b   : > { %v2244_v35 = vsel %vm2212_vm3, %v2228_v18, 0.0  ;;  %2256 = vst.msk [vmem:[%s2845_s28 + $0x10] sm:$0xff] %vm447_vm1, %v2240_v43  ;;  %2257 = vst.msk [vmem:[%s2845_s28 + $0x18] sm:$0xff] %vm447_vm1, %v2241_v19  ;;  %v2245_v52 = vsel %vm2213_vm0, %v2229_v25, 0.0  ;;  %v2246_v61 = vsel %vm2214_vm5, %v2230_v53, 0.0  ;;  %v2247_v30 = vsel %vm2215_vm15, %v2231_v15, 0.0 }
 0x28c   : > { %2258 = vst.msk [vmem:[%s2845_s28 + $0x20] sm:$0xff] %vm447_vm1, %v2242_v17  ;;  %v2248_v6 = vsel %vm2216_vm2, %v2232_v49, 0.0  ;;  %2259 = vst.msk [vmem:[%s2845_s28 + $0x28] sm:$0xff] %vm447_vm1, %v2243_v1  ;;  %v2142_v63 = vor.u32 %v2141_v47, %v2140_v32  ;;  %v2145_v27 = vshll.u32 %v2144_v46, 23  ;;  %v2249_v37 = vsel %vm2217_vm14, %v2233_v41, 0.0 }
 0x28d   : > { %2260 = vst.msk [vmem:[%s2845_s28 + $0x30] sm:$0xff] %vm447_vm1, %v2244_v35  ;;  %v2662_v31 = vpop.eup %2661  ;;  %v2250_v33 = vsel %vm2218_vm4, %v2234_v39, 0.0  ;;  %2261 = vst.msk [vmem:[%s2845_s28 + $0x38] sm:$0xff] %vm447_vm1, %v2245_v52  ;;  %vm2058_vm8 = vcmp.lt.s32.totalorder %v4480_v12, 2  ;;  %vm2059_vm9 = vcmp.eq.s32.totalorder %v4480_v12, 0  ;;  %v2251_v0 = vsel %vm2219_vm6, %v2235_v58, 0.0 }
 0x28e   : > { %2262 = vst.msk [vmem:[%s2845_s28 + $0x40] sm:$0xff] %vm447_vm1, %v2246_v61  ;;  %2263 = vst.msk [vmem:[%s2845_s28 + $0x48] sm:$0xff] %vm447_vm1, %v2247_v30  ;;  %v2664_v9 = vpop.eup %2663  ;;  %v2063_v29 = vxor.u32 2147483648, %v2662_v31  ;;  %v2146_v28 = vor.u32 4788187, %v2145_v27  ;;  %v2149_v7 = vcvt.s32.f32 %v2142_v63  ;;  %v2204_v14 = vadd.s32 %v4464_v51, %v4514_v62 }
 0x28f   : > { %2264 = vst.msk [vmem:[%s2845_s28 + $0x50] sm:$0xff] %vm447_vm1, %v2248_v6  ;;  %2265 = vst.msk [vmem:[%s2845_s28 + $0x58] sm:$0xff] %vm447_vm1, %v2249_v37  ;;  %v2060_v20 = vxor.u32 2147483648, %v2664_v9  ;;  %vm2055_vm10 = vweird.f32 %v4749_v26  ;;  %vm4759_vm11 = vcmp.eq.s32.totalorder %v4480_v12, 2  ;;  %v2153_v40 = vsub.s32 4, %v4506_v23 }
 0x290   : > { %2266 = vst.msk [vmem:[%s2845_s28 + $0x60] sm:$0xff] %vm447_vm1, %v2250_v33  ;;  %2267 = vst.msk [vmem:[%s2845_s28 + $0x68] sm:$0xff] %vm447_vm1, %v2251_v0  ;;  %v2064_v24 = vsel %vm4759_vm11, %v2063_v29, %v2664_v9  ;;  %v2147_v50 = vand.u32 2147483647, %v2146_v28  ;;  %vm2220_vm12 = vcmp.lt.s32.totalorder %v2204_v14, 200  ;;  %vm2069_vm13 = vcmp.lt.s32.totalorder %v4753_v5, 0 }
 0x291   : > { %v2061_v59 = vsel %vm2059_vm9, %v2662_v31, %v2060_v20  ;;  %vm2068_vm3 = vcmp.le.f32.partialorder %v2067_v10, 0.7853982  ;;  %v2154_v56 = vsel %vm2069_vm13, %v2153_v40, %v4506_v23  ;;  %v2188_v34 = vadd.s32 120, %v4469_v36 }
 0x292   : > { %v2065_v42 = vsel %vm2058_vm8, %v2061_v59, %v2064_v24  ;;  %v2150_v45 = vmul.f32 %v2149_v7, %v2147_v50  ;;  %v2156_v12 = vsel %vm2068_vm3, 0, %v2154_v56  ;;  %vm2159_vm2 = vweird.f32 %v4753_v5 }
 0x293   : > { %v2066_v38 = vsel %vm2055_vm10, nan, %v2065_v42  ;;  %v2160_v22 = vadd.s32 3, %v2156_v12  ;;  %v2205_v21 = vadd.s32 %v4464_v51, %v2188_v34 }
 0x294   : > { %v2236_v62 = vmul.f32 %v2066_v38, %v2066_v38  ;;  %v2151_v26 = vxor.u32 2147483648, %v2150_v45 }
 0x295   : > { %v2161_v13 = vand.u32 3, %v2160_v22  ;;  %vm2221_vm14 = vcmp.lt.s32.totalorder %v2205_v21, 200 }
 0x296   : > { %v2252_v11 = vsel %vm2220_vm12, %v2236_v62, 0.0  ;;  %v2152_v16 = vsel %vm2069_vm13, %v2151_v26, %v2150_v45 }
 0x297   : > { %2268 = vst.msk [vmem:[%s2845_s28 + $0x70] sm:$0xff] %vm447_vm1, %v2252_v11  ;;  %v2155_v3 = vsel %vm2068_vm3, %v4753_v5, %v2152_v16  ;;  %vm2166_vm0 = vcmp.eq.s32.totalorder %v2161_v13, 2  ;;  %vm2163_vm5 = vcmp.eq.s32.totalorder %v2161_v13, 0  ;;  %vm2162_vm15 = vcmp.lt.s32.totalorder %v2161_v13, 2 }
 0x298   : > { %2665 = vcosq.f32 %v2155_v3 }
 0x299   : > { %2667 = vsinq.f32 %v2155_v3 }
 0x2a2   : > { %v2666_v48 = vpop.eup %2665 }
 0x2a3   : > { %v2668_v10 = vpop.eup %2667  ;;  %v2167_v55 = vxor.u32 2147483648, %v2666_v48 }
 0x2a4   : > { %v2164_v23 = vxor.u32 2147483648, %v2668_v10 }
 0x2a5   : > { %v2168_v8 = vsel %vm2166_vm0, %v2167_v55, %v2668_v10 }
 0x2a6   : > { %v2165_v60 = vsel %vm2163_vm5, %v2666_v48, %v2164_v23 }
 0x2a7   : > { %v2169_v18 = vsel %vm2162_vm15, %v2165_v60, %v2168_v8 }
 0x2a8   : > { %v2170_v25 = vsel %vm2159_vm2, nan, %v2169_v18 }
 0x2a9   : > { %v2237_v53 = vmul.f32 %v2170_v25, %v2170_v25 }
 0x2ab   : > { %v2253_v15 = vsel %vm2221_vm14, %v2237_v53, 0.0 }
 0x2ac   : > { %2269 = vst.msk [vmem:[%s2845_s28 + $0x78] sm:$0xff] %vm447_vm1, %v2253_v15 }
 0x2ad PF: > { %s15_s20 = sadd.s32 1, %s2723_s20   ;;  %s4760_s14 = smov %s2703_s15 }
 0x2ae   : > { %p12_p0 = scmp.ge.s32.totalorder %s15_s20, 6   ;;  %s4761_s15 = smov %s2806_s26 }
 0x2af   : > { %s4762_s16 = smov %s2715_s18  ;;  %s4763_s17 = smov %s2719_s19 }
 0x2b0   : > { %s4764_s18 = smov %s4767_s2  ;;  %s4765_s19 = smov %s4771_s21 }
 0x2b1   :  { %14 = sbr.rel (!%p12_p0) target bundleno = 7 (0x7), region = 119 }

// kernel: linear_h_forward.2
= control target key start
LH: loop header
LB: loop body
LE: loop exit
PB: predicated region body
PF: predicated region fallthrough
CT: control target
= control target key end

     0   :  { %s7745_s1 = inlined_call_operand.vmem [shape: bf16[128,128], index: 1, kind: input, shape index: {}]   ;;  %s7746_s0 = inlined_call_operand.vmem [shape: bf16[256,128], index: 0, kind: input, shape index: {}]   ;;  %s7747_s2 = inlined_call_operand.vmem [shape: f32[1,128], index: 2, kind: input, shape index: {}]   ;;  %s7748_s3 = inlined_call_operand.vmem [shape: f32[1,128], index: 3, kind: input, shape index: {}]   ;;  %s7749_s4 = inlined_call_operand.vmem [shape: f32[256,1], index: 4, kind: output, shape index: {}]  }
   0x1   :  { %v4222_v0 = vld [vmem:[%s7745_s1] sm:$0xff]   ;;  %v4223_v1 = vld [vmem:[%s7745_s1 + $0x8] sm:$0xff]   ;;  %v4224_v2 = vld [vmem:[%s7745_s1 + $0x10] sm:$0xff]  }
   0x2   :  { %4024 = vmatprep.subr.bf16.mxu0 %v4222_v0  ;;  %4072 = vmatprep.subr.bf16.mxu1 %v4222_v0  ;;  %v4225_v3 = vld [vmem:[%s7745_s1 + $0x18] sm:$0xff]   ;;  %v4230_v4 = vld [vmem:[%s7746_s0] sm:$0xff]   ;;  %v4227_v7 = vld [vmem:[%s7745_s1 + $0x28] sm:$0xff]  }
   0x3   :  { %4025 = vmatpush3.bf16.msra.mxu0 %v4222_v0  ;;  %4080 = vmatpush3.bf16.msra.mxu1 %v4222_v0  ;;  %v4231_v5 = vld [vmem:[%s7746_s0 + $0x40] sm:$0xff]   ;;  %v4228_v8 = vld [vmem:[%s7745_s1 + $0x30] sm:$0xff]   ;;  %v4229_v9 = vld [vmem:[%s7745_s1 + $0x38] sm:$0xff]  }
   0x4   :  { %4026 = vmatprep.subr.bf16.mxu0 %v4223_v1  ;;  %4073 = vmatprep.subr.bf16.mxu1 %v4223_v1  ;;  %v4226_v6 = vld [vmem:[%s7745_s1 + $0x20] sm:$0xff]   ;;  %v4232_v10 = vld [vmem:[%s7746_s0 + $0x8] sm:$0xff]   ;;  %v4234_v12 = vld [vmem:[%s7746_s0 + $0x10] sm:$0xff]  }
   0x5   :  { %4040 = vmatprep.mubr.bf16.mxu0 %v4230_v4  ;;  %4056 = vmatprep.mubr.bf16.mxu1 %v4231_v5  ;;  %v4233_v11 = vld [vmem:[%s7746_s0 + $0x48] sm:$0xff]   ;;  %v4235_v13 = vld [vmem:[%s7746_s0 + $0x50] sm:$0xff]   ;;  %v4236_v14 = vld [vmem:[%s7746_s0 + $0x18] sm:$0xff]  }
   0x6   :  { %v4237_v15 = vld [vmem:[%s7746_s0 + $0x58] sm:$0xff]   ;;  %v4238_v16 = vld [vmem:[%s7746_s0 + $0x20] sm:$0xff]   ;;  %v4240_v18 = vld [vmem:[%s7746_s0 + $0x28] sm:$0xff]  }
   0x7   :  { %4027 = vmatpush3.bf16.msra.mxu0 %v4223_v1  ;;  %4081 = vmatpush3.bf16.msra.mxu1 %v4223_v1  ;;  %v4239_v17 = vld [vmem:[%s7746_s0 + $0x60] sm:$0xff]   ;;  %v4241_v19 = vld [vmem:[%s7746_s0 + $0x68] sm:$0xff]   ;;  %v4242_v20 = vld [vmem:[%s7746_s0 + $0x30] sm:$0xff]  }
   0x8   :  { %4028 = vmatprep.subr.bf16.mxu0 %v4224_v2  ;;  %4074 = vmatprep.subr.bf16.mxu1 %v4224_v2  ;;  %v4243_v21 = vld [vmem:[%s7746_s0 + $0x70] sm:$0xff]   ;;  %v4244_v22 = vld [vmem:[%s7746_s0 + $0x38] sm:$0xff]   ;;  %v4485_v24 = vld [vmem:[%s7747_s2] ss:$0 sm:$0xff] }
   0x9   :  { %v4245_v23 = vld [vmem:[%s7746_s0 + $0x78] sm:$0xff]  }
   0xb   :  { %4029 = vmatpush3.bf16.msra.mxu0 %v4224_v2  ;;  %4082 = vmatpush3.bf16.msra.mxu1 %v4224_v2 }
   0xc   :  { %4030 = vmatprep.subr.bf16.mxu0 %v4225_v3  ;;  %4075 = vmatprep.subr.bf16.mxu1 %v4225_v3 }
   0xf   :  { %4031 = vmatpush3.bf16.msra.mxu0 %v4225_v3  ;;  %4083 = vmatpush3.bf16.msra.mxu1 %v4225_v3 }
  0x10   :  { %4032 = vmatprep.subr.bf16.mxu0 %v4226_v6  ;;  %4076 = vmatprep.subr.bf16.mxu1 %v4226_v6 }
  0x13   :  { %4033 = vmatpush3.bf16.msra.mxu0 %v4226_v6  ;;  %4084 = vmatpush3.bf16.msra.mxu1 %v4226_v6  ;;  %v7756_v6 = vmov 683565275  }
  0x14   :  { %4034 = vmatprep.subr.bf16.mxu0 %v4227_v7  ;;  %4077 = vmatprep.subr.bf16.mxu1 %v4227_v7 }
  0x17   :  { %4035 = vmatpush3.bf16.msra.mxu0 %v4227_v7  ;;  %4085 = vmatpush3.bf16.msra.mxu1 %v4227_v7 }
  0x18   :  { %4036 = vmatprep.subr.bf16.mxu0 %v4228_v8  ;;  %4078 = vmatprep.subr.bf16.mxu1 %v4228_v8 }
  0x1b   :  { %4037 = vmatpush3.bf16.msra.mxu0 %v4228_v8  ;;  %4086 = vmatpush3.bf16.msra.mxu1 %v4228_v8  ;;  %v7758_v8 = vmov 2475754826  }
  0x1c   :  { %4038 = vmatprep.subr.bf16.mxu0 %v4229_v9  ;;  %4079 = vmatprep.subr.bf16.mxu1 %v4229_v9 }
  0x1f   :  { %4039 = vmatpush3.bf16.msra.mxu0 %v4229_v9  ;;  %4087 = vmatpush3.bf16.msra.mxu1 %v4229_v9 }
  0x22   :  { %4041 = vmatmul.mubr.bf16.vlgmr.msra.gmra.mrb[0].mxu0 %v4232_v10  ;;  %4057 = vmatmul.mubr.bf16.vlgmr.msra.gmra.mrb[0].mxu1 %v4233_v11 }
  0x23   :  { %4044 = vmatprep.mubr.bf16.mxu0 %v4234_v12  ;;  %4060 = vmatprep.mubr.bf16.mxu1 %v4235_v13  ;;  %v7768_v13 = vmov 2131351028  }
  0x2a   :  { %4045 = vmatmul.mubr.bf16.gmra.mrb[4].mxu0 %v4236_v14  ;;  %4061 = vmatmul.mubr.bf16.gmra.mrb[4].mxu1 %v4237_v15 }
  0x2b   :  { %4048 = vmatprep.mubr.bf16.mxu0 %v4238_v16  ;;  %4064 = vmatprep.mubr.bf16.mxu1 %v4239_v17  ;;  %v7766_v16 = vmov 2102212464  }
  0x32   :  { %4049 = vmatmul.mubr.bf16.gmra.mrb[8].mxu0 %v4240_v18  ;;  %4065 = vmatmul.mubr.bf16.gmra.mrb[8].mxu1 %v4241_v19 }
  0x33   :  { %4052 = vmatprep.mubr.bf16.mxu0 %v4242_v20  ;;  %4068 = vmatprep.mubr.bf16.mxu1 %v4243_v21  ;;  %v7764_v20 = vmov 920167782  }
  0x3a   :  { %4053 = vmatmul.mubr.bf16.gmra.mrb[12].mxu0 %v4244_v22  ;;  %4069 = vmatmul.mubr.bf16.gmra.mrb[12].mxu1 %v4245_v23 }
  0xf5   :  { %v4042_v25 = vpop.f32.mrb[0].mxu0  ;;  %v4058_v26 = vpop.f32.mrb[0].mxu1 }
  0xf6   :  { %v251_v27 = vpop.f32.mrb[1].mxu0  ;;  %v315_v28 = vpop.f32.mrb[1].mxu1  ;;  %v4505_v39 = vadd.f32 %v4042_v25, %v4485_v24  ;;  %v4516_v50 = vadd.f32 %v4058_v26, %v4485_v24  ;;  %v7754_v26 = vmov 1326507024  }
  0xf7   :  { %v4488_v29 = vadd.f32 %v4485_v24, %v251_v27  ;;  %v4491_v30 = vadd.f32 %v4485_v24, %v315_v28  ;;  %v4043_v31 = vpop.f32.mrb[2].mxu0  ;;  %v4493_v32 = vpop.f32.mrb[2].mxu1 }
  0xf8   :  { %v4495_v33 = vpop.f32.mrb[3].mxu0  ;;  %v4497_v34 = vpop.f32.mrb[3].mxu1  ;;  %v4501_v36 = vadd.f32 %v4043_v31, %v4485_v24  ;;  %7915 = vst [vmem:[#allocation4_spill] sm:$0xff] %v4505_v39  ;;  %v589_v49 = vand.u32 2139095040, %v4505_v39  ;;  %7916 = vst [vmem:[#allocation5_spill] sm:$0xff] %v4516_v50  ;;  %v2253_v58 = vand.u32 2139095040, %v4516_v50 }
  0xf9   :  { %7913 = vst [vmem:[#allocation2_spill] sm:$0xff] %v4488_v29  ;;  %7914 = vst [vmem:[#allocation3_spill] sm:$0xff] %v4491_v30  ;;  %v381_v35 = vand.u32 2139095040, %v4488_v29  ;;  %v2045_v37 = vand.u32 2139095040, %v4491_v30  ;;  %v7752_v40 = vand.u32 2147483647, %v4488_v29 }
  0xfa   :  { %v7750_v43 = vand.u32 2147483647, %v4491_v30  ;;  %v693_v44 = vand.u32 2139095040, %v4501_v36  ;;  %v590_v57 = vshrl.u32 %v589_v49, 23  ;;  %v4527_v0 = vshrl.u32 %v2253_v58, 23 }
  0xfb   :  { %v382_v38 = vshrl.u32 %v381_v35, 23  ;;  %v2046_v41 = vshrl.u32 %v2045_v37, 23  ;;  %v385_v52 = vand.u32 8388607, %v7752_v40 }
  0xfc   :  { %v2049_v53 = vand.u32 8388607, %v7750_v43  ;;  %v694_v54 = vshrl.u32 %v693_v44, 23  ;;  %v4525_v63 = vadd.s32 4294967169, %v590_v57 }
  0xfd   :  { %v3871_v42 = vadd.s32 4294967169, %v382_v38  ;;  %v4510_v45 = vpop.f32.mrb[4].mxu0  ;;  %v4512_v46 = vpop.f32.mrb[4].mxu1  ;;  %v3935_v48 = vadd.s32 4294967169, %v2046_v41  ;;  %v386_v59 = vor.u32 8388608, %v385_v52 }
  0xfe   :  { %v4518_v51 = vpop.f32.mrb[5].mxu0  ;;  %v2050_v60 = vor.u32 8388608, %v2049_v53  ;;  %v3883_v61 = vadd.s32 4294967169, %v694_v54 }
  0xff   :  { %v388_v47 = vadd.s32 1, %v3871_v42  ;;  %v2052_v56 = vadd.s32 1, %v3935_v48  ;;  %v4529_v3 = vshll.u32 %v386_v59, 8 }
 0x100   :  { %v4531_v4 = vshll.u32 %v2050_v60, 8  ;;  %v4533_v5 = vadd.s32 1, %v3883_v61  ;;  %v4556_v61 = vpop.f32.mrb[5].mxu1 }
 0x101   :  { %vm389_vm0 = vcmp.gt.s32.totalorder %v388_v47, 0  ;;  %vm2053_vm1 = vcmp.gt.s32.totalorder %v2052_v56, 0 }
 0x102   :  { %v390_v55 = vsel %vm389_vm0, %v388_v47, 0  ;;  %v2054_v11 = vsel %vm2053_vm1, %v2052_v56, 0  ;;  %vm701_vm6 = vcmp.gt.s32.totalorder %v4533_v5, 0 }
 0x103   :  { %v392_v62 = vand.u32 31, %v390_v55  ;;  %v391_v2 = vshrl.u32 %v390_v55, 5  ;;  %v2055_v47 = vshrl.u32 %v2054_v11, 5  ;;  %v2056_v53 = vand.u32 31, %v2054_v11 }
 0x105   :  { %v393_v1 = vsub.s32 32, %v392_v62  ;;  %v395_v7 = vshll.u32 %v7756_v6, %v392_v62  ;;  %v398_v10 = vshll.u32 %v7758_v8, %v392_v62  ;;  %v401_v15 = vshll.u32 %v7768_v13, %v392_v62 }
 0x106   :  { %v404_v19 = vshll.u32 %v7766_v16, %v392_v62  ;;  %v407_v22 = vshll.u32 %v7764_v20, %v392_v62  ;;  %vm410_vm2 = vcmp.lt.s32.totalorder %v391_v2, 1  ;;  %vm411_vm3 = vcmp.lt.s32.totalorder %v391_v2, 2 }
 0x107   :  { %v396_v9 = vshrl.u32 %v7758_v8, %v393_v1  ;;  %v394_v12 = vshrl.u32 %v7756_v6, %v393_v1  ;;  %v399_v14 = vshrl.u32 %v7768_v13, %v393_v1  ;;  %v402_v17 = vshrl.u32 %v7766_v16, %v393_v1 }
 0x108   :  { %v405_v21 = vshrl.u32 %v7764_v20, %v393_v1  ;;  %v408_v27 = vshrl.u32 %v7754_v26, %v393_v1  ;;  %vm412_vm4 = vcmp.lt.s32.totalorder %v391_v2, 3  ;;  %vm413_vm5 = vcmp.lt.s32.totalorder %v391_v2, 4 }
 0x109   :  { %v397_v18 = vor.u32 %v396_v9, %v395_v7  ;;  %v400_v23 = vor.u32 %v399_v14, %v398_v10  ;;  %v403_v25 = vor.u32 %v402_v17, %v401_v15  ;;  %v2057_v60 = vsub.s32 32, %v2056_v53 }
 0x10a   :  { %v406_v28 = vor.u32 %v405_v21, %v404_v19  ;;  %v409_v31 = vor.u32 %v408_v27, %v407_v22  ;;  %v2059_v7 = vshll.u32 %v7756_v6, %v2056_v53  ;;  %vm2074_vm7 = vcmp.lt.s32.totalorder %v2055_v47, 1 }
 0x10b   :  { %v414_v35 = vsel %vm410_vm2, %v394_v12, %v397_v18  ;;  %v415_v37 = vsel %vm413_vm5, %v403_v25, 2102212464  ;;  %v418_v38 = vsel %vm410_vm2, %v397_v18, %v400_v23  ;;  %v422_v44 = vsel %vm410_vm2, %v400_v23, %v403_v25 }
 0x10c   :  { %v416_v41 = vsel %vm412_vm4, %v400_v23, %v415_v37  ;;  %v419_v42 = vsel %vm413_vm5, %v406_v28, 920167782  ;;  %v423_v52 = vsel %vm413_vm5, %v409_v31, 1326507024  ;;  %v2060_v9 = vshrl.u32 %v7758_v8, %v2057_v60 }
 0x10d   :  { %v417_v48 = vsel %vm411_vm3, %v414_v35, %v416_v41  ;;  %v420_v49 = vsel %vm412_vm4, %v403_v25, %v419_v42  ;;  %v424_v55 = vsel %vm412_vm4, %v406_v28, %v423_v52  ;;  %v2062_v2 = vshll.u32 %v7758_v8, %v2056_v53 }
 0x10e   :  { %v421_v54 = vsel %vm411_vm3, %v418_v38, %v420_v49  ;;  %v433_v56 = vmul.u32 %v4529_v3, %v417_v48  ;;  %v425_v57 = vsel %vm411_vm3, %v422_v44, %v424_v55  ;;  %v2063_v10 = vshrl.u32 %v7768_v13, %v2057_v60 }
 0x10f   :  { %v4552_v58 = vmul.u32.u64.low %v4529_v3, %v421_v54  ;;  %v4553_v59 = vmul.u32.u64.high %v4529_v3, %v421_v54, %v4552_v58  ;;  %v4559_v62 = vmul.u32.u64.low %v4529_v3, %v425_v57  ;;  %v4560_v1 = vmul.u32.u64.high %v4529_v3, %v425_v57, %v4559_v62 }
 0x110   :  { %v2065_v11 = vshll.u32 %v7768_v13, %v2056_v53  ;;  %v2066_v12 = vshrl.u32 %v7766_v16, %v2057_v60  ;;  %v2068_v14 = vshll.u32 %v7766_v16, %v2056_v53  ;;  %v2069_v15 = vshrl.u32 %v7764_v20, %v2057_v60 }
 0x111   :  { %v2071_v3 = vshll.u32 %v7764_v20, %v2056_v53  ;;  %v436_v17 = vadd.s32 1, %v4553_v59  ;;  %v2061_v18 = vor.u32 %v2060_v9, %v2059_v7  ;;  %v2064_v19 = vor.u32 %v2063_v10, %v2062_v2 }
 0x112   :  { %v2072_v21 = vshrl.u32 %v7754_v26, %v2057_v60  ;;  %vm435_vm8 = vc.u32 %v4560_v1, %v4552_v58  ;;  %v2058_v22 = vshrl.u32 %v7756_v6, %v2057_v60  ;;  %v2067_v23 = vor.u32 %v2066_v12, %v2065_v11 }
 0x113   :  { %v2070_v25 = vor.u32 %v2069_v15, %v2068_v14  ;;  %v437_v27 = vsel %vm435_vm8, %v436_v17, %v4553_v59  ;;  %vm2075_vm9 = vcmp.lt.s32.totalorder %v2055_v47, 2  ;;  %vm2076_vm10 = vcmp.lt.s32.totalorder %v2055_v47, 3 }
 0x114   :  { %v2073_v28 = vor.u32 %v2072_v21, %v2071_v3  ;;  %v438_v31 = vadd.s32 %v437_v27, %v433_v56  ;;  %vm2077_vm11 = vcmp.lt.s32.totalorder %v2055_v47, 4  ;;  %v2078_v35 = vsel %vm2074_vm7, %v2058_v22, %v2061_v18 }
 0x115   :  { %v2082_v37 = vsel %vm2074_vm7, %v2061_v18, %v2064_v19  ;;  %v2079_v38 = vsel %vm2077_vm11, %v2067_v23, 2102212464  ;;  %v2083_v41 = vsel %vm2077_vm11, %v2070_v25, 920167782  ;;  %v2086_v42 = vsel %vm2074_vm7, %v2064_v19, %v2067_v23 }
 0x116   :  { %v2087_v44 = vsel %vm2077_vm11, %v2073_v28, 1326507024  ;;  %v439_v48 = vadd.s32 536870912, %v438_v31  ;;  %v2080_v49 = vsel %vm2076_vm10, %v2064_v19, %v2079_v38  ;;  %v2084_v52 = vsel %vm2076_vm10, %v2067_v23, %v2083_v41 }
 0x117   :  { %v2088_v53 = vsel %vm2076_vm10, %v2070_v25, %v2087_v44  ;;  %v2085_v54 = vsel %vm2075_vm9, %v2082_v37, %v2084_v52  ;;  %v7753_v56 = vand.u32 2147483647, %v4501_v36  ;;  %v702_v57 = vsel %vm701_vm6, %v4533_v5, 0 }
 0x118   :  { %v2089_v55 = vsel %vm2075_vm9, %v2086_v42, %v2088_v53  ;;  %v4586_v59 = vshrl.u32 %v439_v48, 30  ;;  %v2081_v60 = vsel %vm2075_vm9, %v2078_v35, %v2080_v49  ;;  %v704_v10 = vand.u32 31, %v702_v57 }
 0x119   :  { %v4590_v62 = vmul.u32.u64.low %v4531_v4, %v2089_v55  ;;  %v4591_v7 = vmul.u32.u64.high %v4531_v4, %v2089_v55, %v4590_v62  ;;  %v4594_v9 = vmul.u32.u64.low %v4531_v4, %v2085_v54  ;;  %v4595_v2 = vmul.u32.u64.high %v4531_v4, %v2085_v54, %v4594_v9 }
 0x11a   :  { %7917 = vst [vmem:[#allocation6_spill] sm:$0xff] %v4586_v59  ;;  %v596_v11 = vadd.s32 1, %v4525_v63  ;;  %v3943_v12 = vadd.s32 4294967169, %v4527_v0  ;;  %v4602_v5 = vadd.f32 %v4493_v32, %v4485_v24  ;;  %v2097_v47 = vmul.u32 %v4531_v4, %v2081_v60 }
 0x11b   :  { %v697_v14 = vand.u32 8388607, %v7753_v56  ;;  %v4607_v15 = vshrl.u32 %v702_v57, 5  ;;  %v705_v3 = vsub.s32 32, %v704_v10  ;;  %v441_v17 = vshll.u32 %v4586_v59, 30 }
 0x11c   :  { %7918 = vst [vmem:[#allocation7_spill] sm:$0xff] %v4602_v5  ;;  %vm2099_vm12 = vc.u32 %v4591_v7, %v4594_v9  ;;  %v707_v63 = vshll.u32 %v7756_v6, %v704_v10  ;;  %v710_v0 = vshll.u32 %v7758_v8, %v704_v10  ;;  %v2100_v32 = vadd.s32 1, %v4595_v2 }
 0x11d   :  { %v708_v18 = vshrl.u32 %v7758_v8, %v705_v3  ;;  %v711_v4 = vshrl.u32 %v7768_v13, %v705_v3  ;;  %v713_v19 = vshll.u32 %v7768_v13, %v704_v10  ;;  %v714_v21 = vshrl.u32 %v7766_v16, %v705_v3 }
 0x11e   :  { %v716_v22 = vshll.u32 %v7766_v16, %v704_v10  ;;  %v717_v23 = vshrl.u32 %v7764_v20, %v705_v3  ;;  %v719_v25 = vshll.u32 %v7764_v20, %v704_v10  ;;  %v2101_v27 = vsel %vm2099_vm12, %v2100_v32, %v4595_v2 }
 0x11f   :  { %v709_v28 = vor.u32 %v708_v18, %v707_v63  ;;  %v712_v35 = vor.u32 %v711_v4, %v710_v0  ;;  %v720_v37 = vshrl.u32 %v7754_v26, %v705_v3  ;;  %v2102_v38 = vadd.s32 %v2101_v27, %v2097_v47 }
 0x120   :  { %v698_v41 = vor.u32 8388608, %v697_v14  ;;  %v715_v42 = vor.u32 %v714_v21, %v713_v19  ;;  %v718_v44 = vor.u32 %v717_v23, %v716_v22  ;;  %v4624_v48 = vsub.s32 %v438_v31, %v441_v17  ;;  %v4640_v14 = vpop.f32.mrb[6].mxu0 }
 0x121   :  { %v721_v49 = vor.u32 %v720_v37, %v719_v25  ;;  %v2357_v52 = vand.u32 2139095040, %v4602_v5  ;;  %vm597_vm13 = vcmp.gt.s32.totalorder %v596_v11, 0  ;;  %v2260_v53 = vadd.s32 1, %v3943_v12 }
 0x122   :  { %vm722_vm14 = vcmp.lt.s32.totalorder %v4607_v15, 1  ;;  %vm725_vm15 = vcmp.lt.s32.totalorder %v4607_v15, 4  ;;  %v2103_v54 = vadd.s32 536870912, %v2102_v38  ;;  %vm724_vm0 = vcmp.lt.s32.totalorder %v4607_v15, 3 }
 0x123   :  { %v730_v55 = vsel %vm722_vm14, %v709_v28, %v712_v35  ;;  %v731_v57 = vsel %vm725_vm15, %v718_v44, 920167782  ;;  %vm723_vm1 = vcmp.lt.s32.totalorder %v4607_v15, 2  ;;  %v734_v60 = vsel %vm722_vm14, %v712_v35, %v715_v42 }
 0x124   :  { %v732_v31 = vsel %vm724_vm0, %v715_v42, %v731_v57  ;;  %v738_v62 = vshll.u32 %v698_v41, 8  ;;  %v444_v2 = vsub.s32 0, %v4624_v48  ;;  %v735_v12 = vsel %vm725_vm15, %v721_v49, 1326507024 }
 0x125   :  { %v733_v10 = vsel %vm723_vm1, %v730_v55, %v732_v31  ;;  %v2358_v47 = vshrl.u32 %v2357_v52, 23  ;;  %v727_v17 = vsel %vm725_vm15, %v715_v42, 2102212464  ;;  %v736_v63 = vsel %vm724_vm0, %v718_v44, %v735_v12 }
 0x126   :  { %v4644_v0 = vshrl.u32 %v2103_v54, 30  ;;  %v737_v32 = vsel %vm723_vm1, %v734_v60, %v736_v63  ;;  %v4648_v18 = vmul.u32.u64.low %v738_v62, %v733_v10  ;;  %v4649_v4 = vmul.u32.u64.high %v738_v62, %v733_v10, %v4648_v18 }
 0x127   :  { %v598_v19 = vsel %vm597_vm13, %v596_v11, 0  ;;  %vm2261_vm2 = vcmp.gt.s32.totalorder %v2260_v53, 0  ;;  %v706_v21 = vshrl.u32 %v7756_v6, %v705_v3  ;;  %v3872_v22 = vmin.u32 %v444_v2, %v4624_v48 }
 0x128   :  { %7919 = vst [vmem:[#allocation8_spill] sm:$0xff] %v4644_v0  ;;  %v4655_v23 = vmul.u32.u64.low %v738_v62, %v737_v32  ;;  %v4656_v25 = vmul.u32.u64.high %v738_v62, %v737_v32, %v4655_v23  ;;  %v3947_v27 = vadd.s32 4294967169, %v2358_v47  ;;  %v728_v41 = vsel %vm724_vm0, %v712_v35, %v727_v17 }
 0x129   :  { %v726_v37 = vsel %vm722_vm14, %v706_v21, %v709_v28  ;;  %v2262_v42 = vsel %vm2261_vm2, %v2260_v53, 0  ;;  %v2105_v44 = vshll.u32 %v4644_v0, 30  ;;  %v748_v11 = vadd.s32 1, %v4649_v4 }
 0x12a   :  { %v2364_v49 = vadd.s32 1, %v3947_v27  ;;  %v4664_v52 = vand.u32 31, %v598_v19  ;;  %v446_v3 = vclz %v3872_v22  ;;  %v729_v54 = vsel %vm723_vm1, %v726_v37, %v728_v41 }
 0x12b   :  { %vm747_vm3 = vc.u32 %v4656_v25, %v4648_v18  ;;  %v4670_v28 = vand.u32 31, %v2262_v42  ;;  %v4672_v55 = vsub.s32 %v2102_v38, %v2105_v44  ;;  %v7751_v53 = vand.u32 2147483647, %v4602_v5 }
 0x12c   :  { %7920 = vst [vmem:[#allocation9_spill] sm:$0xff] %v4664_v52  ;;  %vm2365_vm4 = vcmp.gt.s32.totalorder %v2364_v49, 0  ;;  %v749_v35 = vsel %vm747_vm3, %v748_v11, %v4649_v4  ;;  %v4677_v31 = vsub.s32 32, %v4664_v52  ;;  %v745_v60 = vmul.u32 %v738_v62, %v729_v54 }
 0x12d   :  { %7921 = vst [vmem:[#allocation10_spill] sm:$0xff] %v4670_v28  ;;  %v2366_v57 = vsel %vm2365_vm4, %v2364_v49, 0  ;;  %v4679_v15 = vshrl.u32 %v598_v19, 5  ;;  %v3873_v10 = vadd.s32 4294967294, %v446_v3  ;;  %v612_v12 = vshll.u32 %v7766_v16, %v4664_v52  ;;  %v4719_v3 = vpop.f32.mrb[6].mxu1 }
 0x12e   :  { %7922 = vst [vmem:[#allocation11_spill] sm:$0xff] %v4677_v31  ;;  %v2368_v2 = vand.u32 31, %v2366_v57  ;;  %v4683_v47 = vshrl.u32 %v2262_v42, 5  ;;  %v4685_v38 = vadd.s32 %v749_v35, %v745_v60  ;;  %v4689_v63 = vshll.u32 %v7764_v20, %v4664_v52 }
 0x12f   :  { %7923 = vst [vmem:[#allocation12_spill] sm:$0xff] %v4679_v15  ;;  %v4692_v32 = vsub.s32 32, %v4670_v28  ;;  %v2108_v62 = vsub.s32 0, %v4672_v55  ;;  %v2361_v4 = vand.u32 8388607, %v7751_v53  ;;  %v613_v19 = vshrl.u32 %v7764_v20, %v4677_v31 }
 0x130   :  { %7924 = vst [vmem:[#allocation13_spill] sm:$0xff] %v4683_v47  ;;  %v2369_v17 = vsub.s32 32, %v2368_v2  ;;  %v4701_v21 = vshrl.u32 %v7754_v26, %v4677_v31  ;;  %v2276_v22 = vshll.u32 %v7766_v16, %v4670_v28  ;;  %v4707_v23 = vshll.u32 %v7764_v20, %v4670_v28 }
 0x131   :  { %7925 = vst [vmem:[#allocation14_spill] sm:$0xff] %v4692_v32  ;;  %vm3874_vm5 = vcmp.lt.s32.totalorder %v3873_v10, 0  ;;  %v4713_v41 = vadd.f32 %v4485_v24, %v4495_v33  ;;  %v751_v42 = vadd.s32 536870912, %v4685_v38  ;;  %v2371_v44 = vshll.u32 %v7756_v6, %v2368_v2 }
 0x132   :  { %v2372_v27 = vshrl.u32 %v7758_v8, %v2369_v17  ;;  %v2375_v37 = vshrl.u32 %v7768_v13, %v2369_v17  ;;  %v2374_v11 = vshll.u32 %v7758_v8, %v2368_v2  ;;  %v2378_v49 = vshrl.u32 %v7766_v16, %v2369_v17 }
 0x133   :  { %7926 = vst [vmem:[#allocation15_spill] sm:$0xff] %v4713_v41  ;;  %v3936_v54 = vmin.u32 %v2108_v62, %v4672_v55  ;;  %v2362_v35 = vor.u32 8388608, %v2361_v4  ;;  %v2367_v60 = vshrl.u32 %v2366_v57, 5  ;;  %v2377_v43 = vshll.u32 %v7768_v13, %v2368_v2 }
 0x134   :  { %v2373_v53 = vor.u32 %v2372_v27, %v2371_v44  ;;  %v2376_v40 = vor.u32 %v2375_v37, %v2374_v11  ;;  %v2380_v33 = vshll.u32 %v7766_v16, %v2368_v2  ;;  %v2381_v56 = vshrl.u32 %v7764_v20, %v2369_v17 }
 0x135   :  { %v2379_v26 = vor.u32 %v2378_v49, %v2377_v43  ;;  %v2383_v6 = vshll.u32 %v7764_v20, %v2368_v2  ;;  %v7927_v8 = vmov 1326507024   ;;  %v485_v59 = vand.u32 2139095040, %v4713_v41 }
 0x136   :  { %v2384_v0 = vshrl.u32 %v7927_v8, %v2369_v17  ;;  %v2277_v62 = vshrl.u32 %v7764_v20, %v4692_v32  ;;  %v2280_v57 = vshrl.u32 %v7927_v8, %v4692_v32  ;;  %v4732_v4 = vshrl.u32 %v751_v42, 30 }
 0x137   :  { %v2382_v27 = vor.u32 %v2381_v56, %v2380_v33  ;;  %v4734_v37 = vor.u32 %v613_v19, %v612_v12  ;;  %vm621_vm6 = vcmp.lt.s32.totalorder %v4679_v15, 4  ;;  %v2110_v43 = vclz %v3936_v54 }
 0x138   :  { %7928 = vst [vmem:[#allocation16_spill] sm:$0xff] %v4732_v4  ;;  %v2385_v44 = vor.u32 %v2384_v0, %v2383_v6  ;;  %vm2386_vm7 = vcmp.lt.s32.totalorder %v2367_v60, 1  ;;  %v4738_v2 = vsel %vm3874_vm5, 0, %v3873_v10  ;;  %vm2389_vm8 = vcmp.lt.s32.totalorder %v2367_v60, 4 }
 0x139   :  { %7929 = vst [vmem:[#allocation17_spill] sm:$0xff] %v4734_v37  ;;  %v2394_v11 = vsel %vm2386_vm7, %v2373_v53, %v2376_v40  ;;  %v2402_v49 = vshll.u32 %v2362_v35, 8  ;;  %vm2388_vm9 = vcmp.lt.s32.totalorder %v2367_v60, 3  ;;  %v2395_v20 = vsel %vm2389_vm8, %v2382_v27, 920167782 }
 0x13a   :  { %v2398_v42 = vsel %vm2386_vm7, %v2376_v40, %v2379_v26  ;;  %v486_v16 = vshrl.u32 %v485_v59, 23  ;;  %v753_v56 = vshll.u32 %v4732_v4, 30  ;;  %vm2387_vm10 = vcmp.lt.s32.totalorder %v2367_v60, 2 }
 0x13b   :  { %v2396_v12 = vsel %vm2388_vm9, %v2379_v26, %v2395_v20  ;;  %v2399_v19 = vsel %vm2389_vm8, %v2385_v44, 1326507024  ;;  %v3937_v6 = vadd.s32 4294967294, %v2110_v43  ;;  %v7778_v54 = vand.u32 2147483647, %v4713_v41 }
 0x13c   :  { %v2397_v0 = vsel %vm2387_vm10, %v2394_v11, %v2396_v12  ;;  %v2400_v10 = vsel %vm2388_vm9, %v2382_v27, %v2399_v19  ;;  %v2391_v33 = vsel %vm2389_vm8, %v2379_v26, 2102212464  ;;  %v7930_v59 = vmov 683565275  }
 0x13d   :  { %v2401_v35 = vsel %vm2387_vm10, %v2398_v42, %v2400_v10  ;;  %v4748_v13 = vmul.u32.u64.low %v2402_v49, %v2397_v0  ;;  %v4749_v52 = vmul.u32.u64.high %v2402_v49, %v2397_v0, %v4748_v13  ;;  %v2370_v4 = vshrl.u32 %v7930_v59, %v2369_v17 }
 0x13e   :  { %v4753_v31 = vmul.u32.u64.low %v2402_v49, %v2401_v35  ;;  %v4754_v39 = vmul.u32.u64.high %v2402_v49, %v2401_v35, %v4753_v31  ;;  %v3875_v20 = vadd.s32 4294967169, %v486_v16  ;;  %v617_v43 = vor.u32 %v4701_v21, %v4689_v63 }
 0x13f   :  { %vm2285_vm11 = vcmp.lt.s32.totalorder %v4683_v47, 4  ;;  %v4760_v27 = vsub.s32 %v4685_v38, %v753_v56  ;;  %v4764_v26 = vadd.f32 %v4485_v24, %v4497_v34  ;;  %v4766_v44 = vor.u32 %v2277_v62, %v2276_v22 }
 0x140   :  { %v2390_v17 = vsel %vm2386_vm7, %v2370_v4, %v2373_v53  ;;  %v2392_v11 = vsel %vm2388_vm9, %v2376_v40, %v2391_v33  ;;  %v492_v31 = vadd.s32 1, %v3875_v20  ;;  %v4773_v16 = vsel %vm621_vm6, %v4734_v37, 920167782  ;;  %v4807_v20 = vpop.f32.mrb[7].mxu0 }
 0x141   :  { %7931 = vst [vmem:[#allocation18_spill] sm:$0xff] %v4764_v26  ;;  %7932 = vst [vmem:[#allocation19_spill] sm:$0xff] %v4766_v44  ;;  %v2281_v63 = vor.u32 %v2280_v57, %v4707_v23  ;;  %v450_v38 = vsub.s32 32, %v4738_v2  ;;  %v2412_v21 = vadd.s32 1, %v4749_v52  ;;  %v454_v34 = vsub.s32 4294967266, %v4738_v2  ;;  %v4947_v50 = vpop.f32.mrb[8].mxu0 }
 0x142   :  { %7933 = vst [vmem:[#allocation20_spill] sm:$0xff] %v4773_v16  ;;  %vm3938_vm12 = vcmp.lt.s32.totalorder %v3937_v6, 0  ;;  %vm2411_vm13 = vc.u32 %v4754_v39, %v4748_v13  ;;  %v489_v40 = vand.u32 8388607, %v7778_v54  ;;  %v756_v53 = vsub.s32 0, %v4760_v27 }
 0x143   :  { %v2393_v22 = vsel %vm2387_vm10, %v2390_v17, %v2392_v11  ;;  %vm493_vm14 = vcmp.gt.s32.totalorder %v492_v31, 0  ;;  %v2149_v23 = vand.u32 2139095040, %v4764_v26  ;;  %v4788_v62 = vsel %vm621_vm6, %v617_v43, 1326507024 }
 0x144   :  { %7934 = vst [vmem:[#allocation21_spill] sm:$0xff] %v4788_v62  ;;  %v4793_v57 = vsel %vm2285_vm11, %v4766_v44, 920167782  ;;  %v434_v4 = vadd.s32 %v4552_v58, %v4560_v1  ;;  %v494_v42 = vsel %vm493_vm14, %v492_v31, 0  ;;  %v4799_v60 = vsel %vm2285_vm11, %v2281_v63, 1326507024 }
 0x145   :  { %7935 = vst [vmem:[#allocation22_spill] sm:$0xff] %v4793_v57  ;;  %7936 = vst [vmem:[#allocation23_spill] sm:$0xff] %v4799_v60  ;;  %v451_v56 = vshll.u32 %v4624_v48, %v4738_v2  ;;  %v2413_v12 = vsel %vm2411_vm13, %v2412_v21, %v4749_v52  ;;  %v496_v19 = vand.u32 31, %v494_v42  ;;  %v455_v10 = vadd.s32 127, %v454_v34 }
 0x146   :  { %v452_v0 = vshrl.u32 %v434_v4, %v450_v38  ;;  %v4805_v33 = vsel %vm3938_vm12, 0, %v3937_v6  ;;  %v2409_v35 = vmul.u32 %v2402_v49, %v2393_v22  ;;  %v3884_v58 = vmin.u32 %v756_v53, %v4760_v27 }
 0x147   :  { %v490_v1 = vor.u32 8388608, %v489_v40  ;;  %v497_v43 = vsub.s32 32, %v496_v19  ;;  %v2150_v17 = vshrl.u32 %v2149_v23, 23  ;;  %v495_v31 = vshrl.u32 %v494_v42, 5 }
 0x148   :  { %v4810_v11 = vadd.s32 %v2413_v12, %v2409_v35  ;;  %v499_v48 = vshll.u32 %v7930_v59, %v496_v19  ;;  %v7937_v52 = vmov 2475754826   ;;  %v7938_v38 = vmov 2131351028  }
 0x149   :  { %v502_v2 = vshll.u32 %v7937_v52, %v496_v19  ;;  %v500_v63 = vshrl.u32 %v7937_v52, %v497_v43  ;;  %v503_v6 = vshrl.u32 %v7938_v38, %v497_v43  ;;  %v505_v49 = vshll.u32 %v7938_v38, %v496_v19 }
 0x14a   :  { %v7939_v21 = vmov 2102212464   ;;  %v7940_v40 = vmov 920167782   ;;  %v512_v4 = vshrl.u32 %v7927_v8, %v497_v43  ;;  %v4822_v42 = vor.u32 %v452_v0, %v451_v56 }
 0x14b   :  { %v506_v34 = vshrl.u32 %v7939_v21, %v497_v43  ;;  %v508_v53 = vshll.u32 %v7939_v21, %v496_v19  ;;  %v509_v22 = vshrl.u32 %v7940_v40, %v497_v43  ;;  %v511_v23 = vshll.u32 %v7940_v40, %v496_v19 }
 0x14c   :  { %v501_v12 = vor.u32 %v500_v63, %v499_v48  ;;  %v504_v35 = vor.u32 %v503_v6, %v502_v2  ;;  %v456_v16 = vshll.u32 %v455_v10, 23  ;;  %v2118_v37 = vsub.s32 4294967266, %v4805_v33 }
 0x14d   :  { %v507_v54 = vor.u32 %v506_v34, %v505_v49  ;;  %v510_v62 = vor.u32 %v509_v22, %v508_v53  ;;  %v513_v15 = vor.u32 %v512_v4, %v511_v23  ;;  %v758_v57 = vclz %v3884_v58 }
 0x14e   :  { %v2415_v44 = vadd.s32 536870912, %v4810_v11  ;;  %vm514_vm15 = vcmp.lt.s32.totalorder %v495_v31, 1  ;;  %v3939_v60 = vadd.s32 4294967169, %v2150_v17  ;;  %vm516_vm0 = vcmp.lt.s32.totalorder %v495_v31, 3 }
 0x14f   :  { %vm517_vm1 = vcmp.lt.s32.totalorder %v495_v31, 4  ;;  %v522_v19 = vsel %vm514_vm15, %v501_v12, %v504_v35  ;;  %v530_v47 = vshll.u32 %v490_v1, 8  ;;  %v526_v48 = vsel %vm514_vm15, %v504_v35, %v507_v54 }
 0x150   :  { %v519_v56 = vsel %vm517_vm1, %v507_v54, 2102212464  ;;  %v523_v0 = vsel %vm517_vm1, %v510_v62, 920167782  ;;  %v527_v2 = vsel %vm517_vm1, %v513_v15, 1326507024  ;;  %v498_v10 = vshrl.u32 %v7930_v59, %v497_v43 }
 0x151   :  { %vm515_vm2 = vcmp.lt.s32.totalorder %v495_v31, 2  ;;  %v524_v63 = vsel %vm516_vm0, %v507_v54, %v523_v0  ;;  %v528_v58 = vsel %vm516_vm0, %v510_v62, %v527_v2  ;;  %v4831_v6 = vshrl.u32 %v2415_v44, 30 }
 0x152   :  { %v525_v17 = vsel %vm515_vm2, %v522_v19, %v524_v63  ;;  %v529_v49 = vsel %vm515_vm2, %v526_v48, %v528_v58  ;;  %v2156_v34 = vadd.s32 1, %v3939_v60  ;;  %v518_v1 = vsel %vm514_vm15, %v498_v10, %v501_v12 }
 0x153   :  { %7941 = vst [vmem:[#allocation24_spill] sm:$0xff] %v4831_v6  ;;  %v520_v53 = vsel %vm516_vm0, %v504_v35, %v519_v56  ;;  %v4837_v22 = vmul.u32.u64.low %v530_v47, %v529_v49  ;;  %v4838_v15 = vmul.u32.u64.high %v530_v47, %v529_v49, %v4837_v22  ;;  %v4840_v43 = vor.u32 4788187, %v456_v16 }
 0x154   :  { %v4842_v23 = vmul.u32.u64.low %v530_v47, %v525_v17  ;;  %v4843_v54 = vmul.u32.u64.high %v530_v47, %v525_v17, %v4842_v23  ;;  %vm2157_vm3 = vcmp.gt.s32.totalorder %v2156_v34, 0  ;;  %v2114_v44 = vsub.s32 32, %v4805_v33 }
 0x155   :  { %v2119_v62 = vadd.s32 127, %v2118_v37  ;;  %v3885_v4 = vadd.s32 4294967294, %v758_v57  ;;  %v2158_v19 = vsel %vm2157_vm3, %v2156_v34, 0  ;;  %v2098_v60 = vadd.s32 %v4594_v9, %v4591_v7 }
 0x156   :  { %v521_v12 = vsel %vm515_vm2, %v518_v1, %v520_v53  ;;  %v7785_v35 = vand.u32 2147483647, %v4764_v26  ;;  %v2160_v56 = vand.u32 31, %v2158_v19  ;;  %v2417_v0 = vshll.u32 %v4831_v6, 30 }
 0x157   :  { %vm539_vm4 = vc.u32 %v4838_v15, %v4842_v23  ;;  %v4857_v37 = vadd.f32 %v4510_v45, %v4485_v24  ;;  %v2115_v7 = vshll.u32 %v4672_v55, %v4805_v33  ;;  %v540_v9 = vadd.s32 1, %v4843_v54 }
 0x158   :  { %v2161_v31 = vsub.s32 32, %v2160_v56  ;;  %v2116_v48 = vshrl.u32 %v2098_v60, %v2114_v44  ;;  %v2120_v2 = vshll.u32 %v2119_v62, 23  ;;  %vm3886_vm5 = vcmp.lt.s32.totalorder %v3885_v4, 0 }
 0x159   :  { %7942 = vst [vmem:[#allocation25_spill] sm:$0xff] %v4857_v37  ;;  %v537_v10 = vmul.u32 %v530_v47, %v521_v12  ;;  %v541_v63 = vsel %vm539_vm4, %v540_v9, %v4843_v54  ;;  %v2153_v58 = vand.u32 8388607, %v7785_v35  ;;  %v4869_v49 = vsub.s32 %v4810_v11, %v2417_v0  ;;  %v4878_v11 = vpop.f32.mrb[7].mxu1 }
 0x15a   :  { %v2164_v45 = vshrl.u32 %v7937_v52, %v2161_v31  ;;  %v2167_v17 = vshrl.u32 %v7938_v38, %v2161_v31  ;;  %v2163_v33 = vshll.u32 %v7930_v59, %v2160_v56  ;;  %v1005_v34 = vand.u32 2139095040, %v4857_v37 }
 0x15b   :  { %v542_v55 = vadd.s32 %v541_v63, %v537_v10  ;;  %v2159_v1 = vshrl.u32 %v2158_v19, 5  ;;  %v2166_v47 = vshll.u32 %v7937_v52, %v2160_v56  ;;  %v2169_v53 = vshll.u32 %v7938_v38, %v2160_v56 }
 0x15c   :  { %v2170_v22 = vshrl.u32 %v7939_v21, %v2161_v31  ;;  %v2165_v44 = vor.u32 %v2164_v45, %v2163_v33  ;;  %v2172_v62 = vshll.u32 %v7939_v21, %v2160_v56  ;;  %v2173_v60 = vshrl.u32 %v7940_v40, %v2161_v31 }
 0x15d   :  { %v543_v54 = vadd.s32 536870912, %v542_v55  ;;  %v2168_v12 = vor.u32 %v2167_v17, %v2166_v47  ;;  %v2175_v9 = vshll.u32 %v7940_v40, %v2160_v56  ;;  %v2176_v19 = vshrl.u32 %v7927_v8, %v2161_v31 }
 0x15e   :  { %v2171_v0 = vor.u32 %v2170_v22, %v2169_v53  ;;  %v4882_v10 = vor.u32 %v2116_v48, %v2115_v7  ;;  %v4884_v63 = vor.u32 4788187, %v2120_v2  ;;  %v2174_v16 = vor.u32 %v2173_v60, %v2172_v62 }
 0x15f   :  { %v4886_v35 = vshrl.u32 %v543_v54, 30  ;;  %v4889_v45 = vsel %vm3886_vm5, 0, %v3885_v4  ;;  %v2154_v33 = vor.u32 8388608, %v2153_v58  ;;  %v2177_v57 = vor.u32 %v2176_v19, %v2175_v9 }
 0x160   :  { %v1006_v6 = vshrl.u32 %v1005_v34, 23  ;;  %v2420_v17 = vsub.s32 0, %v4869_v49  ;;  %v2162_v47 = vshrl.u32 %v7930_v59, %v2161_v31  ;;  %vm2178_vm7 = vcmp.lt.s32.totalorder %v2159_v1, 1 }
 0x161   :  { %7943 = vst [vmem:[#allocation26_spill] sm:$0xff] %v4886_v35  ;;  %vm2181_vm8 = vcmp.lt.s32.totalorder %v2159_v1, 4  ;;  %vm2180_vm9 = vcmp.lt.s32.totalorder %v2159_v1, 3  ;;  %v2186_v7 = vsel %vm2178_vm7, %v2165_v44, %v2168_v12  ;;  %v545_v2 = vshll.u32 %v4886_v35, 30 }
 0x162   :  { %v2183_v56 = vsel %vm2181_vm8, %v2171_v0, 2102212464  ;;  %v2187_v48 = vsel %vm2181_vm8, %v2174_v16, 920167782  ;;  %vm2179_vm10 = vcmp.lt.s32.totalorder %v2159_v1, 2  ;;  %v2190_v22 = vsel %vm2178_vm7, %v2168_v12, %v2171_v0 }
 0x163   :  { %v2188_v53 = vsel %vm2180_vm9, %v2171_v0, %v2187_v48  ;;  %v2191_v58 = vsel %vm2181_vm8, %v2177_v57, 1326507024  ;;  %v2194_v54 = vshll.u32 %v2154_v33, 8  ;;  %v3895_v34 = vadd.s32 4294967169, %v1006_v6 }
 0x164   :  { %v2189_v4 = vsel %vm2179_vm10, %v2186_v7, %v2188_v53  ;;  %v3948_v62 = vmin.u32 %v2420_v17, %v4869_v49  ;;  %v2182_v60 = vsel %vm2178_vm7, %v2162_v47, %v2165_v44  ;;  %v2184_v31 = vsel %vm2180_vm9, %v2168_v12, %v2183_v56 }
 0x165   :  { %v2192_v9 = vsel %vm2180_vm9, %v2174_v16, %v2191_v58  ;;  %v4897_v32 = vmul.u32.u64.low %v2194_v54, %v2189_v4  ;;  %v4898_v28 = vmul.u32.u64.high %v2194_v54, %v2189_v4, %v4897_v32  ;;  %v1012_v35 = vadd.s32 1, %v3895_v34 }
 0x166   :  { %v2193_v19 = vsel %vm2179_vm10, %v2190_v22, %v2192_v9  ;;  %v746_v0 = vadd.s32 %v4648_v18, %v4656_v25  ;;  %v4903_v48 = vsub.s32 %v542_v55, %v545_v2  ;;  %v7944_v6 = vand.u32 2147483647, %v4840_v43 }
 0x167   :  { %v4905_v57 = vmul.u32.u64.low %v2194_v54, %v2193_v19  ;;  %v4906_v33 = vmul.u32.u64.high %v2194_v54, %v2193_v19, %v4905_v57  ;;  %v7945_v44 = vcvt.s32.f32 %v4822_v42  ;;  %v766_v12 = vsub.s32 4294967266, %v4889_v45 }
 0x168   :  { %v2185_v17 = vsel %vm2179_vm10, %v2182_v60, %v2184_v31  ;;  %vm1013_vm12 = vcmp.gt.s32.totalorder %v1012_v35, 0  ;;  %v2422_v25 = vclz %v3948_v62  ;;  %v762_v56 = vsub.s32 32, %v4889_v45 }
 0x169   :  { %v4912_v16 = vmul.f32 %v7945_v44, %v7944_v6  ;;  %v1014_v55 = vsel %vm1013_vm12, %v1012_v35, 0  ;;  %v763_v43 = vshll.u32 %v4760_v27, %v4889_v45  ;;  %v2204_v42 = vadd.s32 1, %v4898_v28 }
 0x16a   :  { %v1016_v7 = vand.u32 31, %v1014_v55  ;;  %v548_v2 = vsub.s32 0, %v4903_v48  ;;  %v2201_v53 = vmul.u32 %v2194_v54, %v2185_v17  ;;  %vm2203_vm13 = vc.u32 %v4906_v33, %v4897_v32 }
 0x16b   :  { %v7794_v1 = vand.u32 2147483647, %v4857_v37  ;;  %v767_v22 = vadd.s32 127, %v766_v12  ;;  %v2205_v4 = vsel %vm2203_vm13, %v2204_v42, %v4898_v28  ;;  %v4929_v58 = vadd.f32 %v4512_v46, %v4485_v24 }
 0x16c   :  { %v1017_v35 = vsub.s32 32, %v1016_v7  ;;  %v3949_v27 = vadd.s32 4294967294, %v2422_v25  ;;  %v2206_v45 = vadd.s32 %v2205_v4, %v2201_v53  ;;  %v1019_v34 = vshll.u32 %v7930_v59, %v1016_v7 }
 0x16d   :  { %7946 = vst [vmem:[#allocation27_spill] sm:$0xff] %v4929_v58  ;;  %v1022_v62 = vshll.u32 %v7937_v52, %v1016_v7  ;;  %v1025_v31 = vshll.u32 %v7938_v38, %v1016_v7  ;;  %v1028_v9 = vshll.u32 %v7939_v21, %v1016_v7  ;;  %v3876_v28 = vmin.u32 %v548_v2, %v4903_v48 }
 0x16e   :  { %v1020_v54 = vshrl.u32 %v7937_v52, %v1017_v35  ;;  %v1023_v60 = vshrl.u32 %v7938_v38, %v1017_v35  ;;  %v2207_v19 = vadd.s32 536870912, %v2206_v45  ;;  %v1009_v24 = vand.u32 8388607, %v7794_v1 }
 0x16f   :  { %v1015_v46 = vshrl.u32 %v1014_v55, 5  ;;  %v764_v57 = vshrl.u32 %v746_v0, %v762_v56  ;;  %v1026_v6 = vshrl.u32 %v7939_v21, %v1017_v35  ;;  %v1029_v44 = vshrl.u32 %v7940_v40, %v1017_v35 }
 0x170   :  { %v2669_v12 = vand.u32 2139095040, %v4929_v58  ;;  %v768_v17 = vshll.u32 %v767_v22, 23  ;;  %v4943_v25 = vshrl.u32 %v2207_v19, 30  ;;  %v1021_v42 = vor.u32 %v1020_v54, %v1019_v34 }
 0x171   :  { %v1031_v53 = vshll.u32 %v7940_v40, %v1016_v7  ;;  %v1024_v4 = vor.u32 %v1023_v60, %v1022_v62  ;;  %v1027_v2 = vor.u32 %v1026_v6, %v1025_v31  ;;  %v1030_v18 = vor.u32 %v1029_v44, %v1028_v9 }
 0x172   :  { %7947 = vst [vmem:[#allocation28_spill] sm:$0xff] %v4943_v25  ;;  %v1032_v47 = vshrl.u32 %v7927_v8, %v1017_v35  ;;  %vm3950_vm14 = vcmp.lt.s32.totalorder %v3949_v27, 0  ;;  %v550_v55 = vclz %v3876_v28  ;;  %v1010_v0 = vor.u32 8388608, %v1009_v24 }
 0x173   :  { %vm1034_vm15 = vcmp.lt.s32.totalorder %v1015_v46, 1  ;;  %vm1036_vm0 = vcmp.lt.s32.totalorder %v1015_v46, 3  ;;  %vm1037_vm1 = vcmp.lt.s32.totalorder %v1015_v46, 4  ;;  %v2670_v1 = vshrl.u32 %v2669_v12, 23 }
 0x174   :  { %v1033_v56 = vor.u32 %v1032_v47, %v1031_v53  ;;  %v4949_v22 = vor.u32 %v764_v57, %v763_v43  ;;  %v4951_v34 = vor.u32 4788187, %v768_v17  ;;  %v2209_v7 = vshll.u32 %v4943_v25, 30 }
 0x175   :  { %v1018_v62 = vshrl.u32 %v7930_v59, %v1017_v35  ;;  %v2425_v54 = vsel %vm3950_vm14, 0, %v3949_v27  ;;  %v1039_v60 = vsel %vm1037_vm1, %v1027_v2, 2102212464  ;;  %v1042_v31 = vsel %vm1034_vm15, %v1021_v42, %v1024_v4 }
 0x176   :  { %v1043_v47 = vsel %vm1037_vm1, %v1030_v18, 920167782  ;;  %vm1035_vm2 = vcmp.lt.s32.totalorder %v1015_v46, 2  ;;  %v1046_v28 = vsel %vm1034_vm15, %v1024_v4, %v1027_v2  ;;  %v1050_v43 = vshll.u32 %v1010_v0, 8 }
 0x177   :  { %v1044_v9 = vsel %vm1036_vm0, %v1027_v2, %v1043_v47  ;;  %v3877_v19 = vadd.s32 4294967294, %v550_v55  ;;  %v1047_v57 = vsel %vm1037_vm1, %v1033_v56, 1326507024  ;;  %v3959_v6 = vadd.s32 4294967169, %v2670_v1 }
 0x178   :  { %v1045_v24 = vsel %vm1035_vm2, %v1042_v31, %v1044_v9  ;;  %v4962_v35 = vsub.s32 %v2206_v45, %v2209_v7  ;;  %v1038_v27 = vsel %vm1034_vm15, %v1018_v62, %v1021_v42  ;;  %v1040_v44 = vsel %vm1036_vm0, %v1024_v4, %v1039_v60 }
 0x179   :  { %v1048_v12 = vsel %vm1036_vm0, %v1030_v18, %v1047_v57  ;;  %v4968_v53 = vmul.u32.u64.low %v1050_v43, %v1045_v24  ;;  %v4969_v47 = vmul.u32.u64.high %v1050_v43, %v1045_v24, %v4968_v53  ;;  %v2676_v2 = vadd.s32 1, %v3959_v6 }
 0x17a   :  { %v1049_v17 = vsel %vm1035_vm2, %v1046_v28, %v1048_v12  ;;  %v7948_v55 = vand.u32 2147483647, %v4884_v63  ;;  %v7949_v0 = vcvt.s32.f32 %v4882_v10  ;;  %v2426_v45 = vsub.s32 32, %v2425_v54  ;;  %v4991_v28 = vld [vmem:[%s7747_s2] ss:$0 sm:$0xff] }
 0x17b   :  { %v4978_v56 = vmul.u32.u64.low %v1050_v43, %v1049_v17  ;;  %v4979_v42 = vmul.u32.u64.high %v1050_v43, %v1049_v17, %v4978_v56  ;;  %v2410_v18 = vadd.s32 %v4748_v13, %v4754_v39  ;;  %v2430_v4 = vsub.s32 4294967266, %v2425_v54 }
 0x17c   :  { %v4976_v1 = vmul.f32 %v7949_v0, %v7948_v55  ;;  %v1041_v7 = vsel %vm1035_vm2, %v1038_v27, %v1040_v44  ;;  %vm2677_vm3 = vcmp.gt.s32.totalorder %v2676_v2, 0  ;;  %v2212_v63 = vsub.s32 0, %v4962_v35 }
 0x17d   :  { %v2678_v10 = vsel %vm2677_vm3, %v2676_v2, 0  ;;  %vm3878_vm4 = vcmp.lt.s32.totalorder %v3877_v19, 0  ;;  %v1060_v31 = vadd.s32 1, %v4969_v47  ;;  %v4995_v39 = vadd.f32 %v4991_v28, %v4518_v51 }
 0x17e   :  { %v2680_v9 = vand.u32 31, %v2678_v10  ;;  %v2428_v13 = vshrl.u32 %v2410_v18, %v2426_v45  ;;  %v1057_v46 = vmul.u32 %v1050_v43, %v1041_v7  ;;  %vm1059_vm5 = vc.u32 %v4979_v42, %v4968_v53 }
 0x17f   :  { %7950 = vst [vmem:[#allocation29_spill] sm:$0xff] %v4995_v39  ;;  %v7797_v24 = vand.u32 2147483647, %v4929_v58  ;;  %v2431_v57 = vadd.s32 127, %v2430_v4  ;;  %v538_v6 = vadd.s32 %v4842_v23, %v4838_v15  ;;  %v1061_v27 = vsel %vm1059_vm5, %v1060_v31, %v4969_v47  ;;  %v5021_v4 = vpop.f32.mrb[8].mxu1 }
 0x180   :  { %v2681_v44 = vsub.s32 32, %v2680_v9  ;;  %v2427_v12 = vshll.u32 %v4869_v49, %v2425_v54  ;;  %v5004_v17 = vsel %vm3878_vm4, 0, %v3877_v19  ;;  %v3940_v51 = vmin.u32 %v2212_v63, %v4962_v35  ;;  %7951 = vst [vmem:[#allocation30_spill] sm:$0xff] %v5021_v4 }
 0x181   :  { %v5007_v2 = vadd.s32 %v1061_v27, %v1057_v46  ;;  %v2683_v43 = vshll.u32 %v7930_v59, %v2680_v9  ;;  %v2686_v0 = vshll.u32 %v7937_v52, %v2680_v9  ;;  %v2673_v23 = vand.u32 8388607, %v7797_v24 }
 0x182   :  { %v2684_v55 = vshrl.u32 %v7937_v52, %v2681_v44  ;;  %v2687_v45 = vshrl.u32 %v7938_v38, %v2681_v44  ;;  %v5013_v15 = vor.u32 %v2428_v13, %v2427_v12  ;;  %v2679_v49 = vshrl.u32 %v2678_v10, 5 }
 0x183   :  { %v2689_v54 = vshll.u32 %v7938_v38, %v2680_v9  ;;  %v2432_v19 = vshll.u32 %v2431_v57, 23  ;;  %v2690_v47 = vshrl.u32 %v7939_v21, %v2681_v44  ;;  %v2692_v56 = vshll.u32 %v7939_v21, %v2680_v9 }
 0x184   :  { %v797_v18 = vand.u32 2139095040, %v4995_v39  ;;  %v558_v7 = vsub.s32 4294967266, %v5004_v17  ;;  %v2214_v63 = vclz %v3940_v51  ;;  %v1063_v31 = vadd.s32 536870912, %v5007_v2 }
 0x185   :  { %v2693_v13 = vshrl.u32 %v7940_v40, %v2681_v44  ;;  %v2685_v46 = vor.u32 %v2684_v55, %v2683_v43  ;;  %v2688_v10 = vor.u32 %v2687_v45, %v2686_v0  ;;  %v2695_v27 = vshll.u32 %v7940_v40, %v2680_v9 }
 0x186   :  { %v2696_v57 = vshrl.u32 %v7927_v8, %v2681_v44  ;;  %v2674_v12 = vor.u32 8388608, %v2673_v23  ;;  %v2691_v24 = vor.u32 %v2690_v47, %v2689_v54  ;;  %vm2698_vm7 = vcmp.lt.s32.totalorder %v2679_v49, 1 }
 0x187   :  { %v2694_v60 = vor.u32 %v2693_v13, %v2692_v56  ;;  %vm2700_vm8 = vcmp.lt.s32.totalorder %v2679_v49, 3  ;;  %vm2701_vm9 = vcmp.lt.s32.totalorder %v2679_v49, 4  ;;  %v798_v25 = vshrl.u32 %v797_v18, 23 }
 0x188   :  { %v2697_v62 = vor.u32 %v2696_v57, %v2695_v27  ;;  %v554_v51 = vsub.s32 32, %v5004_v17  ;;  %v3941_v4 = vadd.s32 4294967294, %v2214_v63  ;;  %v5029_v58 = vshrl.u32 %v1063_v31, 30 }
 0x189   :  { %vm2699_vm10 = vcmp.lt.s32.totalorder %v2679_v49, 2  ;;  %v5031_v43 = vor.u32 4788187, %v2432_v19  ;;  %v559_v55 = vadd.s32 127, %v558_v7  ;;  %v2706_v9 = vsel %vm2698_vm7, %v2685_v46, %v2688_v10 }
 0x18a   :  { %7952 = vst [vmem:[#allocation31_spill] sm:$0xff] %v5029_v58  ;;  %v2707_v0 = vsel %vm2701_vm9, %v2694_v60, 920167782  ;;  %v2682_v45 = vshrl.u32 %v7930_v59, %v2681_v44  ;;  %v2710_v54 = vsel %vm2698_vm7, %v2688_v10, %v2691_v24  ;;  %v2714_v47 = vshll.u32 %v2674_v12, 8 }
 0x18b   :  { %v2708_v23 = vsel %vm2700_vm8, %v2691_v24, %v2707_v0  ;;  %v2703_v56 = vsel %vm2701_vm9, %v2691_v24, 2102212464  ;;  %v2711_v63 = vsel %vm2701_vm9, %v2697_v62, 1326507024  ;;  %v3887_v19 = vadd.s32 4294967169, %v798_v25 }
 0x18c   :  { %v2709_v18 = vsel %vm2699_vm10, %v2706_v9, %v2708_v23  ;;  %v556_v31 = vshrl.u32 %v538_v6, %v554_v51  ;;  %vm3942_vm12 = vcmp.lt.s32.totalorder %v3941_v4, 0  ;;  %v1065_v7 = vshll.u32 %v5029_v58, 30 }
 0x18d   :  { %v2712_v13 = vsel %vm2700_vm8, %v2694_v60, %v2711_v63  ;;  %v5044_v27 = vmul.u32.u64.low %v2714_v47, %v2709_v18  ;;  %v5045_v57 = vmul.u32.u64.high %v2714_v47, %v2709_v18, %v5044_v27  ;;  %v804_v12 = vadd.s32 1, %v3887_v19 }
 0x18e   :  { %v2713_v44 = vsel %vm2699_vm10, %v2710_v54, %v2712_v13  ;;  %v2702_v24 = vsel %vm2698_vm7, %v2682_v45, %v2685_v46  ;;  %v2704_v9 = vsel %vm2700_vm8, %v2688_v10, %v2703_v56  ;;  %v560_v51 = vshll.u32 %v559_v55, 23 }
 0x18f   :  { %v5050_v0 = vmul.u32.u64.low %v2714_v47, %v2713_v44  ;;  %v5051_v62 = vmul.u32.u64.high %v2714_v47, %v2713_v44, %v5050_v0  ;;  %vm805_vm13 = vcmp.gt.s32.totalorder %v804_v12, 0  ;;  %v7953_v60 = vand.u32 2147483647, %v4951_v34 }
 0x190   :  { %v7954_v23 = vcvt.s32.f32 %v4949_v22  ;;  %v555_v46 = vshll.u32 %v4903_v48, %v5004_v17  ;;  %v5064_v10 = vsub.s32 %v5007_v2, %v1065_v7  ;;  %v806_v45 = vsel %vm805_vm13, %v804_v12, 0 }
 0x191   :  { %v5067_v56 = vsel %vm3942_vm12, 0, %v3941_v4  ;;  %v2705_v18 = vsel %vm2699_vm10, %v2702_v24, %v2704_v9  ;;  %v2724_v55 = vadd.s32 1, %v5045_v57  ;;  %v808_v63 = vand.u32 31, %v806_v45 }
 0x192   :  { %v5059_v54 = vmul.f32 %v7954_v23, %v7953_v60  ;;  %v2434_v34 = vand.u32 2147483647, %v5031_v43  ;;  %v2436_v22 = vcvt.s32.f32 %v5013_v15  ;;  %v557_v19 = vor.u32 %v556_v31, %v555_v46 }
 0x193   :  { %vm2723_vm14 = vc.u32 %v5051_v62, %v5044_v27  ;;  %v561_v48 = vor.u32 4788187, %v560_v51  ;;  %v7802_v2 = vand.u32 2147483647, %v4995_v39  ;;  %v809_v4 = vsub.s32 32, %v808_v63 }
 0x194   :  { %v2725_v17 = vsel %vm2723_vm14, %v2724_v55, %v5045_v57  ;;  %v2202_v49 = vadd.s32 %v4897_v32, %v4906_v33  ;;  %v2222_v7 = vsub.s32 4294967266, %v5067_v56  ;;  %v1068_v13 = vsub.s32 0, %v5064_v10  ;;  %v5090_v33 = vpop.f32.mrb[9].mxu0 }
 0x195   :  { %v2721_v43 = vmul.u32 %v2714_v47, %v2705_v18  ;;  %v811_v15 = vshll.u32 %v7930_v59, %v808_v63  ;;  %v812_v31 = vshrl.u32 %v7937_v52, %v809_v4  ;;  %v814_v44 = vshll.u32 %v7937_v52, %v808_v63 }
 0x196   :  { %v815_v12 = vshrl.u32 %v7938_v38, %v809_v4  ;;  %v564_v57 = vcvt.s32.f32 %v557_v19  ;;  %v5087_v9 = vshrl.u32 %v806_v45, 5  ;;  %v817_v32 = vshll.u32 %v7938_v38, %v808_v63 }
 0x197   :  { %v5085_v24 = vadd.s32 %v2725_v17, %v2721_v43  ;;  %v562_v0 = vand.u32 2147483647, %v561_v48  ;;  %v801_v47 = vand.u32 8388607, %v7802_v2  ;;  %v818_v51 = vshrl.u32 %v7939_v21, %v809_v4 }
 0x198   :  { %v820_v60 = vshll.u32 %v7939_v21, %v808_v63  ;;  %v2218_v23 = vsub.s32 32, %v5067_v56  ;;  %v2223_v46 = vadd.s32 127, %v2222_v7  ;;  %v3896_v18 = vmin.u32 %v1068_v13, %v5064_v10 }
 0x199   :  { %v821_v45 = vshrl.u32 %v7940_v40, %v809_v4  ;;  %v813_v55 = vor.u32 %v812_v31, %v811_v15  ;;  %v816_v19 = vor.u32 %v815_v12, %v814_v44  ;;  %v823_v17 = vshll.u32 %v7940_v40, %v808_v63 }
 0x19a   :  { %v824_v48 = vshrl.u32 %v7927_v8, %v809_v4  ;;  %v2727_v43 = vadd.s32 536870912, %v5085_v24  ;;  %v819_v2 = vor.u32 %v818_v51, %v817_v32  ;;  %vm826_vm15 = vcmp.lt.s32.totalorder %v5087_v9, 1 }
 0x19b   :  { %v822_v6 = vor.u32 %v821_v45, %v820_v60  ;;  %v802_v25 = vor.u32 8388608, %v801_v47  ;;  %vm829_vm0 = vcmp.lt.s32.totalorder %v5087_v9, 4  ;;  %v5106_v7 = vadd.f32 %v4991_v28, %v4556_v61 }
 0x19c   :  { %v825_v58 = vor.u32 %v824_v48, %v823_v17  ;;  %v2437_v13 = vmul.f32 %v2436_v22, %v2434_v34  ;;  %v565_v15 = vmul.f32 %v564_v57, %v562_v0  ;;  %v2220_v31 = vshrl.u32 %v2202_v49, %v2218_v23 }
 0x19d   :  { %7955 = vst [vmem:[#allocation32_spill] sm:$0xff] %v5106_v7  ;;  %v1070_v63 = vclz %v3896_v18  ;;  %v2224_v44 = vshll.u32 %v2223_v46, 23  ;;  %vm828_vm1 = vcmp.lt.s32.totalorder %v5087_v9, 3  ;;  %v834_v12 = vsel %vm826_vm15, %v813_v55, %v816_v19 }
 0x19e   :  { %v835_v32 = vsel %vm829_vm0, %v822_v6, 920167782  ;;  %v5113_v47 = vshrl.u32 %v2727_v43, 30  ;;  %vm827_vm2 = vcmp.lt.s32.totalorder %v5087_v9, 2  ;;  %v838_v34 = vsel %vm826_vm15, %v816_v19, %v819_v2 }
 0x19f   :  { %v836_v61 = vsel %vm828_vm1, %v819_v2, %v835_v32  ;;  %vm380_vm3 = vcmp.lt.s32.totalorder %v4488_v29, 0  ;;  %vm2044_vm4 = vcmp.lt.s32.totalorder %v4491_v30, 0  ;;  %vm692_vm5 = vcmp.lt.s32.totalorder %v4501_v36, 0 }
 0x1a0   :  { %7956 = vst [vmem:[#allocation33_spill] sm:$0xff] %v5113_v47  ;;  %vm2356_vm7 = vcmp.lt.s32.totalorder %v4602_v5, 0  ;;  %v837_v22 = vsel %vm827_vm2, %v834_v12, %v836_v61  ;;  %v839_v49 = vsel %vm829_vm0, %v825_v58, 1326507024  ;;  %v842_v57 = vshll.u32 %v802_v25, 8 }
 0x1a1   :  { %v2461_v0 = vand.u32 2139095040, %v5106_v7  ;;  %v3897_v51 = vadd.s32 4294967294, %v1070_v63  ;;  %v810_v60 = vshrl.u32 %v7930_v59, %v809_v4  ;;  %v831_v23 = vsel %vm829_vm0, %v819_v2, 2102212464 }
 0x1a2   :  { %v840_v46 = vsel %vm828_vm1, %v822_v6, %v839_v49  ;;  %v5136_v45 = vmul.u32.u64.low %v842_v57, %v837_v22  ;;  %v5137_v17 = vmul.u32.u64.high %v842_v57, %v837_v22, %v5136_v45  ;;  %v2225_v25 = vor.u32 4788187, %v2224_v44 }
 0x1a3   :  { %v841_v18 = vsel %vm827_vm2, %v838_v34, %v840_v46  ;;  %v2462_v58 = vshrl.u32 %v2461_v0, 23  ;;  %v2729_v48 = vshll.u32 %v5113_v47, 30  ;;  %v774_v4 = vxor.u32 2147483648, %v5059_v54 }
 0x1a4   :  { %v5141_v43 = vmul.u32.u64.low %v842_v57, %v841_v18  ;;  %v5142_v63 = vmul.u32.u64.high %v842_v57, %v841_v18, %v5141_v43  ;;  %v2219_v2 = vshll.u32 %v4962_v35, %v5067_v56  ;;  %v5149_v12 = vadd.f32 %v4991_v28, %v4640_v14 }
 0x1a5   :  { %v3951_v6 = vadd.s32 4294967169, %v2462_v58  ;;  %v2438_v32 = vxor.u32 2147483648, %v2437_v13  ;;  %vm3898_vm8 = vcmp.lt.s32.totalorder %v3897_v51, 0  ;;  %v830_v44 = vsel %vm826_vm15, %v810_v60, %v813_v55 }
 0x1a6   :  { %7957 = vst [vmem:[#allocation34_spill] sm:$0xff] %v5149_v12  ;;  %v832_v61 = vsel %vm828_vm1, %v816_v19, %v831_v23  ;;  %v566_v34 = vxor.u32 2147483648, %v565_v15  ;;  %v2221_v22 = vor.u32 %v2220_v31, %v2219_v2  ;;  %v852_v49 = vadd.s32 1, %v5137_v17  ;;  %v5204_v2 = vpop.f32.mrb[9].mxu1 }
 0x1a7   :  { %v2468_v0 = vadd.s32 1, %v3951_v6  ;;  %vm484_vm9 = vcmp.lt.s32.totalorder %v4713_v41, 0  ;;  %v2226_v35 = vand.u32 2147483647, %v2225_v25  ;;  %v5158_v56 = vsub.s32 %v5085_v24, %v2729_v48 }
 0x1a8   :  { %vm851_vm10 = vc.u32 %v5142_v63, %v5136_v45  ;;  %v5162_v14 = vsel %vm3898_vm8, 0, %v3897_v51  ;;  %v833_v55 = vsel %vm827_vm2, %v830_v44, %v832_v61  ;;  %v1109_v19 = vand.u32 2139095040, %v5149_v12 }
 0x1a9   :  { %vm2469_vm12 = vcmp.gt.s32.totalorder %v2468_v0, 0  ;;  %v7958_v31 = vxor.u32 2147483648, %v4912_v16  ;;  %v7960_v24 = vxor.u32 2147483648, %v4976_v1  ;;  %v5184_v9 = vsel %vm692_vm5, %v774_v4, %v5059_v54 }
 0x1aa   :  { %7962 = vst [vmem:[#allocation37_spill] sm:$0xff] %v5184_v9  ;;  %v5188_v23 = vsel %vm2356_vm7, %v2438_v32, %v2437_v13  ;;  %v2228_v46 = vcvt.s32.f32 %v2221_v22  ;;  %v853_v18 = vsel %vm851_vm10, %v852_v49, %v5137_v17  ;;  %v2470_v58 = vsel %vm2469_vm12, %v2468_v0, 0 }
 0x1ab   :  { %v5172_v60 = vsel %vm380_vm3, %v7958_v31, %v4912_v16  ;;  %v5179_v51 = vsel %vm2044_vm4, %v7960_v24, %v4976_v1  ;;  %7963 = vst [vmem:[#allocation38_spill] sm:$0xff] %v5188_v23  ;;  %v5192_v16 = vsel %vm484_vm9, %v566_v34, %v565_v15  ;;  %v1078_v1 = vsub.s32 4294967266, %v5162_v14 }
 0x1ac   :  { %7959 = vst [vmem:[#allocation35_spill] sm:$0xff] %v5172_v60  ;;  %7961 = vst [vmem:[#allocation36_spill] sm:$0xff] %v5179_v51  ;;  %v2732_v25 = vsub.s32 0, %v5158_v56  ;;  %v849_v48 = vmul.u32 %v842_v57, %v833_v55  ;;  %v7805_v54 = vand.u32 2147483647, %v5106_v7  ;;  %v5198_v43 = vmul.f32 %v2228_v46, %v2226_v35 }
 0x1ad   :  { %7964 = vst [vmem:[#allocation39_spill] sm:$0xff] %v5192_v16  ;;  %v5202_v13 = vadd.s32 %v4968_v53, %v4979_v42  ;;  %v2472_v4 = vand.u32 31, %v2470_v58  ;;  %v1110_v15 = vshrl.u32 %v1109_v19, 23  ;;  %v1074_v17 = vsub.s32 32, %v5162_v14 }
 0x1ae   :  { %v5207_v6 = vadd.s32 %v853_v18, %v849_v48  ;;  %v2471_v32 = vshrl.u32 %v2470_v58, 5  ;;  %v5211_v57 = vadd.f32 %v4991_v28, %v4719_v3  ;;  %v5216_v42 = vadd.s32 127, %v1078_v1 }
 0x1af   :  { %v2473_v44 = vsub.s32 32, %v2472_v4  ;;  %v2475_v61 = vshll.u32 %v7930_v59, %v2472_v4  ;;  %v2478_v34 = vshll.u32 %v7937_v52, %v2472_v4  ;;  %v2481_v53 = vshll.u32 %v7938_v38, %v2472_v4 }
 0x1b0   :  { %7965 = vst [vmem:[#allocation40_spill] sm:$0xff] %v5211_v57  ;;  %v3960_v22 = vmin.u32 %v2732_v25, %v5158_v56  ;;  %v2465_v49 = vand.u32 8388607, %v7805_v54  ;;  %v2484_v0 = vshll.u32 %v7939_v21, %v2472_v4  ;;  %v3899_v19 = vadd.s32 4294967169, %v1110_v15 }
 0x1b1   :  { %v2476_v35 = vshrl.u32 %v7937_v52, %v2473_v44  ;;  %v2479_v3 = vshrl.u32 %v7938_v38, %v2473_v44  ;;  %v2482_v55 = vshrl.u32 %v7939_v21, %v2473_v44  ;;  %v855_v31 = vadd.s32 536870912, %v5207_v6 }
 0x1b2   :  { %v2485_v24 = vshrl.u32 %v7940_v40, %v2473_v44  ;;  %v2487_v46 = vshll.u32 %v7940_v40, %v2472_v4  ;;  %vm2490_vm13 = vcmp.lt.s32.totalorder %v2471_v32, 1  ;;  %v2488_v25 = vshrl.u32 %v7927_v8, %v2473_v44 }
 0x1b3   :  { %v2477_v18 = vor.u32 %v2476_v35, %v2475_v61  ;;  %v2480_v58 = vor.u32 %v2479_v3, %v2478_v34  ;;  %v2483_v1 = vor.u32 %v2482_v55, %v2481_v53  ;;  %v2734_v48 = vclz %v3960_v22 }
 0x1b4   :  { %v2466_v54 = vor.u32 8388608, %v2465_v49  ;;  %v2474_v47 = vshrl.u32 %v7930_v59, %v2473_v44  ;;  %v2486_v16 = vor.u32 %v2485_v24, %v2484_v0  ;;  %v2489_v41 = vor.u32 %v2488_v25, %v2487_v46 }
 0x1b5   :  { %vm2492_vm14 = vcmp.lt.s32.totalorder %v2471_v32, 3  ;;  %vm2493_vm15 = vcmp.lt.s32.totalorder %v2471_v32, 4  ;;  %v1116_v15 = vadd.s32 1, %v3899_v19  ;;  %v5230_v51 = vshrl.u32 %v855_v31, 30 }
 0x1b6   :  { %vm2491_vm0 = vcmp.lt.s32.totalorder %v2471_v32, 2  ;;  %v2495_v30 = vsel %vm2493_vm15, %v2483_v1, 2102212464  ;;  %v2498_v4 = vsel %vm2490_vm13, %v2477_v18, %v2480_v58  ;;  %v2499_v61 = vsel %vm2493_vm15, %v2486_v16, 920167782 }
 0x1b7   :  { %7966 = vst [vmem:[#allocation41_spill] sm:$0xff] %v5230_v51  ;;  %v2502_v34 = vsel %vm2490_vm13, %v2480_v58, %v2483_v1  ;;  %v2503_v53 = vsel %vm2493_vm15, %v2489_v41, 1326507024  ;;  %v7812_v22 = vand.u32 2147483647, %v5149_v12  ;;  %v2494_v49 = vsel %vm2490_vm13, %v2474_v47, %v2477_v18 }
 0x1b8   :  { %v2500_v44 = vsel %vm2492_vm14, %v2483_v1, %v2499_v61  ;;  %v2506_v0 = vshll.u32 %v2466_v54, 8  ;;  %v2773_v35 = vand.u32 2139095040, %v5211_v57  ;;  %v2496_v3 = vsel %vm2492_vm14, %v2480_v58, %v2495_v30 }
 0x1b9   :  { %v2501_v55 = vsel %vm2491_vm0, %v2498_v4, %v2500_v44  ;;  %v2504_v19 = vsel %vm2492_vm14, %v2486_v16, %v2503_v53  ;;  %vm1117_vm1 = vcmp.gt.s32.totalorder %v1116_v15, 0  ;;  %v857_v31 = vshll.u32 %v5230_v51, 30 }
 0x1ba   :  { %v2505_v41 = vsel %vm2491_vm0, %v2502_v34, %v2504_v19  ;;  %v5243_v24 = vmul.u32.u64.low %v2506_v0, %v2501_v55  ;;  %v5244_v46 = vmul.u32.u64.high %v2506_v0, %v2501_v55, %v5243_v24  ;;  %v1118_v1 = vsel %vm1117_vm1, %v1116_v15, 0  ;;  %v5278_v55 = vpop.f32.mrb[10].mxu0 }
 0x1bb   :  { %v5248_v54 = vmul.u32.u64.low %v2506_v0, %v2505_v41  ;;  %v5249_v18 = vmul.u32.u64.high %v2506_v0, %v2505_v41, %v5248_v54  ;;  %v3961_v30 = vadd.s32 4294967294, %v2734_v48  ;;  %v2497_v58 = vsel %vm2491_vm0, %v2494_v49, %v2496_v3 }
 0x1bc   :  { %v1120_v25 = vand.u32 31, %v1118_v1  ;;  %v5254_v16 = vadd.f32 %v4991_v28, %v4807_v20  ;;  %v5259_v61 = vshrl.u32 %v5202_v13, %v1074_v17  ;;  %v1113_v34 = vand.u32 8388607, %v7812_v22 }
 0x1bd   :  { %v5265_v15 = vadd.f32 %v4991_v28, %v4878_v11  ;;  %v5269_v48 = vsub.s32 %v5207_v6, %v857_v31  ;;  %v2516_v20 = vadd.s32 1, %v5244_v46  ;;  %v2774_v53 = vshrl.u32 %v2773_v35, 23 }
 0x1be   :  { %v2513_v49 = vmul.u32 %v2506_v0, %v2497_v58  ;;  %vm2515_vm2 = vc.u32 %v5249_v18, %v5243_v24  ;;  %v1121_v13 = vsub.s32 32, %v1120_v25  ;;  %vm3962_vm8 = vcmp.lt.s32.totalorder %v3961_v30, 0 }
 0x1bf   :  { %7967 = vst [vmem:[#allocation42_spill] sm:$0xff] %v5265_v15  ;;  %v2517_v44 = vsel %vm2515_vm2, %v2516_v20, %v5244_v46  ;;  %v1123_v11 = vshll.u32 %v7930_v59, %v1120_v25  ;;  %v1126_v3 = vshll.u32 %v7937_v52, %v1120_v25  ;;  %v1114_v19 = vor.u32 8388608, %v1113_v34 }
 0x1c0   :  { %v2518_v6 = vadd.s32 %v2517_v44, %v2513_v49  ;;  %v1124_v35 = vshrl.u32 %v7937_v52, %v1121_v13  ;;  %v1127_v0 = vshrl.u32 %v7938_v38, %v1121_v13  ;;  %v860_v31 = vsub.s32 0, %v5269_v48 }
 0x1c1   :  { %v1129_v41 = vshll.u32 %v7938_v38, %v1120_v25  ;;  %v1130_v54 = vshrl.u32 %v7939_v21, %v1121_v13  ;;  %v3963_v58 = vadd.s32 4294967169, %v2774_v53  ;;  %v5285_v46 = vsel %vm3962_vm8, 0, %v3961_v30 }
 0x1c2   :  { %v2519_v20 = vadd.s32 536870912, %v2518_v6  ;;  %v1119_v22 = vshrl.u32 %v1118_v1, 5  ;;  %v1132_v47 = vshll.u32 %v7939_v21, %v1120_v25  ;;  %v1125_v17 = vor.u32 %v1124_v35, %v1123_v11 }
 0x1c3   :  { %v1128_v49 = vor.u32 %v1127_v0, %v1126_v3  ;;  %v1131_v34 = vor.u32 %v1130_v54, %v1129_v41  ;;  %v1133_v44 = vshrl.u32 %v7940_v40, %v1121_v13  ;;  %v1135_v4 = vshll.u32 %v7940_v40, %v1120_v25 }
 0x1c4   :  { %v5289_v32 = vshrl.u32 %v2519_v20, 30  ;;  %v1136_v51 = vshrl.u32 %v7927_v8, %v1121_v13  ;;  %v1154_v23 = vshll.u32 %v1114_v19, 8  ;;  %v3888_v53 = vmin.u32 %v860_v31, %v5269_v48 }
 0x1c5   :  { %v1122_v30 = vshrl.u32 %v7930_v59, %v1121_v13  ;;  %v1134_v5 = vor.u32 %v1133_v44, %v1132_v47  ;;  %v2780_v1 = vadd.s32 1, %v3963_v58  ;;  %vm1138_vm10 = vcmp.lt.s32.totalorder %v1119_v22, 1 }
 0x1c6   :  { %7968 = vst [vmem:[#allocation43_spill] sm:$0xff] %v5289_v32  ;;  %v2521_v60 = vshll.u32 %v5289_v32, 30  ;;  %v1137_v11 = vor.u32 %v1136_v51, %v1135_v4  ;;  %vm1141_vm12 = vcmp.lt.s32.totalorder %v1119_v22, 4  ;;  %vm1140_vm13 = vcmp.lt.s32.totalorder %v1119_v22, 3 }
 0x1c7   :  { %v1143_v3 = vsel %vm1141_vm12, %v1131_v34, 2102212464  ;;  %v1146_v35 = vsel %vm1138_vm10, %v1125_v17, %v1128_v49  ;;  %v1147_v0 = vsel %vm1141_vm12, %v1134_v5, 920167782  ;;  %vm1139_vm14 = vcmp.lt.s32.totalorder %v1119_v22, 2 }
 0x1c8   :  { %v5296_v41 = vsub.s32 %v2518_v6, %v2521_v60  ;;  %v1148_v25 = vsel %vm1140_vm13, %v1131_v34, %v1147_v0  ;;  %v1150_v19 = vsel %vm1138_vm10, %v1128_v49, %v1131_v34  ;;  %v1142_v54 = vsel %vm1138_vm10, %v1122_v30, %v1125_v17 }
 0x1c9   :  { %v1144_v31 = vsel %vm1140_vm13, %v1128_v49, %v1143_v3  ;;  %v1149_v20 = vsel %vm1139_vm14, %v1146_v35, %v1148_v25  ;;  %v1151_v13 = vsel %vm1141_vm12, %v1137_v11, 1326507024  ;;  %v2742_v47 = vsub.s32 4294967266, %v5285_v46 }
 0x1ca   :  { %v1152_v58 = vsel %vm1140_vm13, %v1134_v5, %v1151_v13  ;;  %v5299_v44 = vmul.u32.u64.low %v1154_v23, %v1149_v20  ;;  %v5300_v51 = vmul.u32.u64.high %v1154_v23, %v1149_v20, %v5299_v44  ;;  %v862_v4 = vclz %v3888_v53 }
 0x1cb   :  { %v2524_v32 = vsub.s32 0, %v5296_v41  ;;  %v1153_v29 = vsel %vm1139_vm14, %v1150_v19, %v1152_v58  ;;  %vm2781_vm15 = vcmp.gt.s32.totalorder %v2780_v1, 0  ;;  %v1145_v60 = vsel %vm1139_vm14, %v1142_v54, %v1144_v31 }
 0x1cc   :  { %v5304_v22 = vmul.u32.u64.low %v1154_v23, %v1153_v29  ;;  %v5305_v6 = vmul.u32.u64.high %v1154_v23, %v1153_v29, %v5304_v22  ;;  %v2782_v17 = vsel %vm2781_vm15, %v2780_v1, 0  ;;  %v7969_v49 = vshll.u32 %v5064_v10, %v5162_v14 }
 0x1cd   :  { %v7970_v5 = vshll.u32 %v5216_v42, 23  ;;  %v2722_v53 = vadd.s32 %v5044_v27, %v5051_v62  ;;  %v2784_v11 = vand.u32 31, %v2782_v17  ;;  %v2738_v3 = vsub.s32 32, %v5285_v46 }
 0x1ce   :  { %v5311_v34 = vor.u32 %v5259_v61, %v7969_v49  ;;  %v2743_v35 = vadd.s32 127, %v2742_v47  ;;  %v1164_v29 = vadd.s32 1, %v5300_v51  ;;  %v7971_v1 = vand.u32 2147483647, %v5211_v57 }
 0x1cf   :  { %v5315_v30 = vor.u32 4788187, %v7970_v5  ;;  %v3889_v10 = vadd.s32 4294967294, %v862_v4  ;;  %v3952_v14 = vmin.u32 %v2524_v32, %v5296_v41  ;;  %v1161_v61 = vmul.u32 %v1154_v23, %v1145_v60 }
 0x1d0   :  { %v2777_v0 = vand.u32 8388607, %v7971_v1  ;;  %v2785_v25 = vsub.s32 32, %v2784_v11  ;;  %vm1163_vm0 = vc.u32 %v5305_v6, %v5299_v44  ;;  %v2787_v42 = vshll.u32 %v7930_v59, %v2784_v11  ;;  %v5340_v1 = vpop.f32.mrb[10].mxu1 }
 0x1d1   :  { %v2790_v27 = vshll.u32 %v7937_v52, %v2784_v11  ;;  %v2793_v62 = vshll.u32 %v7938_v38, %v2784_v11  ;;  %v1165_v19 = vsel %vm1163_vm0, %v1164_v29, %v5300_v51  ;;  %v2796_v20 = vshll.u32 %v7939_v21, %v2784_v11 }
 0x1d2   :  { %v2788_v54 = vshrl.u32 %v7937_v52, %v2785_v25  ;;  %v2791_v31 = vshrl.u32 %v7938_v38, %v2785_v25  ;;  %v1166_v32 = vadd.s32 %v1165_v19, %v1161_v61  ;;  %v2783_v23 = vshrl.u32 %v2782_v17, 5 }
 0x1d3   :  { %v2794_v13 = vshrl.u32 %v7939_v21, %v2785_v25  ;;  %v2797_v47 = vshrl.u32 %v7940_v40, %v2785_v25  ;;  %v1082_v58 = vand.u32 2147483647, %v5315_v30  ;;  %v1084_v4 = vcvt.s32.f32 %v5311_v34 }
 0x1d4   :  { %v2739_v60 = vshll.u32 %v5158_v56, %v5285_v46  ;;  %v2799_v51 = vshll.u32 %v7940_v40, %v2784_v11  ;;  %v2740_v22 = vshrl.u32 %v2722_v53, %v2738_v3  ;;  %v2744_v49 = vshll.u32 %v2743_v35, 23 }
 0x1d5   :  { %v1167_v5 = vadd.s32 536870912, %v1166_v32  ;;  %v2789_v29 = vor.u32 %v2788_v54, %v2787_v42  ;;  %v2792_v17 = vor.u32 %v2791_v31, %v2790_v27  ;;  %v2795_v61 = vor.u32 %v2794_v13, %v2793_v62 }
 0x1d6   :  { %v2798_v19 = vor.u32 %v2797_v47, %v2796_v20  ;;  %v2800_v9 = vshrl.u32 %v7927_v8, %v2785_v25  ;;  %vm2148_vm1 = vcmp.lt.s32.totalorder %v4764_v26, 0  ;;  %vm3890_vm2 = vcmp.lt.s32.totalorder %v3889_v10, 0 }
 0x1d7   :  { %v2526_v34 = vclz %v3952_v14  ;;  %v2778_v30 = vor.u32 8388608, %v2777_v0  ;;  %vm2802_vm8 = vcmp.lt.s32.totalorder %v2783_v23, 1  ;;  %v2786_v56 = vshrl.u32 %v7930_v59, %v2785_v25 }
 0x1d8   :  { %v2801_v46 = vor.u32 %v2800_v9, %v2799_v51  ;;  %vm2805_vm10 = vcmp.lt.s32.totalorder %v2783_v23, 4  ;;  %v901_v53 = vand.u32 2139095040, %v5254_v16  ;;  %v2741_v11 = vor.u32 %v2740_v22, %v2739_v60 }
 0x1d9   :  { %v2745_v3 = vor.u32 4788187, %v2744_v49  ;;  %v5346_v35 = vshrl.u32 %v1167_v5, 30  ;;  %vm2804_vm12 = vcmp.lt.s32.totalorder %v2783_v23, 3  ;;  %vm2803_vm13 = vcmp.lt.s32.totalorder %v2783_v23, 2 }
 0x1da   :  { %v2807_v42 = vsel %vm2805_vm10, %v2795_v61, 2102212464  ;;  %v2810_v27 = vsel %vm2802_vm8, %v2789_v29, %v2792_v17  ;;  %v2811_v14 = vsel %vm2805_vm10, %v2798_v19, 920167782  ;;  %v865_v0 = vsel %vm3890_vm2, 0, %v3889_v10 }
 0x1db   :  { %7972 = vst [vmem:[#allocation44_spill] sm:$0xff] %v5346_v35  ;;  %v3953_v62 = vadd.s32 4294967294, %v2526_v34  ;;  %v2814_v9 = vsel %vm2802_vm8, %v2792_v17, %v2795_v61  ;;  %v2818_v25 = vshll.u32 %v2778_v30, 8  ;;  %v2806_v54 = vsel %vm2802_vm8, %v2786_v56, %v2789_v29 }
 0x1dc   :  { %v2812_v31 = vsel %vm2804_vm12, %v2795_v61, %v2811_v14  ;;  %v2815_v20 = vsel %vm2805_vm10, %v2801_v46, 1326507024  ;;  %v902_v13 = vshrl.u32 %v901_v53, 23  ;;  %v1169_v47 = vshll.u32 %v5346_v35, 30 }
 0x1dd   :  { %v2808_v60 = vsel %vm2804_vm12, %v2792_v17, %v2807_v42  ;;  %v2813_v51 = vsel %vm2803_vm13, %v2810_v27, %v2812_v31  ;;  %v2816_v22 = vsel %vm2804_vm12, %v2798_v19, %v2815_v20  ;;  %v866_v34 = vsub.s32 32, %v865_v0 }
 0x1de   :  { %v2817_v10 = vsel %vm2803_vm13, %v2814_v9, %v2816_v22  ;;  %v5361_v49 = vmul.u32.u64.low %v2818_v25, %v2813_v51  ;;  %v5362_v5 = vmul.u32.u64.high %v2818_v25, %v2813_v51, %v5361_v49  ;;  %v3891_v29 = vadd.s32 4294967169, %v902_v13 }
 0x1df   :  { %v870_v61 = vsub.s32 4294967266, %v865_v0  ;;  %v5365_v30 = vmul.u32.u64.low %v2818_v25, %v2817_v10  ;;  %v5366_v56 = vmul.u32.u64.high %v2818_v25, %v2817_v10, %v5365_v30  ;;  %v7973_v46 = vxor.u32 2147483648, %v5198_v43 }
 0x1e0   :  { %v5375_v19 = vmul.f32 %v1084_v4, %v1082_v58  ;;  %v850_v53 = vadd.s32 %v5136_v45, %v5142_v63  ;;  %v908_v42 = vadd.s32 1, %v3891_v29  ;;  %vm3954_vm14 = vcmp.lt.s32.totalorder %v3953_v62, 0  ;;  %v5407_v30 = vpop.f32.mrb[11].mxu0 }
 0x1e1   :  { %v5373_v17 = vsel %vm2148_vm1, %v7973_v46, %v5198_v43  ;;  %v5379_v27 = vsub.s32 %v1166_v32, %v1169_v47  ;;  %v2809_v14 = vsel %vm2803_vm13, %v2806_v54, %v2808_v60  ;;  %v2565_v9 = vand.u32 2139095040, %v5265_v15 }
 0x1e2   :  { %7974 = vst [vmem:[#allocation45_spill] sm:$0xff] %v5373_v17  ;;  %v2746_v31 = vand.u32 2147483647, %v2745_v3  ;;  %v2748_v20 = vcvt.s32.f32 %v2741_v11  ;;  %v2828_v13 = vadd.s32 1, %v5362_v5  ;;  %vm909_vm15 = vcmp.gt.s32.totalorder %v908_v42, 0 }
 0x1e3   :  { %v868_v43 = vshrl.u32 %v850_v53, %v866_v34  ;;  %v871_v51 = vadd.s32 127, %v870_v61  ;;  %vm2827_vm0 = vc.u32 %v5366_v56, %v5361_v49  ;;  %v7821_v45 = vand.u32 2147483647, %v5254_v16 }
 0x1e4   :  { %v5387_v63 = vsel %vm3954_vm14, 0, %v3953_v62  ;;  %v2825_v32 = vmul.u32 %v2818_v25, %v2809_v14  ;;  %v2829_v23 = vsel %vm2827_vm0, %v2828_v13, %v5362_v5  ;;  %v910_v58 = vsel %vm909_vm15, %v908_v42, 0 }
 0x1e5   :  { %v867_v4 = vshll.u32 %v5269_v48, %v865_v0  ;;  %v1172_v11 = vsub.s32 0, %v5379_v27  ;;  %v912_v3 = vand.u32 31, %v910_v58  ;;  %v2566_v54 = vshrl.u32 %v2565_v9, 23 }
 0x1e6   :  { %v5393_v60 = vmul.f32 %v2748_v20, %v2746_v31  ;;  %v2514_v22 = vadd.s32 %v5243_v24, %v5249_v18  ;;  %v5397_v10 = vadd.s32 %v2829_v23, %v2825_v32  ;;  %v872_v25 = vshll.u32 %v871_v51, 23 }
 0x1e7   :  { %v5399_v62 = vor.u32 %v868_v43, %v867_v4  ;;  %v2530_v5 = vsub.s32 32, %v5387_v63  ;;  %v905_v48 = vand.u32 8388607, %v7821_v45  ;;  %v913_v0 = vsub.s32 32, %v912_v3 }
 0x1e8   :  { %v915_v29 = vshll.u32 %v7930_v59, %v912_v3  ;;  %v918_v34 = vshll.u32 %v7937_v52, %v912_v3  ;;  %v921_v61 = vshll.u32 %v7938_v38, %v912_v3  ;;  %v2534_v24 = vsub.s32 4294967266, %v5387_v63 }
 0x1e9   :  { %v3900_v18 = vmin.u32 %v1172_v11, %v5379_v27  ;;  %v924_v46 = vshll.u32 %v7939_v21, %v912_v3  ;;  %v3955_v53 = vadd.s32 4294967169, %v2566_v54  ;;  %v2831_v42 = vadd.s32 536870912, %v5397_v10 }
 0x1ea   :  { %v916_v14 = vshrl.u32 %v7937_v52, %v913_v0  ;;  %v919_v9 = vshrl.u32 %v7938_v38, %v913_v0  ;;  %v922_v31 = vshrl.u32 %v7939_v21, %v913_v0  ;;  %v5416_v20 = vor.u32 4788187, %v872_v25 }
 0x1eb   :  { %v2531_v13 = vshll.u32 %v5296_v41, %v5387_v63  ;;  %v911_v43 = vshrl.u32 %v910_v58, 5  ;;  %v925_v51 = vshrl.u32 %v7940_v40, %v913_v0  ;;  %v927_v11 = vshll.u32 %v7940_v40, %v912_v3 }
 0x1ec   :  { %v917_v32 = vor.u32 %v916_v14, %v915_v29  ;;  %v920_v23 = vor.u32 %v919_v9, %v918_v34  ;;  %v923_v4 = vor.u32 %v922_v31, %v921_v61  ;;  %vm7862_vm2 = vcmp.lt.s32.totalorder %v4857_v37, 0 }
 0x1ed   :  { %v2532_v54 = vshrl.u32 %v2514_v22, %v2530_v5  ;;  %v1174_v45 = vclz %v3900_v18  ;;  %v906_v47 = vor.u32 8388608, %v905_v48  ;;  %v926_v35 = vor.u32 %v925_v51, %v924_v46 }
 0x1ee   :  { %v2535_v17 = vadd.s32 127, %v2534_v24  ;;  %v5423_v25 = vshrl.u32 %v2831_v42, 30  ;;  %v928_v26 = vshrl.u32 %v7927_v8, %v913_v0  ;;  %v2572_v41 = vadd.s32 1, %v3955_v53 }
 0x1ef   :  { %v914_v63 = vshrl.u32 %v7930_v59, %v913_v0  ;;  %vm930_vm8 = vcmp.lt.s32.totalorder %v911_v43, 1  ;;  %vm932_vm10 = vcmp.lt.s32.totalorder %v911_v43, 3  ;;  %vm933_vm12 = vcmp.lt.s32.totalorder %v911_v43, 4 }
 0x1f0   :  { %7975 = vst [vmem:[#allocation46_spill] sm:$0xff] %v5423_v25  ;;  %v929_v58 = vor.u32 %v928_v26, %v927_v11  ;;  %v935_v29 = vsel %vm933_vm12, %v923_v4, 2102212464  ;;  %v938_v3 = vsel %vm930_vm8, %v917_v32, %v920_v23  ;;  %v939_v34 = vsel %vm933_vm12, %v926_v35, 920167782  ;;  %v7980_v11 = vld [vmem:[#allocation27_spill] sm:$0xff] }
 0x1f1   :  { %v3901_v22 = vadd.s32 4294967294, %v1174_v45  ;;  %vm931_vm13 = vcmp.lt.s32.totalorder %v911_v43, 2  ;;  %v940_v5 = vsel %vm932_vm10, %v923_v4, %v939_v34  ;;  %v946_v48 = vshll.u32 %v906_v47, 8 }
 0x1f2   :  { %v2833_v61 = vshll.u32 %v5423_v25, 30  ;;  %v941_v24 = vsel %vm931_vm13, %v938_v3, %v940_v5  ;;  %v942_v18 = vsel %vm930_vm8, %v920_v23, %v923_v4  ;;  %v943_v0 = vsel %vm933_vm12, %v929_v58, 1326507024 }
 0x1f3   :  { %v2536_v46 = vshll.u32 %v2535_v17, 23  ;;  %v934_v53 = vsel %vm930_vm8, %v914_v63, %v917_v32  ;;  %v936_v26 = vsel %vm932_vm10, %v920_v23, %v935_v29  ;;  %v944_v42 = vsel %vm932_vm10, %v926_v35, %v943_v0 }
 0x1f4   :  { %v945_v45 = vsel %vm931_vm13, %v942_v18, %v944_v42  ;;  %v5436_v14 = vmul.u32.u64.low %v946_v48, %v941_v24  ;;  %v5437_v9 = vmul.u32.u64.high %v946_v48, %v941_v24, %v5436_v14  ;;  %vm2573_vm14 = vcmp.gt.s32.totalorder %v2572_v41, 0 }
 0x1f5   :  { %v5440_v47 = vor.u32 %v2532_v54, %v2531_v13  ;;  %v5442_v31 = vmul.u32.u64.low %v946_v48, %v945_v45  ;;  %v5443_v51 = vmul.u32.u64.high %v946_v48, %v945_v45, %v5442_v31  ;;  %v7826_v17 = vand.u32 2147483647, %v5265_v15 }
 0x1f6   :  { %v7976_v32 = vxor.u32 2147483648, %v5375_v19  ;;  %vm3902_vm15 = vcmp.lt.s32.totalorder %v3901_v22, 0  ;;  %v5454_v23 = vsub.s32 %v5397_v10, %v2833_v61  ;;  %v2574_v4 = vsel %vm2573_vm14, %v2572_v41, 0 }
 0x1f7   :  { %v937_v54 = vsel %vm931_vm13, %v934_v53, %v936_v26  ;;  %v2576_v63 = vand.u32 31, %v2574_v4  ;;  %v5460_v29 = vor.u32 4788187, %v2536_v46  ;;  %v956_v3 = vadd.s32 1, %v5437_v9  ;;  %v5483_v53 = vpop.f32.mrb[11].mxu1 }
 0x1f8   :  { %v5451_v35 = vsel %vm7862_vm2, %v7976_v32, %v5375_v19  ;;  %v1162_v19 = vadd.s32 %v5299_v44, %v5305_v6  ;;  %v5466_v34 = vsel %vm3902_vm15, 0, %v3901_v22  ;;  %v2569_v41 = vand.u32 8388607, %v7826_v17 }
 0x1f9   :  { %7977 = vst [vmem:[#allocation47_spill] sm:$0xff] %v5451_v35  ;;  %v5472_v43 = vadd.f32 %v4991_v28, %v4947_v50  ;;  %v2836_v5 = vsub.s32 0, %v5454_v23  ;;  %v953_v61 = vmul.u32 %v946_v48, %v937_v54  ;;  %vm955_vm0 = vc.u32 %v5443_v51, %v5436_v14 }
 0x1fa   :  { %v2577_v44 = vsub.s32 32, %v2576_v63  ;;  %v957_v6 = vsel %vm955_vm0, %v956_v3, %v5437_v9  ;;  %v2579_v24 = vshll.u32 %v7930_v59, %v2576_v63  ;;  %v2582_v22 = vshll.u32 %v7937_v52, %v2576_v63 }
 0x1fb   :  { %7978 = vst [vmem:[#allocation48_spill] sm:$0xff] %v5472_v43  ;;  %v2585_v18 = vshll.u32 %v7938_v38, %v2576_v63  ;;  %v958_v0 = vadd.s32 %v957_v6, %v953_v61  ;;  %v2575_v46 = vshrl.u32 %v2574_v4, 5  ;;  %v1182_v48 = vsub.s32 4294967266, %v5466_v34 }
 0x1fc   :  { %v2580_v50 = vshrl.u32 %v7937_v52, %v2577_v44  ;;  %v2583_v28 = vshrl.u32 %v7938_v38, %v2577_v44  ;;  %v2570_v26 = vor.u32 8388608, %v2569_v41  ;;  %v2586_v42 = vshrl.u32 %v7939_v21, %v2577_v44 }
 0x1fd   :  { %v2588_v45 = vshll.u32 %v7939_v21, %v2576_v63  ;;  %v3964_v9 = vmin.u32 %v2836_v5, %v5454_v23  ;;  %v959_v31 = vadd.s32 536870912, %v958_v0  ;;  %v2589_v32 = vshrl.u32 %v7940_v40, %v2577_v44 }
 0x1fe   :  { %v1421_v4 = vand.u32 2139095040, %v5472_v43  ;;  %v2581_v54 = vor.u32 %v2580_v50, %v2579_v24  ;;  %v2584_v3 = vor.u32 %v2583_v28, %v2582_v22  ;;  %v2587_v61 = vor.u32 %v2586_v42, %v2585_v18 }
 0x1ff   :  { %v2591_v6 = vshll.u32 %v7940_v40, %v2576_v63  ;;  %v5492_v17 = vshrl.u32 %v959_v31, 30  ;;  %v2590_v13 = vor.u32 %v2589_v32, %v2588_v45  ;;  %v2592_v41 = vshrl.u32 %v7927_v8, %v2577_v44 }
 0x200   :  { %vm2594_vm8 = vcmp.lt.s32.totalorder %v2575_v46, 1  ;;  %v1178_v10 = vsub.s32 32, %v5466_v34  ;;  %vm2596_vm10 = vcmp.lt.s32.totalorder %v2575_v46, 3  ;;  %vm2597_vm12 = vcmp.lt.s32.totalorder %v2575_v46, 4 }
 0x201   :  { %7979 = vst [vmem:[#allocation49_spill] sm:$0xff] %v5492_v17  ;;  %v2610_v5 = vshll.u32 %v2570_v26, 8  ;;  %vm7832_vm13 = vcmp.lt.s32.totalorder %v7980_v11, 0  ;;  %v1183_v58 = vadd.s32 127, %v1182_v48  ;;  %v2838_v25 = vclz %v3964_v9 }
 0x202   :  { %v2593_v24 = vor.u32 %v2592_v41, %v2591_v6  ;;  %vm2595_vm14 = vcmp.lt.s32.totalorder %v2575_v46, 2  ;;  %v2578_v22 = vshrl.u32 %v7930_v59, %v2577_v44  ;;  %v2602_v63 = vsel %vm2594_vm8, %v2581_v54, %v2584_v3 }
 0x203   :  { %v2603_v18 = vsel %vm2597_vm12, %v2590_v13, 920167782  ;;  %v1422_v50 = vshrl.u32 %v1421_v4, 23  ;;  %v961_v28 = vshll.u32 %v5492_v17, 30  ;;  %v2599_v42 = vsel %vm2597_vm12, %v2587_v61, 2102212464 }
 0x204   :  { %v2604_v45 = vsel %vm2596_vm10, %v2587_v61, %v2603_v18  ;;  %v2606_v26 = vsel %vm2594_vm8, %v2584_v3, %v2587_v61  ;;  %v2538_v48 = vand.u32 2147483647, %v5460_v29  ;;  %v1180_v9 = vshrl.u32 %v1162_v19, %v1178_v10 }
 0x205   :  { %v2605_v31 = vsel %vm2595_vm14, %v2602_v63, %v2604_v45  ;;  %v2607_v44 = vsel %vm2597_vm12, %v2593_v24, 1326507024  ;;  %v1184_v32 = vshll.u32 %v1183_v58, 23  ;;  %v2598_v17 = vsel %vm2594_vm8, %v2578_v22, %v2581_v54 }
 0x206   :  { %v2608_v6 = vsel %vm2596_vm10, %v2590_v13, %v2607_v44  ;;  %v5508_v41 = vmul.u32.u64.low %v2610_v5, %v2605_v31  ;;  %v5509_v4 = vmul.u32.u64.high %v2610_v5, %v2605_v31, %v5508_v41  ;;  %v2600_v18 = vsel %vm2596_vm10, %v2584_v3, %v2599_v42 }
 0x207   :  { %v2609_v61 = vsel %vm2595_vm14, %v2606_v26, %v2608_v6  ;;  %v3911_v35 = vadd.s32 4294967169, %v1422_v50  ;;  %v3965_v29 = vadd.s32 4294967294, %v2838_v25  ;;  %v5515_v19 = vsub.s32 %v958_v0, %v961_v28 }
 0x208   :  { %v5517_v10 = vmul.u32.u64.low %v2610_v5, %v2609_v61  ;;  %v5518_v63 = vmul.u32.u64.high %v2610_v5, %v2609_v61, %v5517_v10  ;;  %v7981_v58 = vand.u32 2147483647, %v5416_v20  ;;  %v7982_v13 = vcvt.s32.f32 %v5399_v62  ;;  %v5538_v62 = vld [vmem:[%s7747_s2] ss:$0 sm:$0xff] }
 0x209   :  { %v7983_v45 = vcvt.s32.f32 %v5440_v47  ;;  %v1179_v3 = vshll.u32 %v5379_v27, %v5466_v34  ;;  %v1428_v22 = vadd.s32 1, %v3911_v35  ;;  %v2601_v25 = vsel %vm2595_vm14, %v2598_v17, %v2600_v18  ;;  %v7984_v20 = vld [vmem:[#allocation30_spill] sm:$0xff] }
 0x20a   :  { %v5524_v24 = vmul.f32 %v7982_v13, %v7981_v58  ;;  %v2620_v0 = vadd.s32 1, %v5509_v4  ;;  %v7831_v50 = vand.u32 2147483647, %v5472_v43  ;;  %v5542_v47 = vadd.f32 %v5538_v62, %v7984_v20 }
 0x20b   :  { %v5528_v54 = vmul.f32 %v7983_v45, %v2538_v48  ;;  %v7986_v28 = vxor.u32 2147483648, %v5393_v60  ;;  %v1181_v17 = vor.u32 %v1180_v9, %v1179_v3  ;;  %v1185_v35 = vor.u32 4788187, %v1184_v32 }
 0x20c   :  { %7985 = vst [vmem:[#allocation30_spill] sm:$0xff] %v5542_v47  ;;  %vm1429_vm15 = vcmp.gt.s32.totalorder %v1428_v22, 0  ;;  %vm3966_vm0 = vcmp.lt.s32.totalorder %v3965_v29, 0  ;;  %v964_v34 = vsub.s32 0, %v5515_v19  ;;  %vm2619_vm8 = vc.u32 %v5518_v63, %v5508_v41 }
 0x20d   :  { %v5549_v27 = vsel %vm7832_vm13, %v7986_v28, %v5393_v60  ;;  %v1430_v46 = vsel %vm1429_vm15, %v1428_v22, 0  ;;  %v2617_v26 = vmul.u32 %v2610_v5, %v2601_v25  ;;  %v2621_v48 = vsel %vm2619_vm8, %v2620_v0, %v5509_v4 }
 0x20e   :  { %7987 = vst [vmem:[#allocation50_spill] sm:$0xff] %v5549_v27  ;;  %v1432_v31 = vand.u32 31, %v1430_v46  ;;  %v2826_v60 = vadd.s32 %v5361_v49, %v5366_v56  ;;  %v1425_v9 = vand.u32 8388607, %v7831_v50  ;;  %v3085_v32 = vand.u32 2139095040, %v5542_v47 }
 0x20f   :  { %v1186_v6 = vand.u32 2147483647, %v1185_v35  ;;  %v5562_v18 = vsel %vm3966_vm0, 0, %v3965_v29  ;;  %v5564_v61 = vadd.s32 %v2621_v48, %v2617_v26  ;;  %v1188_v5 = vcvt.s32.f32 %v1181_v17 }
 0x210   :  { %v1433_v10 = vsub.s32 32, %v1432_v31  ;;  %v3892_v4 = vmin.u32 %v964_v34, %v5515_v19  ;;  %v1435_v58 = vshll.u32 %v7930_v59, %v1432_v31  ;;  %v1438_v13 = vshll.u32 %v7937_v52, %v1432_v31 }
 0x211   :  { %v1431_v45 = vshrl.u32 %v1430_v46, 5  ;;  %v1441_v3 = vshll.u32 %v7938_v38, %v1432_v31  ;;  %v2846_v29 = vsub.s32 4294967266, %v5562_v18  ;;  %v1426_v22 = vor.u32 8388608, %v1425_v9 }
 0x212   :  { %v1436_v49 = vshrl.u32 %v7937_v52, %v1433_v10  ;;  %v1439_v56 = vshrl.u32 %v7938_v38, %v1433_v10  ;;  %v1442_v25 = vshrl.u32 %v7939_v21, %v1433_v10  ;;  %v3086_v0 = vshrl.u32 %v3085_v32, 23  ;;  %v5582_v32 = vpop.f32.mrb[12].mxu0 }
 0x213   :  { %v5574_v20 = vmul.f32 %v1188_v5, %v1186_v6  ;;  %v2623_v28 = vadd.s32 536870912, %v5564_v61  ;;  %v1444_v17 = vshll.u32 %v7939_v21, %v1432_v31  ;;  %v1445_v35 = vshrl.u32 %v7940_v40, %v1433_v10 }
 0x214   :  { %v966_v34 = vclz %v3892_v4  ;;  %v1437_v46 = vor.u32 %v1436_v49, %v1435_v58  ;;  %v1440_v26 = vor.u32 %v1439_v56, %v1438_v13  ;;  %v1443_v48 = vor.u32 %v1442_v25, %v1441_v3 }
 0x215   :  { %vm7847_vm10 = vcmp.lt.s32.totalorder %v4995_v39, 0  ;;  %v1446_v50 = vor.u32 %v1445_v35, %v1444_v17  ;;  %v1447_v9 = vshll.u32 %v7940_v40, %v1432_v31  ;;  %v1448_v44 = vshrl.u32 %v7927_v8, %v1433_v10 }
 0x216   :  { %vm1450_vm12 = vcmp.lt.s32.totalorder %v1431_v45, 1  ;;  %v2842_v6 = vsub.s32 32, %v5562_v18  ;;  %v2847_v5 = vadd.s32 127, %v2846_v29  ;;  %v1466_v42 = vshll.u32 %v1426_v22, 8 }
 0x217   :  { %v3975_v27 = vadd.s32 4294967169, %v3086_v0  ;;  %vm7846_vm14 = vcmp.lt.s32.totalorder %v5106_v7, 0  ;;  %v5586_v4 = vshrl.u32 %v2623_v28, 30  ;;  %v1449_v58 = vor.u32 %v1448_v44, %v1447_v9 }
 0x218   :  { %vm1452_vm15 = vcmp.lt.s32.totalorder %v1431_v45, 3  ;;  %vm1453_vm0 = vcmp.lt.s32.totalorder %v1431_v45, 4  ;;  %v3893_v13 = vadd.s32 4294967294, %v966_v34  ;;  %v1434_v31 = vshrl.u32 %v7930_v59, %v1433_v10 }
 0x219   :  { %7988 = vst [vmem:[#allocation51_spill] sm:$0xff] %v5586_v4  ;;  %vm1451_vm8 = vcmp.lt.s32.totalorder %v1431_v45, 2  ;;  %v1458_v49 = vsel %vm1450_vm12, %v1437_v46, %v1440_v26  ;;  %v1455_v56 = vsel %vm1453_vm0, %v1443_v48, 2102212464  ;;  %v1459_v3 = vsel %vm1453_vm0, %v1446_v50, 920167782 }
 0x21a   :  { %v1462_v25 = vsel %vm1450_vm12, %v1440_v26, %v1443_v48  ;;  %v1463_v29 = vsel %vm1453_vm0, %v1449_v58, 1326507024  ;;  %v2844_v22 = vshrl.u32 %v2826_v60, %v2842_v6  ;;  %v2848_v0 = vshll.u32 %v2847_v5, 23 }
 0x21b   :  { %v1460_v17 = vsel %vm1452_vm15, %v1443_v48, %v1459_v3  ;;  %v7834_v28 = vand.u32 2147483647, %v5542_v47  ;;  %v2625_v44 = vshll.u32 %v5586_v4, 30  ;;  %v1464_v10 = vsel %vm1452_vm15, %v1446_v50, %v1463_v29 }
 0x21c   :  { %v1461_v35 = vsel %vm1451_vm8, %v1458_v49, %v1460_v17  ;;  %v3092_v34 = vadd.s32 1, %v3975_v27  ;;  %vm3894_vm13 = vcmp.lt.s32.totalorder %v3893_v13, 0  ;;  %v1454_v9 = vsel %vm1450_vm12, %v1434_v31, %v1437_v46 }
 0x21d   :  { %v1456_v11 = vsel %vm1452_vm15, %v1440_v26, %v1455_v56  ;;  %v1465_v58 = vsel %vm1451_vm8, %v1462_v25, %v1464_v10  ;;  %v5602_v48 = vmul.u32.u64.low %v1466_v42, %v1461_v35  ;;  %v5603_v5 = vmul.u32.u64.high %v1466_v42, %v1461_v35, %v5602_v48 }
 0x21e   :  { %v5599_v60 = vmul.u32.u64.low %v1466_v42, %v1465_v58  ;;  %v5600_v6 = vmul.u32.u64.high %v1466_v42, %v1465_v58, %v5599_v60  ;;  %v7989_v49 = vxor.u32 2147483648, %v5524_v24  ;;  %v2843_v27 = vshll.u32 %v5454_v23, %v5562_v18 }
 0x21f   :  { %v3089_v46 = vand.u32 8388607, %v7834_v28  ;;  %vm3093_vm12 = vcmp.gt.s32.totalorder %v3092_v34, 0  ;;  %v5617_v26 = vsel %vm3894_vm13, 0, %v3893_v13  ;;  %v5620_v31 = vsub.s32 %v5564_v61, %v2625_v44 }
 0x220   :  { %v5611_v50 = vsel %vm7847_vm10, %v7989_v49, %v5524_v24  ;;  %v1457_v56 = vsel %vm1451_vm8, %v1454_v9, %v1456_v11  ;;  %v3094_v3 = vsel %vm3093_vm12, %v3092_v34, 0  ;;  %v7991_v25 = vxor.u32 2147483648, %v5528_v54 }
 0x221   :  { %7990 = vst [vmem:[#allocation52_spill] sm:$0xff] %v5611_v50  ;;  %v3096_v18 = vand.u32 31, %v3094_v3  ;;  %v5633_v13 = vadd.f32 %v5538_v62, %v5090_v33  ;;  %v5635_v29 = vor.u32 %v2844_v22, %v2843_v27  ;;  %v5637_v61 = vor.u32 4788187, %v2848_v0  ;;  %v5647_v0 = vpop.f32.mrb[12].mxu1 }
 0x222   :  { %v5628_v24 = vsel %vm7846_vm14, %v7991_v25, %v5528_v54  ;;  %vm1475_vm13 = vc.u32 %v5600_v6, %v5602_v48  ;;  %v1476_v11 = vadd.s32 1, %v5603_v5  ;;  %v974_v45 = vsub.s32 4294967266, %v5617_v26 }
 0x223   :  { %7992 = vst [vmem:[#allocation53_spill] sm:$0xff] %v5628_v24  ;;  %7993 = vst [vmem:[#allocation54_spill] sm:$0xff] %v5633_v13  ;;  %v1473_v54 = vmul.u32 %v1466_v42, %v1457_v56  ;;  %v3090_v17 = vor.u32 8388608, %v3089_v46  ;;  %v3097_v44 = vsub.s32 32, %v3096_v18  ;;  %v2628_v35 = vsub.s32 0, %v5620_v31 }
 0x224   :  { %v1477_v10 = vsel %vm1475_vm13, %v1476_v11, %v5603_v5  ;;  %v3099_v33 = vshll.u32 %v7930_v59, %v3096_v18  ;;  %v3102_v22 = vshll.u32 %v7937_v52, %v3096_v18  ;;  %v3095_v9 = vshrl.u32 %v3094_v3, 5 }
 0x225   :  { %v1478_v34 = vadd.s32 %v1477_v10, %v1473_v54  ;;  %v3105_v58 = vshll.u32 %v7938_v38, %v3096_v18  ;;  %v1213_v60 = vand.u32 2139095040, %v5633_v13  ;;  %v3100_v42 = vshrl.u32 %v7937_v52, %v3097_v44 }
 0x226   :  { %v3103_v49 = vshrl.u32 %v7938_v38, %v3097_v44  ;;  %v3106_v27 = vshrl.u32 %v7939_v21, %v3097_v44  ;;  %v3108_v5 = vshll.u32 %v7939_v21, %v3096_v18  ;;  %v975_v46 = vadd.s32 127, %v974_v45 }
 0x227   :  { %v1479_v56 = vadd.s32 536870912, %v1478_v34  ;;  %v3098_v25 = vshrl.u32 %v7930_v59, %v3097_v44  ;;  %v3109_v11 = vshrl.u32 %v7940_v40, %v3097_v44  ;;  %v3956_v3 = vmin.u32 %v2628_v35, %v5620_v31 }
 0x228   :  { %v3101_v54 = vor.u32 %v3100_v42, %v3099_v33  ;;  %v3104_v10 = vor.u32 %v3103_v49, %v3102_v22  ;;  %v3111_v28 = vshll.u32 %v7940_v40, %v3096_v18  ;;  %vm7883_vm15 = vcmp.lt.s32.totalorder %v5149_v12, 0 }
 0x229   :  { %v5660_v23 = vshrl.u32 %v1479_v56, 30  ;;  %v3107_v24 = vor.u32 %v3106_v27, %v3105_v58  ;;  %v3110_v7 = vor.u32 %v3109_v11, %v3108_v5  ;;  %v3130_v4 = vshll.u32 %v3090_v17, 8 }
 0x22a   :  { %v3112_v45 = vshrl.u32 %v7927_v8, %v3097_v44  ;;  %vm3114_vm0 = vcmp.lt.s32.totalorder %v3095_v9, 1  ;;  %vm3116_vm8 = vcmp.lt.s32.totalorder %v3095_v9, 3  ;;  %v1214_v50 = vshrl.u32 %v1213_v60, 23 }
 0x22b   :  { %7994 = vst [vmem:[#allocation55_spill] sm:$0xff] %v5660_v23  ;;  %v1481_v39 = vshll.u32 %v5660_v23, 30  ;;  %vm3115_vm12 = vcmp.lt.s32.totalorder %v3095_v9, 2  ;;  %vm3117_vm13 = vcmp.lt.s32.totalorder %v3095_v9, 4  ;;  %v3118_v35 = vsel %vm3114_vm0, %v3098_v25, %v3101_v54 }
 0x22c   :  { %v3113_v33 = vor.u32 %v3112_v45, %v3111_v28  ;;  %v3119_v18 = vsel %vm3117_vm13, %v3107_v24, 2102212464  ;;  %v3122_v22 = vsel %vm3114_vm0, %v3101_v54, %v3104_v10  ;;  %v3123_v42 = vsel %vm3117_vm13, %v3110_v7, 920167782 }
 0x22d   :  { %v2630_v49 = vclz %v3956_v3  ;;  %v5666_v58 = vsub.s32 %v1478_v34, %v1481_v39  ;;  %v3120_v17 = vsel %vm3116_vm8, %v3104_v10, %v3119_v18  ;;  %v3124_v44 = vsel %vm3116_vm8, %v3107_v24, %v3123_v42 }
 0x22e   :  { %v3125_v60 = vsel %vm3115_vm12, %v3122_v22, %v3124_v44  ;;  %v3126_v27 = vsel %vm3114_vm0, %v3104_v10, %v3107_v24  ;;  %v3127_v5 = vsel %vm3117_vm13, %v3113_v33, 1326507024  ;;  %v3903_v56 = vadd.s32 4294967169, %v1214_v50 }
 0x22f   :  { %v970_v25 = vsub.s32 32, %v5617_v26  ;;  %v976_v28 = vshll.u32 %v975_v46, 23  ;;  %v3121_v11 = vsel %vm3115_vm12, %v3118_v35, %v3120_v17  ;;  %v3128_v54 = vsel %vm3116_vm8, %v3110_v7, %v3127_v5 }
 0x230   :  { %v1484_v39 = vsub.s32 0, %v5666_v58  ;;  %v3129_v34 = vsel %vm3115_vm12, %v3126_v27, %v3128_v54  ;;  %v5677_v3 = vmul.u32.u64.low %v3130_v4, %v3125_v60  ;;  %v5678_v45 = vmul.u32.u64.high %v3130_v4, %v3125_v60, %v5677_v3 }
 0x231   :  { %v954_v24 = vadd.s32 %v5436_v14, %v5443_v51  ;;  %v3957_v10 = vadd.s32 4294967294, %v2630_v49  ;;  %v5683_v50 = vmul.u32.u64.low %v3130_v4, %v3129_v34  ;;  %v5684_v33 = vmul.u32.u64.high %v3130_v4, %v3129_v34, %v5683_v50 }
 0x232   :  { %v7995_v46 = vxor.u32 2147483648, %v5574_v20  ;;  %v2850_v9 = vand.u32 2147483647, %v5637_v61  ;;  %v2852_v35 = vcvt.s32.f32 %v5635_v29  ;;  %v1220_v18 = vadd.s32 1, %v3903_v56 }
 0x233   :  { %v972_v22 = vshrl.u32 %v954_v24, %v970_v25  ;;  %v5695_v42 = vor.u32 4788187, %v976_v28  ;;  %v3137_v14 = vmul.u32 %v3130_v4, %v3121_v11  ;;  %v7841_v51 = vand.u32 2147483647, %v5633_v13 }
 0x234   :  { %v5691_v7 = vsel %vm7883_vm15, %v7995_v46, %v5574_v20  ;;  %v3912_v49 = vmin.u32 %v1484_v39, %v5666_v58  ;;  %v3140_v17 = vadd.s32 1, %v5678_v45  ;;  %vm1221_vm0 = vcmp.gt.s32.totalorder %v1220_v18, 0 }
 0x235   :  { %7996 = vst [vmem:[#allocation56_spill] sm:$0xff] %v5691_v7  ;;  %v5702_v20 = vadd.f32 %v5538_v62, %v5204_v2  ;;  %v971_v61 = vshll.u32 %v5515_v19, %v5617_v26  ;;  %vm3958_vm8 = vcmp.lt.s32.totalorder %v3957_v10, 0  ;;  %vm3139_vm12 = vc.u32 %v5684_v33, %v5677_v3 }
 0x236   :  { %v1222_v29 = vsel %vm1221_vm0, %v1220_v18, 0  ;;  %v5708_v4 = vmul.f32 %v2852_v35, %v2850_v9  ;;  %v2618_v44 = vadd.s32 %v5508_v41, %v5518_v63  ;;  %v3141_v60 = vsel %vm3139_vm12, %v3140_v17, %v5678_v45  ;;  %v5733_v17 = vpop.f32.mrb[13].mxu0 }
 0x237   :  { %7997 = vst [vmem:[#allocation57_spill] sm:$0xff] %v5702_v20  ;;  %v1224_v27 = vand.u32 31, %v1222_v29  ;;  %v5713_v5 = vor.u32 %v972_v22, %v971_v61  ;;  %v3142_v56 = vadd.s32 %v3141_v60, %v3137_v14  ;;  %v1217_v19 = vand.u32 8388607, %v7841_v51 }
 0x238   :  { %v5718_v26 = vsel %vm3958_vm8, 0, %v3957_v10  ;;  %v1486_v25 = vclz %v3912_v49  ;;  %v2877_v11 = vand.u32 2139095040, %v5702_v20  ;;  %v1223_v34 = vshrl.u32 %v1222_v29, 5 }
 0x239   :  { %v1225_v28 = vsub.s32 32, %v1224_v27  ;;  %v3143_v54 = vadd.s32 536870912, %v3142_v56  ;;  %v1227_v41 = vshll.u32 %v7930_v59, %v1224_v27  ;;  %v1230_v63 = vshll.u32 %v7937_v52, %v1224_v27 }
 0x23a   :  { %v1233_v50 = vshll.u32 %v7938_v38, %v1224_v27  ;;  %v2638_v10 = vsub.s32 4294967266, %v5718_v26  ;;  %v1218_v9 = vor.u32 8388608, %v1217_v19  ;;  %v3913_v18 = vadd.s32 4294967294, %v1486_v25 }
 0x23b   :  { %v1228_v45 = vshrl.u32 %v7937_v52, %v1225_v28  ;;  %v1231_v24 = vshrl.u32 %v7938_v38, %v1225_v28  ;;  %v5728_v46 = vshrl.u32 %v3143_v54, 30  ;;  %v1234_v35 = vshrl.u32 %v7939_v21, %v1225_v28 }
 0x23c   :  { %v1236_v22 = vshll.u32 %v7939_v21, %v1224_v27  ;;  %v1237_v14 = vshrl.u32 %v7940_v40, %v1225_v28  ;;  %v2878_v49 = vshrl.u32 %v2877_v11, 23  ;;  %v1239_v54 = vshll.u32 %v7940_v40, %v1224_v27 }
 0x23d   :  { %7998 = vst [vmem:[#allocation58_spill] sm:$0xff] %v5728_v46  ;;  %v3145_v61 = vshll.u32 %v5728_v46, 30  ;;  %v1229_v29 = vor.u32 %v1228_v45, %v1227_v41  ;;  %v1232_v60 = vor.u32 %v1231_v24, %v1230_v63  ;;  %v1235_v51 = vor.u32 %v1234_v35, %v1233_v50 }
 0x23e   :  { %v1238_v2 = vor.u32 %v1237_v14, %v1236_v22  ;;  %v1240_v19 = vshrl.u32 %v7927_v8, %v1225_v28  ;;  %vm1242_vm13 = vcmp.lt.s32.totalorder %v1223_v34, 1  ;;  %v2634_v25 = vsub.s32 32, %v5718_v26 }
 0x23f   :  { %v2639_v39 = vadd.s32 127, %v2638_v10  ;;  %v5739_v23 = vsub.s32 %v3142_v56, %v3145_v61  ;;  %v1258_v37 = vshll.u32 %v1218_v9, 8  ;;  %vm1244_vm0 = vcmp.lt.s32.totalorder %v1223_v34, 3 }
 0x240   :  { %v1241_v11 = vor.u32 %v1240_v19, %v1239_v54  ;;  %vm1245_vm8 = vcmp.lt.s32.totalorder %v1223_v34, 4  ;;  %v3967_v7 = vadd.s32 4294967169, %v2878_v49  ;;  %vm3914_vm12 = vcmp.lt.s32.totalorder %v3913_v18, 0 }
 0x241   :  { %v1226_v41 = vshrl.u32 %v7930_v59, %v1225_v28  ;;  %vm1243_vm14 = vcmp.lt.s32.totalorder %v1223_v34, 2  ;;  %v1250_v63 = vsel %vm1242_vm13, %v1229_v29, %v1232_v60  ;;  %v1247_v27 = vsel %vm1245_vm8, %v1235_v51, 2102212464 }
 0x242   :  { %v1251_v45 = vsel %vm1245_vm8, %v1238_v2, 920167782  ;;  %v1254_v24 = vsel %vm1242_vm13, %v1232_v60, %v1235_v51  ;;  %v1255_v50 = vsel %vm1245_vm8, %v1241_v11, 1326507024  ;;  %v2636_v35 = vshrl.u32 %v2618_v44, %v2634_v25 }
 0x243   :  { %v2640_v10 = vshll.u32 %v2639_v39, 23  ;;  %v3148_v56 = vsub.s32 0, %v5739_v23  ;;  %v1252_v9 = vsel %vm1244_vm0, %v1235_v51, %v1251_v45  ;;  %v1256_v14 = vsel %vm1244_vm0, %v1238_v2, %v1255_v50 }
 0x244   :  { %v1253_v22 = vsel %vm1243_vm14, %v1250_v63, %v1252_v9  ;;  %v7999_v28 = vand.u32 2147483647, %v5702_v20  ;;  %v2884_v61 = vadd.s32 1, %v3967_v7  ;;  %v5751_v54 = vsel %vm3914_vm12, 0, %v3913_v18 }
 0x245   :  { %v1246_v19 = vsel %vm1242_vm13, %v1226_v41, %v1229_v29  ;;  %v1248_v44 = vsel %vm1244_vm0, %v1232_v60, %v1247_v27  ;;  %v1257_v39 = vsel %vm1243_vm14, %v1254_v24, %v1256_v14  ;;  %v980_v7 = vcvt.s32.f32 %v5713_v5 }
 0x246   :  { %v2881_v49 = vand.u32 8388607, %v7999_v28  ;;  %v5756_v25 = vmul.u32.u64.low %v1258_v37, %v1257_v39  ;;  %v5757_v11 = vmul.u32.u64.high %v1258_v37, %v1257_v39, %v5756_v25  ;;  %v3976_v18 = vmin.u32 %v3148_v56, %v5739_v23 }
 0x247   :  { %v5759_v51 = vmul.u32.u64.low %v1258_v37, %v1253_v22  ;;  %v5760_v63 = vmul.u32.u64.high %v1258_v37, %v1253_v22, %v5759_v51  ;;  %vm2885_vm8 = vcmp.gt.s32.totalorder %v2884_v61, 0  ;;  %v2635_v29 = vshll.u32 %v5620_v31, %v5718_v26 }
 0x248   :  { %v1249_v60 = vsel %vm1243_vm14, %v1246_v19, %v1248_v44  ;;  %v2882_v41 = vor.u32 8388608, %v2881_v49  ;;  %v2886_v27 = vsel %vm2885_vm8, %v2884_v61, 0  ;;  %v8000_v45 = vand.u32 2147483647, %v5695_v42  ;;  %v5793_v44 = vpop.f32.mrb[13].mxu1 }
 0x249   :  { %v1474_v50 = vadd.s32 %v5602_v48, %v5600_v6  ;;  %v1494_v9 = vsub.s32 4294967266, %v5751_v54  ;;  %v2888_v5 = vand.u32 31, %v2886_v27  ;;  %v5776_v22 = vor.u32 %v2636_v35, %v2635_v29 }
 0x24a   :  { %v5771_v24 = vmul.f32 %v980_v7, %v8000_v45  ;;  %v5778_v56 = vor.u32 4788187, %v2640_v10  ;;  %vm1267_vm13 = vc.u32 %v5757_v11, %v5759_v51  ;;  %v1268_v31 = vadd.s32 1, %v5760_v63 }
 0x24b   :  { %v3150_v26 = vclz %v3976_v18  ;;  %v1265_v34 = vmul.u32 %v1258_v37, %v1249_v60  ;;  %v2889_v42 = vsub.s32 32, %v2888_v5  ;;  %v5785_v14 = vadd.f32 %v5538_v62, %v5278_v55 }
 0x24c   :  { %v1269_v6 = vsel %vm1267_vm13, %v1268_v31, %v5760_v63  ;;  %v2891_v48 = vshll.u32 %v7930_v59, %v2888_v5  ;;  %v2894_v35 = vshll.u32 %v7937_v52, %v2888_v5  ;;  %v5790_v10 = vshll.u32 %v2882_v41, 8 }
 0x24d   :  { %v1495_v28 = vadd.s32 127, %v1494_v9  ;;  %v1270_v49 = vadd.s32 %v1269_v6, %v1265_v34  ;;  %v2887_v61 = vshrl.u32 %v2886_v27, 5  ;;  %v2897_v19 = vshll.u32 %v7938_v38, %v2888_v5 }
 0x24e   :  { %v2892_v37 = vshrl.u32 %v7937_v52, %v2889_v42  ;;  %v2895_v55 = vshrl.u32 %v7938_v38, %v2889_v42  ;;  %v2898_v39 = vshrl.u32 %v7939_v21, %v2889_v42  ;;  %v2900_v25 = vshll.u32 %v7939_v21, %v2888_v5 }
 0x24f   :  { %v3977_v63 = vadd.s32 4294967294, %v3150_v26  ;;  %v1271_v7 = vadd.s32 536870912, %v1270_v49  ;;  %v2901_v18 = vshrl.u32 %v7940_v40, %v2889_v42  ;;  %v1525_v29 = vand.u32 2139095040, %v5785_v14 }
 0x250   :  { %v1490_v60 = vsub.s32 32, %v5751_v54  ;;  %v2893_v41 = vor.u32 %v2892_v37, %v2891_v48  ;;  %v2896_v27 = vor.u32 %v2895_v55, %v2894_v35  ;;  %v2903_v45 = vshll.u32 %v7940_v40, %v2888_v5 }
 0x251   :  { %vm7857_vm14 = vcmp.lt.s32.totalorder %v5211_v57, 0  ;;  %v5804_v9 = vshrl.u32 %v1271_v7, 30  ;;  %v2890_v31 = vshrl.u32 %v7930_v59, %v2889_v42  ;;  %v2899_v34 = vor.u32 %v2898_v39, %v2897_v19 }
 0x252   :  { %v2902_v6 = vor.u32 %v2901_v18, %v2900_v25  ;;  %v1496_v26 = vshll.u32 %v1495_v28, 23  ;;  %v2904_v2 = vshrl.u32 %v7927_v8, %v2889_v42  ;;  %vm2906_vm0 = vcmp.lt.s32.totalorder %v2887_v61, 1 }
 0x253   :  { %8001 = vst [vmem:[#allocation59_spill] sm:$0xff] %v5804_v9  ;;  %vm2908_vm12 = vcmp.lt.s32.totalorder %v2887_v61, 3  ;;  %vm3978_vm8 = vcmp.lt.s32.totalorder %v3977_v63, 0  ;;  %vm2907_vm13 = vcmp.lt.s32.totalorder %v2887_v61, 2  ;;  %vm2909_vm10 = vcmp.lt.s32.totalorder %v2887_v61, 4 }
 0x254   :  { %v1526_v48 = vshrl.u32 %v1525_v29, 23  ;;  %v2905_v35 = vor.u32 %v2904_v2, %v2903_v45  ;;  %v2911_v37 = vsel %vm2909_vm10, %v2899_v34, 2102212464  ;;  %v2914_v5 = vsel %vm2906_vm0, %v2893_v41, %v2896_v27 }
 0x255   :  { %v2915_v55 = vsel %vm2909_vm10, %v2902_v6, 920167782  ;;  %v1492_v7 = vshrl.u32 %v1474_v50, %v1490_v60  ;;  %v1273_v46 = vshll.u32 %v5804_v9, 30  ;;  %v2910_v19 = vsel %vm2906_vm0, %v2890_v31, %v2893_v41 }
 0x256   :  { %v2916_v28 = vsel %vm2908_vm12, %v2899_v34, %v2915_v55  ;;  %v2912_v42 = vsel %vm2908_vm12, %v2896_v27, %v2911_v37  ;;  %v2918_v25 = vsel %vm2906_vm0, %v2896_v27, %v2899_v34  ;;  %v2919_v18 = vsel %vm2909_vm10, %v2905_v35, 1326507024 }
 0x257   :  { %v2917_v39 = vsel %vm2907_vm13, %v2914_v5, %v2916_v28  ;;  %v1491_v2 = vshll.u32 %v5666_v58, %v5751_v54  ;;  %v1497_v29 = vor.u32 4788187, %v1496_v26  ;;  %v5818_v45 = vsel %vm3978_vm8, 0, %v3977_v63 }
 0x258   :  { %v2920_v50 = vsel %vm2908_vm12, %v2902_v6, %v2919_v18  ;;  %v5823_v41 = vmul.u32.u64.low %v5790_v10, %v2917_v39  ;;  %v5824_v31 = vmul.u32.u64.high %v5790_v10, %v2917_v39, %v5823_v41  ;;  %v3915_v37 = vadd.s32 4294967169, %v1526_v48 }
 0x259   :  { %v2921_v60 = vsel %vm2907_vm13, %v2918_v25, %v2920_v50  ;;  %v5827_v5 = vsub.s32 %v1270_v49, %v1273_v46  ;;  %v2913_v27 = vsel %vm2907_vm13, %v2910_v19, %v2912_v42  ;;  %v8002_v63 = vxor.u32 2147483648, %v5708_v4 }
 0x25a   :  { %v5831_v58 = vmul.u32.u64.low %v5790_v10, %v2921_v60  ;;  %v5832_v54 = vmul.u32.u64.high %v5790_v10, %v2921_v60, %v5831_v58  ;;  %v2642_v6 = vand.u32 2147483647, %v5778_v56  ;;  %v1493_v26 = vor.u32 %v1492_v7, %v1491_v2 }
 0x25b   :  { %v5839_v34 = vsel %vm7857_vm14, %v8002_v63, %v5708_v4  ;;  %v1532_v35 = vadd.s32 1, %v3915_v37  ;;  %v2644_v46 = vcvt.s32.f32 %v5776_v22  ;;  %v3158_v49 = vsub.s32 4294967266, %v5818_v45 }
 0x25c   :  { %8003 = vst [vmem:[#allocation60_spill] sm:$0xff] %v5839_v34  ;;  %v7850_v61 = vand.u32 2147483647, %v5785_v14  ;;  %v5847_v48 = vadd.f32 %v5538_v62, %v5340_v1  ;;  %v1498_v55 = vand.u32 2147483647, %v1497_v29  ;;  %v2929_v19 = vmul.u32 %v5790_v10, %v2913_v27 }
 0x25d   :  { %v2932_v4 = vadd.s32 1, %v5824_v31  ;;  %vm1533_vm10 = vcmp.gt.s32.totalorder %v1532_v35, 0  ;;  %v1276_v7 = vsub.s32 0, %v5827_v5  ;;  %vm2931_vm0 = vc.u32 %v5832_v54, %v5823_v41 }
 0x25e   :  { %v1534_v22 = vsel %vm1533_vm10, %v1532_v35, 0  ;;  %v5855_v28 = vmul.f32 %v2644_v46, %v2642_v6  ;;  %v1500_v42 = vcvt.s32.f32 %v1493_v26  ;;  %v3159_v25 = vadd.s32 127, %v3158_v49 }
 0x25f   :  { %v2933_v1 = vsel %vm2931_vm0, %v2932_v4, %v5824_v31  ;;  %v1536_v39 = vand.u32 31, %v1534_v22  ;;  %v1529_v10 = vand.u32 8388607, %v7850_v61  ;;  %v3189_v18 = vand.u32 2139095040, %v5847_v48  ;;  %v5871_v31 = vpop.f32.mrb[14].mxu0 }
 0x260   :  { %v5863_v2 = vadd.f32 %v5538_v62, %v5407_v30  ;;  %v5865_v29 = vmul.f32 %v1500_v42, %v1498_v55  ;;  %v3138_v50 = vadd.s32 %v5677_v3, %v5684_v33  ;;  %v5869_v60 = vadd.s32 %v2933_v1, %v2929_v19 }
 0x261   :  { %v1537_v37 = vsub.s32 32, %v1536_v39  ;;  %v3154_v27 = vsub.s32 32, %v5818_v45  ;;  %v3904_v58 = vmin.u32 %v1276_v7, %v5827_v5  ;;  %v1539_v63 = vshll.u32 %v7930_v59, %v1536_v39 }
 0x262   :  { %v1542_v6 = vshll.u32 %v7937_v52, %v1536_v39  ;;  %v1535_v30 = vshrl.u32 %v1534_v22, 5  ;;  %v1545_v3 = vshll.u32 %v7938_v38, %v1536_v39  ;;  %v3160_v33 = vshll.u32 %v3159_v25, 23 }
 0x263   :  { %v1540_v26 = vshrl.u32 %v7937_v52, %v1537_v37  ;;  %v1543_v35 = vshrl.u32 %v7938_v38, %v1537_v37  ;;  %v1530_v46 = vor.u32 8388608, %v1529_v10  ;;  %v1546_v49 = vshrl.u32 %v7939_v21, %v1537_v37 }
 0x264   :  { %v3190_v55 = vshrl.u32 %v3189_v18, 23  ;;  %v3155_v19 = vshll.u32 %v5739_v23, %v5818_v45  ;;  %v2935_v4 = vadd.s32 536870912, %v5869_v60  ;;  %v1548_v7 = vshll.u32 %v7939_v21, %v1536_v39 }
 0x265   :  { %v1549_v22 = vshrl.u32 %v7940_v40, %v1537_v37  ;;  %v1278_v42 = vclz %v3904_v58  ;;  %v1541_v1 = vor.u32 %v1540_v26, %v1539_v63  ;;  %v1544_v61 = vor.u32 %v1543_v35, %v1542_v6 }
 0x266   :  { %v1547_v56 = vor.u32 %v1546_v49, %v1545_v3  ;;  %vm7861_vm12 = vcmp.lt.s32.totalorder %v5254_v16, 0  ;;  %v1551_v10 = vshll.u32 %v7940_v40, %v1536_v39  ;;  %v1552_v18 = vshrl.u32 %v7927_v8, %v1537_v37 }
 0x267   :  { %v1550_v25 = vor.u32 %v1549_v22, %v1548_v7  ;;  %vm1554_vm8 = vcmp.lt.s32.totalorder %v1535_v30, 1  ;;  %v3156_v9 = vshrl.u32 %v3138_v50, %v3154_v27  ;;  %v3161_v23 = vor.u32 4788187, %v3160_v33 }
 0x268   :  { %v1570_v45 = vshll.u32 %v1530_v46, 8  ;;  %v3979_v34 = vadd.s32 4294967169, %v3190_v55  ;;  %v5889_v57 = vshrl.u32 %v2935_v4, 30  ;;  %v1553_v12 = vor.u32 %v1552_v18, %v1551_v10 }
 0x269   :  { %vm1556_vm13 = vcmp.lt.s32.totalorder %v1535_v30, 3  ;;  %vm1557_vm10 = vcmp.lt.s32.totalorder %v1535_v30, 4  ;;  %v3905_v58 = vadd.s32 4294967294, %v1278_v42  ;;  %v1538_v63 = vshrl.u32 %v7930_v59, %v1537_v37 }
 0x26a   :  { %8004 = vst [vmem:[#allocation61_spill] sm:$0xff] %v5889_v57  ;;  %vm1555_vm0 = vcmp.lt.s32.totalorder %v1535_v30, 2  ;;  %v1562_v6 = vsel %vm1554_vm8, %v1541_v1, %v1544_v61  ;;  %v1559_v26 = vsel %vm1557_vm10, %v1547_v56, 2102212464  ;;  %v1563_v39 = vsel %vm1557_vm10, %v1550_v25, 920167782 }
 0x26b   :  { %v1566_v35 = vsel %vm1554_vm8, %v1544_v61, %v1547_v56  ;;  %v1567_v3 = vsel %vm1557_vm10, %v1553_v12, 1326507024  ;;  %v3157_v50 = vor.u32 %v3156_v9, %v3155_v19  ;;  %v3162_v27 = vand.u32 2147483647, %v3161_v23 }
 0x26c   :  { %v1564_v33 = vsel %vm1556_vm13, %v1547_v56, %v1563_v39  ;;  %v7858_v46 = vand.u32 2147483647, %v5847_v48  ;;  %v2937_v49 = vshll.u32 %v5889_v57, 30  ;;  %v1568_v37 = vsel %vm1556_vm13, %v1550_v25, %v1567_v3 }
 0x26d   :  { %v1565_v55 = vsel %vm1555_vm0, %v1562_v6, %v1564_v33  ;;  %v3196_v4 = vadd.s32 1, %v3979_v34  ;;  %vm3906_vm14 = vcmp.lt.s32.totalorder %v3905_v58, 0  ;;  %v1558_v7 = vsel %vm1554_vm8, %v1538_v63, %v1541_v1 }
 0x26e   :  { %v1560_v22 = vsel %vm1556_vm13, %v1544_v61, %v1559_v26  ;;  %v1569_v12 = vsel %vm1555_vm0, %v1566_v35, %v1568_v37  ;;  %v5905_v56 = vmul.u32.u64.low %v1570_v45, %v1565_v55  ;;  %v5906_v42 = vmul.u32.u64.high %v1570_v45, %v1565_v55, %v5905_v56 }
 0x26f   :  { %v5902_v9 = vmul.u32.u64.low %v1570_v45, %v1569_v12  ;;  %v5903_v19 = vmul.u32.u64.high %v1570_v45, %v1569_v12, %v5902_v9  ;;  %v8005_v10 = vxor.u32 2147483648, %v5771_v24  ;;  %v3164_v25 = vcvt.s32.f32 %v3157_v50 }
 0x270   :  { %v3193_v61 = vand.u32 8388607, %v7858_v46  ;;  %vm3197_vm8 = vcmp.gt.s32.totalorder %v3196_v4, 0  ;;  %v5918_v1 = vsel %vm3906_vm14, 0, %v3905_v58  ;;  %v5921_v18 = vsub.s32 %v5869_v60, %v2937_v49 }
 0x271   :  { %v5914_v34 = vsel %vm7861_vm12, %v8005_v10, %v5771_v24  ;;  %v1561_v23 = vsel %vm1555_vm0, %v1558_v7, %v1560_v22  ;;  %v3198_v63 = vsel %vm3197_vm8, %v3196_v4, 0  ;;  %v1317_v24 = vand.u32 2139095040, %v5863_v2  ;;  %v5944_v10 = vpop.f32.mrb[14].mxu1 }
 0x272   :  { %8006 = vst [vmem:[#allocation62_spill] sm:$0xff] %v5914_v34  ;;  %v3200_v39 = vand.u32 31, %v3198_v63  ;;  %v5927_v35 = vmul.f32 %v3164_v25, %v3162_v27  ;;  %v1266_v3 = vadd.s32 %v5759_v51, %v5757_v11  ;;  %vm1579_vm14 = vc.u32 %v5903_v19, %v5905_v56 }
 0x273   :  { %v1580_v60 = vadd.s32 1, %v5906_v42  ;;  %v1286_v30 = vsub.s32 4294967266, %v5918_v1  ;;  %v1577_v58 = vmul.u32 %v1570_v45, %v1561_v23  ;;  %v3194_v50 = vor.u32 8388608, %v3193_v61 }
 0x274   :  { %v3201_v33 = vsub.s32 32, %v3200_v39  ;;  %v2940_v49 = vsub.s32 0, %v5921_v18  ;;  %v3203_v27 = vshll.u32 %v7930_v59, %v3200_v39  ;;  %v3206_v37 = vshll.u32 %v7937_v52, %v3200_v39 }
 0x275   :  { %v1581_v55 = vsel %vm1579_vm14, %v1580_v60, %v5906_v42  ;;  %v3199_v11 = vshrl.u32 %v3198_v63, 5  ;;  %v3209_v51 = vshll.u32 %v7938_v38, %v3200_v39  ;;  %v1318_v7 = vshrl.u32 %v1317_v24, 23 }
 0x276   :  { %v1582_v4 = vadd.s32 %v1581_v55, %v1577_v58  ;;  %v3204_v22 = vshrl.u32 %v7937_v52, %v3201_v33  ;;  %v3207_v12 = vshrl.u32 %v7938_v38, %v3201_v33  ;;  %v3210_v45 = vshrl.u32 %v7939_v21, %v3201_v33 }
 0x277   :  { %v3212_v9 = vshll.u32 %v7939_v21, %v3200_v39  ;;  %vm7880_vm13 = vcmp.lt.s32.totalorder %v5265_v15, 0  ;;  %v3166_v42 = vxor.u32 2147483648, %v5927_v35  ;;  %v1287_v25 = vadd.s32 127, %v1286_v30 }
 0x278   :  { %v1583_v61 = vadd.s32 536870912, %v1582_v4  ;;  %v3213_v23 = vshrl.u32 %v7940_v40, %v3201_v33  ;;  %v3968_v63 = vmin.u32 %v2940_v49, %v5921_v18  ;;  %v3205_v24 = vor.u32 %v3204_v22, %v3203_v27 }
 0x279   :  { %v3208_v60 = vor.u32 %v3207_v12, %v3206_v37  ;;  %v3215_v58 = vshll.u32 %v7940_v40, %v3200_v39  ;;  %vm7879_vm10 = vcmp.lt.s32.totalorder %v5472_v43, 0  ;;  %v3211_v46 = vor.u32 %v3210_v45, %v3209_v51 }
 0x27a   :  { %v5952_v55 = vshrl.u32 %v1583_v61, 30  ;;  %v3214_v26 = vor.u32 %v3213_v23, %v3212_v9  ;;  %v3234_v6 = vshll.u32 %v3194_v50, 8  ;;  %vm7868_vm0 = vcmp.lt.s32.totalorder %v5542_v47, 0 }
 0x27b   :  { %v3216_v30 = vshrl.u32 %v7927_v8, %v3201_v33  ;;  %vm3218_vm8 = vcmp.lt.s32.totalorder %v3199_v11, 1  ;;  %vm3220_vm14 = vcmp.lt.s32.totalorder %v3199_v11, 3  ;;  %v3907_v57 = vadd.s32 4294967169, %v1318_v7 }
 0x27c   :  { %8007 = vst [vmem:[#allocation63_spill] sm:$0xff] %v5952_v55  ;;  %v1585_v49 = vshll.u32 %v5952_v55, 30  ;;  %v3202_v27 = vshrl.u32 %v7930_v59, %v3201_v33  ;;  %vm3219_vm12 = vcmp.lt.s32.totalorder %v3199_v11, 2  ;;  %vm3221_vm2 = vcmp.lt.s32.totalorder %v3199_v11, 4 }
 0x27d   :  { %v3217_v39 = vor.u32 %v3216_v30, %v3215_v58  ;;  %v3223_v37 = vsel %vm3221_vm2, %v3211_v46, 2102212464  ;;  %v3226_v22 = vsel %vm3218_vm8, %v3205_v24, %v3208_v60  ;;  %v3227_v51 = vsel %vm3221_vm2, %v3214_v26, 920167782 }
 0x27e   :  { %v1282_v50 = vsub.s32 32, %v5918_v1  ;;  %v1288_v12 = vshll.u32 %v1287_v25, 23  ;;  %v2942_v45 = vclz %v3968_v63  ;;  %v3228_v9 = vsel %vm3220_vm14, %v3211_v46, %v3227_v51 }
 0x27f   :  { %v3229_v61 = vsel %vm3219_vm12, %v3226_v22, %v3228_v9  ;;  %v3230_v7 = vsel %vm3218_vm8, %v3208_v60, %v3211_v46  ;;  %v3231_v23 = vsel %vm3221_vm2, %v3217_v39, 1326507024  ;;  %v1324_v55 = vadd.s32 1, %v3907_v57 }
 0x280   :  { %v5963_v33 = vsub.s32 %v1582_v4, %v1585_v49  ;;  %v3222_v58 = vsel %vm3218_vm8, %v3202_v27, %v3205_v24  ;;  %v3224_v30 = vsel %vm3220_vm14, %v3208_v60, %v3223_v37  ;;  %v3232_v34 = vsel %vm3220_vm14, %v3214_v26, %v3231_v23 }
 0x281   :  { %v8008_v25 = vxor.u32 2147483648, %v5855_v28  ;;  %v3233_v22 = vsel %vm3219_vm12, %v3230_v7, %v3232_v34  ;;  %v5976_v46 = vmul.u32.u64.low %v3234_v6, %v3229_v61  ;;  %v5977_v39 = vmul.u32.u64.high %v3234_v6, %v3229_v61, %v5976_v46 }
 0x282   :  { %v1284_v57 = vshrl.u32 %v1266_v3, %v1282_v50  ;;  %v1289_v4 = vor.u32 4788187, %v1288_v12  ;;  %v5980_v24 = vmul.u32.u64.low %v3234_v6, %v3233_v22  ;;  %v5981_v49 = vmul.u32.u64.high %v3234_v6, %v3233_v22, %v5980_v24  ;;  %v6021_v22 = vpop.f32.mrb[15].mxu0 }
 0x283   :  { %v5973_v63 = vsel %vm7880_vm13, %v8008_v25, %v5855_v28  ;;  %v8010_v26 = vxor.u32 2147483648, %v5865_v29  ;;  %v3969_v28 = vadd.s32 4294967294, %v2942_v45  ;;  %v3225_v27 = vsel %vm3219_vm12, %v3222_v58, %v3224_v30 }
 0x284   :  { %8009 = vst [vmem:[#allocation64_spill] sm:$0xff] %v5973_v63  ;;  %vm1325_vm2 = vcmp.gt.s32.totalorder %v1324_v55, 0  ;;  %v5994_v34 = vsel %vm7868_vm0, %v3166_v42, %v5927_v35  ;;  %v1283_v3 = vshll.u32 %v5827_v5, %v5918_v1  ;;  %v1588_v37 = vsub.s32 0, %v5963_v33 }
 0x285   :  { %v5988_v60 = vsel %vm7879_vm10, %v8010_v26, %v5865_v29  ;;  %8012 = vst [vmem:[#allocation66_spill] sm:$0xff] %v5994_v34  ;;  %v1326_v51 = vsel %vm1325_vm2, %v1324_v55, 0  ;;  %v6001_v50 = vadd.s32 %v5823_v41, %v5832_v54  ;;  %v3244_v29 = vadd.s32 1, %v5977_v39 }
 0x286   :  { %8011 = vst [vmem:[#allocation65_spill] sm:$0xff] %v5988_v60  ;;  %v7865_v11 = vand.u32 2147483647, %v5863_v2  ;;  %v1328_v12 = vand.u32 31, %v1326_v51  ;;  %v1285_v45 = vor.u32 %v1284_v57, %v1283_v3  ;;  %v1290_v9 = vand.u32 2147483647, %v1289_v4 }
 0x287   :  { %v3241_v61 = vmul.u32 %v3234_v6, %v3225_v27  ;;  %vm3243_vm12 = vc.u32 %v5981_v49, %v5976_v46  ;;  %vm3970_vm8 = vcmp.lt.s32.totalorder %v3969_v28, 0  ;;  %v6010_v35 = vadd.f32 %v5538_v62, %v5483_v53 }
 0x288   :  { %v3245_v5 = vsel %vm3243_vm12, %v3244_v29, %v5977_v39  ;;  %v1329_v1 = vsub.s32 32, %v1328_v12  ;;  %v3916_v41 = vmin.u32 %v1588_v37, %v5963_v33  ;;  %v1331_v42 = vshll.u32 %v7930_v59, %v1328_v12 }
 0x289   :  { %v3246_v54 = vadd.s32 %v3245_v5, %v3241_v61  ;;  %v1334_v55 = vshll.u32 %v7937_v52, %v1328_v12  ;;  %v1337_v23 = vshll.u32 %v7938_v38, %v1328_v12  ;;  %v1340_v58 = vshll.u32 %v7939_v21, %v1328_v12 }
 0x28a   :  { %v1332_v6 = vshrl.u32 %v7937_v52, %v1329_v1  ;;  %v1335_v7 = vshrl.u32 %v7938_v38, %v1329_v1  ;;  %v1292_v30 = vcvt.s32.f32 %v1285_v45  ;;  %v1321_v53 = vand.u32 8388607, %v7865_v11 }
 0x28b   :  { %v3247_v25 = vadd.s32 536870912, %v3246_v54  ;;  %v1327_v62 = vshrl.u32 %v1326_v51, 5  ;;  %v2945_v39 = vsel %vm3970_vm8, 0, %v3969_v28  ;;  %v1338_v57 = vshrl.u32 %v7939_v21, %v1329_v1 }
 0x28c   :  { %v1341_v4 = vshrl.u32 %v7940_v40, %v1329_v1  ;;  %v2981_v24 = vand.u32 2139095040, %v6010_v35  ;;  %v1590_v26 = vclz %v3916_v41  ;;  %v1333_v3 = vor.u32 %v1332_v6, %v1331_v42 }
 0x28d   :  { %v6027_v27 = vshrl.u32 %v3247_v25, 30  ;;  %v1343_v37 = vshll.u32 %v7940_v40, %v1328_v12  ;;  %v1336_v29 = vor.u32 %v1335_v7, %v1334_v55  ;;  %v1339_v45 = vor.u32 %v1338_v57, %v1337_v23 }
 0x28e   :  { %v1342_v61 = vor.u32 %v1341_v4, %v1340_v58  ;;  %v1344_v51 = vshrl.u32 %v7927_v8, %v1329_v1  ;;  %v2950_v5 = vsub.s32 4294967266, %v2945_v39  ;;  %v1322_v11 = vor.u32 8388608, %v1321_v53 }
 0x28f   :  { %8013 = vst [vmem:[#allocation67_spill] sm:$0xff] %v6027_v27  ;;  %v3249_v28 = vshll.u32 %v6027_v27, 30  ;;  %vm1346_vm14 = vcmp.lt.s32.totalorder %v1327_v62, 1  ;;  %vm1348_vm2 = vcmp.lt.s32.totalorder %v1327_v62, 3  ;;  %vm1349_vm12 = vcmp.lt.s32.totalorder %v1327_v62, 4 }
 0x290   :  { %v1345_v34 = vor.u32 %v1344_v51, %v1343_v37  ;;  %v2982_v47 = vshrl.u32 %v2981_v24, 23  ;;  %v6032_v41 = vmul.f32 %v1292_v30, %v1290_v9  ;;  %v3917_v25 = vadd.s32 4294967294, %v1590_v26 }
 0x291   :  { %v1330_v42 = vshrl.u32 %v7930_v59, %v1329_v1  ;;  %vm1347_vm8 = vcmp.lt.s32.totalorder %v1327_v62, 2  ;;  %v2946_v12 = vsub.s32 32, %v2945_v39  ;;  %v1351_v55 = vsel %vm1349_vm12, %v1339_v45, 2102212464  ;;  %v6067_v62 = vld [vmem:[%s7747_s2] ss:$0 sm:$0xff] }
 0x292   :  { %v1354_v6 = vsel %vm1346_vm14, %v1333_v3, %v1336_v29  ;;  %v1355_v7 = vsel %vm1349_vm12, %v1342_v61, 920167782  ;;  %v2951_v23 = vadd.s32 127, %v2950_v5  ;;  %v6036_v58 = vsub.s32 %v3246_v54, %v3249_v28 }
 0x293   :  { %v1356_v53 = vsel %vm1348_vm2, %v1339_v45, %v1355_v7  ;;  %v1358_v57 = vsel %vm1346_vm14, %v1336_v29, %v1339_v45  ;;  %v1359_v9 = vsel %vm1349_vm12, %v1345_v34, 1326507024  ;;  %v1362_v30 = vshll.u32 %v1322_v11, 8 }
 0x294   :  { %v1357_v4 = vsel %vm1347_vm8, %v1354_v6, %v1356_v53  ;;  %v3971_v24 = vadd.s32 4294967169, %v2982_v47  ;;  %vm3918_vm0 = vcmp.lt.s32.totalorder %v3917_v25, 0  ;;  %v1350_v1 = vsel %vm1346_vm14, %v1330_v42, %v1333_v3 }
 0x295   :  { %v1352_v26 = vsel %vm1348_vm2, %v1336_v29, %v1351_v55  ;;  %v1360_v37 = vsel %vm1348_vm2, %v1342_v61, %v1359_v9  ;;  %v6045_v54 = vmul.u32.u64.low %v1362_v30, %v1357_v4  ;;  %v6046_v5 = vmul.u32.u64.high %v1362_v30, %v1357_v4, %v6045_v54 }
 0x296   :  { %v1361_v51 = vsel %vm1347_vm8, %v1358_v57, %v1360_v37  ;;  %v2988_v28 = vadd.s32 1, %v3971_v24  ;;  %v2948_v45 = vshrl.u32 %v6001_v50, %v2946_v12  ;;  %v3252_v34 = vsub.s32 0, %v6036_v58 }
 0x297   :  { %v6051_v11 = vmul.u32.u64.low %v1362_v30, %v1361_v51  ;;  %v6052_v47 = vmul.u32.u64.high %v1362_v30, %v1361_v51, %v6051_v11  ;;  %v2952_v42 = vshll.u32 %v2951_v23, 23  ;;  %v1353_v29 = vsel %vm1347_vm8, %v1350_v1, %v1352_v26 }
 0x298   :  { %vm2989_vm14 = vcmp.gt.s32.totalorder %v2988_v28, 0  ;;  %v2947_v61 = vshll.u32 %v5921_v18, %v2945_v39  ;;  %v6058_v55 = vsel %vm3918_vm0, 0, %v3917_v25  ;;  %v7869_v6 = vand.u32 2147483647, %v6010_v35 }
 0x299   :  { %v2990_v7 = vsel %vm2989_vm14, %v2988_v28, 0  ;;  %v1578_v50 = vadd.s32 %v5905_v56, %v5903_v19  ;;  %v1372_v12 = vadd.s32 1, %v6046_v5  ;;  %v6071_v18 = vadd.f32 %v6067_v62, %v5582_v32 }
 0x29a   :  { %v2992_v53 = vand.u32 31, %v2990_v7  ;;  %v6073_v39 = vor.u32 %v2948_v45, %v2947_v61  ;;  %v3980_v25 = vmin.u32 %v3252_v34, %v6036_v58  ;;  %v1369_v23 = vmul.u32 %v1362_v30, %v1353_v29 }
 0x29b   :  { %vm1371_vm0 = vc.u32 %v6052_v47, %v6045_v54  ;;  %v6078_v19 = vor.u32 4788187, %v2952_v42  ;;  %v1598_v56 = vsub.s32 4294967266, %v6058_v55  ;;  %v2985_v32 = vand.u32 8388607, %v7869_v6 }
 0x29c   :  { %v1373_v57 = vsel %vm1371_vm0, %v1372_v12, %v6046_v5  ;;  %v2993_v4 = vsub.s32 32, %v2992_v53  ;;  %v2995_v24 = vshll.u32 %v7930_v59, %v2992_v53  ;;  %v1594_v30 = vsub.s32 32, %v6058_v55  ;;  %v6094_v12 = vpop.f32.mrb[15].mxu1 }
 0x29d   :  { %v1374_v9 = vadd.s32 %v1373_v57, %v1369_v23  ;;  %v2998_v37 = vshll.u32 %v7937_v52, %v2992_v53  ;;  %v3254_v28 = vclz %v3980_v25  ;;  %v2991_v5 = vshrl.u32 %v2990_v7, 5 }
 0x29e   :  { %v2996_v26 = vshrl.u32 %v7937_v52, %v2993_v4  ;;  %v2999_v51 = vshrl.u32 %v7938_v38, %v2993_v4  ;;  %v3001_v34 = vshll.u32 %v7938_v38, %v2992_v53  ;;  %v1599_v11 = vadd.s32 127, %v1598_v56 }
 0x29f   :  { %v1375_v45 = vadd.s32 536870912, %v1374_v9  ;;  %v3002_v42 = vshrl.u32 %v7939_v21, %v2993_v4  ;;  %v3004_v29 = vshll.u32 %v7939_v21, %v2992_v53  ;;  %v1837_v61 = vand.u32 2139095040, %v6071_v18 }
 0x2a0   :  { %v2986_v57 = vor.u32 8388608, %v2985_v32  ;;  %v2997_v6 = vor.u32 %v2996_v26, %v2995_v24  ;;  %v3005_v3 = vshrl.u32 %v7940_v40, %v2993_v4  ;;  %v3000_v25 = vor.u32 %v2999_v51, %v2998_v37 }
 0x2a1   :  { %v6096_v23 = vshrl.u32 %v1375_v45, 30  ;;  %v3003_v1 = vor.u32 %v3002_v42, %v3001_v34  ;;  %v3007_v7 = vshll.u32 %v7940_v40, %v2992_v53  ;;  %v3008_v56 = vshrl.u32 %v7927_v8, %v2993_v4 }
 0x2a2   :  { %v3981_v27 = vadd.s32 4294967294, %v3254_v28  ;;  %v3006_v43 = vor.u32 %v3005_v3, %v3004_v29  ;;  %vm3010_vm2 = vcmp.lt.s32.totalorder %v2991_v5, 1  ;;  %vm3012_vm12 = vcmp.lt.s32.totalorder %v2991_v5, 3 }
 0x2a3   :  { %v1377_v60 = vshll.u32 %v6096_v23, 30  ;;  %v3009_v63 = vor.u32 %v3008_v56, %v3007_v7  ;;  %vm3013_vm8 = vcmp.lt.s32.totalorder %v2991_v5, 4  ;;  %v1838_v45 = vshrl.u32 %v1837_v61, 23 }
 0x2a4   :  { %v1596_v15 = vshrl.u32 %v1578_v50, %v1594_v30  ;;  %v2994_v24 = vshrl.u32 %v7930_v59, %v2993_v4  ;;  %vm3011_vm14 = vcmp.lt.s32.totalorder %v2991_v5, 2  ;;  %v3015_v26 = vsel %vm3013_vm8, %v3003_v1, 2102212464 }
 0x2a5   :  { %v6102_v32 = vsub.s32 %v1374_v9, %v1377_v60  ;;  %v3018_v53 = vsel %vm3010_vm2, %v2997_v6, %v3000_v25  ;;  %v3019_v37 = vsel %vm3013_vm8, %v3006_v43, 920167782  ;;  %v3026_v51 = vshll.u32 %v2986_v57, 8 }
 0x2a6   :  { %v1600_v28 = vshll.u32 %v1599_v11, 23  ;;  %v3020_v34 = vsel %vm3012_vm12, %v3003_v1, %v3019_v37  ;;  %v3022_v42 = vsel %vm3010_vm2, %v3000_v25, %v3003_v1  ;;  %vm3982_vm0 = vcmp.lt.s32.totalorder %v3981_v27, 0 }
 0x2a7   :  { %v1380_v3 = vsub.s32 0, %v6102_v32  ;;  %v3021_v60 = vsel %vm3011_vm14, %v3018_v53, %v3020_v34  ;;  %v3023_v50 = vsel %vm3013_vm8, %v3009_v63, 1326507024  ;;  %v3927_v4 = vadd.s32 4294967169, %v1838_v45 }
 0x2a8   :  { %v3014_v30 = vsel %vm3010_vm2, %v2994_v24, %v2997_v6  ;;  %v3016_v29 = vsel %vm3012_vm12, %v3000_v25, %v3015_v26  ;;  %v3024_v11 = vsel %vm3012_vm12, %v3006_v43, %v3023_v50  ;;  %v1595_v56 = vshll.u32 %v5963_v33, %v6058_v55 }
 0x2a9   :  { %v3908_v9 = vmin.u32 %v1380_v3, %v6102_v32  ;;  %v3025_v61 = vsel %vm3011_vm14, %v3022_v42, %v3024_v11  ;;  %v6118_v57 = vmul.u32.u64.low %v3026_v51, %v3021_v60  ;;  %v6119_v7 = vmul.u32.u64.high %v3026_v51, %v3021_v60, %v6118_v57 }
 0x2aa   :  { %v1844_v1 = vadd.s32 1, %v3927_v4  ;;  %v6124_v63 = vor.u32 4788187, %v1600_v28  ;;  %v6126_v45 = vmul.u32.u64.low %v3026_v51, %v3025_v61  ;;  %v6127_v53 = vmul.u32.u64.high %v3026_v51, %v3025_v61, %v6126_v45 }
 0x2ab   :  { %v6129_v6 = vsel %vm3982_vm0, 0, %v3981_v27  ;;  %v3017_v25 = vsel %vm3011_vm14, %v3014_v30, %v3016_v29  ;;  %v8014_v43 = vand.u32 2147483647, %v6071_v18  ;;  %v2954_v26 = vand.u32 2147483647, %v6078_v19 }
 0x2ac   :  { %vm1845_vm2 = vcmp.gt.s32.totalorder %v1844_v1, 0  ;;  %v2956_v37 = vcvt.s32.f32 %v6073_v39  ;;  %v1382_v3 = vclz %v3908_v9  ;;  %v6136_v33 = vor.u32 %v1596_v15, %v1595_v56 }
 0x2ad   :  { %v1841_v24 = vand.u32 8388607, %v8014_v43  ;;  %v1846_v34 = vsel %vm1845_vm2, %v1844_v1, 0  ;;  %v3242_v55 = vadd.s32 %v5976_v46, %v5981_v49  ;;  %v3036_v27 = vadd.s32 1, %v6119_v7 }
 0x2ae   :  { %v1848_v28 = vand.u32 31, %v1846_v34  ;;  %v3258_v42 = vsub.s32 32, %v6129_v6  ;;  %v3033_v60 = vmul.u32 %v3026_v51, %v3017_v25  ;;  %vm3035_vm12 = vc.u32 %v6127_v53, %v6118_v57 }
 0x2af   :  { %v3262_v50 = vsub.s32 4294967266, %v6129_v6  ;;  %v3037_v4 = vsel %vm3035_vm12, %v3036_v27, %v6119_v7  ;;  %v1842_v15 = vor.u32 8388608, %v1841_v24  ;;  %v3259_v46 = vshll.u32 %v6036_v58, %v6129_v6 }
 0x2b0   :  { %v1849_v9 = vsub.s32 32, %v1848_v28  ;;  %v6151_v49 = vadd.s32 %v6045_v54, %v6052_v47  ;;  %v3909_v30 = vadd.s32 4294967294, %v1382_v3  ;;  %v3038_v29 = vadd.s32 %v3037_v4, %v3033_v60 }
 0x2b1   :  { %v1851_v51 = vshll.u32 %v7930_v59, %v1848_v28  ;;  %v1854_v61 = vshll.u32 %v7937_v52, %v1848_v28  ;;  %v3260_v7 = vshrl.u32 %v3242_v55, %v3258_v42  ;;  %v1847_v45 = vshrl.u32 %v1846_v34, 5 }
 0x2b2   :  { %v1852_v11 = vshrl.u32 %v7937_v52, %v1849_v9  ;;  %v1855_v1 = vshrl.u32 %v7938_v38, %v1849_v9  ;;  %v3039_v56 = vadd.s32 536870912, %v3038_v29  ;;  %v1857_v25 = vshll.u32 %v7938_v38, %v1848_v28 }
 0x2b3   :  { %v3263_v58 = vadd.s32 127, %v3262_v50  ;;  %v1858_v6 = vshrl.u32 %v7939_v21, %v1849_v9  ;;  %v1860_v54 = vshll.u32 %v7939_v21, %v1848_v28  ;;  %v6160_v47 = vshll.u32 %v1842_v15, 8 }
 0x2b4   :  { %vm3910_vm8 = vcmp.lt.s32.totalorder %v3909_v30, 0  ;;  %v6162_v43 = vshrl.u32 %v3039_v56, 30  ;;  %v1850_v24 = vshrl.u32 %v7930_v59, %v1849_v9  ;;  %v1861_v3 = vshrl.u32 %v7940_v40, %v1849_v9 }
 0x2b5   :  { %v1853_v27 = vor.u32 %v1852_v11, %v1851_v51  ;;  %v1856_v55 = vor.u32 %v1855_v1, %v1854_v61  ;;  %v1863_v34 = vshll.u32 %v7940_v40, %v1848_v28  ;;  %v1864_v42 = vshrl.u32 %v7927_v8, %v1849_v9 }
 0x2b6   :  { %8015 = vst [vmem:[#allocation68_spill] sm:$0xff] %v6162_v43  ;;  %v3041_v60 = vshll.u32 %v6162_v43, 30  ;;  %v1859_v50 = vor.u32 %v1858_v6, %v1857_v25  ;;  %v1862_v4 = vor.u32 %v1861_v3, %v1860_v54  ;;  %vm1866_vm14 = vcmp.lt.s32.totalorder %v1847_v45, 1 }
 0x2b7   :  { %v1865_v15 = vor.u32 %v1864_v42, %v1863_v34  ;;  %vm1868_vm0 = vcmp.lt.s32.totalorder %v1847_v45, 3  ;;  %vm1869_vm2 = vcmp.lt.s32.totalorder %v1847_v45, 4  ;;  %v6171_v56 = vadd.f32 %v6067_v62, %v5647_v0 }
 0x2b8   :  { %v1385_v5 = vsel %vm3910_vm8, 0, %v3909_v30  ;;  %v6174_v51 = vsub.s32 %v3038_v29, %v3041_v60  ;;  %vm1867_vm12 = vcmp.lt.s32.totalorder %v1847_v45, 2  ;;  %v1871_v28 = vsel %vm1869_vm2, %v1859_v50, 2102212464 }
 0x2b9   :  { %v1870_v9 = vsel %vm1866_vm14, %v1850_v24, %v1853_v27  ;;  %v1872_v11 = vsel %vm1868_vm0, %v1856_v55, %v1871_v28  ;;  %v1874_v61 = vsel %vm1866_vm14, %v1853_v27, %v1856_v55  ;;  %v1875_v1 = vsel %vm1869_vm2, %v1862_v4, 920167782 }
 0x2ba   :  { %v3264_v25 = vshll.u32 %v3263_v58, 23  ;;  %v1876_v6 = vsel %vm1868_vm0, %v1859_v50, %v1875_v1  ;;  %v1878_v54 = vsel %vm1866_vm14, %v1856_v55, %v1859_v50  ;;  %v7876_v0 = vand.u32 2147483647, %v6171_v56 }
 0x2bb   :  { %v1390_v3 = vsub.s32 4294967266, %v1385_v5  ;;  %v1877_v30 = vsel %vm1867_vm12, %v1874_v61, %v1876_v6  ;;  %v1879_v29 = vsel %vm1869_vm2, %v1865_v15, 1326507024  ;;  %v3501_v34 = vand.u32 2139095040, %v6171_v56 }
 0x2bc   :  { %vm7878_vm8 = vcmp.lt.s32.totalorder %v5633_v13, 0  ;;  %v1386_v24 = vsub.s32 32, %v1385_v5  ;;  %v3044_v27 = vsub.s32 0, %v6174_v51  ;;  %v1873_v42 = vsel %vm1867_vm12, %v1870_v9, %v1872_v11 }
 0x2bd   :  { %v1880_v58 = vsel %vm1868_vm0, %v1862_v4, %v1879_v29  ;;  %v6190_v60 = vmul.u32.u64.low %v6160_v47, %v1877_v30  ;;  %v6191_v50 = vmul.u32.u64.high %v6160_v47, %v1877_v30, %v6190_v60  ;;  %v3502_v28 = vshrl.u32 %v3501_v34, 23 }
 0x2be   :  { %v1881_v55 = vsel %vm1867_vm12, %v1878_v54, %v1880_v58  ;;  %v3265_v15 = vor.u32 4788187, %v3264_v25  ;;  %v6200_v6 = vadd.f32 %v6067_v62, %v5733_v17  ;;  %v1604_v9 = vcvt.s32.f32 %v6136_v33 }
 0x2bf   :  { %v6195_v61 = vmul.u32.u64.low %v6160_v47, %v1881_v55  ;;  %v6196_v1 = vmul.u32.u64.high %v6160_v47, %v1881_v55, %v6195_v61  ;;  %v3261_v4 = vor.u32 %v3260_v7, %v3259_v46  ;;  %v1391_v45 = vadd.s32 127, %v1390_v3 }
 0x2c0   :  { %v3991_v11 = vadd.s32 4294967169, %v3502_v28  ;;  %v1388_v54 = vshrl.u32 %v6151_v49, %v1386_v24  ;;  %v3972_v30 = vmin.u32 %v3044_v27, %v6174_v51  ;;  %v1889_v29 = vmul.u32 %v6160_v47, %v1873_v42 }
 0x2c1   :  { %v3505_v25 = vand.u32 8388607, %v7876_v0  ;;  %v6212_v17 = vmul.f32 %v2956_v37, %v2954_v26  ;;  %v8016_v33 = vand.u32 2147483647, %v6124_v63  ;;  %v1892_v7 = vadd.s32 1, %v6191_v50 }
 0x2c2   :  { %v3508_v49 = vadd.s32 1, %v3991_v11  ;;  %v3266_v3 = vand.u32 2147483647, %v3265_v15  ;;  %v1387_v34 = vshll.u32 %v6102_v32, %v1385_v5  ;;  %vm1891_vm14 = vc.u32 %v6196_v1, %v6190_v60 }
 0x2c3   :  { %v6216_v46 = vmul.f32 %v1604_v9, %v8016_v33  ;;  %v1629_v47 = vand.u32 2139095040, %v6200_v6  ;;  %v3268_v19 = vcvt.s32.f32 %v3261_v4  ;;  %v1392_v24 = vshll.u32 %v1391_v45, 23 }
 0x2c4   :  { %v1893_v39 = vsel %vm1891_vm14, %v1892_v7, %v6191_v50  ;;  %vm3509_vm0 = vcmp.gt.s32.totalorder %v3508_v49, 0  ;;  %v6224_v26 = vor.u32 %v1388_v54, %v1387_v34  ;;  %v3046_v63 = vclz %v3972_v30 }
 0x2c5   :  { %v1894_v37 = vadd.s32 %v1893_v39, %v1889_v29  ;;  %v3506_v27 = vor.u32 8388608, %v3505_v25  ;;  %v8017_v42 = vxor.u32 2147483648, %v6032_v41  ;;  %v3510_v55 = vsel %vm3509_vm0, %v3508_v49, 0 }
 0x2c6   :  { %v6235_v28 = vmul.f32 %v3268_v19, %v3266_v3  ;;  %v7877_v15 = vand.u32 2147483647, %v6200_v6  ;;  %v1630_v61 = vshrl.u32 %v1629_v47, 23  ;;  %v6238_v9 = vor.u32 4788187, %v1392_v24 }
 0x2c7   :  { %v6231_v32 = vsel %vm7878_vm8, %v8017_v42, %v6032_v41  ;;  %v1895_v50 = vadd.s32 536870912, %v1894_v37  ;;  %v3511_v4 = vshrl.u32 %v3510_v55, 5  ;;  %v3512_v45 = vand.u32 31, %v3510_v55 }
 0x2c8   :  { %8018 = vst [vmem:[#allocation69_spill] sm:$0xff] %v6231_v32  ;;  %v6242_v11 = vadd.f32 %v6067_v62, %v5793_v44  ;;  %v1396_v41 = vcvt.s32.f32 %v6224_v26  ;;  %v3973_v54 = vadd.s32 4294967294, %v3046_v63  ;;  %v6247_v29 = vshll.u32 %v3506_v27, 8 }
 0x2c9   :  { %v6245_v30 = vshrl.u32 %v1895_v50, 30  ;;  %v3513_v25 = vsub.s32 32, %v3512_v45  ;;  %v3515_v33 = vshll.u32 %v7930_v59, %v3512_v45  ;;  %v3518_v7 = vshll.u32 %v7937_v52, %v3512_v45 }
 0x2ca   :  { %v3521_v49 = vshll.u32 %v7938_v38, %v3512_v45  ;;  %v3524_v34 = vshll.u32 %v7939_v21, %v3512_v45  ;;  %v3919_v44 = vadd.s32 4294967169, %v1630_v61  ;;  %v1633_v47 = vand.u32 8388607, %v7877_v15 }
 0x2cb   :  { %8019 = vst [vmem:[#allocation70_spill] sm:$0xff] %v6245_v30  ;;  %v1897_v3 = vshll.u32 %v6245_v30, 30  ;;  %v3516_v19 = vshrl.u32 %v7937_v52, %v3513_v25  ;;  %v3519_v24 = vshrl.u32 %v7938_v38, %v3513_v25  ;;  %v3522_v39 = vshrl.u32 %v7939_v21, %v3513_v25 }
 0x2cc   :  { %vm3530_vm2 = vcmp.lt.s32.totalorder %v3511_v4, 1  ;;  %v3514_v63 = vshrl.u32 %v7930_v59, %v3513_v25  ;;  %v3525_v27 = vshrl.u32 %v7940_v40, %v3513_v25  ;;  %v3527_v42 = vshll.u32 %v7940_v40, %v3512_v45 }
 0x2cd   :  { %v6259_v26 = vsub.s32 %v1894_v37, %v1897_v3  ;;  %vm7892_vm12 = vcmp.lt.s32.totalorder %v5702_v20, 0  ;;  %vm1524_vm14 = vcmp.lt.s32.totalorder %v5785_v14, 0  ;;  %v3517_v55 = vor.u32 %v3516_v19, %v3515_v33 }
 0x2ce   :  { %v3520_v50 = vor.u32 %v3519_v24, %v3518_v7  ;;  %v3523_v61 = vor.u32 %v3522_v39, %v3521_v49  ;;  %v3528_v0 = vshrl.u32 %v7927_v8, %v3513_v25  ;;  %vm3974_vm0 = vcmp.lt.s32.totalorder %v3973_v54, 0 }
 0x2cf   :  { %v1900_v15 = vsub.s32 0, %v6259_v26  ;;  %v3526_v37 = vor.u32 %v3525_v27, %v3524_v34  ;;  %v1636_v3 = vadd.s32 1, %v3919_v44  ;;  %vm3531_vm8 = vcmp.lt.s32.totalorder %v3511_v4, 2 }
 0x2d0   :  { %v3529_v58 = vor.u32 %v3528_v0, %v3527_v42  ;;  %vm3532_vm10 = vcmp.lt.s32.totalorder %v3511_v4, 3  ;;  %vm3533_vm13 = vcmp.lt.s32.totalorder %v3511_v4, 4  ;;  %v3534_v5 = vsel %vm3530_vm2, %v3514_v63, %v3517_v55 }
 0x2d1   :  { %v3928_v45 = vmin.u32 %v1900_v15, %v6259_v26  ;;  %v3535_v30 = vsel %vm3533_vm13, %v3523_v61, 2102212464  ;;  %v3538_v33 = vsel %vm3530_vm2, %v3517_v55, %v3520_v50  ;;  %v3539_v49 = vsel %vm3533_vm13, %v3526_v37, 920167782 }
 0x2d2   :  { %v3536_v7 = vsel %vm3532_vm10, %v3520_v50, %v3535_v30  ;;  %v3542_v25 = vsel %vm3530_vm2, %v3520_v50, %v3523_v61  ;;  %v3543_v19 = vsel %vm3533_vm13, %v3529_v58, 1326507024  ;;  %v1394_v24 = vand.u32 2147483647, %v6238_v9 }
 0x2d3   :  { %v6274_v34 = vsel %vm3974_vm0, 0, %v3973_v54  ;;  %v3540_v0 = vsel %vm3532_vm10, %v3523_v61, %v3539_v49  ;;  %v1634_v44 = vor.u32 8388608, %v1633_v47  ;;  %v3544_v15 = vsel %vm3532_vm10, %v3526_v37, %v3543_v19 }
 0x2d4   :  { %v3541_v39 = vsel %vm3531_vm8, %v3538_v33, %v3540_v0  ;;  %vm1637_vm15 = vcmp.gt.s32.totalorder %v1636_v3, 0  ;;  %v3293_v63 = vand.u32 2139095040, %v6242_v11  ;;  %v3537_v27 = vsel %vm3531_vm8, %v3534_v5, %v3536_v7 }
 0x2d5   :  { %v3545_v30 = vsel %vm3531_vm8, %v3542_v25, %v3544_v15  ;;  %v6281_v42 = vmul.u32.u64.low %v6247_v29, %v3541_v39  ;;  %v6282_v58 = vmul.u32.u64.high %v6247_v29, %v3541_v39, %v6281_v42  ;;  %v1902_v9 = vclz %v3928_v45 }
 0x2d6   :  { %v6286_v54 = vmul.u32.u64.low %v6247_v29, %v3545_v30  ;;  %v6287_v55 = vmul.u32.u64.high %v6247_v29, %v3545_v30, %v6286_v54  ;;  %v1638_v47 = vsel %vm1637_vm15, %v1636_v3, 0  ;;  %v8020_v50 = vxor.u32 2147483648, %v6212_v17 }
 0x2d7   :  { %v8022_v5 = vxor.u32 2147483648, %v6216_v46  ;;  %v3050_v37 = vsub.s32 32, %v6274_v34  ;;  %v1640_v45 = vand.u32 31, %v1638_v47  ;;  %v6305_v3 = vmul.f32 %v1396_v41, %v1394_v24 }
 0x2d8   :  { %v6294_v61 = vsel %vm7892_vm12, %v8020_v50, %v6212_v17  ;;  %v3034_v7 = vadd.s32 %v6118_v57, %v6127_v53  ;;  %v3553_v17 = vmul.u32 %v6247_v29, %v3537_v27  ;;  %v3054_v49 = vsub.s32 4294967266, %v6274_v34 }
 0x2d9   :  { %8021 = vst [vmem:[#allocation71_spill] sm:$0xff] %v6294_v61  ;;  %v6301_v4 = vsel %vm1524_vm14, %v8022_v5, %v6216_v46  ;;  %v3556_v25 = vadd.s32 1, %v6282_v58  ;;  %v3294_v46 = vshrl.u32 %v3293_v63, 23  ;;  %v3929_v0 = vadd.s32 4294967294, %v1902_v9 }
 0x2da   :  { %vm3555_vm15 = vc.u32 %v6287_v55, %v6281_v42  ;;  %v1641_v39 = vsub.s32 32, %v1640_v45  ;;  %v6315_v15 = vshll.u32 %v1634_v44, 8  ;;  %v3052_v41 = vshrl.u32 %v3034_v7, %v3050_v37 }
 0x2db   :  { %v3557_v24 = vsel %vm3555_vm15, %v3556_v25, %v6282_v58  ;;  %v1643_v57 = vshll.u32 %v7930_v59, %v1640_v45  ;;  %v1646_v53 = vshll.u32 %v7937_v52, %v1640_v45  ;;  %v1639_v27 = vshrl.u32 %v1638_v47, 5 }
 0x2dc   :  { %v3558_v29 = vadd.s32 %v3557_v24, %v3553_v17  ;;  %v1644_v30 = vshrl.u32 %v7937_v52, %v1641_v39  ;;  %v1647_v63 = vshrl.u32 %v7938_v38, %v1641_v39  ;;  %v3055_v9 = vadd.s32 127, %v3054_v49 }
 0x2dd   :  { %v1649_v54 = vshll.u32 %v7938_v38, %v1640_v45  ;;  %v1650_v50 = vshrl.u32 %v7939_v21, %v1641_v39  ;;  %v3983_v44 = vadd.s32 4294967169, %v3294_v46  ;;  %vm3930_vm13 = vcmp.lt.s32.totalorder %v3929_v0, 0 }
 0x2de   :  { %v3559_v5 = vadd.s32 536870912, %v3558_v29  ;;  %v1642_v58 = vshrl.u32 %v7930_v59, %v1641_v39  ;;  %v1652_v37 = vshll.u32 %v7939_v21, %v1640_v45  ;;  %v1645_v7 = vor.u32 %v1644_v30, %v1643_v57 }
 0x2df   :  { %v1648_v25 = vor.u32 %v1647_v63, %v1646_v53  ;;  %v1651_v17 = vor.u32 %v1650_v50, %v1649_v54  ;;  %v1653_v47 = vshrl.u32 %v7940_v40, %v1641_v39  ;;  %v1655_v49 = vshll.u32 %v7940_v40, %v1640_v45 }
 0x2e0   :  { %v6327_v24 = vshrl.u32 %v3559_v5, 30  ;;  %v1656_v33 = vshrl.u32 %v7927_v8, %v1641_v39  ;;  %vm1658_vm10 = vcmp.lt.s32.totalorder %v1639_v27, 1  ;;  %v6331_v19 = vsel %vm3930_vm13, 0, %v3929_v0 }
 0x2e1   :  { %v1654_v46 = vor.u32 %v1653_v47, %v1652_v37  ;;  %vm1660_vm8 = vcmp.lt.s32.totalorder %v1639_v27, 3  ;;  %v3300_v61 = vadd.s32 1, %v3983_v44  ;;  %vm1659_vm2 = vcmp.lt.s32.totalorder %v1639_v27, 2 }
 0x2e2   :  { %8023 = vst [vmem:[#allocation72_spill] sm:$0xff] %v6327_v24  ;;  %v3561_v20 = vshll.u32 %v6327_v24, 30  ;;  %v1657_v43 = vor.u32 %v1656_v33, %v1655_v49  ;;  %vm1661_vm0 = vcmp.lt.s32.totalorder %v1639_v27, 4  ;;  %v1662_v57 = vsel %vm1658_vm10, %v1642_v58, %v1645_v7 }
 0x2e3   :  { %v1663_v53 = vsel %vm1661_vm0, %v1651_v17, 2102212464  ;;  %v1666_v30 = vsel %vm1658_vm10, %v1645_v7, %v1648_v25  ;;  %v1667_v63 = vsel %vm1661_vm0, %v1654_v46, 920167782  ;;  %v1670_v54 = vsel %vm1658_vm10, %v1648_v25, %v1651_v17 }
 0x2e4   :  { %v6336_v45 = vsub.s32 %v3558_v29, %v3561_v20  ;;  %v1664_v39 = vsel %vm1660_vm8, %v1648_v25, %v1663_v53  ;;  %v1668_v0 = vsel %vm1660_vm8, %v1651_v17, %v1667_v63  ;;  %v3056_v50 = vshll.u32 %v3055_v9, 23 }
 0x2e5   :  { %v1669_v44 = vsel %vm1659_vm2, %v1666_v30, %v1668_v0  ;;  %v1671_v33 = vsel %vm1661_vm0, %v1657_v43, 1326507024  ;;  %v8024_v5 = vand.u32 2147483647, %v6242_v11  ;;  %v1910_v58 = vsub.s32 4294967266, %v6331_v19 }
 0x2e6   :  { %v1672_v7 = vsel %vm1660_vm8, %v1654_v46, %v1671_v33  ;;  %v6347_v20 = vmul.u32.u64.low %v6315_v15, %v1669_v44  ;;  %v6348_v29 = vmul.u32.u64.high %v6315_v15, %v1669_v44, %v6347_v20  ;;  %v3564_v47 = vsub.s32 0, %v6336_v45 }
 0x2e7   :  { %v3297_v37 = vand.u32 8388607, %v8024_v5  ;;  %v1665_v25 = vsel %vm1659_vm2, %v1662_v57, %v1664_v39  ;;  %v1673_v9 = vsel %vm1659_vm2, %v1670_v54, %v1672_v7  ;;  %vm3301_vm15 = vcmp.gt.s32.totalorder %v3300_v61, 0 }
 0x2e8   :  { %v3051_v43 = vshll.u32 %v6174_v51, %v6274_v34  ;;  %v6357_v17 = vmul.u32.u64.low %v6315_v15, %v1673_v9  ;;  %v6358_v49 = vmul.u32.u64.high %v6315_v15, %v1673_v9, %v6357_v17  ;;  %v3302_v46 = vsel %vm3301_vm15, %v3300_v61, 0 }
 0x2e9   :  { %v1890_v30 = vadd.s32 %v6190_v60, %v6196_v1  ;;  %v3304_v63 = vand.u32 31, %v3302_v46  ;;  %v6365_v57 = vadd.f32 %v6067_v62, %v5871_v31  ;;  %v6369_v39 = vor.u32 4788187, %v3056_v50 }
 0x2ea   :  { %v6367_v27 = vor.u32 %v3052_v41, %v3051_v43  ;;  %v1681_v51 = vmul.u32 %v6315_v15, %v1665_v25  ;;  %v1684_v34 = vadd.s32 1, %v6348_v29  ;;  %v1911_v0 = vadd.s32 127, %v1910_v58 }
 0x2eb   :  { %v3992_v61 = vmin.u32 %v3564_v47, %v6336_v45  ;;  %v3298_v54 = vor.u32 8388608, %v3297_v37  ;;  %v3305_v44 = vsub.s32 32, %v3304_v63  ;;  %vm1683_vm13 = vc.u32 %v6358_v49, %v6347_v20 }
 0x2ec   :  { %v3303_v60 = vshrl.u32 %v3302_v46, 5  ;;  %v3307_v31 = vshll.u32 %v7930_v59, %v3304_v63  ;;  %v3310_v1 = vshll.u32 %v7937_v52, %v3304_v63  ;;  %v1685_v41 = vsel %vm1683_vm13, %v1684_v34, %v6348_v29 }
 0x2ed   :  { %v3308_v50 = vshrl.u32 %v7937_v52, %v3305_v44  ;;  %v3311_v15 = vshrl.u32 %v7938_v38, %v3305_v44  ;;  %v3316_v33 = vshll.u32 %v7939_v21, %v3304_v63  ;;  %v1686_v5 = vadd.s32 %v1685_v41, %v1681_v51 }
 0x2ee   :  { %v3313_v37 = vshll.u32 %v7938_v38, %v3304_v63  ;;  %v3314_v58 = vshrl.u32 %v7939_v21, %v3305_v44  ;;  %v3317_v7 = vshrl.u32 %v7940_v40, %v3305_v44  ;;  %v3058_v47 = vand.u32 2147483647, %v6369_v39 }
 0x2ef   :  { %v1906_v25 = vsub.s32 32, %v6331_v19  ;;  %v3566_v9 = vclz %v3992_v61  ;;  %v3319_v29 = vshll.u32 %v7940_v40, %v3304_v63  ;;  %v1907_v43 = vshll.u32 %v6259_v26, %v6331_v19 }
 0x2f0   :  { %v1912_v17 = vshll.u32 %v1911_v0, 23  ;;  %v1687_v46 = vadd.s32 536870912, %v1686_v5  ;;  %v3306_v51 = vshrl.u32 %v7930_v59, %v3305_v44  ;;  %v3309_v34 = vor.u32 %v3308_v50, %v3307_v31 }
 0x2f1   :  { %v3312_v41 = vor.u32 %v3311_v15, %v3310_v1  ;;  %v3318_v53 = vor.u32 %v3317_v7, %v3316_v33  ;;  %v3320_v24 = vshrl.u32 %v7927_v8, %v3305_v44  ;;  %v3315_v39 = vor.u32 %v3314_v58, %v3313_v37 }
 0x2f2   :  { %v6392_v32 = vshrl.u32 %v1687_v46, 30  ;;  %vm3322_vm10 = vcmp.lt.s32.totalorder %v3303_v60, 1  ;;  %v3338_v13 = vshll.u32 %v3298_v54, 8  ;;  %vm7895_vm8 = vcmp.lt.s32.totalorder %v5847_v48, 0 }
 0x2f3   :  { %vm7894_vm2 = vcmp.lt.s32.totalorder %v5863_v2, 0  ;;  %v3993_v63 = vadd.s32 4294967294, %v3566_v9  ;;  %v3321_v26 = vor.u32 %v3320_v24, %v3319_v29  ;;  %vm3325_vm0 = vcmp.lt.s32.totalorder %v3303_v60, 4 }
 0x2f4   :  { %8025 = vst [vmem:[#allocation73_spill] sm:$0xff] %v6392_v32  ;;  %v1941_v19 = vand.u32 2139095040, %v6365_v57  ;;  %v1689_v0 = vshll.u32 %v6392_v32, 30  ;;  %vm3323_vm15 = vcmp.lt.s32.totalorder %v3303_v60, 2  ;;  %vm3324_vm13 = vcmp.lt.s32.totalorder %v3303_v60, 3 }
 0x2f5   :  { %v3327_v61 = vsel %vm3325_vm0, %v3315_v39, 2102212464  ;;  %v3326_v44 = vsel %vm3322_vm10, %v3306_v51, %v3309_v34  ;;  %v3330_v54 = vsel %vm3322_vm10, %v3309_v34, %v3312_v41  ;;  %v3331_v1 = vsel %vm3325_vm0, %v3318_v53, 920167782 }
 0x2f6   :  { %v3328_v31 = vsel %vm3324_vm13, %v3312_v41, %v3327_v61  ;;  %v1908_v50 = vshrl.u32 %v1890_v30, %v1906_v25  ;;  %v1913_v15 = vor.u32 4788187, %v1912_v17  ;;  %v6403_v24 = vsub.s32 %v1686_v5, %v1689_v0 }
 0x2f7   :  { %v3334_v33 = vsel %vm3322_vm10, %v3312_v41, %v3315_v39  ;;  %vm3994_vm12 = vcmp.lt.s32.totalorder %v3993_v63, 0  ;;  %v3332_v37 = vsel %vm3324_vm13, %v3315_v39, %v3331_v1  ;;  %v3335_v58 = vsel %vm3325_vm0, %v3321_v26, 1326507024 }
 0x2f8   :  { %v1942_v7 = vshrl.u32 %v1941_v19, 23  ;;  %v1692_v9 = vsub.s32 0, %v6403_v24  ;;  %v3329_v29 = vsel %vm3323_vm15, %v3326_v44, %v3328_v31  ;;  %v3333_v46 = vsel %vm3323_vm15, %v3330_v54, %v3332_v37 }
 0x2f9   :  { %v3336_v51 = vsel %vm3324_vm13, %v3318_v53, %v3335_v58  ;;  %v6413_v5 = vmul.u32.u64.low %v3338_v13, %v3333_v46  ;;  %v6414_v25 = vmul.u32.u64.high %v3338_v13, %v3333_v46, %v6413_v5  ;;  %v3060_v34 = vcvt.s32.f32 %v6367_v27 }
 0x2fa   :  { %v3337_v30 = vsel %vm3323_vm15, %v3334_v33, %v3336_v51  ;;  %v3931_v17 = vadd.s32 4294967169, %v1942_v7  ;;  %v6423_v26 = vadd.f32 %v6067_v62, %v5944_v10  ;;  %v1909_v19 = vor.u32 %v1908_v50, %v1907_v43 }
 0x2fb   :  { %v6418_v41 = vmul.u32.u64.low %v3338_v13, %v3337_v30  ;;  %v6419_v39 = vmul.u32.u64.high %v3338_v13, %v3337_v30, %v6418_v41  ;;  %v6425_v0 = vsel %vm3994_vm12, 0, %v3993_v63  ;;  %v7893_v53 = vand.u32 2147483647, %v6365_v57 }
 0x2fc   :  { %8026 = vst [vmem:[#allocation74_spill] sm:$0xff] %v6423_v26  ;;  %v1948_v60 = vadd.s32 1, %v3931_v17  ;;  %v8027_v61 = vxor.u32 2147483648, %v6235_v28  ;;  %v8028_v27 = vxor.u32 2147483648, %v6305_v3  ;;  %v3920_v43 = vmin.u32 %v1692_v9, %v6403_v24 }
 0x2fd   :  { %v3345_v63 = vmul.u32 %v3338_v13, %v3329_v29  ;;  %v6443_v31 = vmul.f32 %v3060_v34, %v3058_v47  ;;  %v1914_v54 = vand.u32 2147483647, %v1913_v15  ;;  %v3348_v1 = vadd.s32 1, %v6414_v25 }
 0x2fe   :  { %v6433_v44 = vsel %vm7895_vm8, %v8027_v61, %v6235_v28  ;;  %v6440_v10 = vsel %vm7894_vm2, %v8028_v27, %v6305_v3  ;;  %vm1949_vm12 = vcmp.gt.s32.totalorder %v1948_v60, 0  ;;  %v3570_v50 = vsub.s32 32, %v6425_v0 }
 0x2ff   :  { %v3574_v28 = vsub.s32 4294967266, %v6425_v0  ;;  %vm3347_vm10 = vc.u32 %v6419_v39, %v6413_v5  ;;  %v3605_v33 = vand.u32 2139095040, %v6423_v26  ;;  %v1916_v3 = vcvt.s32.f32 %v1909_v19 }
 0x300   :  { %v3349_v37 = vsel %vm3347_vm10, %v3348_v1, %v6414_v25  ;;  %v1945_v13 = vand.u32 8388607, %v7893_v53  ;;  %v1950_v47 = vsel %vm1949_vm12, %v1948_v60, 0  ;;  %v3554_v15 = vadd.s32 %v6281_v42, %v6287_v55 }
 0x301   :  { %v1694_v58 = vclz %v3920_v43  ;;  %v3350_v7 = vadd.s32 %v3349_v37, %v3345_v63  ;;  %v1952_v9 = vand.u32 31, %v1950_v47  ;;  %v6457_v46 = vmul.f32 %v1916_v3, %v1914_v54 }
 0x302   :  { %v3571_v51 = vshll.u32 %v6336_v45, %v6425_v0  ;;  %v7896_v30 = vand.u32 2147483647, %v6423_v26  ;;  %v3572_v25 = vshrl.u32 %v3554_v15, %v3570_v50  ;;  %v3575_v17 = vadd.s32 127, %v3574_v28 }
 0x303   :  { %v3351_v34 = vadd.s32 536870912, %v3350_v7  ;;  %v3606_v41 = vshrl.u32 %v3605_v33, 23  ;;  %v1946_v19 = vor.u32 8388608, %v1945_v13  ;;  %v1953_v60 = vsub.s32 32, %v1952_v9 }
 0x304   :  { %v1955_v42 = vshll.u32 %v7930_v59, %v1952_v9  ;;  %v1958_v55 = vshll.u32 %v7937_v52, %v1952_v9  ;;  %v3921_v61 = vadd.s32 4294967294, %v1694_v58  ;;  %v1961_v43 = vshll.u32 %v7938_v38, %v1952_v9 }
 0x305   :  { %v6464_v27 = vshrl.u32 %v3351_v34, 30  ;;  %v1964_v63 = vshll.u32 %v7939_v21, %v1952_v9  ;;  %v1951_v45 = vshrl.u32 %v1950_v47, 5  ;;  %v1956_v0 = vshrl.u32 %v7937_v52, %v1953_v60 }
 0x306   :  { %v1959_v54 = vshrl.u32 %v7938_v38, %v1953_v60  ;;  %v1962_v1 = vshrl.u32 %v7939_v21, %v1953_v60  ;;  %v3576_v50 = vshll.u32 %v3575_v17, 23  ;;  %v1965_v33 = vshrl.u32 %v7940_v40, %v1953_v60 }
 0x307   :  { %8029 = vst [vmem:[#allocation75_spill] sm:$0xff] %v6464_v27  ;;  %v3353_v28 = vshll.u32 %v6464_v27, 30  ;;  %v3995_v3 = vadd.s32 4294967169, %v3606_v41  ;;  %v1957_v37 = vor.u32 %v1956_v0, %v1955_v42  ;;  %v1967_v15 = vshll.u32 %v7940_v40, %v1952_v9 }
 0x308   :  { %v1960_v13 = vor.u32 %v1959_v54, %v1958_v55  ;;  %v6474_v58 = vshll.u32 %v1946_v19, 8  ;;  %vm7907_vm0 = vcmp.lt.s32.totalorder %v6010_v35, 0  ;;  %v1954_v34 = vshrl.u32 %v7930_v59, %v1953_v60 }
 0x309   :  { %v6477_v47 = vsub.s32 %v3350_v7, %v3353_v28  ;;  %v1963_v53 = vor.u32 %v1962_v1, %v1961_v43  ;;  %v1966_v29 = vor.u32 %v1965_v33, %v1964_v63  ;;  %vm3922_vm15 = vcmp.lt.s32.totalorder %v3921_v61, 0 }
 0x30a   :  { %v1968_v17 = vshrl.u32 %v7927_v8, %v1953_v60  ;;  %vm1970_vm13 = vcmp.lt.s32.totalorder %v1951_v45, 1  ;;  %vm1972_vm12 = vcmp.lt.s32.totalorder %v1951_v45, 3  ;;  %vm1971_vm10 = vcmp.lt.s32.totalorder %v1951_v45, 2 }
 0x30b   :  { %v3356_v41 = vsub.s32 0, %v6477_v47  ;;  %vm1973_vm2 = vcmp.lt.s32.totalorder %v1951_v45, 4  ;;  %v3612_v9 = vadd.s32 1, %v3995_v3  ;;  %v1978_v55 = vsel %vm1970_vm13, %v1957_v37, %v1960_v13 }
 0x30c   :  { %v1969_v19 = vor.u32 %v1968_v17, %v1967_v15  ;;  %v1975_v42 = vsel %vm1973_vm2, %v1963_v53, 2102212464  ;;  %v1979_v7 = vsel %vm1973_vm2, %v1966_v29, 920167782  ;;  %v1974_v43 = vsel %vm1970_vm13, %v1954_v34, %v1957_v37 }
 0x30d   :  { %v3984_v0 = vmin.u32 %v3356_v41, %v6477_v47  ;;  %v1980_v63 = vsel %vm1972_vm12, %v1963_v53, %v1979_v7  ;;  %v3609_v60 = vand.u32 8388607, %v7896_v30  ;;  %v1976_v54 = vsel %vm1972_vm12, %v1960_v13, %v1975_v42 }
 0x30e   :  { %v1981_v1 = vsel %vm1971_vm10, %v1978_v55, %v1980_v63  ;;  %v1982_v28 = vsel %vm1970_vm13, %v1960_v13, %v1963_v53  ;;  %v1983_v33 = vsel %vm1973_vm2, %v1969_v19, 1326507024  ;;  %v6491_v3 = vor.u32 %v3572_v25, %v3571_v51 }
 0x30f   :  { %v6493_v15 = vor.u32 4788187, %v3576_v50  ;;  %v6496_v17 = vsel %vm3922_vm15, 0, %v3921_v61  ;;  %v1984_v37 = vsel %vm1972_vm12, %v1966_v29, %v1983_v33  ;;  %vm3613_vm8 = vcmp.gt.s32.totalorder %v3612_v9, 0 }
 0x310   :  { %v1985_v34 = vsel %vm1971_vm10, %v1982_v28, %v1984_v37  ;;  %v6501_v41 = vmul.u32.u64.low %v6474_v58, %v1981_v1  ;;  %v6502_v7 = vmul.u32.u64.high %v6474_v58, %v1981_v1, %v6501_v41  ;;  %v1977_v53 = vsel %vm1971_vm10, %v1974_v43, %v1976_v54 }
 0x311   :  { %v6507_v51 = vmul.u32.u64.low %v6474_v58, %v1985_v34  ;;  %v6508_v25 = vmul.u32.u64.high %v6474_v58, %v1985_v34, %v6507_v51  ;;  %v3610_v50 = vor.u32 8388608, %v3609_v60  ;;  %v8030_v61 = vxor.u32 2147483648, %v6443_v31 }
 0x312   :  { %v1698_v13 = vsub.s32 32, %v6496_v17  ;;  %v3358_v19 = vclz %v3984_v0  ;;  %v3614_v42 = vsel %vm3613_vm8, %v3612_v9, 0  ;;  %v1682_v45 = vadd.s32 %v6347_v20, %v6358_v49 }
 0x313   :  { %v6515_v29 = vsel %vm7907_vm0, %v8030_v61, %v6443_v31  ;;  %v3616_v43 = vand.u32 31, %v3614_v42  ;;  %v6523_v63 = vadd.f32 %v6067_v62, %v6021_v22  ;;  %v1993_v31 = vmul.u32 %v6474_v58, %v1977_v53 }
 0x314   :  { %v1996_v1 = vadd.s32 1, %v6502_v7  ;;  %v1699_v9 = vshll.u32 %v6403_v24, %v6496_v17  ;;  %v1702_v0 = vsub.s32 4294967266, %v6496_v17  ;;  %v6532_v28 = vshll.u32 %v3610_v50, 8 }
 0x315   :  { %v1700_v49 = vshrl.u32 %v1682_v45, %v1698_v13  ;;  %v3985_v22 = vadd.s32 4294967294, %v3358_v19  ;;  %vm1995_vm8 = vc.u32 %v6508_v25, %v6501_v41  ;;  %v3617_v62 = vsub.s32 32, %v3616_v43 }
 0x316   :  { %v1997_v33 = vsel %vm1995_vm8, %v1996_v1, %v6502_v7  ;;  %v3619_v58 = vshll.u32 %v7930_v59, %v3616_v43  ;;  %v3622_v37 = vshll.u32 %v7937_v52, %v3616_v43  ;;  %v3625_v24 = vshll.u32 %v7938_v38, %v3616_v43 }
 0x317   :  { %v1998_v34 = vadd.s32 %v1997_v33, %v1993_v31  ;;  %v3615_v17 = vshrl.u32 %v3614_v42, 5  ;;  %v3620_v53 = vshrl.u32 %v7937_v52, %v3617_v62  ;;  %v3623_v51 = vshrl.u32 %v7938_v38, %v3617_v62 }
 0x318   :  { %v1703_v50 = vadd.s32 127, %v1702_v0  ;;  %v3626_v61 = vshrl.u32 %v7939_v21, %v3617_v62  ;;  %v3628_v13 = vshll.u32 %v7939_v21, %v3616_v43  ;;  %v1733_v19 = vand.u32 2139095040, %v6523_v63 }
 0x319   :  { %vm3986_vm2 = vcmp.lt.s32.totalorder %v3985_v22, 0  ;;  %v1999_v7 = vadd.s32 536870912, %v1998_v34  ;;  %v3618_v45 = vshrl.u32 %v7930_v59, %v3617_v62  ;;  %v3629_v1 = vshrl.u32 %v7940_v40, %v3617_v62 }
 0x31a   :  { %v3621_v30 = vor.u32 %v3620_v53, %v3619_v58  ;;  %v3624_v31 = vor.u32 %v3623_v51, %v3622_v37  ;;  %v3627_v42 = vor.u32 %v3626_v61, %v3625_v24  ;;  %v3631_v33 = vshll.u32 %v7940_v40, %v3616_v43 }
 0x31b   :  { %v6549_v55 = vshrl.u32 %v1999_v7, 30  ;;  %v3630_v0 = vor.u32 %v3629_v1, %v3628_v13  ;;  %v3632_v20 = vshrl.u32 %v7927_v8, %v3617_v62  ;;  %vm3634_vm15 = vcmp.lt.s32.totalorder %v3615_v17, 1 }
 0x31c   :  { %v1704_v54 = vshll.u32 %v1703_v50, 23  ;;  %v3361_v60 = vsel %vm3986_vm2, 0, %v3985_v22  ;;  %vm3636_vm13 = vcmp.lt.s32.totalorder %v3615_v17, 3  ;;  %vm3637_vm12 = vcmp.lt.s32.totalorder %v3615_v17, 4 }
 0x31d   :  { %v2001_v27 = vshll.u32 %v6549_v55, 30  ;;  %v3633_v32 = vor.u32 %v3632_v20, %v3631_v33  ;;  %vm3635_vm10 = vcmp.lt.s32.totalorder %v3615_v17, 2  ;;  %v3639_v58 = vsel %vm3637_vm12, %v3627_v42, 2102212464 }
 0x31e   :  { %vm7906_vm8 = vcmp.lt.s32.totalorder %v6071_v18, 0  ;;  %v3638_v43 = vsel %vm3634_vm15, %v3618_v45, %v3621_v30  ;;  %v3642_v37 = vsel %vm3634_vm15, %v3621_v30, %v3624_v31  ;;  %v3643_v24 = vsel %vm3637_vm12, %v3630_v0, 920167782 }
 0x31f   :  { %v1734_v62 = vshrl.u32 %v1733_v19, 23  ;;  %v6558_v53 = vsub.s32 %v1998_v34, %v2001_v27  ;;  %v3640_v22 = vsel %vm3636_vm13, %v3624_v31, %v3639_v58  ;;  %v3644_v51 = vsel %vm3636_vm13, %v3627_v42, %v3643_v24 }
 0x320   :  { %v3646_v20 = vsel %vm3634_vm15, %v3624_v31, %v3627_v42  ;;  %v1705_v50 = vor.u32 4788187, %v1704_v54  ;;  %v3366_v61 = vsub.s32 4294967266, %v3361_v60  ;;  %v3645_v13 = vsel %vm3635_vm10, %v3642_v37, %v3644_v51 }
 0x321   :  { %v3647_v7 = vsel %vm3637_vm12, %v3633_v32, 1326507024  ;;  %v2004_v45 = vsub.s32 0, %v6558_v53  ;;  %v6568_v19 = vmul.u32.u64.low %v6532_v28, %v3645_v13  ;;  %v6569_v27 = vmul.u32.u64.high %v6532_v28, %v3645_v13, %v6568_v19 }
 0x322   :  { %v3648_v30 = vsel %vm3636_vm13, %v3630_v0, %v3647_v7  ;;  %v1701_v34 = vor.u32 %v1700_v49, %v1699_v9  ;;  %v3641_v1 = vsel %vm3635_vm10, %v3638_v43, %v3640_v22  ;;  %v3923_v54 = vadd.s32 4294967169, %v1734_v62  ;;  %v4377_v22 = vld [vmem:[%s7747_s2] ss:$0 sm:$0xff] }
 0x323   :  { %v3649_v31 = vsel %vm3635_vm10, %v3646_v20, %v3648_v30  ;;  %v3362_v42 = vsub.s32 32, %v3361_v60  ;;  %v3932_v33 = vmin.u32 %v2004_v45, %v6558_v53  ;;  %v8031_v0 = vand.u32 2147483647, %v6493_v15 }
 0x324   :  { %v6576_v32 = vmul.u32.u64.low %v6532_v28, %v3649_v31  ;;  %v6577_v58 = vmul.u32.u64.high %v6532_v28, %v3649_v31, %v6576_v32  ;;  %v8032_v37 = vcvt.s32.f32 %v6491_v3  ;;  %v1706_v51 = vand.u32 2147483647, %v1705_v50 }
 0x325   :  { %v3346_v9 = vadd.s32 %v6413_v5, %v6419_v39  ;;  %v1740_v49 = vadd.s32 1, %v3923_v54  ;;  %v3367_v17 = vadd.s32 127, %v3366_v61  ;;  %v3657_v43 = vmul.u32 %v6532_v28, %v3641_v1 }
 0x326   :  { %v6583_v24 = vmul.f32 %v8032_v37, %v8031_v0  ;;  %v3660_v62 = vadd.s32 1, %v6569_v27  ;;  %v6593_v15 = vadd.f32 %v4377_v22, %v6094_v12  ;;  %v1708_v3 = vcvt.s32.f32 %v1701_v34 }
 0x327   :  { %v2006_v20 = vclz %v3932_v33  ;;  %v8033_v50 = vand.u32 2147483647, %v6523_v63  ;;  %vm1741_vm2 = vcmp.gt.s32.totalorder %v1740_v49, 0  ;;  %v8034_v5 = vxor.u32 2147483648, %v6457_v46 }
 0x328   :  { %v3364_v28 = vshrl.u32 %v3346_v9, %v3362_v42  ;;  %vm3659_vm15 = vc.u32 %v6577_v58, %v6568_v19  ;;  %v1742_v61 = vsel %vm1741_vm2, %v1740_v49, 0  ;;  %v6607_v7 = vmul.f32 %v1708_v3, %v1706_v51 }
 0x329   :  { %v1737_v13 = vand.u32 8388607, %v8033_v50  ;;  %v6602_v39 = vsel %vm7906_vm8, %v8034_v5, %v6457_v46  ;;  %v3661_v45 = vsel %vm3659_vm15, %v3660_v62, %v6569_v27  ;;  %v1744_v30 = vand.u32 31, %v1742_v61 }
 0x32a   :  { %8035 = vst [vmem:[#allocation76_spill] sm:$0xff] %v6602_v39  ;;  %v3363_v34 = vshll.u32 %v6477_v47, %v3361_v60  ;;  %v3368_v1 = vshll.u32 %v3367_v17, 23  ;;  %v3662_v31 = vadd.s32 %v3661_v45, %v3657_v43  ;;  %v3397_v54 = vand.u32 2139095040, %v6593_v15 }
 0x32b   :  { %v1994_v46 = vadd.s32 %v6501_v41, %v6508_v25  ;;  %v3933_v42 = vadd.s32 4294967294, %v2006_v20  ;;  %v1738_v33 = vor.u32 8388608, %v1737_v13  ;;  %v1745_v32 = vsub.s32 32, %v1744_v30 }
 0x32c   :  { %v6614_v0 = vor.u32 %v3364_v28, %v3363_v34  ;;  %v3663_v37 = vadd.s32 536870912, %v3662_v31  ;;  %v1747_v51 = vshll.u32 %v7930_v59, %v1744_v30  ;;  %v1750_v27 = vshll.u32 %v7937_v52, %v1744_v30 }
 0x32d   :  { %v1743_v9 = vshrl.u32 %v1742_v61, 5  ;;  %v1748_v47 = vshrl.u32 %v7937_v52, %v1745_v32  ;;  %v1751_v60 = vshrl.u32 %v7938_v38, %v1745_v32  ;;  %v1753_v49 = vshll.u32 %v7938_v38, %v1744_v30 }
 0x32e   :  { %v3369_v17 = vor.u32 4788187, %v3368_v1  ;;  %v6621_v43 = vshrl.u32 %v3663_v37, 30  ;;  %v1754_v41 = vshrl.u32 %v7939_v21, %v1745_v32  ;;  %v3398_v25 = vshrl.u32 %v3397_v54, 23 }
 0x32f   :  { %vm3934_vm13 = vcmp.lt.s32.totalorder %v3933_v42, 0  ;;  %v1746_v62 = vshrl.u32 %v7930_v59, %v1745_v32  ;;  %v1756_v22 = vshll.u32 %v7939_v21, %v1744_v30  ;;  %v1757_v3 = vshrl.u32 %v7940_v40, %v1745_v32 }
 0x330   :  { %8036 = vst [vmem:[#allocation77_spill] sm:$0xff] %v6621_v43  ;;  %v3665_v20 = vshll.u32 %v6621_v43, 30  ;;  %v1749_v50 = vor.u32 %v1748_v47, %v1747_v51  ;;  %v1752_v13 = vor.u32 %v1751_v60, %v1750_v27  ;;  %v1755_v5 = vor.u32 %v1754_v41, %v1753_v49 }
 0x331   :  { %v1758_v28 = vor.u32 %v1757_v3, %v1756_v22  ;;  %v1759_v61 = vshll.u32 %v7940_v40, %v1744_v30  ;;  %v1760_v45 = vshrl.u32 %v7927_v8, %v1745_v32  ;;  %vm1762_vm12 = vcmp.lt.s32.totalorder %v1743_v9, 1 }
 0x332   :  { %v2009_v34 = vsel %vm3934_vm13, 0, %v3933_v42  ;;  %v6630_v1 = vsub.s32 %v3662_v31, %v3665_v20  ;;  %v1778_v54 = vshll.u32 %v1738_v33, 8  ;;  %v3987_v37 = vadd.s32 4294967169, %v3398_v25  ;;  %v8037_v33 = vld [vmem:[#allocation5_spill] sm:$0xff] }
 0x333   :  { %v1761_v12 = vor.u32 %v1760_v45, %v1759_v61  ;;  %vm1763_vm10 = vcmp.lt.s32.totalorder %v1743_v9, 2  ;;  %vm1764_vm2 = vcmp.lt.s32.totalorder %v1743_v9, 3  ;;  %vm1765_vm15 = vcmp.lt.s32.totalorder %v1743_v9, 4 }
 0x334   :  { %v3668_v43 = vsub.s32 0, %v6630_v1  ;;  %v1766_v51 = vsel %vm1762_vm12, %v1746_v62, %v1749_v50  ;;  %v1767_v27 = vsel %vm1765_vm15, %v1755_v5, 2102212464  ;;  %v1770_v47 = vsel %vm1762_vm12, %v1749_v50, %v1752_v13 }
 0x335   :  { %v1768_v60 = vsel %vm1764_vm2, %v1752_v13, %v1767_v27  ;;  %v1771_v30 = vsel %vm1765_vm15, %v1758_v28, 920167782  ;;  %v1774_v49 = vsel %vm1762_vm12, %v1752_v13, %v1755_v5  ;;  %v1775_v32 = vsel %vm1765_vm15, %v1761_v12, 1326507024 }
 0x336   :  { %v2010_v41 = vsub.s32 32, %v2009_v34  ;;  %v1772_v31 = vsel %vm1764_vm2, %v1755_v5, %v1771_v30  ;;  %v7903_v42 = vand.u32 2147483647, %v6593_v15  ;;  %v2014_v22 = vsub.s32 4294967266, %v2009_v34 }
 0x337   :  { %v1773_v3 = vsel %vm1763_vm10, %v1770_v47, %v1772_v31  ;;  %v1776_v20 = vsel %vm1764_vm2, %v1758_v28, %v1775_v32  ;;  %v3404_v62 = vadd.s32 1, %v3987_v37  ;;  %v3370_v61 = vand.u32 2147483647, %v3369_v17 }
 0x338   :  { %v3996_v50 = vmin.u32 %v3668_v43, %v6630_v1  ;;  %v1769_v45 = vsel %vm1763_vm10, %v1766_v51, %v1768_v60  ;;  %v1777_v12 = vsel %vm1763_vm10, %v1774_v49, %v1776_v20  ;;  %v2012_v25 = vshrl.u32 %v1994_v46, %v2010_v41 }
 0x339   :  { %v6642_v13 = vmul.u32.u64.low %v1778_v54, %v1777_v12  ;;  %v6643_v27 = vmul.u32.u64.high %v1778_v54, %v1777_v12, %v6642_v13  ;;  %v6645_v5 = vmul.u32.u64.low %v1778_v54, %v1773_v3  ;;  %v6646_v30 = vmul.u32.u64.high %v1778_v54, %v1773_v3, %v6645_v5 }
 0x33a   :  { %v3401_v47 = vand.u32 8388607, %v7903_v42  ;;  %vm3405_vm13 = vcmp.gt.s32.totalorder %v3404_v62, 0  ;;  %v8038_v17 = vand.u32 2147483647, %v8037_v33  ;;  %v3372_v9 = vcvt.s32.f32 %v6614_v0 }
 0x33b   :  { %v6657_v37 = vadd.s32 127, %v2014_v22  ;;  %v3406_v51 = vsel %vm3405_vm13, %v3404_v62, 0  ;;  %v2011_v60 = vshll.u32 %v6558_v53, %v2009_v34  ;;  %v3670_v49 = vclz %v3996_v50  ;;  %v8040_v53 = vld [vmem:[#allocation14_spill] sm:$0xff] }
 0x33c   :  { %v6653_v28 = vand.u32 8388607, %v8038_v17  ;;  %v1785_v32 = vmul.u32 %v1778_v54, %v1769_v45  ;;  %v3408_v46 = vand.u32 31, %v3406_v51  ;;  %v6660_v41 = vmul.f32 %v3372_v9, %v3370_v61 }
 0x33d   :  { %v6664_v31 = vadd.s32 %v6568_v19, %v6577_v58  ;;  %vm1787_vm12 = vc.u32 %v6643_v27, %v6645_v5  ;;  %v1788_v3 = vadd.s32 1, %v6646_v30  ;;  %v6669_v0 = vor.u32 %v2012_v25, %v2011_v60 }
 0x33e   :  { %v3402_v22 = vor.u32 8388608, %v3401_v47  ;;  %v3409_v20 = vsub.s32 32, %v3408_v46  ;;  %v2016_v34 = vshll.u32 %v6657_v37, 23  ;;  %v3411_v62 = vshll.u32 %v7930_v59, %v3408_v46 }
 0x33f   :  { %v1789_v54 = vsel %vm1787_vm12, %v1788_v3, %v6646_v30  ;;  %v3414_v19 = vshll.u32 %v7937_v52, %v3408_v46  ;;  %v3997_v58 = vadd.s32 4294967294, %v3670_v49  ;;  %v3407_v50 = vshrl.u32 %v3406_v51, 5 }
 0x340   :  { %v1790_v61 = vadd.s32 %v1789_v54, %v1785_v32  ;;  %v3417_v45 = vshll.u32 %v7938_v38, %v3408_v46  ;;  %v3412_v25 = vshrl.u32 %v7937_v52, %v3409_v20  ;;  %v3415_v12 = vshrl.u32 %v7938_v38, %v3409_v20  ;;  %v8039_v32 = vld [vmem:[#allocation10_spill] sm:$0xff] }
 0x341   :  { %v3418_v13 = vshrl.u32 %v7939_v21, %v3409_v20  ;;  %v3420_v47 = vshll.u32 %v7939_v21, %v3408_v46  ;;  %v3410_v30 = vshrl.u32 %v7930_v59, %v3409_v20  ;;  %v3421_v9 = vshrl.u32 %v7940_v40, %v3409_v20 }
 0x342   :  { %v1791_v17 = vadd.s32 536870912, %v1790_v61  ;;  %v6683_v37 = vshll.u32 %v3402_v22, 8  ;;  %v3413_v60 = vor.u32 %v3412_v25, %v3411_v62  ;;  %v3416_v49 = vor.u32 %v3415_v12, %v3414_v19 }
 0x343   :  { %v3423_v51 = vshll.u32 %v7940_v40, %v3408_v46  ;;  %v2267_v3 = vshll.u32 %v7930_v59, %v8039_v32  ;;  %v3419_v42 = vor.u32 %v3418_v13, %v3417_v45  ;;  %v3422_v43 = vor.u32 %v3421_v9, %v3420_v47 }
 0x344   :  { %v6688_v54 = vshrl.u32 %v1791_v17, 30  ;;  %v2268_v26 = vshrl.u32 %v7937_v52, %v8040_v53  ;;  %vm3998_vm10 = vcmp.lt.s32.totalorder %v3997_v58, 0  ;;  %v3424_v39 = vshrl.u32 %v7927_v8, %v3409_v20 }
 0x345   :  { %vm3426_vm2 = vcmp.lt.s32.totalorder %v3407_v50, 1  ;;  %vm3428_vm15 = vcmp.lt.s32.totalorder %v3407_v50, 3  ;;  %vm3427_vm13 = vcmp.lt.s32.totalorder %v3407_v50, 2  ;;  %vm3429_vm12 = vcmp.lt.s32.totalorder %v3407_v50, 4 }
 0x346   :  { %v1793_v22 = vshll.u32 %v6688_v54, 30  ;;  %v3430_v40 = vsel %vm3426_vm2, %v3410_v30, %v3413_v60  ;;  %v3425_v46 = vor.u32 %v3424_v39, %v3423_v51  ;;  %v3431_v62 = vsel %vm3429_vm12, %v3419_v42, 2102212464 }
 0x347   :  { %v3434_v19 = vsel %vm3426_vm2, %v3413_v60, %v3416_v49  ;;  %v3435_v25 = vsel %vm3429_vm12, %v3422_v43, 920167782  ;;  %v3432_v45 = vsel %vm3428_vm15, %v3416_v49, %v3431_v62  ;;  %v2270_v8 = vshll.u32 %v7937_v52, %v8039_v32 }
 0x348   :  { %v6694_v12 = vsub.s32 %v1790_v61, %v1793_v22  ;;  %v3436_v13 = vsel %vm3428_vm15, %v3419_v42, %v3435_v25  ;;  %v3438_v47 = vsel %vm3426_vm2, %v3416_v49, %v3419_v42  ;;  %v3439_v17 = vsel %vm3429_vm12, %v3425_v46, 1326507024 }
 0x349   :  { %v3437_v20 = vsel %vm3427_vm13, %v3434_v19, %v3436_v13  ;;  %v2271_v30 = vshrl.u32 %v7938_v38, %v8040_v53  ;;  %v3673_v39 = vsel %vm3998_vm10, 0, %v3997_v58  ;;  %v3433_v61 = vsel %vm3427_vm13, %v3430_v40, %v3432_v45  ;;  %v8041_v45 = vld [vmem:[#allocation13_spill] sm:$0xff] }
 0x34a   :  { %v1796_v9 = vsub.s32 0, %v6694_v12  ;;  %v3440_v60 = vsel %vm3428_vm15, %v3422_v43, %v3439_v17  ;;  %v6709_v22 = vmul.u32.u64.low %v6683_v37, %v3437_v20  ;;  %v6710_v62 = vmul.u32.u64.high %v6683_v37, %v3437_v20, %v6709_v22 }
 0x34b   :  { %v3441_v51 = vsel %vm3427_vm13, %v3438_v47, %v3440_v60  ;;  %v2269_v42 = vor.u32 %v2268_v26, %v2267_v3  ;;  %v2017_v49 = vor.u32 4788187, %v2016_v34  ;;  %v2266_v40 = vshrl.u32 %v7930_v59, %v8040_v53  ;;  %v8043_v47 = vld [vmem:[#allocation19_spill] sm:$0xff] }
 0x34c   :  { %v3924_v46 = vmin.u32 %v1796_v9, %v6694_v12  ;;  %v6715_v19 = vmul.u32.u64.low %v6683_v37, %v3441_v51  ;;  %v6716_v58 = vmul.u32.u64.high %v6683_v37, %v3441_v51, %v6715_v19  ;;  %v2272_v25 = vor.u32 %v2271_v30, %v2270_v8  ;;  %v8044_v9 = vld [vmem:[#allocation22_spill] sm:$0xff] }
 0x34d   :  { %v2273_v43 = vshll.u32 %v7938_v38, %v8039_v32  ;;  %v2274_v50 = vshrl.u32 %v7939_v21, %v8040_v53  ;;  %vm7909_vm10 = vcmp.lt.s32.totalorder %v6171_v56, 0  ;;  %vm7911_vm2 = vcmp.lt.s32.totalorder %v6200_v6, 0  ;;  %v8042_v53 = vld [vmem:[#allocation23_spill] sm:$0xff] }
 0x34e   :  { %v3678_v26 = vsub.s32 4294967266, %v3673_v39  ;;  %v1798_v34 = vclz %v3924_v46  ;;  %v3449_v3 = vmul.u32 %v6683_v37, %v3433_v61  ;;  %vm2282_vm15 = vcmp.lt.s32.totalorder %v8041_v45, 1 }
 0x34f   :  { %v3452_v13 = vadd.s32 1, %v6710_v62  ;;  %v2275_v20 = vor.u32 %v2274_v50, %v2273_v43  ;;  %vm2284_vm13 = vcmp.lt.s32.totalorder %v8041_v45, 3  ;;  %v2290_v32 = vsel %vm2282_vm15, %v2269_v42, %v2272_v25 }
 0x350   :  { %v3674_v8 = vsub.s32 32, %v3673_v39  ;;  %vm3451_vm12 = vc.u32 %v6716_v58, %v6709_v22  ;;  %vm2283_vm8 = vcmp.lt.s32.totalorder %v8041_v45, 2  ;;  %v2296_v37 = vsel %vm2284_vm13, %v8043_v47, %v8042_v53 }
 0x351   :  { %v3453_v17 = vsel %vm3451_vm12, %v3452_v13, %v6710_v62  ;;  %v2287_v30 = vsel %vm2285_vm11, %v2275_v20, 2102212464  ;;  %v2292_v61 = vsel %vm2284_vm13, %v2275_v20, %v8044_v9  ;;  %v2294_v60 = vsel %vm2282_vm15, %v2272_v25, %v2275_v20 }
 0x352   :  { %v3679_v51 = vadd.s32 127, %v3678_v26  ;;  %v3925_v46 = vadd.s32 4294967294, %v1798_v34  ;;  %v3454_v19 = vadd.s32 %v3453_v17, %v3449_v3  ;;  %v2293_v43 = vsel %vm2283_vm8, %v2290_v32, %v2292_v61 }
 0x353   :  { %vm7910_vm0 = vcmp.lt.s32.totalorder %v6242_v11, 0  ;;  %v2018_v50 = vand.u32 2147483647, %v2017_v49  ;;  %v2020_v62 = vcvt.s32.f32 %v6669_v0  ;;  %v2297_v13 = vsel %vm2283_vm8, %v2294_v60, %v2296_v37 }
 0x354   :  { %v8045_v53 = vor.u32 8388608, %v6653_v28  ;;  %v3676_v9 = vshrl.u32 %v6664_v31, %v3674_v8  ;;  %v3455_v20 = vadd.s32 536870912, %v3454_v19  ;;  %v2286_v26 = vsel %vm2282_vm15, %v2266_v40, %v2269_v42 }
 0x355   :  { %v2288_v34 = vsel %vm2284_vm13, %v2272_v25, %v2287_v30  ;;  %v3675_v37 = vshll.u32 %v6630_v1, %v3673_v39  ;;  %v3680_v28 = vshll.u32 %v3679_v51, 23  ;;  %vm3926_vm11 = vcmp.lt.s32.totalorder %v3925_v46, 0  ;;  %v8049_v39 = vld [vmem:[#allocation4_spill] sm:$0xff] }
 0x356   :  { %v2298_v47 = vshll.u32 %v8045_v53, 8  ;;  %v6768_v17 = vshrl.u32 %v3455_v20, 30  ;;  %v8046_v31 = vxor.u32 2147483648, %v6583_v24  ;;  %v8048_v40 = vxor.u32 2147483648, %v6607_v7 }
 0x357   :  { %v2289_v1 = vsel %vm2283_vm8, %v2286_v26, %v2288_v34  ;;  %v7908_v8 = vand.u32 2147483647, %v8049_v39  ;;  %v3374_v30 = vxor.u32 2147483648, %v6660_v41  ;;  %v6788_v61 = vmul.f32 %v2020_v62, %v2018_v50  ;;  %v8051_v26 = vld [vmem:[#allocation9_spill] sm:$0xff] }
 0x358   :  { %v6760_v3 = vmul.u32.u64.low %v2298_v47, %v2297_v13  ;;  %v6761_v32 = vmul.u32.u64.high %v2298_v47, %v2297_v13, %v6760_v3  ;;  %v6763_v49 = vmul.u32.u64.low %v2298_v47, %v2293_v43  ;;  %v6764_v0 = vmul.u32.u64.high %v2298_v47, %v2293_v43, %v6763_v49  ;;  %v8050_v43 = vld [vmem:[#allocation11_spill] sm:$0xff] }
 0x359   :  { %v6775_v42 = vsel %vm7909_vm10, %v8046_v31, %v6583_v24  ;;  %v6782_v25 = vsel %vm7911_vm2, %v8048_v40, %v6607_v7  ;;  %v3677_v60 = vor.u32 %v3676_v9, %v3675_v37  ;;  %v3457_v24 = vshll.u32 %v6768_v17, 30 }
 0x35a   :  { %8047 = vst [vmem:[#allocation5_spill] sm:$0xff] %v6775_v42  ;;  %v6791_v51 = vsel %vm3926_vm11, 0, %v3925_v46  ;;  %vm2307_vm15 = vc.u32 %v6761_v32, %v6763_v49  ;;  %v2308_v7 = vadd.s32 1, %v6764_v0  ;;  %v604_v45 = vshrl.u32 %v7937_v52, %v8050_v43 }
 0x35b   :  { %v3681_v13 = vor.u32 4788187, %v3680_v28  ;;  %v6798_v53 = vsub.s32 %v3454_v19, %v3457_v24  ;;  %v2305_v20 = vmul.u32 %v2298_v47, %v2289_v1  ;;  %v603_v50 = vshll.u32 %v7930_v59, %v8051_v26 }
 0x35c   :  { %v2309_v62 = vsel %vm2307_vm15, %v2308_v7, %v6764_v0  ;;  %v593_v46 = vand.u32 8388607, %v7908_v8  ;;  %v606_v9 = vshll.u32 %v7937_v52, %v8051_v26  ;;  %v607_v34 = vshrl.u32 %v7938_v38, %v8050_v43 }
 0x35d   :  { %v6812_v19 = vsel %vm7910_vm0, %v3374_v30, %v6660_v41  ;;  %v1806_v47 = vsub.s32 4294967266, %v6791_v51  ;;  %v3460_v3 = vsub.s32 0, %v6798_v53  ;;  %v2310_v37 = vadd.s32 %v2309_v62, %v2305_v20  ;;  %v8052_v20 = vld [vmem:[#allocation12_spill] sm:$0xff] }
 0x35e   :  { %v605_v0 = vor.u32 %v604_v45, %v603_v50  ;;  %v608_v28 = vor.u32 %v607_v34, %v606_v9  ;;  %v609_v31 = vshll.u32 %v7938_v38, %v8051_v26  ;;  %v610_v52 = vshrl.u32 %v7939_v21, %v8050_v43  ;;  %v8053_v38 = vld [vmem:[#allocation21_spill] sm:$0xff]  ;;  %v8055_v9 = vld [vmem:[#allocation20_spill] sm:$0xff] }
 0x35f   :  { %v2022_v40 = vxor.u32 2147483648, %v6788_v61  ;;  %v3682_v1 = vand.u32 2147483647, %v3681_v13  ;;  %v3988_v24 = vmin.u32 %v3460_v3, %v6798_v53  ;;  %v2311_v41 = vadd.s32 536870912, %v2310_v37  ;;  %v8054_v26 = vld [vmem:[#allocation17_spill] sm:$0xff] }
 0x360   :  { %vm7912_vm8 = vcmp.lt.s32.totalorder %v6365_v57, 0  ;;  %v3684_v30 = vcvt.s32.f32 %v3677_v60  ;;  %v594_v7 = vor.u32 8388608, %v593_v46  ;;  %v611_v8 = vor.u32 %v610_v52, %v609_v31 }
 0x361   :  { %vm620_vm13 = vcmp.lt.s32.totalorder %v8052_v20, 3  ;;  %v3462_v45 = vclz %v3988_v24  ;;  %v2312_v50 = vshrl.u32 %v2311_v41, 30  ;;  %vm618_vm12 = vcmp.lt.s32.totalorder %v8052_v20, 1 }
 0x362   :  { %v632_v21 = vsel %vm620_vm13, %v8054_v26, %v8053_v38  ;;  %v1807_v13 = vadd.s32 127, %v1806_v47  ;;  %v626_v62 = vsel %vm618_vm12, %v605_v0, %v608_v28  ;;  %v628_v60 = vsel %vm620_vm13, %v611_v8, %v8055_v9 }
 0x363   :  { %v630_v46 = vsel %vm618_vm12, %v608_v28, %v611_v8  ;;  %v6836_v34 = vmul.f32 %v3684_v30, %v3682_v1  ;;  %v3989_v3 = vadd.s32 4294967294, %v3462_v45  ;;  %v2313_v31 = vshll.u32 %v2312_v50, 30 }
 0x364   :  { %vm619_vm11 = vcmp.lt.s32.totalorder %v8052_v20, 2  ;;  %v1802_v52 = vsub.s32 32, %v6791_v51  ;;  %v623_v47 = vsel %vm621_vm6, %v611_v8, 2102212464  ;;  %v634_v41 = vshll.u32 %v594_v7, 8 }
 0x365   :  { %v633_v24 = vsel %vm619_vm11, %v630_v46, %v632_v21  ;;  %vm3990_vm15 = vcmp.lt.s32.totalorder %v3989_v3, 0  ;;  %v6844_v38 = vsub.s32 %v2310_v37, %v2313_v31  ;;  %v602_v1 = vshrl.u32 %v7930_v59, %v8050_v43 }
 0x366   :  { %v629_v30 = vsel %vm619_vm11, %v626_v62, %v628_v60  ;;  %v1808_v45 = vshll.u32 %v1807_v13, 23  ;;  %v6850_v26 = vsel %vm3990_vm15, 0, %v3989_v3  ;;  %v1786_v8 = vadd.s32 %v6645_v5, %v6643_v27 }
 0x367   :  { %v6852_v9 = vmul.u32.u64.low %v634_v41, %v633_v24  ;;  %v6853_v42 = vmul.u32.u64.high %v634_v41, %v633_v24, %v6852_v9  ;;  %v2316_v7 = vsub.s32 0, %v6844_v38  ;;  %v622_v37 = vsel %vm618_vm12, %v602_v1, %v605_v0 }
 0x368   :  { %v624_v59 = vsel %vm620_vm13, %v608_v28, %v623_v47  ;;  %v3470_v43 = vsub.s32 4294967266, %v6850_v26  ;;  %vm2252_vm6 = vcmp.lt.s32.totalorder %v8037_v33, 0  ;;  %v6871_v27 = vsel %vm7912_vm8, %v2022_v40, %v6788_v61  ;;  %v8059_v61 = vld [vmem:[#allocation16_spill] sm:$0xff] }
 0x369   :  { %v6864_v21 = vmul.u32.u64.low %v634_v41, %v629_v30  ;;  %v6865_v13 = vmul.u32.u64.high %v634_v41, %v629_v30, %v6864_v21  ;;  %v3686_v5 = vxor.u32 2147483648, %v6836_v34  ;;  %v1804_v62 = vshrl.u32 %v1786_v8, %v1802_v52  ;;  %v8063_v30 = vld [vmem:[#allocation37_spill] sm:$0xff] }
 0x36a   :  { %v8056_v0 = vand.u32 2147483647, %v8037_v33  ;;  %v3944_v60 = vmin.u32 %v2316_v7, %v6844_v38  ;;  %v1803_v46 = vshll.u32 %v6694_v12, %v6791_v51  ;;  %v1809_v3 = vor.u32 4788187, %v1808_v45 }
 0x36b   :  { %v625_v31 = vsel %vm619_vm11, %v622_v37, %v624_v59  ;;  %v776_v40 = vsub.s32 4, %v8059_v61  ;;  %v2336_v24 = vsub.s32 4, %v2312_v50  ;;  %vm643_vm13 = vc.u32 %v6853_v42, %v6864_v21 }
 0x36c   :  { %vm6876_vm12 = vcmp.le.f32.partialorder %v8056_v0, 0.7853982  ;;  %v2318_v47 = vclz %v3944_v60  ;;  %v8060_v52 = vand.u32 2147483647, %v4501_v36  ;;  %v3450_v12 = vadd.s32 %v6709_v22, %v6716_v58 }
 0x36d   :  { %v3471_v51 = vadd.s32 127, %v3470_v43  ;;  %v644_v20 = vadd.s32 1, %v6865_v13  ;;  %v1805_v9 = vor.u32 %v1804_v62, %v1803_v46  ;;  %v2306_v8 = vadd.s32 %v6763_v49, %v6761_v32  ;;  %v8064_v32 = vld [vmem:[#allocation6_spill] sm:$0xff] }
 0x36e   :  { %vm6890_vm15 = vcmp.le.f32.partialorder %v8060_v52, 0.7853982  ;;  %v3945_v7 = vadd.s32 4294967294, %v2318_v47  ;;  %v641_v37 = vmul.u32 %v634_v41, %v625_v31  ;;  %v1810_v59 = vand.u32 2147483647, %v1809_v3  ;;  %v8065_v31 = vld [vmem:[#allocation2_spill] sm:$0xff] }
 0x36f   :  { %v778_v45 = vsel %vm6890_vm15, %v4501_v36, %v8063_v30  ;;  %v3466_v0 = vsub.s32 32, %v6850_v26  ;;  %v645_v60 = vsel %vm643_vm13, %v644_v20, %v6865_v13  ;;  %v777_v22 = vsel %vm692_vm5, %v776_v40, %v8059_v61  ;;  %v8069_v52 = vld [vmem:[#allocation35_spill] sm:$0xff] }
 0x370   :  { %vm3946_vm11 = vcmp.lt.s32.totalorder %v3945_v7, 0  ;;  %v2337_v58 = vsel %vm2252_vm6, %v2336_v24, %v2312_v50  ;;  %v646_v43 = vadd.s32 %v645_v60, %v641_v37  ;;  %4246 = vcosq.f32 %v778_v45 }
 0x371   :  { %v3472_v62 = vshll.u32 %v3471_v51, 23  ;;  %v2321_v46 = vsel %vm3946_vm11, 0, %v3945_v7  ;;  %vm588_vm10 = vcmp.lt.s32.totalorder %v8049_v39, 0  ;;  %4248 = vsinq.f32 %v778_v45 }
 0x372   :  { %v464_v49 = vsub.s32 4, %v8064_v32  ;;  %v2322_v41 = vsub.s32 32, %v2321_v46  ;;  %v2326_v3 = vsub.s32 4294967266, %v2321_v46  ;;  %v779_v13 = vsel %vm6890_vm15, 0, %v777_v22 }
 0x373   :  { %v8066_v61 = vand.u32 2147483647, %v8065_v31  ;;  %v3468_v50 = vshrl.u32 %v3450_v12, %v3466_v0  ;;  %v2339_v47 = vsel %vm6876_vm12, 0, %v2337_v58  ;;  %v647_v24 = vadd.s32 536870912, %v646_v43 }
 0x374   :  { %v3467_v1 = vshll.u32 %v6798_v53, %v6850_v26  ;;  %v2323_v20 = vshll.u32 %v6844_v38, %v2321_v46  ;;  %v2324_v30 = vshrl.u32 %v2306_v8, %v2322_v41  ;;  %v2327_v45 = vadd.s32 127, %v2326_v3 }
 0x375   :  { %vm6916_vm5 = vcmp.le.f32.partialorder %v8066_v61, 0.7853982  ;;  %v8070_v7 = vand.u32 2147483647, %v8049_v39  ;;  %v3473_v37 = vor.u32 4788187, %v3472_v62  ;;  %v465_v22 = vsel %vm380_vm3, %v464_v49, %v8064_v32 }
 0x376   :  { %v466_v51 = vsel %vm6916_vm5, %v8065_v31, %v8069_v52  ;;  %v648_v0 = vshrl.u32 %v647_v24, 30  ;;  %v783_v60 = vadd.s32 3, %v779_v13  ;;  %v1812_v58 = vcvt.s32.f32 %v1805_v9  ;;  %v8073_v32 = vld [vmem:[#allocation24_spill] sm:$0xff] }
 0x377   :  { %vm6931_vm13 = vcmp.le.f32.partialorder %v8070_v7, 0.7853982  ;;  %v2325_v61 = vor.u32 %v2324_v30, %v2323_v20  ;;  %v2328_v53 = vshll.u32 %v2327_v45, 23  ;;  %4250 = vcosq.f32 %v466_v51  ;;  %v8078_v7 = vld [vmem:[#allocation38_spill] sm:$0xff] }
 0x378   :  { %v3469_v38 = vor.u32 %v3468_v50, %v3467_v1  ;;  %v649_v26 = vshll.u32 %v648_v0, 30  ;;  %v672_v8 = vsub.s32 4, %v648_v0  ;;  %4252 = vsinq.f32 %v466_v51  ;;  %v8074_v51 = vld [vmem:[#allocation7_spill] sm:$0xff] }
 0x379   :  { %v6938_v46 = vmul.f32 %v1812_v58, %v1810_v59  ;;  %v2329_v41 = vor.u32 4788187, %v2328_v53  ;;  %v2343_v3 = vadd.s32 3, %v2339_v47  ;;  %v467_v62 = vsel %vm6916_vm5, 0, %v465_v22 }
 0x37a   :  { %v3474_v13 = vand.u32 2147483647, %v3473_v37  ;;  %v6942_v24 = vsub.s32 %v646_v43, %v649_v26  ;;  %v784_v52 = vand.u32 3, %v783_v60  ;;  %v2440_v9 = vsub.s32 4, %v8073_v32  ;;  %v4247_v49 = vpop.eup %4246 }
 0x37b   :  { %v2330_v20 = vand.u32 2147483647, %v2329_v41  ;;  %v2332_v30 = vcvt.s32.f32 %v2325_v61  ;;  %v673_v50 = vsel %vm588_vm10, %v672_v8, %v648_v0  ;;  %v8075_v59 = vand.u32 2147483647, %v8074_v51  ;;  %v4249_v40 = vpop.eup %4248 }
 0x37c   :  { %v3476_v47 = vcvt.s32.f32 %v3469_v38  ;;  %v652_v43 = vsub.s32 0, %v6942_v24  ;;  %v471_v45 = vadd.s32 3, %v467_v62  ;;  %v6958_v22 = vand.u32 3, %v2343_v3 }
 0x37d   :  { %vm6949_vm3 = vcmp.le.f32.partialorder %v8075_v59, 0.7853982  ;;  %v2333_v60 = vmul.f32 %v2332_v30, %v2330_v20  ;;  %v642_v0 = vadd.s32 %v6864_v21, %v6853_v42  ;;  %v2441_v58 = vsel %vm2356_vm7, %v2440_v9, %v8073_v32 }
 0x37e   :  { %v2442_v37 = vsel %vm6949_vm3, %v8074_v51, %v8078_v7  ;;  %v6965_v61 = vmul.f32 %v3476_v47, %v3474_v13  ;;  %v3880_v53 = vmin.u32 %v652_v43, %v6942_v24  ;;  %v675_v38 = vsel %vm6931_vm13, 0, %v673_v50 }
 0x37f   :  { %v790_v26 = vxor.u32 2147483648, %v4247_v49  ;;  %v2334_v8 = vxor.u32 2147483648, %v2333_v60  ;;  %vm785_vm15 = vcmp.lt.s32.totalorder %v784_v52, 2  ;;  %v787_v41 = vxor.u32 2147483648, %v4249_v40 }
 0x380   :  { %4254 = vcosq.f32 %v2442_v37  ;;  %v654_v3 = vclz %v3880_v53  ;;  %vm786_vm11 = vcmp.eq.s32.totalorder %v784_v52, 0  ;;  %v472_v62 = vand.u32 3, %v471_v45  ;;  %v8079_v45 = vld [vmem:[#allocation8_spill] sm:$0xff] }
 0x381   :  { %v2443_v42 = vsel %vm6949_vm3, 0, %v2441_v58  ;;  %v4251_v21 = vpop.eup %4250  ;;  %v2335_v13 = vsel %vm2252_vm6, %v2334_v8, %v2333_v60  ;;  %v679_v32 = vadd.s32 3, %v675_v38  ;;  %vm789_vm7 = vcmp.eq.s32.totalorder %v784_v52, 2  ;;  %v8080_v60 = vld [vmem:[#allocation3_spill] sm:$0xff] }
 0x382   :  { %4256 = vsinq.f32 %v2442_v37  ;;  %v4253_v9 = vpop.eup %4252  ;;  %v2338_v20 = vsel %vm6876_vm12, %v8037_v33, %v2335_v13  ;;  %v3881_v30 = vadd.s32 4294967294, %v654_v3  ;;  %vm782_vm5 = vweird.f32 %v4501_v36 }
 0x383   :  { %v791_v50 = vsel %vm789_vm7, %v790_v26, %v4249_v40  ;;  %v478_v59 = vxor.u32 2147483648, %v4251_v21  ;;  %4258 = vcosq.f32 %v2338_v20  ;;  %v788_v1 = vsel %vm786_vm11, %v4247_v49, %v787_v41  ;;  %v8084_v26 = vld [vmem:[#allocation36_spill] sm:$0xff] }
 0x384   :  { %vm470_vm3 = vweird.f32 %v8065_v31  ;;  %v475_v47 = vxor.u32 2147483648, %v4253_v9  ;;  %v2447_v43 = vadd.s32 3, %v2443_v42  ;;  %4260 = vsinq.f32 %v2338_v20 }
 0x385   :  { %vm3882_vm6 = vcmp.lt.s32.totalorder %v3881_v30, 0  ;;  %vm477_vm0 = vcmp.eq.s32.totalorder %v472_v62, 2  ;;  %v2128_v7 = vsub.s32 4, %v8079_v45  ;;  %vm474_vm2 = vcmp.eq.s32.totalorder %v472_v62, 0 }
 0x386   :  { %v657_v37 = vsel %vm3882_vm6, 0, %v3881_v30  ;;  %v479_v28 = vsel %vm477_vm0, %v478_v59, %v4253_v9  ;;  %v8081_v58 = vand.u32 2147483647, %v8080_v60  ;;  %v476_v38 = vsel %vm474_vm2, %v4251_v21, %v475_v47 }
 0x387   :  { %v658_v40 = vsub.s32 32, %v657_v37  ;;  %v662_v49 = vsub.s32 4294967266, %v657_v37  ;;  %vm2349_vm11 = vcmp.eq.s32.totalorder %v6958_v22, 2  ;;  %v6991_v41 = vand.u32 3, %v679_v32 }
 0x388   :  { %vm6982_vm12 = vcmp.le.f32.partialorder %v8081_v58, 0.7853982  ;;  %v792_v3 = vsel %vm785_vm15, %v788_v1, %v791_v50  ;;  %vm473_vm0 = vcmp.lt.s32.totalorder %v472_v62, 2  ;;  %v2448_v42 = vand.u32 3, %v2447_v43  ;;  %v8085_v62 = vld [vmem:[#allocation18_spill] sm:$0xff]  ;;  %v8090_v58 = vld [vmem:[#allocation45_spill] sm:$0xff] }
 0x389   :  { %v2130_v8 = vsel %vm6982_vm12, %v8080_v60, %v8084_v26  ;;  %vm2346_vm7 = vcmp.eq.s32.totalorder %v6958_v22, 0  ;;  %v659_v13 = vshll.u32 %v6942_v24, %v657_v37  ;;  %v660_v9 = vshrl.u32 %v642_v0, %v658_v40  ;;  %v7012_v43 = vld [vmem:[%s7748_s3] ss:$0 sm:$0xff]  ;;  %v8089_v37 = vld [vmem:[#allocation28_spill] sm:$0xff] }
 0x38a   :  { %v663_v20 = vadd.s32 127, %v662_v49  ;;  %v2129_v21 = vsel %vm2044_vm4, %v2128_v7, %v8079_v45  ;;  %v4255_v30 = vpop.eup %4254  ;;  %vm2345_vm2 = vcmp.lt.s32.totalorder %v6958_v22, 2  ;;  %v480_v59 = vsel %vm473_vm0, %v476_v38, %v479_v28 }
 0x38b   :  { %v2131_v52 = vsel %vm6982_vm12, 0, %v2129_v21  ;;  %4262 = vcosq.f32 %v2130_v8  ;;  %v8086_v32 = vand.u32 2147483647, %v8085_v62  ;;  %vm2342_vm6 = vweird.f32 %v8037_v33 }
 0x38c   :  { %v661_v24 = vor.u32 %v660_v9, %v659_v13  ;;  %v664_v0 = vshll.u32 %v663_v20, 23  ;;  %v2454_v1 = vxor.u32 2147483648, %v4255_v30  ;;  %4264 = vsinq.f32 %v2130_v8  ;;  %v4257_v47 = vpop.eup %4256 }
 0x38d   :  { %vm7004_vm15 = vcmp.le.f32.partialorder %v8086_v32, 0.7853982  ;;  %v7016_v45 = vsel %vm782_vm5, nan, %v792_v3  ;;  %v2135_v7 = vadd.s32 3, %v2131_v52  ;;  %v2232_v28 = vsub.s32 4, %v8089_v37  ;;  %v4259_v26 = vpop.eup %4258 }
 0x38e   :  { %v2234_v53 = vsel %vm7004_vm15, %v8085_v62, %v8090_v58  ;;  %v665_v40 = vor.u32 4788187, %v664_v0  ;;  %v481_v49 = vsel %vm470_vm3, nan, %v480_v59  ;;  %v2451_v38 = vxor.u32 2147483648, %v4257_v47  ;;  %v4261_v13 = vpop.eup %4260  ;;  %v8095_v58 = vld [vmem:[#allocation26_spill] sm:$0xff] }
 0x38f   :  { %vm2453_vm4 = vcmp.eq.s32.totalorder %v2448_v42, 2  ;;  %v668_v8 = vcvt.s32.f32 %v661_v24  ;;  %vm2446_vm12 = vweird.f32 %v8074_v51  ;;  %vm2450_vm5 = vcmp.eq.s32.totalorder %v2448_v42, 0  ;;  %v8101_v51 = vld [vmem:[#allocation44_spill] sm:$0xff] }
 0x390   :  { %v2455_v36 = vsel %vm2453_vm4, %v2454_v1, %v4257_v47  ;;  %v2233_v3 = vsel %vm2148_vm1, %v2232_v28, %v8089_v37  ;;  %v2350_v9 = vxor.u32 2147483648, %v4259_v26  ;;  %v666_v20 = vand.u32 2147483647, %v665_v40 }
 0x391   :  { %v2452_v21 = vsel %vm2450_vm5, %v4255_v30, %v2451_v38  ;;  %4266 = vcosq.f32 %v2234_v53  ;;  %v2347_v52 = vxor.u32 2147483648, %v4261_v13  ;;  %v3713_v31 = vmul.f32 %v7012_v43, %v481_v49  ;;  %v8091_v30 = vld [vmem:[#allocation15_spill] sm:$0xff] }
 0x392   :  { %vm2449_vm3 = vcmp.lt.s32.totalorder %v2448_v42, 2  ;;  %v2136_v59 = vand.u32 3, %v2135_v7  ;;  %v2351_v32 = vsel %vm2349_vm11, %v2350_v9, %v4261_v13  ;;  %v669_v24 = vmul.f32 %v668_v8, %v666_v20  ;;  %v8096_v49 = vld [vmem:[#allocation39_spill] sm:$0xff] }
 0x393   :  { %vm2134_vm0 = vweird.f32 %v8080_v60  ;;  %v2235_v0 = vsel %vm7004_vm15, 0, %v2233_v3  ;;  %v2348_v1 = vsel %vm2346_vm7, %v4259_v26, %v2347_v52  ;;  %v2456_v47 = vsel %vm2449_vm3, %v2452_v21, %v2455_v36 }
 0x394   :  { %4268 = vsinq.f32 %v2234_v53  ;;  %v8092_v37 = vand.u32 2147483647, %v8091_v30  ;;  %v2352_v42 = vsel %vm2345_vm2, %v2348_v1, %v2351_v32  ;;  %v670_v7 = vxor.u32 2147483648, %v669_v24 }
 0x395   :  { %v568_v40 = vsub.s32 4, %v8095_v58  ;;  %v4263_v38 = vpop.eup %4262  ;;  %v2353_v53 = vsel %vm2342_vm6, nan, %v2352_v42  ;;  %vm2137_vm11 = vcmp.lt.s32.totalorder %v2136_v59, 2  ;;  %v2239_v26 = vadd.s32 3, %v2235_v0 }
 0x396   :  { %vm7039_vm1 = vcmp.le.f32.partialorder %v8092_v37, 0.7853982  ;;  %v4265_v8 = vpop.eup %4264  ;;  %v3731_v36 = vmul.f32 %v7012_v43, %v2353_v53  ;;  %v671_v22 = vsel %vm588_vm10, %v670_v7, %v669_v24  ;;  %v2142_v3 = vxor.u32 2147483648, %v4263_v38  ;;  %v8097_v37 = vld [vmem:[#allocation34_spill] sm:$0xff] }
 0x397   :  { %v570_v50 = vsel %vm7039_vm1, %v8091_v30, %v8096_v49  ;;  %v569_v13 = vsel %vm484_vm9, %v568_v40, %v8095_v58  ;;  %v674_v9 = vsel %vm6931_vm13, %v8049_v39, %v671_v22  ;;  %vm2138_vm7 = vcmp.eq.s32.totalorder %v2136_v59, 0  ;;  %v8102_v49 = vld [vmem:[#allocation56_spill] sm:$0xff]  ;;  %v8104_v22 = vld [vmem:[#allocation25_spill] sm:$0xff] }
 0x398   :  { %4270 = vcosq.f32 %v570_v50  ;;  %v2139_v33 = vxor.u32 2147483648, %v4265_v8  ;;  %vm2141_vm2 = vcmp.eq.s32.totalorder %v2136_v59, 2  ;;  %3781 = vadd.xlane.f32.xlu0 %v3731_v36  ;;  %v2457_v20 = vsel %vm2446_vm12, nan, %v2456_v47 }
 0x399   :  { %4272 = vcosq.f32 %v674_v9  ;;  %v2143_v21 = vsel %vm2141_vm2, %v2142_v3, %v4265_v8  ;;  %v571_v52 = vsel %vm7039_vm1, 0, %v569_v13  ;;  %v7065_v24 = vand.u32 3, %v2239_v26 }
 0x39a   :  { %4274 = vsinq.f32 %v674_v9  ;;  %v2140_v32 = vsel %vm2138_vm7, %v4263_v38, %v2139_v33  ;;  %v575_v0 = vadd.s32 3, %v571_v52  ;;  %v8098_v42 = vand.u32 2147483647, %v8097_v37  ;;  %v8109_v52 = vld [vmem:[#allocation47_spill] sm:$0xff] }
 0x39b   :  { %v4267_v1 = vpop.eup %4266  ;;  %v2144_v12 = vsel %vm2137_vm11, %v2140_v32, %v2143_v21  ;;  %4276 = vsinq.f32 %v570_v50  ;;  %v1192_v47 = vsub.s32 4, %v8101_v51  ;;  %v1814_v28 = vxor.u32 2147483648, %v6938_v46 }
 0x39c   :  { %vm7070_vm9 = vcmp.le.f32.partialorder %v8098_v42, 0.7853982  ;;  %v3478_v58 = vxor.u32 2147483648, %v6965_v61  ;;  %v2145_v40 = vsel %vm2134_vm0, nan, %v2144_v12  ;;  %vm685_vm10 = vcmp.eq.s32.totalorder %v6991_v41, 2  ;;  %3745 = vadd.xlane.f32.xlu0 %v3713_v31  ;;  %v8111_v42 = vld [vmem:[#allocation46_spill] sm:$0xff] }
 0x39d   :  { %v1194_v59 = vsel %vm7070_vm9, %v8097_v37, %v8102_v49  ;;  %v7086_v50 = vmul.f32 %v7012_v43, %v7016_v45  ;;  %v7088_v38 = vand.u32 3, %v575_v0  ;;  %vm8103_vm13 = vcmp.lt.s32.totalorder %v8097_v37, 0  ;;  %v8112_v49 = vld [vmem:[#allocation40_spill] sm:$0xff] }
 0x39e   :  { %v1193_v53 = vsel %vm8103_vm13, %v1192_v47, %v8101_v51  ;;  %4278 = vcosq.f32 %v1194_v59  ;;  %v4269_v60 = vpop.eup %4268  ;;  %vm682_vm15 = vcmp.eq.s32.totalorder %v6991_v41, 0  ;;  %v7095_v26 = vmul.f32 %v7012_v43, %v2457_v20  ;;  %v8108_v20 = vld [vmem:[#allocation31_spill] sm:$0xff] }
 0x39f   :  { %vm2241_vm6 = vcmp.lt.s32.totalorder %v7065_v24, 2  ;;  %v2246_v8 = vxor.u32 2147483648, %v4267_v1  ;;  %v1195_v45 = vsel %vm7070_vm9, 0, %v1193_v53  ;;  %vm681_vm4 = vcmp.lt.s32.totalorder %v6991_v41, 2 }
 0x3a0   :  { %v3729_v31 = vmul.f32 %v7012_v43, %v2145_v40  ;;  %4280 = vsinq.f32 %v1194_v59  ;;  %v1199_v36 = vadd.s32 3, %v1195_v45  ;;  %v8105_v3 = vand.u32 2147483647, %v8104_v22 }
 0x3a1   :  { %vm678_vm5 = vweird.f32 %v8049_v39  ;;  %vm2242_vm3 = vcmp.eq.s32.totalorder %v7065_v24, 0  ;;  %v2243_v33 = vxor.u32 2147483648, %v4269_v60  ;;  %v1088_v21 = vsub.s32 4, %v8108_v20 }
 0x3a2   :  { %vm7104_vm12 = vcmp.le.f32.partialorder %v8105_v3, 0.7853982  ;;  %v4271_v9 = vpop.eup %4270  ;;  %3777 = vadd.xlane.f32.xlu0 %v3729_v31  ;;  %vm2245_vm0 = vcmp.eq.s32.totalorder %v7065_v24, 2  ;;  %vm574_vm1 = vweird.f32 %v8091_v30  ;;  %vm577_vm11 = vcmp.lt.s32.totalorder %v7088_v38, 2 }
 0x3a3   :  { %v1090_v32 = vsel %vm7104_vm12, %v8104_v22, %v8109_v52  ;;  %vm578_vm7 = vcmp.eq.s32.totalorder %v7088_v38, 0  ;;  %v582_v0 = vxor.u32 2147483648, %v4271_v9  ;;  %vm8110_vm2 = vcmp.lt.s32.totalorder %v8104_v22, 0  ;;  %v4273_v51 = vpop.eup %4272  ;;  %v8117_v52 = vld [vmem:[#allocation60_spill] sm:$0xff] }
 0x3a4   :  { %4282 = vcosq.f32 %v1090_v32  ;;  %v1089_v12 = vsel %vm8110_vm2, %v1088_v21, %v8108_v20  ;;  %v2856_v7 = vsub.s32 4, %v8111_v42  ;;  %v2247_v47 = vsel %vm2245_vm0, %v2246_v8, %v4269_v60  ;;  %v4275_v45 = vpop.eup %4274 }
 0x3a5   :  { %4284 = vsinq.f32 %v1090_v32  ;;  %vm581_vm9 = vcmp.eq.s32.totalorder %v7088_v38, 2  ;;  %v1200_v40 = vand.u32 3, %v1199_v36  ;;  %v8113_v59 = vand.u32 2147483647, %v8112_v49  ;;  %v4277_v8 = vpop.eup %4276 }
 0x3a6   :  { %v686_v31 = vxor.u32 2147483648, %v4273_v51  ;;  %vm2238_vm8 = vweird.f32 %v8085_v62  ;;  %v2244_v3 = vsel %vm2242_vm3, %v4267_v1, %v2243_v33  ;;  %v1091_v20 = vsel %vm7104_vm12, 0, %v1089_v12 }
 0x3a7   :  { %vm7126_vm13 = vcmp.le.f32.partialorder %v8113_v59, 0.7853982  ;;  %vm8116_vm0 = vcmp.lt.s32.totalorder %v8112_v49, 0  ;;  %v683_v36 = vxor.u32 2147483648, %v4275_v45  ;;  %v1095_v21 = vadd.s32 3, %v1091_v20 }
 0x3a8   :  { %v2857_v60 = vsel %vm8116_vm0, %v2856_v7, %v8111_v42  ;;  %v2858_v32 = vsel %vm7126_vm13, %v8112_v49, %v8117_v52  ;;  %v687_v1 = vsel %vm685_vm10, %v686_v31, %v4275_v45  ;;  %v579_v13 = vxor.u32 2147483648, %v4277_v8  ;;  %v4279_v12 = vpop.eup %4278 }
 0x3a9   :  { %v2859_v59 = vsel %vm7126_vm13, 0, %v2857_v60  ;;  %v583_v33 = vsel %vm581_vm9, %v582_v0, %v4277_v8  ;;  %4286 = vcosq.f32 %v2858_v32  ;;  %v684_v42 = vsel %vm682_vm15, %v4273_v51, %v683_v36 }
 0x3aa   :  { %v2248_v7 = vsel %vm2241_vm6, %v2244_v3, %v2247_v47  ;;  %vm1198_vm12 = vweird.f32 %v8097_v37  ;;  %vm1201_vm3 = vcmp.lt.s32.totalorder %v1200_v40, 2  ;;  %4288 = vsinq.f32 %v2858_v32  ;;  %v4281_v20 = vpop.eup %4280  ;;  %v8118_v32 = vld [vmem:[#allocation27_spill] sm:$0xff] }
 0x3ab   :  { %v688_v53 = vsel %vm681_vm4, %v684_v42, %v687_v1  ;;  %v580_v45 = vsel %vm578_vm7, %v4271_v9, %v579_v13  ;;  %v1206_v31 = vxor.u32 2147483648, %v4279_v12  ;;  %vm1094_vm10 = vweird.f32 %v8104_v22  ;;  %v8122_v13 = vld [vmem:[#allocation33_spill] sm:$0xff] }
 0x3ac   :  { %v2863_v0 = vadd.s32 3, %v2859_v59  ;;  %v689_v51 = vsel %vm678_vm5, nan, %v688_v53  ;;  %v584_v24 = vsel %vm577_vm11, %v580_v45, %v583_v33  ;;  %vm1205_vm15 = vcmp.eq.s32.totalorder %v1200_v40, 2  ;;  %v8123_v33 = vld [vmem:[#allocation50_spill] sm:$0xff] }
 0x3ad   :  { %v1096_v47 = vand.u32 3, %v1095_v21  ;;  %v3715_v3 = vmul.f32 %v7012_v43, %v689_v51  ;;  %v585_v41 = vsel %vm574_vm1, nan, %v584_v24  ;;  %v1203_v60 = vxor.u32 2147483648, %v4281_v20 }
 0x3ae   :  { %v1207_v9 = vsel %vm1205_vm15, %v1206_v31, %v4281_v20  ;;  %v4283_v8 = vpop.eup %4282  ;;  %v3714_v36 = vmul.f32 %v7012_v43, %v585_v41  ;;  %vm1202_vm6 = vcmp.eq.s32.totalorder %v1200_v40, 0  ;;  %v2864_v52 = vand.u32 3, %v2863_v0 }
 0x3af   :  { %v8119_v39 = vand.u32 2147483647, %v8118_v32  ;;  %v4285_v38 = vpop.eup %4284  ;;  %3749 = vadd.xlane.f32.xlu1 %v3715_v3  ;;  %v1204_v21 = vsel %vm1202_vm6, %v4279_v12, %v1203_v60  ;;  %v1102_v1 = vxor.u32 2147483648, %v4283_v8  ;;  %v2752_v30 = vsub.s32 4, %v8122_v13 }
 0x3b0   :  { %v2249_v53 = vsel %vm2238_vm8, nan, %v2248_v7  ;;  %3747 = vadd.xlane.f32.xlu0 %v3714_v36  ;;  %v1208_v45 = vsel %vm1201_vm3, %v1204_v21, %v1207_v9  ;;  %v1099_v31 = vxor.u32 2147483648, %v4285_v38  ;;  %vm1101_vm5 = vcmp.eq.s32.totalorder %v1096_v47, 2 }
 0x3b1   :  { %vm7168_vm4 = vcmp.le.f32.partialorder %v8119_v39, 0.7853982  ;;  %vm1097_vm1 = vcmp.lt.s32.totalorder %v1096_v47, 2  ;;  %vm1098_vm11 = vcmp.eq.s32.totalorder %v1096_v47, 0  ;;  %v1103_v0 = vsel %vm1101_vm5, %v1102_v1, %v4285_v38  ;;  %v8129_v39 = vld [vmem:[#allocation62_spill] sm:$0xff] }
 0x3b2   :  { %v2754_v42 = vsel %vm7168_vm4, %v8118_v32, %v8123_v33  ;;  %vm8124_vm7 = vcmp.lt.s32.totalorder %v8118_v32, 0  ;;  %v1100_v20 = vsel %vm1098_vm11, %v4283_v8, %v1099_v31  ;;  %vm2866_vm2 = vcmp.eq.s32.totalorder %v2864_v52, 0  ;;  %v8128_v8 = vld [vmem:[#allocation49_spill] sm:$0xff] }
 0x3b3   :  { %v2753_v12 = vsel %vm8124_vm7, %v2752_v30, %v8122_v13  ;;  %4290 = vcosq.f32 %v2754_v42  ;;  %v4287_v62 = vpop.eup %4286  ;;  %3751 = vadd.xlane.f32.xlu1 %v7086_v50  ;;  %v1209_v40 = vsel %vm1198_vm12, nan, %v1208_v45  ;;  %v1104_v7 = vsel %vm1097_vm1, %v1100_v20, %v1103_v0  ;;  %v8135_v0 = vld [vmem:[#allocation41_spill] sm:$0xff] }
 0x3b4   :  { %v2755_v51 = vsel %vm7168_vm4, 0, %v2753_v12  ;;  %4292 = vsinq.f32 %v2754_v42  ;;  %v4289_v47 = vpop.eup %4288  ;;  %v1105_v3 = vsel %vm1094_vm10, nan, %v1104_v7  ;;  %v2870_v41 = vxor.u32 2147483648, %v4287_v62  ;;  %v8131_v42 = vld [vmem:[#allocation29_spill] sm:$0xff] }
 0x3b5   :  { %v2759_v24 = vadd.s32 3, %v2755_v51  ;;  %v8125_v60 = vand.u32 2147483647, %v5254_v16  ;;  %v984_v36 = vsub.s32 4, %v8128_v8  ;;  %v3719_v50 = vmul.f32 %v7012_v43, %v1105_v3 }
 0x3b6   :  { %v2867_v37 = vxor.u32 2147483648, %v4289_v47  ;;  %vm2869_vm9 = vcmp.eq.s32.totalorder %v2864_v52, 2  ;;  %vm8130_vm13 = vcmp.lt.s32.totalorder %v5254_v16, 0  ;;  %v3730_v1 = vmul.f32 %v7012_v43, %v2249_v53 }
 0x3b7   :  { %vm7192_vm8 = vcmp.le.f32.partialorder %v8125_v60, 0.7853982  ;;  %v2871_v22 = vsel %vm2869_vm9, %v2870_v41, %v4289_v47  ;;  %v2760_v38 = vand.u32 3, %v2759_v24  ;;  %v985_v21 = vsel %vm8130_vm13, %v984_v36, %v8128_v8  ;;  %3783 = vadd.xlane.f32.xlu1 %v7095_v26  ;;  %3757 = vadd.xlane.f32.xlu0 %v3719_v50  ;;  %v8142_v24 = vld [vmem:[#allocation51_spill] sm:$0xff]  ;;  %v8143_v60 = vld [vmem:[#allocation64_spill] sm:$0xff] }
 0x3b8   :  { %v986_v59 = vsel %vm7192_vm8, %v5254_v16, %v8129_v39  ;;  %vm2862_vm0 = vweird.f32 %v8112_v49  ;;  %vm2865_vm12 = vcmp.lt.s32.totalorder %v2864_v52, 2  ;;  %v2868_v13 = vsel %vm2866_vm2, %v4287_v62, %v2867_v37  ;;  %v8136_v49 = vld [vmem:[#allocation52_spill] sm:$0xff]  ;;  %v8138_v62 = vld [vmem:[#allocation42_spill] sm:$0xff] }
 0x3b9   :  { %4294 = vcosq.f32 %v986_v59  ;;  %v2872_v30 = vsel %vm2865_vm12, %v2868_v13, %v2871_v22  ;;  %v987_v33 = vsel %vm7192_vm8, 0, %v985_v21  ;;  %v8132_v45 = vand.u32 2147483647, %v8131_v42  ;;  %v8144_v39 = vld [vmem:[#allocation32_spill] sm:$0xff] }
 0x3ba   :  { %4296 = vsinq.f32 %v986_v59  ;;  %v3720_v26 = vmul.f32 %v7012_v43, %v1209_v40  ;;  %v991_v53 = vadd.s32 3, %v987_v33  ;;  %v880_v12 = vsub.s32 4, %v8135_v0 }
 0x3bb   :  { %vm7213_vm3 = vcmp.le.f32.partialorder %v8132_v45, 0.7853982  ;;  %v2873_v20 = vsel %vm2862_vm0, nan, %v2872_v30  ;;  %vm2758_vm10 = vweird.f32 %v8118_v32  ;;  %vm2761_vm15 = vcmp.lt.s32.totalorder %v2760_v38, 2  ;;  %3779 = vadd.xlane.f32.xlu1 %v3730_v1  ;;  %v8149_v45 = vld [vmem:[#allocation43_spill] sm:$0xff] }
 0x3bc   :  { %v882_v52 = vsel %vm7213_vm3, %v8131_v42, %v8136_v49  ;;  %vm8137_vm6 = vcmp.lt.s32.totalorder %v8131_v42, 0  ;;  %v8139_v40 = vand.u32 2147483647, %v8138_v62  ;;  %v2648_v47 = vsub.s32 4, %v8142_v24 }
 0x3bd   :  { %4298 = vcosq.f32 %v882_v52  ;;  %v881_v51 = vsel %vm8137_vm6, %v880_v12, %v8135_v0  ;;  %v4291_v3 = vpop.eup %4290  ;;  %vm2762_vm5 = vcmp.eq.s32.totalorder %v2760_v38, 0  ;;  %vm2765_vm1 = vcmp.eq.s32.totalorder %v2760_v38, 2 }
 0x3be   :  { %4300 = vsinq.f32 %v882_v52  ;;  %vm7229_vm4 = vcmp.le.f32.partialorder %v8139_v40, 0.7853982  ;;  %v883_v41 = vsel %vm7213_vm3, 0, %v881_v51  ;;  %v4293_v8 = vpop.eup %4292  ;;  %v3736_v36 = vmul.f32 %v7012_v43, %v2873_v20  ;;  %v8150_v52 = vld [vmem:[#allocation53_spill] sm:$0xff] }
 0x3bf   :  { %v2650_v9 = vsel %vm7229_vm4, %v8138_v62, %v8143_v60  ;;  %v2766_v50 = vxor.u32 2147483648, %v4291_v3  ;;  %v992_v37 = vand.u32 3, %v991_v53  ;;  %v8145_v59 = vand.u32 2147483647, %v8144_v39  ;;  %3759 = vadd.xlane.f32.xlu1 %v3720_v26 }
 0x3c0   :  { %v2763_v21 = vxor.u32 2147483648, %v4293_v8  ;;  %v887_v1 = vadd.s32 3, %v883_v41  ;;  %vm8148_vm7 = vcmp.lt.s32.totalorder %v8138_v62, 0  ;;  %4302 = vcosq.f32 %v2650_v9 }
 0x3c1   :  { %vm7243_vm11 = vcmp.le.f32.partialorder %v8145_v59, 0.7853982  ;;  %v2649_v13 = vsel %vm8148_vm7, %v2648_v47, %v8142_v24  ;;  %v2767_v30 = vsel %vm2765_vm1, %v2766_v50, %v4293_v8  ;;  %4304 = vsinq.f32 %v2650_v9 }
 0x3c2   :  { %v2651_v33 = vsel %vm7229_vm4, 0, %v2649_v13  ;;  %v2544_v31 = vsub.s32 4, %v8149_v45  ;;  %v2764_v0 = vsel %vm2762_vm5, %v4291_v3, %v2763_v21  ;;  %v888_v12 = vand.u32 3, %v887_v1 }
 0x3c3   :  { %v4295_v53 = vpop.eup %4294  ;;  %v2655_v49 = vadd.s32 3, %v2651_v33  ;;  %v2546_v20 = vsel %vm7243_vm11, %v8144_v39, %v8150_v52  ;;  %v2768_v51 = vsel %vm2761_vm15, %v2764_v0, %v2767_v30  ;;  %vm8151_vm2 = vcmp.lt.s32.totalorder %v8144_v39, 0  ;;  %3791 = vadd.xlane.f32.xlu1 %v3736_v36  ;;  %v8155_v30 = vld [vmem:[#allocation63_spill] sm:$0xff] }
 0x3c4   :  { %v998_v26 = vxor.u32 2147483648, %v4295_v53  ;;  %v2545_v40 = vsel %vm8151_vm2, %v2544_v31, %v8149_v45  ;;  %4306 = vcosq.f32 %v2546_v20  ;;  %v4297_v7 = vpop.eup %4296  ;;  %v2769_v24 = vsel %vm2758_vm10, nan, %v2768_v51 }
 0x3c5   :  { %vm990_vm8 = vweird.f32 %v5254_v16  ;;  %vm997_vm9 = vcmp.eq.s32.totalorder %v992_v37, 2  ;;  %vm886_vm13 = vweird.f32 %v8131_v42  ;;  %v3735_v47 = vmul.f32 %v7012_v43, %v2769_v24 }
 0x3c6   :  { %vm993_vm0 = vcmp.lt.s32.totalorder %v992_v37, 2  ;;  %v995_v38 = vxor.u32 2147483648, %v4297_v7  ;;  %v999_v3 = vsel %vm997_vm9, %v998_v26, %v4297_v7  ;;  %vm994_vm12 = vcmp.eq.s32.totalorder %v992_v37, 0 }
 0x3c7   :  { %v4299_v41 = vpop.eup %4298  ;;  %vm890_vm3 = vcmp.eq.s32.totalorder %v888_v12, 0  ;;  %v2547_v60 = vsel %vm7243_vm11, 0, %v2545_v40  ;;  %4308 = vsinq.f32 %v2546_v20  ;;  %3789 = vadd.xlane.f32.xlu0 %v3735_v47  ;;  %vm893_vm10 = vcmp.eq.s32.totalorder %v888_v12, 2 }
 0x3c8   :  { %v4301_v32 = vpop.eup %4300  ;;  %v996_v9 = vsel %vm994_vm12, %v4295_v53, %v995_v38  ;;  %v894_v8 = vxor.u32 2147483648, %v4299_v41  ;;  %v2656_v50 = vand.u32 3, %v2655_v49  ;;  %v2551_v21 = vadd.s32 3, %v2547_v60 }
 0x3c9   :  { %v1000_v59 = vsel %vm993_vm0, %v996_v9, %v999_v3  ;;  %v891_v36 = vxor.u32 2147483648, %v4301_v32  ;;  %v8152_v1 = vand.u32 2147483647, %v5785_v14  ;;  %v1608_v33 = vsub.s32 4, %v8155_v30  ;;  %v8160_v9 = vld [vmem:[#allocation55_spill] sm:$0xff] }
 0x3ca   :  { %v1001_v37 = vsel %vm990_vm8, nan, %v1000_v59  ;;  %v895_v22 = vsel %vm893_vm10, %v894_v8, %v4301_v32  ;;  %v4303_v31 = vpop.eup %4302  ;;  %vm889_vm6 = vcmp.lt.s32.totalorder %v888_v12, 2  ;;  %vm2661_vm4 = vcmp.eq.s32.totalorder %v2656_v50, 2 }
 0x3cb   :  { %vm7271_vm15 = vcmp.le.f32.partialorder %v8152_v1, 0.7853982  ;;  %v3718_v53 = vmul.f32 %v7012_v43, %v1001_v37  ;;  %v892_v0 = vsel %vm890_vm3, %v4299_v41, %v891_v36  ;;  %v4305_v49 = vpop.eup %4304  ;;  %v2662_v20 = vxor.u32 2147483648, %v4303_v31  ;;  %v8156_v41 = vld [vmem:[#allocation48_spill] sm:$0xff] }
 0x3cc   :  { %v1610_v45 = vsel %vm7271_vm15, %v5785_v14, %v6301_v4  ;;  %v896_v52 = vsel %vm889_vm6, %v892_v0, %v895_v22  ;;  %v1609_v16 = vsel %vm1524_vm14, %v1608_v33, %v8155_v30  ;;  %v2659_v4 = vxor.u32 2147483648, %v4305_v49 }
 0x3cd   :  { %4310 = vcosq.f32 %v1610_v45  ;;  %3755 = vadd.xlane.f32.xlu1 %v3718_v53  ;;  %v897_v51 = vsel %vm886_vm13, nan, %v896_v52  ;;  %v2552_v26 = vand.u32 3, %v2551_v21  ;;  %vm2658_vm5 = vcmp.eq.s32.totalorder %v2656_v50, 0  ;;  %v8166_v53 = vld [vmem:[#allocation67_spill] sm:$0xff] }
 0x3ce   :  { %4312 = vsinq.f32 %v1610_v45  ;;  %v4307_v40 = vpop.eup %4306  ;;  %v3717_v12 = vmul.f32 %v7012_v43, %v897_v51  ;;  %v2663_v7 = vsel %vm2661_vm4, %v2662_v20, %v4305_v49  ;;  %v1611_v24 = vsel %vm7271_vm15, 0, %v1609_v16 }
 0x3cf   :  { %vm2657_vm1 = vcmp.lt.s32.totalorder %v2656_v50, 2  ;;  %v2660_v47 = vsel %vm2658_vm5, %v4303_v31, %v2659_v4  ;;  %v2558_v38 = vxor.u32 2147483648, %v4307_v40  ;;  %v1615_v3 = vadd.s32 3, %v1611_v24  ;;  %v8161_v50 = vld [vmem:[#allocation65_spill] sm:$0xff] }
 0x3d0   :  { %3753 = vadd.xlane.f32.xlu0 %v3717_v12  ;;  %vm2654_vm14 = vweird.f32 %v8138_v62  ;;  %v2664_v42 = vsel %vm2657_vm1, %v2660_v47, %v2663_v7  ;;  %v8157_v60 = vand.u32 2147483647, %v8156_v41  ;;  %v1504_v8 = vsub.s32 4, %v8160_v9 }
 0x3d1   :  { %v4309_v59 = vpop.eup %4308  ;;  %v2665_v36 = vsel %vm2654_vm14, nan, %v2664_v42  ;;  %vm2557_vm7 = vcmp.eq.s32.totalorder %v2552_v26, 2  ;;  %v1616_v21 = vand.u32 3, %v1615_v3  ;;  %vm1732_vm2 = vcmp.lt.s32.totalorder %v6523_v63, 0 }
 0x3d2   :  { %vm7295_vm11 = vcmp.le.f32.partialorder %v8157_v60, 0.7853982  ;;  %v3734_v62 = vmul.f32 %v7012_v43, %v2665_v36  ;;  %v2555_v13 = vxor.u32 2147483648, %v4309_v59  ;;  %v2559_v37 = vsel %vm2557_vm7, %v2558_v38, %v4309_v59  ;;  %v8168_v38 = vld [vmem:[#allocation30_spill] sm:$0xff] }
 0x3d3   :  { %v1506_v1 = vsel %vm7295_vm11, %v8156_v41, %v8161_v50  ;;  %vm8162_vm8 = vcmp.lt.s32.totalorder %v8156_v41, 0  ;;  %vm2550_vm9 = vweird.f32 %v8144_v39  ;;  %vm2553_vm13 = vcmp.lt.s32.totalorder %v2552_v26, 2  ;;  %v8173_v59 = vld [vmem:[#allocation66_spill] sm:$0xff] }
 0x3d4   :  { %v1505_v22 = vsel %vm8162_vm8, %v1504_v8, %v8160_v9  ;;  %vm2554_vm0 = vcmp.eq.s32.totalorder %v2552_v26, 0  ;;  %vm3396_vm12 = vcmp.lt.s32.totalorder %v6593_v15, 0  ;;  %3787 = vadd.xlane.f32.xlu1 %v3734_v62  ;;  %4314 = vcosq.f32 %v1506_v1  ;;  %v8172_v9 = vld [vmem:[#allocation58_spill] sm:$0xff] }
 0x3d5   :  { %v1507_v30 = vsel %vm7295_vm11, 0, %v1505_v22  ;;  %v2556_v33 = vsel %vm2554_vm0, %v4307_v40, %v2555_v13  ;;  %v8163_v45 = vand.u32 2147483647, %v5847_v48  ;;  %v3272_v0 = vsub.s32 4, %v8166_v53 }
 0x3d6   :  { %v2560_v52 = vsel %vm2553_vm13, %v2556_v33, %v2559_v37  ;;  %vm1621_vm10 = vcmp.eq.s32.totalorder %v1616_v21, 2  ;;  %4316 = vsinq.f32 %v1506_v1  ;;  %v1511_v26 = vadd.s32 3, %v1507_v30 }
 0x3d7   :  { %vm7315_vm3 = vcmp.le.f32.partialorder %v8163_v45, 0.7853982  ;;  %v4311_v49 = vpop.eup %4310  ;;  %v2561_v51 = vsel %vm2550_vm9, nan, %v2560_v52  ;;  %vm8167_vm15 = vcmp.lt.s32.totalorder %v5847_v48, 0  ;;  %vm1614_vm6 = vweird.f32 %v5785_v14 }
 0x3d8   :  { %v3274_v20 = vsel %vm7315_vm3, %v5847_v48, %v6433_v44  ;;  %v4313_v16 = vpop.eup %4312  ;;  %v1622_v4 = vxor.u32 2147483648, %v4311_v49  ;;  %v3273_v40 = vsel %vm8167_vm15, %v3272_v0, %v8166_v53  ;;  %v3733_v12 = vmul.f32 %v7012_v43, %v2561_v51 }
 0x3d9   :  { %v1619_v7 = vxor.u32 2147483648, %v4313_v16  ;;  %v3275_v24 = vsel %vm7315_vm3, 0, %v3273_v40  ;;  %4318 = vcosq.f32 %v3274_v20  ;;  %vm1617_vm4 = vcmp.lt.s32.totalorder %v1616_v21, 2 }
 0x3da   :  { %vm1618_vm5 = vcmp.eq.s32.totalorder %v1616_v21, 0  ;;  %v1623_v44 = vsel %vm1621_vm10, %v1622_v4, %v4313_v16  ;;  %3785 = vadd.xlane.f32.xlu0 %v3733_v12  ;;  %4320 = vsinq.f32 %v3274_v20  ;;  %v3279_v47 = vadd.s32 3, %v3275_v24  ;;  %v8179_v16 = vld [vmem:[#allocation59_spill] sm:$0xff] }
 0x3db   :  { %v1620_v39 = vsel %vm1618_vm5, %v4311_v49, %v1619_v7  ;;  %v8169_v3 = vand.u32 2147483647, %v8168_v38  ;;  %v1512_v32 = vand.u32 3, %v1511_v26  ;;  %v3168_v8 = vsub.s32 4, %v8172_v9  ;;  %v8180_v26 = vld [vmem:[#allocation54_spill] sm:$0xff] }
 0x3dc   :  { %v1624_v60 = vsel %vm1617_vm4, %v1620_v39, %v1623_v44  ;;  %v7349_v36 = vsel %vm1732_vm2, %v1814_v28, %v6938_v46  ;;  %v3280_v50 = vand.u32 3, %v3279_v47  ;;  %vm8174_vm14 = vcmp.lt.s32.totalorder %v8168_v38, 0  ;;  %v8185_v39 = vld [vmem:[#allocation69_spill] sm:$0xff] }
 0x3dd   :  { %vm7335_vm1 = vcmp.le.f32.partialorder %v8169_v3, 0.7853982  ;;  %v1625_v21 = vsel %vm1614_vm6, nan, %v1624_v60  ;;  %v3169_v62 = vsel %vm8174_vm14, %v3168_v8, %v8172_v9  ;;  %v1400_v13 = vsub.s32 4, %v6096_v23 }
 0x3de   :  { %v3170_v14 = vsel %vm7335_vm1, %v8168_v38, %v8173_v59  ;;  %v3724_v1 = vmul.f32 %v7012_v43, %v1625_v21  ;;  %v7361_v37 = vsel %vm3396_vm12, %v3478_v58, %v6965_v61  ;;  %vm1510_vm11 = vweird.f32 %v8156_v41  ;;  %v4315_v30 = vpop.eup %4314 }
 0x3df   :  { %4322 = vcosq.f32 %v3170_v14  ;;  %v3171_v46 = vsel %vm7335_vm1, 0, %v3169_v62  ;;  %v8175_v28 = vand.u32 2147483647, %v5863_v2  ;;  %vm1513_vm8 = vcmp.lt.s32.totalorder %v1512_v32, 2 }
 0x3e0   :  { %4324 = vsinq.f32 %v3170_v14  ;;  %3767 = vadd.xlane.f32.xlu1 %v3724_v1  ;;  %v3175_v33 = vadd.s32 3, %v3171_v46  ;;  %vm8178_vm9 = vcmp.lt.s32.totalorder %v5863_v2, 0  ;;  %v4317_v45 = vpop.eup %4316  ;;  %vm1514_vm13 = vcmp.eq.s32.totalorder %v1512_v32, 0 }
 0x3e1   :  { %vm7368_vm7 = vcmp.le.f32.partialorder %v8175_v28, 0.7853982  ;;  %v1401_v61 = vsel %vm8178_vm9, %v1400_v13, %v6096_v23  ;;  %v1518_v31 = vxor.u32 2147483648, %v4315_v30  ;;  %vm3278_vm0 = vweird.f32 %v5847_v48 }
 0x3e2   :  { %v1402_v58 = vsel %vm7368_vm7, %v5863_v2, %v6440_v10  ;;  %v1403_v53 = vsel %vm7368_vm7, 0, %v1401_v61  ;;  %v1515_v0 = vxor.u32 2147483648, %v4317_v45  ;;  %vm1517_vm3 = vcmp.eq.s32.totalorder %v1512_v32, 2 }
 0x3e3   :  { %4326 = vcosq.f32 %v1402_v58  ;;  %vm3281_vm10 = vcmp.lt.s32.totalorder %v3280_v50, 2  ;;  %v4319_v49 = vpop.eup %4318  ;;  %v1519_v23 = vsel %vm1517_vm3, %v1518_v31, %v4317_v45  ;;  %v3176_v52 = vand.u32 3, %v3175_v33  ;;  %v8189_v33 = vld [vmem:[#allocation68_spill] sm:$0xff] }
 0x3e4   :  { %4328 = vsinq.f32 %v1402_v58  ;;  %v1407_v20 = vadd.s32 3, %v1403_v53  ;;  %v1296_v51 = vsub.s32 4, %v8179_v16  ;;  %v1516_v10 = vsel %vm1514_vm13, %v4315_v30, %v1515_v0  ;;  %v4321_v7 = vpop.eup %4320 }
 0x3e5   :  { %vm3282_vm15 = vcmp.eq.s32.totalorder %v3280_v50, 0  ;;  %v3286_v4 = vxor.u32 2147483648, %v4319_v49  ;;  %vm3174_vm6 = vweird.f32 %v8168_v38  ;;  %v8181_v40 = vand.u32 2147483647, %v8180_v26 }
 0x3e6   :  { %v1520_v24 = vsel %vm1513_vm8, %v1516_v10, %v1519_v23  ;;  %vm3285_vm5 = vcmp.eq.s32.totalorder %v3280_v50, 2  ;;  %vm8184_vm1 = vcmp.lt.s32.totalorder %v8180_v26, 0  ;;  %v3283_v42 = vxor.u32 2147483648, %v4321_v7 }
 0x3e7   :  { %vm7386_vm4 = vcmp.le.f32.partialorder %v8181_v40, 0.7853982  ;;  %v1297_v44 = vsel %vm8184_vm1, %v1296_v51, %v8179_v16  ;;  %v1521_v3 = vsel %vm1510_vm11, nan, %v1520_v24  ;;  %v3287_v60 = vsel %vm3285_vm5, %v3286_v4, %v4321_v7  ;;  %v8191_v40 = vld [vmem:[#allocation57_spill] sm:$0xff] }
 0x3e8   :  { %v1298_v47 = vsel %vm7386_vm4, %v8180_v26, %v8185_v39  ;;  %v1299_v9 = vsel %vm7386_vm4, 0, %v1297_v44  ;;  %v3723_v8 = vmul.f32 %v7012_v43, %v1521_v3  ;;  %vm3177_vm14 = vcmp.lt.s32.totalorder %v3176_v52, 2  ;;  %v8195_v24 = vld [vmem:[#allocation61_spill] sm:$0xff]  ;;  %v8196_v39 = vld [vmem:[#allocation71_spill] sm:$0xff] }
 0x3e9   :  { %v4323_v32 = vpop.eup %4322  ;;  %vm3178_vm7 = vcmp.eq.s32.totalorder %v3176_v52, 0  ;;  %v1408_v59 = vand.u32 3, %v1407_v20  ;;  %v3284_v21 = vsel %vm3282_vm15, %v4319_v49, %v3283_v42  ;;  %vm3181_vm8 = vcmp.eq.s32.totalorder %v3176_v52, 2 }
 0x3ea   :  { %v4325_v14 = vpop.eup %4324  ;;  %v3182_v1 = vxor.u32 2147483648, %v4323_v32  ;;  %4330 = vcosq.f32 %v1298_v47  ;;  %3765 = vadd.xlane.f32.xlu0 %v3723_v8  ;;  %v3288_v41 = vsel %vm3281_vm10, %v3284_v21, %v3287_v60  ;;  %v1303_v13 = vadd.s32 3, %v1299_v9 }
 0x3eb   :  { %v3179_v62 = vxor.u32 2147483648, %v4325_v14  ;;  %4332 = vsinq.f32 %v1298_v47  ;;  %v3289_v46 = vsel %vm3278_vm0, nan, %v3288_v41  ;;  %v8186_v22 = vand.u32 2147483647, %v6010_v35 }
 0x3ec   :  { %v3183_v28 = vsel %vm3181_vm8, %v3182_v1, %v4325_v14  ;;  %v3064_v61 = vsub.s32 4, %v8189_v33  ;;  %v3740_v45 = vmul.f32 %v7012_v43, %v3289_v46  ;;  %vm1409_vm9 = vcmp.lt.s32.totalorder %v1408_v59, 2 }
 0x3ed   :  { %vm7409_vm11 = vcmp.le.f32.partialorder %v8186_v22, 0.7853982  ;;  %v4327_v58 = vpop.eup %4326  ;;  %v3180_v50 = vsel %vm3178_vm7, %v4323_v32, %v3179_v62  ;;  %vm1410_vm13 = vcmp.eq.s32.totalorder %v1408_v59, 0  ;;  %vm1413_vm0 = vcmp.eq.s32.totalorder %v1408_v59, 2 }
 0x3ee   :  { %v3066_v48 = vsel %vm7409_vm11, %v6010_v35, %v6515_v29  ;;  %v4329_v31 = vpop.eup %4328  ;;  %v3184_v53 = vsel %vm3177_vm14, %v3180_v50, %v3183_v28  ;;  %v1414_v0 = vxor.u32 2147483648, %v4327_v58  ;;  %3799 = vadd.xlane.f32.xlu1 %v3740_v45  ;;  %v1304_v20 = vand.u32 3, %v1303_v13 }
 0x3ef   :  { %v3185_v49 = vsel %vm3174_vm6, nan, %v3184_v53  ;;  %v1411_v23 = vxor.u32 2147483648, %v4329_v31  ;;  %vm8190_vm3 = vcmp.lt.s32.totalorder %v6010_v35, 0  ;;  %4334 = vcosq.f32 %v3066_v48 }
 0x3f0   :  { %v3065_v16 = vsel %vm8190_vm3, %v3064_v61, %v8189_v33  ;;  %v3739_v51 = vmul.f32 %v7012_v43, %v3185_v49  ;;  %v1415_v10 = vsel %vm1413_vm0, %v1414_v0, %v4329_v31  ;;  %4336 = vsinq.f32 %v3066_v48  ;;  %v8204_v31 = vld [vmem:[#allocation76_spill] sm:$0xff] }
 0x3f1   :  { %v3067_v29 = vsel %vm7409_vm11, 0, %v3065_v16  ;;  %v1412_v52 = vsel %vm1410_vm13, %v4327_v58, %v1411_v23  ;;  %v8192_v12 = vand.u32 2147483647, %v8191_v40  ;;  %vm1406_vm15 = vweird.f32 %v5863_v2 }
 0x3f2   :  { %v3071_v4 = vadd.s32 3, %v3067_v29  ;;  %3797 = vadd.xlane.f32.xlu0 %v3739_v51  ;;  %v1416_v7 = vsel %vm1409_vm9, %v1412_v52, %v1415_v10  ;;  %v2960_v44 = vsub.s32 4, %v8195_v24  ;;  %vm1302_vm6 = vweird.f32 %v8180_v26 }
 0x3f3   :  { %vm7431_vm10 = vcmp.le.f32.partialorder %v8192_v12, 0.7853982  ;;  %v1417_v3 = vsel %vm1406_vm15, nan, %v1416_v7  ;;  %vm1306_vm4 = vcmp.eq.s32.totalorder %v1304_v20, 0  ;;  %vm8197_vm5 = vcmp.lt.s32.totalorder %v8191_v40, 0 }
 0x3f4   :  { %v2962_v47 = vsel %vm7431_vm10, %v8191_v40, %v8196_v39  ;;  %v4331_v42 = vpop.eup %4330  ;;  %v3722_v60 = vmul.f32 %v7012_v43, %v1417_v3  ;;  %v2961_v2 = vsel %vm8197_vm5, %v2960_v44, %v8195_v24  ;;  %v2024_v9 = vsub.s32 4, %v6549_v55 }
 0x3f5   :  { %4338 = vcosq.f32 %v2962_v47  ;;  %v4333_v32 = vpop.eup %4332  ;;  %vm1309_vm1 = vcmp.eq.s32.totalorder %v1304_v20, 2  ;;  %v1310_v8 = vxor.u32 2147483648, %v4331_v42  ;;  %v3072_v59 = vand.u32 3, %v3071_v4 }
 0x3f6   :  { %4340 = vsinq.f32 %v2962_v47  ;;  %v8198_v14 = vand.u32 2147483647, %v6365_v57  ;;  %3763 = vadd.xlane.f32.xlu1 %v3722_v60  ;;  %v1307_v21 = vxor.u32 2147483648, %v4333_v32  ;;  %v2963_v1 = vsel %vm7431_vm10, 0, %v2961_v2 }
 0x3f7   :  { %vm8199_vm7 = vcmp.lt.s32.totalorder %v6365_v57, 0  ;;  %v1311_v13 = vsel %vm1309_vm1, %v1310_v8, %v4333_v32  ;;  %v2967_v46 = vadd.s32 3, %v2963_v1  ;;  %vm1305_vm8 = vcmp.lt.s32.totalorder %v1304_v20, 2 }
 0x3f8   :  { %vm1939_vm14 = vcmp.le.f32.partialorder %v8198_v14, 0.7853982  ;;  %v2025_v41 = vsel %vm8199_vm7, %v2024_v9, %v6549_v55  ;;  %v1308_v22 = vsel %vm1306_vm4, %v4331_v42, %v1307_v21  ;;  %v8200_v58 = vand.u32 2147483647, %v6071_v18  ;;  %v8203_v55 = vld [vmem:[#allocation70_spill] sm:$0xff] }
 0x3f9   :  { %v2026_v62 = vsel %vm1939_vm14, %v6365_v57, %v6871_v27  ;;  %v2027_v28 = vsel %vm1939_vm14, 0, %v2025_v41  ;;  %v1312_v33 = vsel %vm1305_vm8, %v1308_v22, %v1311_v13  ;;  %v2968_v61 = vand.u32 3, %v2967_v46  ;;  %v4335_v27 = vpop.eup %4334  ;;  %v8212_v22 = vld [vmem:[#allocation74_spill] sm:$0xff] }
 0x3fa   :  { %4342 = vcosq.f32 %v2026_v62  ;;  %v2031_v30 = vadd.s32 3, %v2027_v28  ;;  %vm7460_vm11 = vcmp.le.f32.partialorder %v8200_v58, 0.7853982  ;;  %v1920_v50 = vsub.s32 4, %v8203_v55  ;;  %v4337_v0 = vpop.eup %4336 }
 0x3fb   :  { %4344 = vsinq.f32 %v2026_v62  ;;  %v1313_v48 = vsel %vm1302_vm6, nan, %v1312_v33  ;;  %vm3070_vm9 = vweird.f32 %v6010_v35  ;;  %vm2966_vm13 = vweird.f32 %v8191_v40  ;;  %v8213_v33 = vld [vmem:[#allocation73_spill] sm:$0xff] }
 0x3fc   :  { %v1922_v53 = vsel %vm7460_vm11, %v6071_v18, %v8204_v31  ;;  %v3721_v49 = vmul.f32 %v7012_v43, %v1313_v48  ;;  %vm3073_vm0 = vcmp.lt.s32.totalorder %v3072_v59, 2  ;;  %vm3074_vm3 = vcmp.eq.s32.totalorder %v3072_v59, 0 }
 0x3fd   :  { %v3078_v23 = vxor.u32 2147483648, %v4335_v27  ;;  %v3075_v20 = vxor.u32 2147483648, %v4337_v0  ;;  %vm3077_vm10 = vcmp.eq.s32.totalorder %v3072_v59, 2  ;;  %vm2970_vm15 = vcmp.eq.s32.totalorder %v2968_v61, 0 }
 0x3fe   :  { %v2032_v26 = vand.u32 3, %v2031_v30  ;;  %3761 = vadd.xlane.f32.xlu0 %v3721_v49  ;;  %vm2973_vm6 = vcmp.eq.s32.totalorder %v2968_v61, 2  ;;  %vm8205_vm4 = vcmp.lt.s32.totalorder %v6071_v18, 0  ;;  %4346 = vcosq.f32 %v1922_v53 }
 0x3ff   :  { %v4339_v16 = vpop.eup %4338  ;;  %v3079_v51 = vsel %vm3077_vm10, %v3078_v23, %v4337_v0  ;;  %v1921_v10 = vsel %vm8205_vm4, %v1920_v50, %v8203_v55  ;;  %v3076_v52 = vsel %vm3074_vm3, %v4335_v27, %v3075_v20  ;;  %vm2030_vm5 = vweird.f32 %v6365_v57 }
 0x400   :  { %v4341_v29 = vpop.eup %4340  ;;  %v2974_v4 = vxor.u32 2147483648, %v4339_v16  ;;  %v1923_v12 = vsel %vm7460_vm11, 0, %v1921_v10  ;;  %4348 = vsinq.f32 %v1922_v53  ;;  %v3080_v38 = vsel %vm3073_vm0, %v3076_v52, %v3079_v51 }
 0x401   :  { %v2971_v7 = vxor.u32 2147483648, %v4341_v29  ;;  %v1927_v24 = vadd.s32 3, %v1923_v12  ;;  %v8206_v44 = vand.u32 2147483647, %v6523_v63  ;;  %v3081_v47 = vsel %vm3070_vm9, nan, %v3080_v38 }
 0x402   :  { %v2975_v3 = vsel %vm2973_vm6, %v2974_v4, %v4341_v29  ;;  %v1816_v42 = vsub.s32 4, %v6688_v54  ;;  %v3738_v9 = vmul.f32 %v7012_v43, %v3081_v47  ;;  %vm2969_vm14 = vcmp.lt.s32.totalorder %v2968_v61, 2  ;;  %v7504_v43 = vld [vmem:[%s7748_s3] ss:$0 sm:$0xff] }
 0x403   :  { %vm7483_vm1 = vcmp.le.f32.partialorder %v8206_v44, 0.7853982  ;;  %v2972_v32 = vsel %vm2970_vm15, %v4339_v16, %v2971_v7  ;;  %vm2037_vm7 = vcmp.eq.s32.totalorder %v2032_v26, 2  ;;  %v1928_v1 = vand.u32 3, %v1927_v24 }
 0x404   :  { %v1818_v60 = vsel %vm7483_vm1, %v6523_v63, %v7349_v36  ;;  %v4343_v2 = vpop.eup %4342  ;;  %v2976_v59 = vsel %vm2969_vm14, %v2972_v32, %v2975_v3  ;;  %v1817_v35 = vsel %vm1732_vm2, %v1816_v42, %v6688_v54  ;;  %3795 = vadd.xlane.f32.xlu1 %v3738_v9  ;;  %vm2034_vm8 = vcmp.eq.s32.totalorder %v2032_v26, 0 }
 0x405   :  { %4350 = vcosq.f32 %v1818_v60  ;;  %v4345_v8 = vpop.eup %4344  ;;  %v2038_v14 = vxor.u32 2147483648, %v4343_v2  ;;  %v2977_v21 = vsel %vm2966_vm13, nan, %v2976_v59  ;;  %v1819_v54 = vsel %vm7483_vm1, 0, %v1817_v35 }
 0x406   :  { %4352 = vsinq.f32 %v1818_v60  ;;  %v2035_v36 = vxor.u32 2147483648, %v4345_v8  ;;  %v3737_v41 = vmul.f32 %v7504_v43, %v2977_v21  ;;  %vm2033_vm2 = vcmp.lt.s32.totalorder %v2032_v26, 2 }
 0x407   :  { %v2039_v62 = vsel %vm2037_vm7, %v2038_v14, %v4345_v8  ;;  %v1823_v46 = vadd.s32 3, %v1819_v54  ;;  %v8209_v40 = vand.u32 2147483647, %v6200_v6  ;;  %vm3604_vm9 = vcmp.lt.s32.totalorder %v8212_v22, 0 }
 0x408   :  { %v2036_v13 = vsel %vm2034_vm8, %v4343_v2, %v2035_v36  ;;  %3793 = vadd.xlane.f32.xlu0 %v3737_v41  ;;  %vm1926_vm13 = vweird.f32 %v6071_v18  ;;  %v1712_v61 = vsub.s32 4, %v8213_v33  ;;  %v4347_v45 = vpop.eup %4346  ;;  %vm1929_vm0 = vcmp.lt.s32.totalorder %v1928_v1, 2  ;;  %v8221_v2 = vld [vmem:[#allocation75_spill] sm:$0xff] }
 0x409   :  { %vm7511_vm11 = vcmp.le.f32.partialorder %v8209_v40, 0.7853982  ;;  %v2040_v30 = vsel %vm2033_vm2, %v2036_v13, %v2039_v62  ;;  %v1824_v50 = vand.u32 3, %v1823_v46  ;;  %v1934_v31 = vxor.u32 2147483648, %v4347_v45  ;;  %v8226_v62 = vld [vmem:[#allocation77_spill] sm:$0xff] }
 0x40a   :  { %v1714_v58 = vsel %vm7511_vm11, %v6200_v6, %v6782_v25  ;;  %v2041_v55 = vsel %vm2030_vm5, nan, %v2040_v30  ;;  %v4349_v27 = vpop.eup %4348  ;;  %vm8214_vm3 = vcmp.lt.s32.totalorder %v6200_v6, 0  ;;  %vm1930_vm10 = vcmp.eq.s32.totalorder %v1928_v1, 0 }
 0x40b   :  { %4354 = vcosq.f32 %v1714_v58  ;;  %v3728_v48 = vmul.f32 %v7504_v43, %v2041_v55  ;;  %v1713_v53 = vsel %vm8214_vm3, %v1712_v61, %v8213_v33  ;;  %v1931_v0 = vxor.u32 2147483648, %v4349_v27 }
 0x40c   :  { %4356 = vsinq.f32 %v1714_v58  ;;  %vm1933_vm15 = vcmp.eq.s32.totalorder %v1928_v1, 2  ;;  %v8215_v25 = vand.u32 2147483647, %v6593_v15  ;;  %v1715_v23 = vsel %vm7511_vm11, 0, %v1713_v53 }
 0x40d   :  { %3775 = vadd.xlane.f32.xlu1 %v3728_v48  ;;  %v1935_v49 = vsel %vm1933_vm15, %v1934_v31, %v4349_v27  ;;  %v3480_v20 = vsub.s32 4, %v6768_v17  ;;  %v1932_v51 = vsel %vm1930_vm10, %v4347_v45, %v1931_v0  ;;  %vm1829_vm4 = vcmp.eq.s32.totalorder %v1824_v50, 2 }
 0x40e   :  { %vm7530_vm6 = vcmp.le.f32.partialorder %v8215_v25, 0.7853982  ;;  %v1719_v10 = vadd.s32 3, %v1715_v23  ;;  %v1936_v52 = vsel %vm1929_vm0, %v1932_v51, %v1935_v49  ;;  %vm1826_vm5 = vcmp.eq.s32.totalorder %v1824_v50, 0  ;;  %v8230_v49 = vld [vmem:[#allocation72_spill] sm:$0xff] }
 0x40f   :  { %v3482_v26 = vsel %vm7530_vm6, %v6593_v15, %v7361_v37  ;;  %v4351_v16 = vpop.eup %4350  ;;  %v3481_v12 = vsel %vm3396_vm12, %v3480_v20, %v6768_v17  ;;  %v1937_v38 = vsel %vm1926_vm13, nan, %v1936_v52  ;;  %v3687_v17 = vsel %vm3604_vm9, %v3686_v5, %v6836_v34  ;;  %v8231_v20 = vld [vmem:[#allocation5_spill] sm:$0xff] }
 0x410   :  { %4358 = vcosq.f32 %v3482_v26  ;;  %v4353_v29 = vpop.eup %4352  ;;  %v1830_v4 = vxor.u32 2147483648, %v4351_v16  ;;  %v1720_v24 = vand.u32 3, %v1719_v10  ;;  %v3483_v37 = vsel %vm7530_vm6, 0, %v3481_v12 }
 0x411   :  { %4360 = vsinq.f32 %v3482_v26  ;;  %v1827_v7 = vxor.u32 2147483648, %v4353_v29  ;;  %v3727_v44 = vmul.f32 %v7504_v43, %v1937_v38  ;;  %v3487_v47 = vadd.s32 3, %v3483_v37 }
 0x412   :  { %v1831_v39 = vsel %vm1829_vm4, %v1830_v4, %v4353_v29  ;;  %vm1825_vm12 = vcmp.lt.s32.totalorder %v1824_v50, 2  ;;  %v8218_v18 = vand.u32 2147483647, %v6242_v11  ;;  %vm1822_vm14 = vweird.f32 %v6523_v63 }
 0x413   :  { %v1828_v3 = vsel %vm1826_vm5, %v4351_v16, %v1827_v7  ;;  %3773 = vadd.xlane.f32.xlu0 %v3727_v44  ;;  %v3376_v9 = vsub.s32 4, %v8221_v2  ;;  %vm1718_vm7 = vweird.f32 %v6200_v6  ;;  %vm1722_vm8 = vcmp.eq.s32.totalorder %v1720_v24, 0 }
 0x414   :  { %vm7557_vm1 = vcmp.le.f32.partialorder %v8218_v18, 0.7853982  ;;  %v1832_v60 = vsel %vm1825_vm12, %v1828_v3, %v1831_v39  ;;  %vm1725_vm2 = vcmp.eq.s32.totalorder %v1720_v24, 2  ;;  %v3488_v63 = vand.u32 3, %v3487_v47 }
 0x415   :  { %v3378_v32 = vsel %vm7557_vm1, %v6242_v11, %v6812_v19  ;;  %v4355_v34 = vpop.eup %4354  ;;  %v1833_v5 = vsel %vm1822_vm14, nan, %v1832_v60  ;;  %vm8222_vm11 = vcmp.lt.s32.totalorder %v6242_v11, 0  ;;  %v8223_v19 = vand.u32 2147483647, %v8212_v22 }
 0x416   :  { %4362 = vcosq.f32 %v3378_v32  ;;  %v4357_v8 = vpop.eup %4356  ;;  %v3726_v59 = vmul.f32 %v7504_v43, %v1833_v5  ;;  %v1726_v14 = vxor.u32 2147483648, %v4355_v34  ;;  %v3377_v21 = vsel %vm8222_vm11, %v3376_v9, %v8221_v2 }
 0x417   :  { %v1723_v35 = vxor.u32 2147483648, %v4357_v8  ;;  %4364 = vsinq.f32 %v3378_v32  ;;  %vm7574_vm13 = vcmp.le.f32.partialorder %v8223_v19, 0.7853982  ;;  %v3379_v41 = vsel %vm7557_vm1, 0, %v3377_v21 }
 0x418   :  { %3771 = vadd.xlane.f32.xlu1 %v3726_v59  ;;  %v1727_v1 = vsel %vm1725_vm2, %v1726_v14, %v4357_v8  ;;  %v3688_v54 = vsub.s32 4, %v8226_v62  ;;  %v3690_v13 = vsel %vm7574_vm13, %v8212_v22, %v3687_v17  ;;  %vm1721_vm0 = vcmp.lt.s32.totalorder %v1720_v24, 2 }
 0x419   :  { %v1724_v40 = vsel %vm1722_vm8, %v4355_v34, %v1723_v35  ;;  %v3383_v28 = vadd.s32 3, %v3379_v41  ;;  %4366 = vcosq.f32 %v3690_v13  ;;  %vm3493_vm3 = vcmp.eq.s32.totalorder %v3488_v63, 2 }
 0x41a   :  { %v4359_v46 = vpop.eup %4358  ;;  %v1728_v33 = vsel %vm1721_vm0, %v1724_v40, %v1727_v1  ;;  %v3689_v58 = vsel %vm3604_vm9, %v3688_v54, %v8226_v62  ;;  %4368 = vsinq.f32 %v3690_v13  ;;  %vm3489_vm10 = vcmp.lt.s32.totalorder %v3488_v63, 2 }
 0x41b   :  { %v4361_v30 = vpop.eup %4360  ;;  %v3494_v61 = vxor.u32 2147483648, %v4359_v46  ;;  %v1729_v45 = vsel %vm1718_vm7, nan, %v1728_v33  ;;  %v3691_v50 = vsel %vm7574_vm13, 0, %v3689_v58  ;;  %vm3490_vm15 = vcmp.eq.s32.totalorder %v3488_v63, 0 }
 0x41c   :  { %v3491_v55 = vxor.u32 2147483648, %v4361_v30  ;;  %v3725_v27 = vmul.f32 %v7504_v43, %v1729_v45  ;;  %v3384_v53 = vand.u32 3, %v3383_v28  ;;  %v3695_v0 = vadd.s32 3, %v3691_v50 }
 0x41d   :  { %v3495_v48 = vsel %vm3493_vm3, %v3494_v61, %v4361_v30  ;;  %v8227_v25 = vand.u32 2147483647, %v6171_v56  ;;  %vm3486_vm6 = vweird.f32 %v6593_v15  ;;  %v3584_v23 = vsub.s32 4, %v8230_v49 }
 0x41e   :  { %v3492_v31 = vsel %vm3490_vm15, %v4359_v46, %v3491_v55  ;;  %3769 = vadd.xlane.f32.xlu0 %v3725_v27  ;;  %vm3389_vm4 = vcmp.eq.s32.totalorder %v3384_v53, 2  ;;  %v3696_v4 = vand.u32 3, %v3695_v0  ;;  %vm8232_vm5 = vcmp.lt.s32.totalorder %v6171_v56, 0 }
 0x41f   :  { %vm7595_vm9 = vcmp.le.f32.partialorder %v8227_v25, 0.7853982  ;;  %v3496_v6 = vsel %vm3489_vm10, %v3492_v31, %v3495_v48  ;;  %v3585_v15 = vsel %vm8232_vm5, %v3584_v23, %v8230_v49  ;;  %vm3386_vm12 = vcmp.eq.s32.totalorder %v3384_v53, 0 }
 0x420   :  { %v3586_v26 = vsel %vm7595_vm9, %v6171_v56, %v8231_v20  ;;  %v4363_v16 = vpop.eup %4362  ;;  %v3497_v51 = vsel %vm3486_vm6, nan, %v3496_v6  ;;  %v3587_v7 = vsel %vm7595_vm9, 0, %v3585_v15  ;;  %vm3385_vm1 = vcmp.lt.s32.totalorder %v3384_v53, 2 }
 0x421   :  { %4370 = vcosq.f32 %v3586_v26  ;;  %v3742_v10 = vmul.f32 %v7504_v43, %v3497_v51  ;;  %v3390_v29 = vxor.u32 2147483648, %v4363_v16  ;;  %v4365_v52 = vpop.eup %4364  ;;  %v3591_v37 = vadd.s32 3, %v3587_v7 }
 0x422   :  { %4372 = vsinq.f32 %v3586_v26  ;;  %v3387_v12 = vxor.u32 2147483648, %v4365_v52  ;;  %vm3382_vm14 = vweird.f32 %v6242_v11  ;;  %vm3701_vm7 = vcmp.eq.s32.totalorder %v3696_v4, 2 }
 0x423   :  { %3803 = vadd.xlane.f32.xlu1 %v3742_v10  ;;  %v3391_v38 = vsel %vm3389_vm4, %v3390_v29, %v4365_v52  ;;  %v4367_v24 = vpop.eup %4366  ;;  %vm3698_vm8 = vcmp.eq.s32.totalorder %v3696_v4, 0  ;;  %vm3697_vm2 = vcmp.lt.s32.totalorder %v3696_v4, 2  ;;  %v3592_v9 = vand.u32 3, %v3591_v37 }
 0x424   :  { %v4369_v44 = vpop.eup %4368  ;;  %v3388_v39 = vsel %vm3386_vm12, %v4363_v16, %v3387_v12  ;;  %v3702_v47 = vxor.u32 2147483648, %v4367_v24  ;;  %vm3694_vm11 = vweird.f32 %v8212_v22  ;;  %vm3590_vm10 = vweird.f32 %v6171_v56 }
 0x425   :  { %v3392_v17 = vsel %vm3385_vm1, %v3388_v39, %v3391_v38  ;;  %v3699_v3 = vxor.u32 2147483648, %v4369_v44  ;;  %vm3597_vm13 = vcmp.eq.s32.totalorder %v3592_v9, 2  ;;  %vm3594_vm0 = vcmp.eq.s32.totalorder %v3592_v9, 0  ;;  %v3782_v36 = vpop.xlane.xlu0 %3781 }
 0x426   :  { %v3393_v18 = vsel %vm3382_vm14, nan, %v3392_v17  ;;  %v3703_v42 = vsel %vm3701_vm7, %v3702_v47, %v4369_v44  ;;  %vm3593_vm3 = vcmp.lt.s32.totalorder %v3592_v9, 2  ;;  %vm3809_vm15 = vcmask 7168  }
 0x427   :  { %v3741_v60 = vmul.f32 %v7504_v43, %v3393_v18  ;;  %v3700_v2 = vsel %vm3698_vm8, %v4367_v24, %v3699_v3  ;;  %3828 = vst.msk [vmem:[%s7749_s4 + $0x90] sm:$0xff] %vm3809_vm15, %v3782_v36 }
 0x428   :  { %v3704_v32 = vsel %vm3697_vm2, %v3700_v2, %v3703_v42 }
 0x429   :  { %3801 = vadd.xlane.f32.xlu0 %v3741_v60  ;;  %v3705_v5 = vsel %vm3694_vm11, nan, %v3704_v32  ;;  %v3746_v1 = vpop.xlane.xlu0 %3745 }
 0x42a   :  { %v3744_v8 = vmul.f32 %v7504_v43, %v3705_v5  ;;  %3810 = vst.msk [vmem:[%s7749_s4] sm:$0xff] %vm3809_vm15, %v3746_v1 }
 0x42b   :  { %v4371_v34 = vpop.eup %4370 }
 0x42c   :  { %v3598_v11 = vxor.u32 2147483648, %v4371_v34  ;;  %v4373_v59 = vpop.eup %4372  ;;  %3807 = vadd.xlane.f32.xlu1 %v3744_v8 }
 0x42d   :  { %v3595_v14 = vxor.u32 2147483648, %v4373_v59 }
 0x42e   :  { %v3599_v63 = vsel %vm3597_vm13, %v3598_v11, %v4373_v59 }
 0x42f   :  { %v3596_v35 = vsel %vm3594_vm0, %v4371_v34, %v3595_v14  ;;  %v3778_v41 = vpop.xlane.xlu0 %3777 }
 0x430   :  { %v3600_v21 = vsel %vm3593_vm3, %v3596_v35, %v3599_v63  ;;  %3826 = vst.msk [vmem:[%s7749_s4 + $0x80] sm:$0xff] %vm3809_vm15, %v3778_v41 }
 0x431   :  { %v3601_v19 = vsel %vm3590_vm10, nan, %v3600_v21 }
 0x432   :  { %v3743_v22 = vmul.f32 %v7504_v43, %v3601_v19 }
 0x434   :  { %3805 = vadd.xlane.f32.xlu0 %v3743_v22 }
 0x43c   :  { %v3750_v56 = vpop.xlane.xlu1 %3749 }
 0x43d   :  { %3812 = vst.msk [vmem:[%s7749_s4 + $0x10] sm:$0xff] %vm3809_vm15, %v3750_v56  ;;  %v3748_v43 = vpop.xlane.xlu0 %3747 }
 0x43e   :  { %3811 = vst.msk [vmem:[%s7749_s4 + $0x8] sm:$0xff] %vm3809_vm15, %v3748_v43 }
 0x440   :  { %v3752_v62 = vpop.xlane.xlu1 %3751 }
 0x441   :  { %3813 = vst.msk [vmem:[%s7749_s4 + $0x18] sm:$0xff] %vm3809_vm15, %v3752_v62 }
 0x444   :  { %v3784_v54 = vpop.xlane.xlu1 %3783  ;;  %v3758_v13 = vpop.xlane.xlu0 %3757 }
 0x445   :  { %3829 = vst.msk [vmem:[%s7749_s4 + $0x98] sm:$0xff] %vm3809_vm15, %v3784_v54  ;;  %3816 = vst.msk [vmem:[%s7749_s4 + $0x30] sm:$0xff] %vm3809_vm15, %v3758_v13 }
 0x448   :  { %v3780_v46 = vpop.xlane.xlu1 %3779 }
 0x449   :  { %3827 = vst.msk [vmem:[%s7749_s4 + $0x88] sm:$0xff] %vm3809_vm15, %v3780_v46 }
 0x44c   :  { %v3760_v40 = vpop.xlane.xlu1 %3759 }
 0x44d   :  { %3817 = vst.msk [vmem:[%s7749_s4 + $0x38] sm:$0xff] %vm3809_vm15, %v3760_v40 }
 0x450   :  { %v3792_v28 = vpop.xlane.xlu1 %3791 }
 0x451   :  { %3833 = vst.msk [vmem:[%s7749_s4 + $0xb8] sm:$0xff] %vm3809_vm15, %v3792_v28 }
 0x454   :  { %v3790_v30 = vpop.xlane.xlu0 %3789 }
 0x455   :  { %3832 = vst.msk [vmem:[%s7749_s4 + $0xb0] sm:$0xff] %vm3809_vm15, %v3790_v30 }
 0x45a   :  { %v3756_v33 = vpop.xlane.xlu1 %3755 }
 0x45b   :  { %3815 = vst.msk [vmem:[%s7749_s4 + $0x28] sm:$0xff] %vm3809_vm15, %v3756_v33 }
 0x45d   :  { %v3754_v61 = vpop.xlane.xlu0 %3753 }
 0x45e   :  { %3814 = vst.msk [vmem:[%s7749_s4 + $0x20] sm:$0xff] %vm3809_vm15, %v3754_v61 }
 0x461   :  { %v3788_v58 = vpop.xlane.xlu1 %3787 }
 0x462   :  { %3831 = vst.msk [vmem:[%s7749_s4 + $0xa8] sm:$0xff] %vm3809_vm15, %v3788_v58 }
 0x467   :  { %v3786_v45 = vpop.xlane.xlu0 %3785 }
 0x468   :  { %3830 = vst.msk [vmem:[%s7749_s4 + $0xa0] sm:$0xff] %vm3809_vm15, %v3786_v45 }
 0x46d   :  { %v3768_v55 = vpop.xlane.xlu1 %3767 }
 0x46e   :  { %3821 = vst.msk [vmem:[%s7749_s4 + $0x58] sm:$0xff] %vm3809_vm15, %v3768_v55 }
 0x477   :  { %v3766_v50 = vpop.xlane.xlu0 %3765 }
 0x478   :  { %3820 = vst.msk [vmem:[%s7749_s4 + $0x50] sm:$0xff] %vm3809_vm15, %v3766_v50 }
 0x47b   :  { %v3800_v27 = vpop.xlane.xlu1 %3799 }
 0x47c   :  { %3837 = vst.msk [vmem:[%s7749_s4 + $0xd8] sm:$0xff] %vm3809_vm15, %v3800_v27 }
 0x47f   :  { %v3798_v48 = vpop.xlane.xlu0 %3797 }
 0x480   :  { %3836 = vst.msk [vmem:[%s7749_s4 + $0xd0] sm:$0xff] %vm3809_vm15, %v3798_v48 }
 0x483   :  { %v3764_v31 = vpop.xlane.xlu1 %3763 }
 0x484   :  { %3819 = vst.msk [vmem:[%s7749_s4 + $0x48] sm:$0xff] %vm3809_vm15, %v3764_v31 }
 0x48b   :  { %v3762_v53 = vpop.xlane.xlu0 %3761 }
 0x48c   :  { %3818 = vst.msk [vmem:[%s7749_s4 + $0x40] sm:$0xff] %vm3809_vm15, %v3762_v53 }
 0x491   :  { %v3796_v0 = vpop.xlane.xlu1 %3795 }
 0x492   :  { %3835 = vst.msk [vmem:[%s7749_s4 + $0xc8] sm:$0xff] %vm3809_vm15, %v3796_v0 }
 0x495   :  { %v3794_v25 = vpop.xlane.xlu0 %3793 }
 0x496   :  { %3834 = vst.msk [vmem:[%s7749_s4 + $0xc0] sm:$0xff] %vm3809_vm15, %v3794_v25 }
 0x49a   :  { %v3776_v57 = vpop.xlane.xlu1 %3775 }
 0x49b   :  { %3825 = vst.msk [vmem:[%s7749_s4 + $0x78] sm:$0xff] %vm3809_vm15, %v3776_v57 }
 0x4a0   :  { %v3774_v6 = vpop.xlane.xlu0 %3773 }
 0x4a1   :  { %3824 = vst.msk [vmem:[%s7749_s4 + $0x70] sm:$0xff] %vm3809_vm15, %v3774_v6 }
 0x4a5   :  { %v3772_v49 = vpop.xlane.xlu1 %3771 }
 0x4a6   :  { %3823 = vst.msk [vmem:[%s7749_s4 + $0x68] sm:$0xff] %vm3809_vm15, %v3772_v49 }
 0x4ab   :  { %v3770_v23 = vpop.xlane.xlu0 %3769 }
 0x4ac   :  { %3822 = vst.msk [vmem:[%s7749_s4 + $0x60] sm:$0xff] %vm3809_vm15, %v3770_v23 }
 0x4b0   :  { %v3804_v20 = vpop.xlane.xlu1 %3803 }
 0x4b1   :  { %3839 = vst.msk [vmem:[%s7749_s4 + $0xe8] sm:$0xff] %vm3809_vm15, %v3804_v20 }
 0x4b6   :  { %v3802_v26 = vpop.xlane.xlu0 %3801 }
 0x4b7   :  { %3838 = vst.msk [vmem:[%s7749_s4 + $0xe0] sm:$0xff] %vm3809_vm15, %v3802_v26 }
 0x4b9   :  { %v3808_v16 = vpop.xlane.xlu1 %3807 }
 0x4ba   :  { %3841 = vst.msk [vmem:[%s7749_s4 + $0xf8] sm:$0xff] %vm3809_vm15, %v3808_v16 }
 0x4c1   :  { %v3806_v51 = vpop.xlane.xlu0 %3805 }
 0x4c2   :  { %3840 = vst.msk [vmem:[%s7749_s4 + $0xf0] sm:$0xff] %vm3809_vm15, %v3806_v51 }

</bundles_post_ra>
